<compile_context>
chip_gen: v5e
topology: v5e:2x2
jax: 0.10.0
libtpu: 0.0.40
codegen_flags: <defaults>
</compile_context>

<pallas_src>
import jax
import jax.numpy as jnp
from jax.experimental import pallas as pl
from jax.experimental.pallas import tpu as pltpu

S0 = 16     # zero rows in front of each conv1 phase plane (allows negative shifts)
NP2 = 176   # rows per phase plane in the conv1 phase scratch (S0 + 144 + 16)
NR2 = 160   # rows of the flattened, conv3-padded conv2 output (144 grid + 16 pad)
NR3 = 120   # rows of the flattened conv3 output (10 rows x 12-wide padded cols)


# ----------------------------------------------------------------------------
# Fused Pallas kernel: conv1 -> conv2 -> conv3 (+bias +ReLU) for one image
# ----------------------------------------------------------------------------
def _fused_cnn_kernel(p1_ref, w1_ref, b1_ref, m1_ref, w2_ref, b2_ref, m2_ref,
                      w3_ref, b3_ref, feat_ref, x1s_ref, x2s_ref):
    f32 = jnp.float32

    # conv1: one MXU matmul over phase-ordered im2col patches, fused bias+ReLU,
    # then a padding mask so conv2's zero-padding slots are exactly zero.
    out1 = jnp.dot(p1_ref[0], w1_ref[...], preferred_element_type=f32)   # (576,32)
    out1 = (jnp.maximum(out1 + b1_ref[...], 0.0) * m1_ref[...]).astype(jnp.bfloat16)

    # Phase scratch: 4 planes of (NP2, 32); rows [S0, S0+144) of plane (pi,pj)
    # hold the conv2-padded conv1 output at positions (2a+pi, 2b+pj), row 12a+b.
    x1s_ref[...] = jnp.zeros_like(x1s_ref)
    for p in range(4):
        x1s_ref[p, S0:S0 + 144, :] = out1[144 * p:144 * (p + 1), :]

    # conv2 (k=4, s=2, pad=1): 16 accumulated matmuls, one per kernel offset,
    # each lhs a contiguous slice of the matching phase plane.
    acc2 = jnp.zeros((NR2, 64), f32)
    for di in range(4):
        qi, ri = di // 2, di % 2
        for dj in range(4):
            qj, rj = dj // 2, dj % 2
            src = S0 - 13 + 12 * qi + qj
            acc2 = acc2 + jnp.dot(x1s_ref[2 * ri + rj, src:src + NR2, :],
                                  w2_ref[4 * di + dj],
                                  preferred_element_type=f32)
    out2 = jnp.maximum(acc2 + b2_ref[...], 0.0) * m2_ref[...]
    x2s_ref[...] = out2.astype(jnp.bfloat16)          # conv3-padded flat layout

    # conv3 (k=3, s=1, pad=1): 9 accumulated matmuls over the padded-flat layout.
    acc3 = jnp.zeros((NR3, 64), f32)
    for di in range(3):
        for dj in range(3):
            src = 12 * di + dj
            acc3 = acc3 + jnp.dot(x2s_ref[src:src + NR3, :],
                                  w3_ref[3 * di + dj],
                                  preferred_element_type=f32)
    feat_ref[0] = jnp.maximum(acc3 + b3_ref[...], 0.0)


def fused_cnn_features(p1, w1k, b1k, m1, w2k, b2k, m2, w3k, b3k):
    B = p1.shape[0]
    return pl.pallas_call(
        _fused_cnn_kernel,
        out_shape=jax.ShapeDtypeStruct((B, NR3, 64), jnp.float32),
        grid=(B,),
        in_specs=[
            pl.BlockSpec((1, 576, 256), lambda b: (b, 0, 0)),   # conv1 patches
            pl.BlockSpec((256, 32), lambda b: (0, 0)),          # w1
            pl.BlockSpec((1, 32), lambda b: (0, 0)),            # b1
            pl.BlockSpec((576, 1), lambda b: (0, 0)),           # conv2-pad mask
            pl.BlockSpec((16, 32, 64), lambda b: (0, 0, 0)),    # w2 (per offset)
            pl.BlockSpec((1, 64), lambda b: (0, 0)),            # b2
            pl.BlockSpec((NR2, 1), lambda b: (0, 0)),           # conv3-pad mask
            pl.BlockSpec((9, 64, 64), lambda b: (0, 0, 0)),     # w3 (per offset)
            pl.BlockSpec((1, 64), lambda b: (0, 0)),            # b3
        ],
        out_specs=pl.BlockSpec((1, NR3, 64), lambda b: (b, 0, 0)),
        scratch_shapes=[
            pltpu.VMEM((4, NP2, 32), jnp.bfloat16),   # conv1 output, phase layout
            pltpu.VMEM((NR2, 64), jnp.bfloat16),      # conv2 output, padded flat
        ],
        compiler_params=pltpu.CompilerParams(
            dimension_semantics=("parallel",)),
    )(p1, w1k, b1k, m1, w2k, b2k, m2, w3k, b3k)


# ----------------------------------------------------------------------------
# Parameters (PyTorch layout) and one-time conversion to kernel layout
# ----------------------------------------------------------------------------
def init_params(key, in_channels=3, num_actions=18):
    ks = jax.random.split(key, 8)

    def uni(k, shape, fan_in):
        bound = 1.0 / jnp.sqrt(float(fan_in))
        return jax.random.uniform(k, shape, jnp.float32, -bound, bound)

    p = {}
    p["w1"] = uni(ks[0], (32, in_channels, 8, 8), in_channels * 8 * 8)
    p["b1"] = uni(ks[1], (32,), in_channels * 8 * 8)
    p["w2"] = uni(ks[2], (64, 32, 4, 4), 32 * 4 * 4)
    p["b2"] = uni(ks[3], (64,), 32 * 4 * 4)
    p["w3"] = uni(ks[4], (64, 64, 3, 3), 64 * 3 * 3)
    p["b3"] = uni(ks[5], (64,), 64 * 3 * 3)
    lin_in = 10 * 10 * 64       # 84 -> 21 -> 10 -> 10 spatial
    p["wf"] = uni(ks[6], (num_actions, lin_in), lin_in)
    p["bf"] = uni(ks[7], (num_actions,), lin_in)
    return p


def prepare_kernel_params(params):
    """One-time conversion of PyTorch-layout params into kernel-ready layout."""
    num_actions = params["wf"].shape[0]
    cin = params["w1"].shape[1]

    # conv1: pad Cin -> 4 so K = 8*8*4 = 256 (lane aligned); flatten (kh,kw,cin).
    w1p = jnp.pad(params["w1"], ((0, 0), (0, 4 - cin), (0, 0), (0, 0)))
    w1k = jnp.transpose(w1p, (2, 3, 1, 0)).reshape(256, 32).astype(jnp.bfloat16)
    w2k = jnp.transpose(params["w2"], (2, 3, 1, 0)).reshape(16, 32, 64).astype(jnp.bfloat16)
    w3k = jnp.transpose(params["w3"], (2, 3, 1, 0)).reshape(9, 64, 64).astype(jnp.bfloat16)
    b1k = params["b1"].reshape(1, 32).astype(jnp.float32)
    b2k = params["b2"].reshape(1, 64).astype(jnp.float32)
    b3k = params["b3"].reshape(1, 64).astype(jnp.float32)

    # mask1 (576,1): 1 where a phase-grid slot maps to a real conv1 output; 0 on
    # conv2 zero-padding slots (so ReLU(bias) cannot leak into the padding).
    a = jnp.arange(12)
    masks = []
    for pi in (0, 1):
        for pj in (0, 1):
            rv = (2 * a + pi >= 1) & (2 * a + pi <= 21)
            cv = (2 * a + pj >= 1) & (2 * a + pj <= 21)
            masks.append((rv[:, None] & cv[None, :]).reshape(144))
    m1 = jnp.concatenate(masks).astype(jnp.float32).reshape(576, 1)

    # mask2 (160,1): 1 on the 10x10 interior of the 12x12 conv3-padded grid.
    v = (a >= 1) & (a <= 10)
    m2 = jnp.concatenate(
        [(v[:, None] & v[None, :]).reshape(144), jnp.zeros((16,), bool)]
    ).astype(jnp.float32).reshape(160, 1)

    # fc weight: permute NCHW-flatten (c,oi,oj) columns into the kernel's
    # (oi, padded-oj, c) feature layout and zero the padded columns.
    wf4 = params["wf"].reshape(num_actions, 64, 10, 10)
    wf4 = jnp.transpose(wf4, (2, 3, 1, 0))                       # (oi, oj, c, n)
    wf_pad = jnp.zeros((10, 12, 64, num_actions), jnp.float32).at[:, :10].set(wf4)
    wf_pad = wf_pad.reshape(NR3 * 64, num_actions)

    return {"w1k": w1k, "b1k": b1k, "m1": m1, "w2k": w2k, "b2k": b2k, "m2": m2,
            "w3k": w3k, "b3k": b3k, "wf_pad": wf_pad,
            "bf": params["bf"].astype(jnp.float32)}


# ----------------------------------------------------------------------------
# Forward pass (matches cnn.forward semantics)
# ----------------------------------------------------------------------------
@jax.jit
def cnn_forward(kp, x_nchw):
    B = x_nchw.shape[0]
    # NCHW -> NHWC, pad channels to 4 and spatial by conv1's padding=2.
    x = jnp.transpose(x_nchw, (0, 2, 3, 1)).astype(jnp.float32)
    cin = x.shape[-1]
    x = jnp.pad(x, ((0, 0), (2, 2), (2, 2), (0, 4 - cin)))           # (B,88,88,4)

    # TODO(synk): move conv1 patch extraction into the kernel (strided VMEM
    # gather) to avoid the im2col expansion through HBM at large batch sizes.
    slabs = [x[:, di:di + 84:4, dj:dj + 84:4, :]
             for di in range(8) for dj in range(8)]                   # (B,21,21,4)
    patches = jnp.concatenate(slabs, axis=-1)                         # (B,21,21,256)

    # Re-order rows into the four stride-2 phases of conv2's padded input grid.
    pp = jnp.pad(patches, ((0, 0), (1, 2), (1, 2), (0, 0)))           # (B,24,24,256)
    phases = [pp[:, pi::2, pj::2, :].reshape(B, 144, 256)
              for pi in (0, 1) for pj in (0, 1)]
    p1 = jnp.concatenate(phases, axis=1).astype(jnp.bfloat16)         # (B,576,256)

    feat = fused_cnn_features(p1, kp["w1k"], kp["b1k"], kp["m1"],
                              kp["w2k"], kp["b2k"], kp["m2"],
                              kp["w3k"], kp["b3k"])                   # (B,120,64)

    # fc on the pre-permuted, zero-padded weight; tiny matmul left to XLA.
    return feat.reshape(B, NR3 * 64) @ kp["wf_pad"] + kp["bf"]        # (B,18)


if __name__ == "__main__":
    key = jax.random.PRNGKey(0)
    pkey, xkey = jax.random.split(key)
    params = init_params(pkey, in_channels=3, num_actions=18)
    kparams = prepare_kernel_params(params)
    # Spatial must be 84x84 so the fc input size (6400) matches the module.
    x = jax.random.normal(xkey, (2, 3, 84, 84), dtype=jnp.float32)
    out = cnn_forward(kparams, x)
    jax.block_until_ready(out)
    assert out.shape == (2, 18) and out.dtype == jnp.float32
    print("KERNEL_OK")
</pallas_src>

<mosaic_0001>
module attributes {stable_mosaic.version = 11 : i64} {
  func.func @_fused_cnn_kernel(%arg0: i32, %arg1: memref<1x576x256xbf16, #tpu.memory_space<vmem>>, %arg2: memref<256x32xbf16, #tpu.memory_space<vmem>>, %arg3: memref<1x32xf32, #tpu.memory_space<vmem>>, %arg4: memref<576x1xf32, #tpu.memory_space<vmem>>, %arg5: memref<16x32x64xbf16, #tpu.memory_space<vmem>>, %arg6: memref<1x64xf32, #tpu.memory_space<vmem>>, %arg7: memref<160x1xf32, #tpu.memory_space<vmem>>, %arg8: memref<9x64x64xbf16, #tpu.memory_space<vmem>>, %arg9: memref<1x64xf32, #tpu.memory_space<vmem>>, %arg10: memref<1x120x64xf32, #tpu.memory_space<vmem>>, %arg11: memref<4x176x32xbf16, #tpu.memory_space<vmem>>, %arg12: memref<160x64xbf16, #tpu.memory_space<vmem>>) attributes {dimension_semantics = [#tpu.dimension_semantics<parallel>], iteration_bounds = array<i64: 2>, scalar_prefetch = 0 : i64, scratch_operands = 2 : i64, tpu.core_type = #tpu.core_type<tc>, window_params = [{transform_indices = @transform_0, window_bounds = array<i64: 1, 576, 256>}, {pipeline_mode = #tpu.pipeline_mode<synchronous>, transform_indices = @transform_1, window_bounds = array<i64: 256, 32>}, {pipeline_mode = #tpu.pipeline_mode<synchronous>, transform_indices = @transform_2, window_bounds = array<i64: 1, 32>}, {pipeline_mode = #tpu.pipeline_mode<synchronous>, transform_indices = @transform_3, window_bounds = array<i64: 576, 1>}, {pipeline_mode = #tpu.pipeline_mode<synchronous>, transform_indices = @transform_4, window_bounds = array<i64: 16, 32, 64>}, {pipeline_mode = #tpu.pipeline_mode<synchronous>, transform_indices = @transform_5, window_bounds = array<i64: 1, 64>}, {pipeline_mode = #tpu.pipeline_mode<synchronous>, transform_indices = @transform_6, window_bounds = array<i64: 160, 1>}, {pipeline_mode = #tpu.pipeline_mode<synchronous>, transform_indices = @transform_7, window_bounds = array<i64: 9, 64, 64>}, {pipeline_mode = #tpu.pipeline_mode<synchronous>, transform_indices = @transform_8, window_bounds = array<i64: 1, 64>}, {transform_indices = @transform_9, window_bounds = array<i64: 1, 120, 64>}]} {
    %c0 = arith.constant 0 : index
    %c0_0 = arith.constant 0 : index
    %c0_1 = arith.constant 0 : index
    %0 = vector.load %arg1[%c0, %c0_0, %c0_1] : memref<1x576x256xbf16, #tpu.memory_space<vmem>>, vector<1x576x256xbf16>
    %1 = vector.shape_cast %0 : vector<1x576x256xbf16> to vector<576x256xbf16>
    %c0_2 = arith.constant 0 : index
    %c0_3 = arith.constant 0 : index
    %2 = vector.load %arg2[%c0_2, %c0_3] : memref<256x32xbf16, #tpu.memory_space<vmem>>, vector<256x32xbf16>
    %cst = arith.constant dense<0.000000e+00> : vector<576x32xf32>
    %3 = tpu.matmul %1, %2, %cst {dimension_numbers = #tpu.dot_dimension_numbers<[1], [0], [0], [1], [0, 0, 1, 1], [], []>} : vector<576x256xbf16>, vector<256x32xbf16>, vector<576x32xf32> -> vector<576x32xf32>
    %c0_4 = arith.constant 0 : index
    %c0_5 = arith.constant 0 : index
    %4 = vector.load %arg3[%c0_4, %c0_5] : memref<1x32xf32, #tpu.memory_space<vmem>>, vector<1x32xf32>
    %5 = vector.broadcast %4 : vector<1x32xf32> to vector<576x32xf32>
    %6 = arith.addf %3, %5 : vector<576x32xf32>
    %cst_6 = arith.constant 0.000000e+00 : f32
    %7 = vector.broadcast %cst_6 : f32 to vector<576x32xf32>
    %8 = arith.maximumf %6, %7 : vector<576x32xf32>
    %c0_7 = arith.constant 0 : index
    %c0_8 = arith.constant 0 : index
    %9 = vector.load %arg4[%c0_7, %c0_8] : memref<576x1xf32, #tpu.memory_space<vmem>>, vector<576x1xf32>
    %10 = vector.broadcast %9 : vector<576x1xf32> to vector<576x32xf32>
    %11 = arith.mulf %8, %10 : vector<576x32xf32>
    %12 = arith.truncf %11 : vector<576x32xf32> to vector<576x32xbf16>
    %cst_9 = arith.constant 0.000000e+00 : bf16
    %13 = vector.broadcast %cst_9 : bf16 to vector<4x176x32xbf16>
    %c0_10 = arith.constant 0 : index
    %c0_11 = arith.constant 0 : index
    %c0_12 = arith.constant 0 : index
    %14 = vector.load %arg11[%c0_10, %c0_11, %c0_12] : memref<4x176x32xbf16, #tpu.memory_space<vmem>>, vector<4x176x32xbf16>
    tpu.vector_store %arg11[%c0_10, %c0_11, %c0_12], %13 {strides = array<i32>} : memref<4x176x32xbf16, #tpu.memory_space<vmem>>, vector<4x176x32xbf16>,
    %15 = vector.extract_strided_slice %12 {offsets = [0, 0], sizes = [144, 32], strides = [1, 1]} : vector<576x32xbf16> to vector<144x32xbf16>
    %c0_13 = arith.constant 0 : index
    %c16 = arith.constant 16 : index
    %c0_14 = arith.constant 0 : index
    %16 = vector.load %arg11[%c0_13, %c16, %c0_14] : memref<4x176x32xbf16, #tpu.memory_space<vmem>>, vector<1x144x32xbf16>
    %17 = vector.shape_cast %16 : vector<1x144x32xbf16> to vector<144x32xbf16>
    %18 = vector.shape_cast %15 : vector<144x32xbf16> to vector<1x144x32xbf16>
    tpu.vector_store %arg11[%c0_13, %c16, %c0_14], %18 {strides = array<i32>} : memref<4x176x32xbf16, #tpu.memory_space<vmem>>, vector<1x144x32xbf16>,
    %19 = vector.extract_strided_slice %12 {offsets = [144, 0], sizes = [144, 32], strides = [1, 1]} : vector<576x32xbf16> to vector<144x32xbf16>
    %c1 = arith.constant 1 : index
    %c16_15 = arith.constant 16 : index
    %c0_16 = arith.constant 0 : index
    %20 = vector.load %arg11[%c1, %c16_15, %c0_16] : memref<4x176x32xbf16, #tpu.memory_space<vmem>>, vector<1x144x32xbf16>
    %21 = vector.shape_cast %20 : vector<1x144x32xbf16> to vector<144x32xbf16>
    %22 = vector.shape_cast %19 : vector<144x32xbf16> to vector<1x144x32xbf16>
    tpu.vector_store %arg11[%c1, %c16_15, %c0_16], %22 {strides = array<i32>} : memref<4x176x32xbf16, #tpu.memory_space<vmem>>, vector<1x144x32xbf16>,
    %23 = vector.extract_strided_slice %12 {offsets = [288, 0], sizes = [144, 32], strides = [1, 1]} : vector<576x32xbf16> to vector<144x32xbf16>
    %c2 = arith.constant 2 : index
    %c16_17 = arith.constant 16 : index
    %c0_18 = arith.constant 0 : index
    %24 = vector.load %arg11[%c2, %c16_17, %c0_18] : memref<4x176x32xbf16, #tpu.memory_space<vmem>>, vector<1x144x32xbf16>
    %25 = vector.shape_cast %24 : vector<1x144x32xbf16> to vector<144x32xbf16>
    %26 = vector.shape_cast %23 : vector<144x32xbf16> to vector<1x144x32xbf16>
    tpu.vector_store %arg11[%c2, %c16_17, %c0_18], %26 {strides = array<i32>} : memref<4x176x32xbf16, #tpu.memory_space<vmem>>, vector<1x144x32xbf16>,
    %27 = vector.extract_strided_slice %12 {offsets = [432, 0], sizes = [144, 32], strides = [1, 1]} : vector<576x32xbf16> to vector<144x32xbf16>
    %c3 = arith.constant 3 : index
    %c16_19 = arith.constant 16 : index
    %c0_20 = arith.constant 0 : index
    %28 = vector.load %arg11[%c3, %c16_19, %c0_20] : memref<4x176x32xbf16, #tpu.memory_space<vmem>>, vector<1x144x32xbf16>
    %29 = vector.shape_cast %28 : vector<1x144x32xbf16> to vector<144x32xbf16>
    %30 = vector.shape_cast %27 : vector<144x32xbf16> to vector<1x144x32xbf16>
    tpu.vector_store %arg11[%c3, %c16_19, %c0_20], %30 {strides = array<i32>} : memref<4x176x32xbf16, #tpu.memory_space<vmem>>, vector<1x144x32xbf16>,
    %cst_21 = arith.constant 0.000000e+00 : f32
    %31 = vector.broadcast %cst_21 : f32 to vector<160x64xf32>
    %c0_22 = arith.constant 0 : index
    %c3_23 = arith.constant 3 : index
    %c0_24 = arith.constant 0 : index
    %32 = vector.load %arg11[%c0_22, %c3_23, %c0_24] : memref<4x176x32xbf16, #tpu.memory_space<vmem>>, vector<1x160x32xbf16>
    %33 = vector.shape_cast %32 : vector<1x160x32xbf16> to vector<160x32xbf16>
    %c0_25 = arith.constant 0 : index
    %c0_26 = arith.constant 0 : index
    %c0_27 = arith.constant 0 : index
    %34 = vector.load %arg5[%c0_25, %c0_26, %c0_27] : memref<16x32x64xbf16, #tpu.memory_space<vmem>>, vector<1x32x64xbf16>
    %35 = vector.shape_cast %34 : vector<1x32x64xbf16> to vector<32x64xbf16>
    %cst_28 = arith.constant dense<0.000000e+00> : vector<160x64xf32>
    %36 = tpu.matmul %33, %35, %cst_28 {dimension_numbers = #tpu.dot_dimension_numbers<[1], [0], [0], [1], [0, 0, 1, 1], [], []>} : vector<160x32xbf16>, vector<32x64xbf16>, vector<160x64xf32> -> vector<160x64xf32>
    %37 = arith.addf %31, %36 : vector<160x64xf32>
    %c1_29 = arith.constant 1 : index
    %c3_30 = arith.constant 3 : index
    %c0_31 = arith.constant 0 : index
    %38 = vector.load %arg11[%c1_29, %c3_30, %c0_31] : memref<4x176x32xbf16, #tpu.memory_space<vmem>>, vector<1x160x32xbf16>
    %39 = vector.shape_cast %38 : vector<1x160x32xbf16> to vector<160x32xbf16>
    %c1_32 = arith.constant 1 : index
    %c0_33 = arith.constant 0 : index
    %c0_34 = arith.constant 0 : index
    %40 = vector.load %arg5[%c1_32, %c0_33, %c0_34] : memref<16x32x64xbf16, #tpu.memory_space<vmem>>, vector<1x32x64xbf16>
    %41 = vector.shape_cast %40 : vector<1x32x64xbf16> to vector<32x64xbf16>
    %cst_35 = arith.constant dense<0.000000e+00> : vector<160x64xf32>
    %42 = tpu.matmul %39, %41, %cst_35 {dimension_numbers = #tpu.dot_dimension_numbers<[1], [0], [0], [1], [0, 0, 1, 1], [], []>} : vector<160x32xbf16>, vector<32x64xbf16>, vector<160x64xf32> -> vector<160x64xf32>
    %43 = arith.addf %37, %42 : vector<160x64xf32>
    %c0_36 = arith.constant 0 : index
    %c4 = arith.constant 4 : index
    %c0_37 = arith.constant 0 : index
    %44 = vector.load %arg11[%c0_36, %c4, %c0_37] : memref<4x176x32xbf16, #tpu.memory_space<vmem>>, vector<1x160x32xbf16>
    %45 = vector.shape_cast %44 : vector<1x160x32xbf16> to vector<160x32xbf16>
    %c2_38 = arith.constant 2 : index
    %c0_39 = arith.constant 0 : index
    %c0_40 = arith.constant 0 : index
    %46 = vector.load %arg5[%c2_38, %c0_39, %c0_40] : memref<16x32x64xbf16, #tpu.memory_space<vmem>>, vector<1x32x64xbf16>
    %47 = vector.shape_cast %46 : vector<1x32x64xbf16> to vector<32x64xbf16>
    %cst_41 = arith.constant dense<0.000000e+00> : vector<160x64xf32>
    %48 = tpu.matmul %45, %47, %cst_41 {dimension_numbers = #tpu.dot_dimension_numbers<[1], [0], [0], [1], [0, 0, 1, 1], [], []>} : vector<160x32xbf16>, vector<32x64xbf16>, vector<160x64xf32> -> vector<160x64xf32>
    %49 = arith.addf %43, %48 : vector<160x64xf32>
    %c1_42 = arith.constant 1 : index
    %c4_43 = arith.constant 4 : index
    %c0_44 = arith.constant 0 : index
    %50 = vector.load %arg11[%c1_42, %c4_43, %c0_44] : memref<4x176x32xbf16, #tpu.memory_space<vmem>>, vector<1x160x32xbf16>
    %51 = vector.shape_cast %50 : vector<1x160x32xbf16> to vector<160x32xbf16>
    %c3_45 = arith.constant 3 : index
    %c0_46 = arith.constant 0 : index
    %c0_47 = arith.constant 0 : index
    %52 = vector.load %arg5[%c3_45, %c0_46, %c0_47] : memref<16x32x64xbf16, #tpu.memory_space<vmem>>, vector<1x32x64xbf16>
    %53 = vector.shape_cast %52 : vector<1x32x64xbf16> to vector<32x64xbf16>
    %cst_48 = arith.constant dense<0.000000e+00> : vector<160x64xf32>
    %54 = tpu.matmul %51, %53, %cst_48 {dimension_numbers = #tpu.dot_dimension_numbers<[1], [0], [0], [1], [0, 0, 1, 1], [], []>} : vector<160x32xbf16>, vector<32x64xbf16>, vector<160x64xf32> -> vector<160x64xf32>
    %55 = arith.addf %49, %54 : vector<160x64xf32>
    %c2_49 = arith.constant 2 : index
    %c3_50 = arith.constant 3 : index
    %c0_51 = arith.constant 0 : index
    %56 = vector.load %arg11[%c2_49, %c3_50, %c0_51] : memref<4x176x32xbf16, #tpu.memory_space<vmem>>, vector<1x160x32xbf16>
    %57 = vector.shape_cast %56 : vector<1x160x32xbf16> to vector<160x32xbf16>
    %c4_52 = arith.constant 4 : index
    %c0_53 = arith.constant 0 : index
    %c0_54 = arith.constant 0 : index
    %58 = vector.load %arg5[%c4_52, %c0_53, %c0_54] : memref<16x32x64xbf16, #tpu.memory_space<vmem>>, vector<1x32x64xbf16>
    %59 = vector.shape_cast %58 : vector<1x32x64xbf16> to vector<32x64xbf16>
    %cst_55 = arith.constant dense<0.000000e+00> : vector<160x64xf32>
    %60 = tpu.matmul %57, %59, %cst_55 {dimension_numbers = #tpu.dot_dimension_numbers<[1], [0], [0], [1], [0, 0, 1, 1], [], []>} : vector<160x32xbf16>, vector<32x64xbf16>, vector<160x64xf32> -> vector<160x64xf32>
    %61 = arith.addf %55, %60 : vector<160x64xf32>
    %c3_56 = arith.constant 3 : index
    %c3_57 = arith.constant 3 : index
    %c0_58 = arith.constant 0 : index
    %62 = vector.load %arg11[%c3_56, %c3_57, %c0_58] : memref<4x176x32xbf16, #tpu.memory_space<vmem>>, vector<1x160x32xbf16>
    %63 = vector.shape_cast %62 : vector<1x160x32xbf16> to vector<160x32xbf16>
    %c5 = arith.constant 5 : index
    %c0_59 = arith.constant 0 : index
    %c0_60 = arith.constant 0 : index
    %64 = vector.load %arg5[%c5, %c0_59, %c0_60] : memref<16x32x64xbf16, #tpu.memory_space<vmem>>, vector<1x32x64xbf16>
    %65 = vector.shape_cast %64 : vector<1x32x64xbf16> to vector<32x64xbf16>
    %cst_61 = arith.constant dense<0.000000e+00> : vector<160x64xf32>
    %66 = tpu.matmul %63, %65, %cst_61 {dimension_numbers = #tpu.dot_dimension_numbers<[1], [0], [0], [1], [0, 0, 1, 1], [], []>} : vector<160x32xbf16>, vector<32x64xbf16>, vector<160x64xf32> -> vector<160x64xf32>
    %67 = arith.addf %61, %66 : vector<160x64xf32>
    %c2_62 = arith.constant 2 : index
    %c4_63 = arith.constant 4 : index
    %c0_64 = arith.constant 0 : index
    %68 = vector.load %arg11[%c2_62, %c4_63, %c0_64] : memref<4x176x32xbf16, #tpu.memory_space<vmem>>, vector<1x160x32xbf16>
    %69 = vector.shape_cast %68 : vector<1x160x32xbf16> to vector<160x32xbf16>
    %c6 = arith.constant 6 : index
    %c0_65 = arith.constant 0 : index
    %c0_66 = arith.constant 0 : index
    %70 = vector.load %arg5[%c6, %c0_65, %c0_66] : memref<16x32x64xbf16, #tpu.memory_space<vmem>>, vector<1x32x64xbf16>
    %71 = vector.shape_cast %70 : vector<1x32x64xbf16> to vector<32x64xbf16>
    %cst_67 = arith.constant dense<0.000000e+00> : vector<160x64xf32>
    %72 = tpu.matmul %69, %71, %cst_67 {dimension_numbers = #tpu.dot_dimension_numbers<[1], [0], [0], [1], [0, 0, 1, 1], [], []>} : vector<160x32xbf16>, vector<32x64xbf16>, vector<160x64xf32> -> vector<160x64xf32>
    %73 = arith.addf %67, %72 : vector<160x64xf32>
    %c3_68 = arith.constant 3 : index
    %c4_69 = arith.constant 4 : index
    %c0_70 = arith.constant 0 : index
    %74 = vector.load %arg11[%c3_68, %c4_69, %c0_70] : memref<4x176x32xbf16, #tpu.memory_space<vmem>>, vector<1x160x32xbf16>
    %75 = vector.shape_cast %74 : vector<1x160x32xbf16> to vector<160x32xbf16>
    %c7 = arith.constant 7 : index
    %c0_71 = arith.constant 0 : index
    %c0_72 = arith.constant 0 : index
    %76 = vector.load %arg5[%c7, %c0_71, %c0_72] : memref<16x32x64xbf16, #tpu.memory_space<vmem>>, vector<1x32x64xbf16>
    %77 = vector.shape_cast %76 : vector<1x32x64xbf16> to vector<32x64xbf16>
    %cst_73 = arith.constant dense<0.000000e+00> : vector<160x64xf32>
    %78 = tpu.matmul %75, %77, %cst_73 {dimension_numbers = #tpu.dot_dimension_numbers<[1], [0], [0], [1], [0, 0, 1, 1], [], []>} : vector<160x32xbf16>, vector<32x64xbf16>, vector<160x64xf32> -> vector<160x64xf32>
    %79 = arith.addf %73, %78 : vector<160x64xf32>
    %c0_74 = arith.constant 0 : index
    %c15 = arith.constant 15 : index
    %c0_75 = arith.constant 0 : index
    %80 = vector.load %arg11[%c0_74, %c15, %c0_75] : memref<4x176x32xbf16, #tpu.memory_space<vmem>>, vector<1x160x32xbf16>
    %81 = vector.shape_cast %80 : vector<1x160x32xbf16> to vector<160x32xbf16>
    %c8 = arith.constant 8 : index
    %c0_76 = arith.constant 0 : index
    %c0_77 = arith.constant 0 : index
    %82 = vector.load %arg5[%c8, %c0_76, %c0_77] : memref<16x32x64xbf16, #tpu.memory_space<vmem>>, vector<1x32x64xbf16>
    %83 = vector.shape_cast %82 : vector<1x32x64xbf16> to vector<32x64xbf16>
    %cst_78 = arith.constant dense<0.000000e+00> : vector<160x64xf32>
    %84 = tpu.matmul %81, %83, %cst_78 {dimension_numbers = #tpu.dot_dimension_numbers<[1], [0], [0], [1], [0, 0, 1, 1], [], []>} : vector<160x32xbf16>, vector<32x64xbf16>, vector<160x64xf32> -> vector<160x64xf32>
    %85 = arith.addf %79, %84 : vector<160x64xf32>
    %c1_79 = arith.constant 1 : index
    %c15_80 = arith.constant 15 : index
    %c0_81 = arith.constant 0 : index
    %86 = vector.load %arg11[%c1_79, %c15_80, %c0_81] : memref<4x176x32xbf16, #tpu.memory_space<vmem>>, vector<1x160x32xbf16>
    %87 = vector.shape_cast %86 : vector<1x160x32xbf16> to vector<160x32xbf16>
    %c9 = arith.constant 9 : index
    %c0_82 = arith.constant 0 : index
    %c0_83 = arith.constant 0 : index
    %88 = vector.load %arg5[%c9, %c0_82, %c0_83] : memref<16x32x64xbf16, #tpu.memory_space<vmem>>, vector<1x32x64xbf16>
    %89 = vector.shape_cast %88 : vector<1x32x64xbf16> to vector<32x64xbf16>
    %cst_84 = arith.constant dense<0.000000e+00> : vector<160x64xf32>
    %90 = tpu.matmul %87, %89, %cst_84 {dimension_numbers = #tpu.dot_dimension_numbers<[1], [0], [0], [1], [0, 0, 1, 1], [], []>} : vector<160x32xbf16>, vector<32x64xbf16>, vector<160x64xf32> -> vector<160x64xf32>
    %91 = arith.addf %85, %90 : vector<160x64xf32>
    %c0_85 = arith.constant 0 : index
    %c16_86 = arith.constant 16 : index
    %c0_87 = arith.constant 0 : index
    %92 = vector.load %arg11[%c0_85, %c16_86, %c0_87] : memref<4x176x32xbf16, #tpu.memory_space<vmem>>, vector<1x160x32xbf16>
    %93 = vector.shape_cast %92 : vector<1x160x32xbf16> to vector<160x32xbf16>
    %c10 = arith.constant 10 : index
    %c0_88 = arith.constant 0 : index
    %c0_89 = arith.constant 0 : index
    %94 = vector.load %arg5[%c10, %c0_88, %c0_89] : memref<16x32x64xbf16, #tpu.memory_space<vmem>>, vector<1x32x64xbf16>
    %95 = vector.shape_cast %94 : vector<1x32x64xbf16> to vector<32x64xbf16>
    %cst_90 = arith.constant dense<0.000000e+00> : vector<160x64xf32>
    %96 = tpu.matmul %93, %95, %cst_90 {dimension_numbers = #tpu.dot_dimension_numbers<[1], [0], [0], [1], [0, 0, 1, 1], [], []>} : vector<160x32xbf16>, vector<32x64xbf16>, vector<160x64xf32> -> vector<160x64xf32>
    %97 = arith.addf %91, %96 : vector<160x64xf32>
    %c1_91 = arith.constant 1 : index
    %c16_92 = arith.constant 16 : index
    %c0_93 = arith.constant 0 : index
    %98 = vector.load %arg11[%c1_91, %c16_92, %c0_93] : memref<4x176x32xbf16, #tpu.memory_space<vmem>>, vector<1x160x32xbf16>
    %99 = vector.shape_cast %98 : vector<1x160x32xbf16> to vector<160x32xbf16>
    %c11 = arith.constant 11 : index
    %c0_94 = arith.constant 0 : index
    %c0_95 = arith.constant 0 : index
    %100 = vector.load %arg5[%c11, %c0_94, %c0_95] : memref<16x32x64xbf16, #tpu.memory_space<vmem>>, vector<1x32x64xbf16>
    %101 = vector.shape_cast %100 : vector<1x32x64xbf16> to vector<32x64xbf16>
    %cst_96 = arith.constant dense<0.000000e+00> : vector<160x64xf32>
    %102 = tpu.matmul %99, %101, %cst_96 {dimension_numbers = #tpu.dot_dimension_numbers<[1], [0], [0], [1], [0, 0, 1, 1], [], []>} : vector<160x32xbf16>, vector<32x64xbf16>, vector<160x64xf32> -> vector<160x64xf32>
    %103 = arith.addf %97, %102 : vector<160x64xf32>
    %c2_97 = arith.constant 2 : index
    %c15_98 = arith.constant 15 : index
    %c0_99 = arith.constant 0 : index
    %104 = vector.load %arg11[%c2_97, %c15_98, %c0_99] : memref<4x176x32xbf16, #tpu.memory_space<vmem>>, vector<1x160x32xbf16>
    %105 = vector.shape_cast %104 : vector<1x160x32xbf16> to vector<160x32xbf16>
    %c12 = arith.constant 12 : index
    %c0_100 = arith.constant 0 : index
    %c0_101 = arith.constant 0 : index
    %106 = vector.load %arg5[%c12, %c0_100, %c0_101] : memref<16x32x64xbf16, #tpu.memory_space<vmem>>, vector<1x32x64xbf16>
    %107 = vector.shape_cast %106 : vector<1x32x64xbf16> to vector<32x64xbf16>
    %cst_102 = arith.constant dense<0.000000e+00> : vector<160x64xf32>
    %108 = tpu.matmul %105, %107, %cst_102 {dimension_numbers = #tpu.dot_dimension_numbers<[1], [0], [0], [1], [0, 0, 1, 1], [], []>} : vector<160x32xbf16>, vector<32x64xbf16>, vector<160x64xf32> -> vector<160x64xf32>
    %109 = arith.addf %103, %108 : vector<160x64xf32>
    %c3_103 = arith.constant 3 : index
    %c15_104 = arith.constant 15 : index
    %c0_105 = arith.constant 0 : index
    %110 = vector.load %arg11[%c3_103, %c15_104, %c0_105] : memref<4x176x32xbf16, #tpu.memory_space<vmem>>, vector<1x160x32xbf16>
    %111 = vector.shape_cast %110 : vector<1x160x32xbf16> to vector<160x32xbf16>
    %c13 = arith.constant 13 : index
    %c0_106 = arith.constant 0 : index
    %c0_107 = arith.constant 0 : index
    %112 = vector.load %arg5[%c13, %c0_106, %c0_107] : memref<16x32x64xbf16, #tpu.memory_space<vmem>>, vector<1x32x64xbf16>
    %113 = vector.shape_cast %112 : vector<1x32x64xbf16> to vector<32x64xbf16>
    %cst_108 = arith.constant dense<0.000000e+00> : vector<160x64xf32>
    %114 = tpu.matmul %111, %113, %cst_108 {dimension_numbers = #tpu.dot_dimension_numbers<[1], [0], [0], [1], [0, 0, 1, 1], [], []>} : vector<160x32xbf16>, vector<32x64xbf16>, vector<160x64xf32> -> vector<160x64xf32>
    %115 = arith.addf %109, %114 : vector<160x64xf32>
    %c2_109 = arith.constant 2 : index
    %c16_110 = arith.constant 16 : index
    %c0_111 = arith.constant 0 : index
    %116 = vector.load %arg11[%c2_109, %c16_110, %c0_111] : memref<4x176x32xbf16, #tpu.memory_space<vmem>>, vector<1x160x32xbf16>
    %117 = vector.shape_cast %116 : vector<1x160x32xbf16> to vector<160x32xbf16>
    %c14 = arith.constant 14 : index
    %c0_112 = arith.constant 0 : index
    %c0_113 = arith.constant 0 : index
    %118 = vector.load %arg5[%c14, %c0_112, %c0_113] : memref<16x32x64xbf16, #tpu.memory_space<vmem>>, vector<1x32x64xbf16>
    %119 = vector.shape_cast %118 : vector<1x32x64xbf16> to vector<32x64xbf16>
    %cst_114 = arith.constant dense<0.000000e+00> : vector<160x64xf32>
    %120 = tpu.matmul %117, %119, %cst_114 {dimension_numbers = #tpu.dot_dimension_numbers<[1], [0], [0], [1], [0, 0, 1, 1], [], []>} : vector<160x32xbf16>, vector<32x64xbf16>, vector<160x64xf32> -> vector<160x64xf32>
    %121 = arith.addf %115, %120 : vector<160x64xf32>
    %c3_115 = arith.constant 3 : index
    %c16_116 = arith.constant 16 : index
    %c0_117 = arith.constant 0 : index
    %122 = vector.load %arg11[%c3_115, %c16_116, %c0_117] : memref<4x176x32xbf16, #tpu.memory_space<vmem>>, vector<1x160x32xbf16>
    %123 = vector.shape_cast %122 : vector<1x160x32xbf16> to vector<160x32xbf16>
    %c15_118 = arith.constant 15 : index
    %c0_119 = arith.constant 0 : index
    %c0_120 = arith.constant 0 : index
    %124 = vector.load %arg5[%c15_118, %c0_119, %c0_120] : memref<16x32x64xbf16, #tpu.memory_space<vmem>>, vector<1x32x64xbf16>
    %125 = vector.shape_cast %124 : vector<1x32x64xbf16> to vector<32x64xbf16>
    %cst_121 = arith.constant dense<0.000000e+00> : vector<160x64xf32>
    %126 = tpu.matmul %123, %125, %cst_121 {dimension_numbers = #tpu.dot_dimension_numbers<[1], [0], [0], [1], [0, 0, 1, 1], [], []>} : vector<160x32xbf16>, vector<32x64xbf16>, vector<160x64xf32> -> vector<160x64xf32>
    %127 = arith.addf %121, %126 : vector<160x64xf32>
    %c0_122 = arith.constant 0 : index
    %c0_123 = arith.constant 0 : index
    %128 = vector.load %arg6[%c0_122, %c0_123] : memref<1x64xf32, #tpu.memory_space<vmem>>, vector<1x64xf32>
    %129 = vector.broadcast %128 : vector<1x64xf32> to vector<160x64xf32>
    %130 = arith.addf %127, %129 : vector<160x64xf32>
    %cst_124 = arith.constant 0.000000e+00 : f32
    %131 = vector.broadcast %cst_124 : f32 to vector<160x64xf32>
    %132 = arith.maximumf %130, %131 : vector<160x64xf32>
    %c0_125 = arith.constant 0 : index
    %c0_126 = arith.constant 0 : index
    %133 = vector.load %arg7[%c0_125, %c0_126] : memref<160x1xf32, #tpu.memory_space<vmem>>, vector<160x1xf32>
    %134 = vector.broadcast %133 : vector<160x1xf32> to vector<160x64xf32>
    %135 = arith.mulf %132, %134 : vector<160x64xf32>
    %136 = arith.truncf %135 : vector<160x64xf32> to vector<160x64xbf16>
    %c0_127 = arith.constant 0 : index
    %c0_128 = arith.constant 0 : index
    %137 = vector.load %arg12[%c0_127, %c0_128] : memref<160x64xbf16, #tpu.memory_space<vmem>>, vector<160x64xbf16>
    tpu.vector_store %arg12[%c0_127, %c0_128], %136 {strides = array<i32>} : memref<160x64xbf16, #tpu.memory_space<vmem>>, vector<160x64xbf16>,
    %cst_129 = arith.constant 0.000000e+00 : f32
    %138 = vector.broadcast %cst_129 : f32 to vector<120x64xf32>
    %c0_130 = arith.constant 0 : index
    %c0_131 = arith.constant 0 : index
    %139 = vector.load %arg12[%c0_130, %c0_131] : memref<160x64xbf16, #tpu.memory_space<vmem>>, vector<120x64xbf16>
    %c0_132 = arith.constant 0 : index
    %c0_133 = arith.constant 0 : index
    %c0_134 = arith.constant 0 : index
    %140 = vector.load %arg8[%c0_132, %c0_133, %c0_134] : memref<9x64x64xbf16, #tpu.memory_space<vmem>>, vector<1x64x64xbf16>
    %141 = vector.shape_cast %140 : vector<1x64x64xbf16> to vector<64x64xbf16>
    %cst_135 = arith.constant dense<0.000000e+00> : vector<120x64xf32>
    %142 = tpu.matmul %139, %141, %cst_135 {dimension_numbers = #tpu.dot_dimension_numbers<[1], [0], [0], [1], [0, 0, 1, 1], [], []>} : vector<120x64xbf16>, vector<64x64xbf16>, vector<120x64xf32> -> vector<120x64xf32>
    %143 = arith.addf %138, %142 : vector<120x64xf32>
    %c1_136 = arith.constant 1 : index
    %c0_137 = arith.constant 0 : index
    %144 = vector.load %arg12[%c1_136, %c0_137] : memref<160x64xbf16, #tpu.memory_space<vmem>>, vector<120x64xbf16>
    %c1_138 = arith.constant 1 : index
    %c0_139 = arith.constant 0 : index
    %c0_140 = arith.constant 0 : index
    %145 = vector.load %arg8[%c1_138, %c0_139, %c0_140] : memref<9x64x64xbf16, #tpu.memory_space<vmem>>, vector<1x64x64xbf16>
    %146 = vector.shape_cast %145 : vector<1x64x64xbf16> to vector<64x64xbf16>
    %cst_141 = arith.constant dense<0.000000e+00> : vector<120x64xf32>
    %147 = tpu.matmul %144, %146, %cst_141 {dimension_numbers = #tpu.dot_dimension_numbers<[1], [0], [0], [1], [0, 0, 1, 1], [], []>} : vector<120x64xbf16>, vector<64x64xbf16>, vector<120x64xf32> -> vector<120x64xf32>
    %148 = arith.addf %143, %147 : vector<120x64xf32>
    %c2_142 = arith.constant 2 : index
    %c0_143 = arith.constant 0 : index
    %149 = vector.load %arg12[%c2_142, %c0_143] : memref<160x64xbf16, #tpu.memory_space<vmem>>, vector<120x64xbf16>
    %c2_144 = arith.constant 2 : index
    %c0_145 = arith.constant 0 : index
    %c0_146 = arith.constant 0 : index
    %150 = vector.load %arg8[%c2_144, %c0_145, %c0_146] : memref<9x64x64xbf16, #tpu.memory_space<vmem>>, vector<1x64x64xbf16>
    %151 = vector.shape_cast %150 : vector<1x64x64xbf16> to vector<64x64xbf16>
    %cst_147 = arith.constant dense<0.000000e+00> : vector<120x64xf32>
    %152 = tpu.matmul %149, %151, %cst_147 {dimension_numbers = #tpu.dot_dimension_numbers<[1], [0], [0], [1], [0, 0, 1, 1], [], []>} : vector<120x64xbf16>, vector<64x64xbf16>, vector<120x64xf32> -> vector<120x64xf32>
    %153 = arith.addf %148, %152 : vector<120x64xf32>
    %c12_148 = arith.constant 12 : index
    %c0_149 = arith.constant 0 : index
    %154 = vector.load %arg12[%c12_148, %c0_149] : memref<160x64xbf16, #tpu.memory_space<vmem>>, vector<120x64xbf16>
    %c3_150 = arith.constant 3 : index
    %c0_151 = arith.constant 0 : index
    %c0_152 = arith.constant 0 : index
    %155 = vector.load %arg8[%c3_150, %c0_151, %c0_152] : memref<9x64x64xbf16, #tpu.memory_space<vmem>>, vector<1x64x64xbf16>
    %156 = vector.shape_cast %155 : vector<1x64x64xbf16> to vector<64x64xbf16>
    %cst_153 = arith.constant dense<0.000000e+00> : vector<120x64xf32>
    %157 = tpu.matmul %154, %156, %cst_153 {dimension_numbers = #tpu.dot_dimension_numbers<[1], [0], [0], [1], [0, 0, 1, 1], [], []>} : vector<120x64xbf16>, vector<64x64xbf16>, vector<120x64xf32> -> vector<120x64xf32>
    %158 = arith.addf %153, %157 : vector<120x64xf32>
    %c13_154 = arith.constant 13 : index
    %c0_155 = arith.constant 0 : index
    %159 = vector.load %arg12[%c13_154, %c0_155] : memref<160x64xbf16, #tpu.memory_space<vmem>>, vector<120x64xbf16>
    %c4_156 = arith.constant 4 : index
    %c0_157 = arith.constant 0 : index
    %c0_158 = arith.constant 0 : index
    %160 = vector.load %arg8[%c4_156, %c0_157, %c0_158] : memref<9x64x64xbf16, #tpu.memory_space<vmem>>, vector<1x64x64xbf16>
    %161 = vector.shape_cast %160 : vector<1x64x64xbf16> to vector<64x64xbf16>
    %cst_159 = arith.constant dense<0.000000e+00> : vector<120x64xf32>
    %162 = tpu.matmul %159, %161, %cst_159 {dimension_numbers = #tpu.dot_dimension_numbers<[1], [0], [0], [1], [0, 0, 1, 1], [], []>} : vector<120x64xbf16>, vector<64x64xbf16>, vector<120x64xf32> -> vector<120x64xf32>
    %163 = arith.addf %158, %162 : vector<120x64xf32>
    %c14_160 = arith.constant 14 : index
    %c0_161 = arith.constant 0 : index
    %164 = vector.load %arg12[%c14_160, %c0_161] : memref<160x64xbf16, #tpu.memory_space<vmem>>, vector<120x64xbf16>
    %c5_162 = arith.constant 5 : index
    %c0_163 = arith.constant 0 : index
    %c0_164 = arith.constant 0 : index
    %165 = vector.load %arg8[%c5_162, %c0_163, %c0_164] : memref<9x64x64xbf16, #tpu.memory_space<vmem>>, vector<1x64x64xbf16>
    %166 = vector.shape_cast %165 : vector<1x64x64xbf16> to vector<64x64xbf16>
    %cst_165 = arith.constant dense<0.000000e+00> : vector<120x64xf32>
    %167 = tpu.matmul %164, %166, %cst_165 {dimension_numbers = #tpu.dot_dimension_numbers<[1], [0], [0], [1], [0, 0, 1, 1], [], []>} : vector<120x64xbf16>, vector<64x64xbf16>, vector<120x64xf32> -> vector<120x64xf32>
    %168 = arith.addf %163, %167 : vector<120x64xf32>
    %c24 = arith.constant 24 : index
    %c0_166 = arith.constant 0 : index
    %169 = vector.load %arg12[%c24, %c0_166] : memref<160x64xbf16, #tpu.memory_space<vmem>>, vector<120x64xbf16>
    %c6_167 = arith.constant 6 : index
    %c0_168 = arith.constant 0 : index
    %c0_169 = arith.constant 0 : index
    %170 = vector.load %arg8[%c6_167, %c0_168, %c0_169] : memref<9x64x64xbf16, #tpu.memory_space<vmem>>, vector<1x64x64xbf16>
    %171 = vector.shape_cast %170 : vector<1x64x64xbf16> to vector<64x64xbf16>
    %cst_170 = arith.constant dense<0.000000e+00> : vector<120x64xf32>
    %172 = tpu.matmul %169, %171, %cst_170 {dimension_numbers = #tpu.dot_dimension_numbers<[1], [0], [0], [1], [0, 0, 1, 1], [], []>} : vector<120x64xbf16>, vector<64x64xbf16>, vector<120x64xf32> -> vector<120x64xf32>
    %173 = arith.addf %168, %172 : vector<120x64xf32>
    %c25 = arith.constant 25 : index
    %c0_171 = arith.constant 0 : index
    %174 = vector.load %arg12[%c25, %c0_171] : memref<160x64xbf16, #tpu.memory_space<vmem>>, vector<120x64xbf16>
    %c7_172 = arith.constant 7 : index
    %c0_173 = arith.constant 0 : index
    %c0_174 = arith.constant 0 : index
    %175 = vector.load %arg8[%c7_172, %c0_173, %c0_174] : memref<9x64x64xbf16, #tpu.memory_space<vmem>>, vector<1x64x64xbf16>
    %176 = vector.shape_cast %175 : vector<1x64x64xbf16> to vector<64x64xbf16>
    %cst_175 = arith.constant dense<0.000000e+00> : vector<120x64xf32>
    %177 = tpu.matmul %174, %176, %cst_175 {dimension_numbers = #tpu.dot_dimension_numbers<[1], [0], [0], [1], [0, 0, 1, 1], [], []>} : vector<120x64xbf16>, vector<64x64xbf16>, vector<120x64xf32> -> vector<120x64xf32>
    %178 = arith.addf %173, %177 : vector<120x64xf32>
    %c26 = arith.constant 26 : index
    %c0_176 = arith.constant 0 : index
    %179 = vector.load %arg12[%c26, %c0_176] : memref<160x64xbf16, #tpu.memory_space<vmem>>, vector<120x64xbf16>
    %c8_177 = arith.constant 8 : index
    %c0_178 = arith.constant 0 : index
    %c0_179 = arith.constant 0 : index
    %180 = vector.load %arg8[%c8_177, %c0_178, %c0_179] : memref<9x64x64xbf16, #tpu.memory_space<vmem>>, vector<1x64x64xbf16>
    %181 = vector.shape_cast %180 : vector<1x64x64xbf16> to vector<64x64xbf16>
    %cst_180 = arith.constant dense<0.000000e+00> : vector<120x64xf32>
    %182 = tpu.matmul %179, %181, %cst_180 {dimension_numbers = #tpu.dot_dimension_numbers<[1], [0], [0], [1], [0, 0, 1, 1], [], []>} : vector<120x64xbf16>, vector<64x64xbf16>, vector<120x64xf32> -> vector<120x64xf32>
    %183 = arith.addf %178, %182 : vector<120x64xf32>
    %c0_181 = arith.constant 0 : index
    %c0_182 = arith.constant 0 : index
    %184 = vector.load %arg9[%c0_181, %c0_182] : memref<1x64xf32, #tpu.memory_space<vmem>>, vector<1x64xf32>
    %185 = vector.broadcast %184 : vector<1x64xf32> to vector<120x64xf32>
    %186 = arith.addf %183, %185 : vector<120x64xf32>
    %cst_183 = arith.constant 0.000000e+00 : f32
    %187 = vector.broadcast %cst_183 : f32 to vector<120x64xf32>
    %188 = arith.maximumf %186, %187 : vector<120x64xf32>
    %c0_184 = arith.constant 0 : index
    %c0_185 = arith.constant 0 : index
    %c0_186 = arith.constant 0 : index
    %189 = vector.load %arg10[%c0_184, %c0_185, %c0_186] : memref<1x120x64xf32, #tpu.memory_space<vmem>>, vector<1x120x64xf32>
    %190 = vector.shape_cast %189 : vector<1x120x64xf32> to vector<120x64xf32>
    %191 = vector.shape_cast %188 : vector<120x64xf32> to vector<1x120x64xf32>
    tpu.vector_store %arg10[%c0_184, %c0_185, %c0_186], %191 {strides = array<i32>} : memref<1x120x64xf32, #tpu.memory_space<vmem>>, vector<1x120x64xf32>,
    return
  }
  func.func @transform_0(%arg0: i32) -> (i32, i32, i32) {
    %c0_i32 = arith.constant 0 : i32
    %c0_i32_0 = arith.constant 0 : i32
    %c0_i32_1 = arith.constant 0 : i32
    return %arg0, %c0_i32, %c0_i32_0 : i32, i32, i32
  }
  func.func @transform_1(%arg0: i32) -> (i32, i32) {
    %c0_i32 = arith.constant 0 : i32
    %c0_i32_0 = arith.constant 0 : i32
    %c0_i32_1 = arith.constant 0 : i32
    return %c0_i32, %c0_i32_0 : i32, i32
  }
  func.func @transform_2(%arg0: i32) -> (i32, i32) {
    %c0_i32 = arith.constant 0 : i32
    %c0_i32_0 = arith.constant 0 : i32
    %c0_i32_1 = arith.constant 0 : i32
    return %c0_i32, %c0_i32_0 : i32, i32
  }
  func.func @transform_3(%arg0: i32) -> (i32, i32) {
    %c0_i32 = arith.constant 0 : i32
    %c0_i32_0 = arith.constant 0 : i32
    %c0_i32_1 = arith.constant 0 : i32
    return %c0_i32, %c0_i32_0 : i32, i32
  }
  func.func @transform_4(%arg0: i32) -> (i32, i32, i32) {
    %c0_i32 = arith.constant 0 : i32
    %c0_i32_0 = arith.constant 0 : i32
    %c0_i32_1 = arith.constant 0 : i32
    %c0_i32_2 = arith.constant 0 : i32
    return %c0_i32, %c0_i32_0, %c0_i32_1 : i32, i32, i32
  }
  func.func @transform_5(%arg0: i32) -> (i32, i32) {
    %c0_i32 = arith.constant 0 : i32
    %c0_i32_0 = arith.constant 0 : i32
    %c0_i32_1 = arith.constant 0 : i32
    return %c0_i32, %c0_i32_0 : i32, i32
  }
  func.func @transform_6(%arg0: i32) -> (i32, i32) {
    %c0_i32 = arith.constant 0 : i32
    %c0_i32_0 = arith.constant 0 : i32
    %c0_i32_1 = arith.constant 0 : i32
    return %c0_i32, %c0_i32_0 : i32, i32
  }
  func.func @transform_7(%arg0: i32) -> (i32, i32, i32) {
    %c0_i32 = arith.constant 0 : i32
    %c0_i32_0 = arith.constant 0 : i32
    %c0_i32_1 = arith.constant 0 : i32
    %c0_i32_2 = arith.constant 0 : i32
    return %c0_i32, %c0_i32_0, %c0_i32_1 : i32, i32, i32
  }
  func.func @transform_8(%arg0: i32) -> (i32, i32) {
    %c0_i32 = arith.constant 0 : i32
    %c0_i32_0 = arith.constant 0 : i32
    %c0_i32_1 = arith.constant 0 : i32
    return %c0_i32, %c0_i32_0 : i32, i32
  }
  func.func @transform_9(%arg0: i32) -> (i32, i32, i32) {
    %c0_i32 = arith.constant 0 : i32
    %c0_i32_0 = arith.constant 0 : i32
    %c0_i32_1 = arith.constant 0 : i32
    return %arg0, %c0_i32, %c0_i32_0 : i32, i32, i32
  }
}

</mosaic_0001>

<bundles_post_ra>
// kernel: cnn_forward.1
= control target key start
LH: loop header
LB: loop body
LE: loop exit
PB: predicated region body
PF: predicated region fallthrough
CT: control target
= control target key end

     0   :  { %s9490_s30 = smov 0   ;;  %s12762_s0 = inlined_call_operand.vmem [shape: bf16[2,576,256], index: 0, kind: input, shape index: {}]   ;;  %s12763_s1 = inlined_call_operand.vmem [shape: bf16[256,32], index: 1, kind: input, shape index: {}]   ;;  %s12764_s2 = inlined_call_operand.vmem [shape: f32[1,32], index: 2, kind: input, shape index: {}]   ;;  %s12765_s3 = inlined_call_operand.vmem [shape: f32[576,1], index: 3, kind: input, shape index: {}]   ;;  %s12766_s4 = inlined_call_operand.vmem [shape: bf16[16,32,64], index: 4, kind: input, shape index: {}]   ;;  %s12767_s5 = inlined_call_operand.vmem [shape: f32[1,64], index: 5, kind: input, shape index: {}]   ;;  %s12768_s6 = inlined_call_operand.vmem [shape: f32[160,1], index: 6, kind: input, shape index: {}]   ;;  %s12769_s7 = inlined_call_operand.vmem [shape: bf16[9,64,64], index: 7, kind: input, shape index: {}]   ;;  %s12770_s8 = inlined_call_operand.vmem [shape: f32[1,64], index: 8, kind: input, shape index: {}]   ;;  %s12771_s9 = inlined_call_operand.vmem [shape: f32[2,120,64], index: 9, kind: output, shape index: {}]  }
   0x1 LB: > { %s7454_s10 = sadd.s32 4294967295, %s9437_s30   ;;  %p7458_p0 = scmp.ge.s32.totalorder %s9437_s30, 1  ;;  %s9437_s30 = sphi %s9490_s30, %s19_s30  }
   0x2   : > { %p287_p1 = scmp.lt.s32.totalorder %s9437_s30, 3 }
   0x4   : > { %p288_p2 = pnand %p7458_p0, %p287_p1 }
   0x6   : > { %291 = sbr.rel (%p288_p2) target bundleno = 1897 (0x769), region = 56 }
   0xb   : > { %v8770_v0 = vld [vmem:[%s12763_s1 + $0x38] sm:$0xff]  ;;  %v9439_v1 = vmov 0   ;;  %v1366_v2 = vld [vmem:[%s12765_s3 + $0x90] sm:$0xff]  ;;  %v1348_v3 = vld [vmem:[%s12765_s3] sm:$0xff]  ;;  %p323_p3 = scmp.lt.s32.totalorder %s7454_s10, 1  ;;  %vm1924_vm0 = vcmask 257024  }
   0xc   : > { %9407 = vset.pattern.permute.xlu0 %v9439_v1  ;;  %9408 = vset.pattern.permute.xlu1 %v9439_v1  ;;  %v8769_v4 = vld [vmem:[%s12763_s1 + $0x30] sm:$0xff]  ;;  %v8768_v5 = vld [vmem:[%s12763_s1 + $0x28] sm:$0xff]  ;;  %v1367_v6 = vld [vmem:[%s12765_s3 + $0x98] sm:$0xff]  ;;  %1927 = vst.msk [vmem:[#allocation2 + $0x8] sm:$0xf] %vm1924_vm0, %v9439_v1  ;;  %vm2654_vm1 = vcmask 1045504  }
   0xd   : > { %898 = vmatpush.bf16.msra.mxu0 %v8770_v0  ;;  %9312 = vmatpush.bf16.msra.mxu1 %v8770_v0  ;;  %v1349_v7 = vld [vmem:[%s12765_s3 + $0x8] sm:$0xff]  ;;  %v8767_v8 = vld [vmem:[%s12763_s1 + $0x20] sm:$0xff]  ;;  %v8766_v9 = vld [vmem:[%s12763_s1 + $0x18] sm:$0xff]  ;;  %s12936_s10 = smov (!%p323_p3, %s7454_s10), 1  ;;  %1925 = vst.msk [vmem:[#allocation2] sm:$0xf] %vm1924_vm0, %v9439_v1 }
   0xe   : > { %1512 = vperm.xlu0 %9407, %v1366_v2   ;;  %1422 = vperm.xlu1 %9408, %v1348_v3   ;;  %v1350_v10 = vld [vmem:[%s12765_s3 + $0x10] sm:$0xff]  ;;  %v1351_v11 = vld [vmem:[%s12765_s3 + $0x18] sm:$0xff]  ;;  %s9396_s16 = smul.u32 576, %s12936_s10  ;;  %v1368_v13 = vld [vmem:[%s12765_s3 + $0xa0] sm:$0xff]  ;;  %1926 = vst.msk [vmem:[#allocation2 + $0x4] sm:$0xf] %vm1924_vm0, %v9439_v1 }
   0xf   : > { %9409 = vset.pattern.permute.xlu2 %v9439_v1  ;;  %v8765_v12 = vld [vmem:[%s12763_s1 + $0x10] sm:$0xff]  ;;  %v8764_v14 = vld [vmem:[%s12763_s1 + $0x8] sm:$0xff]  ;;  %v1371_v15 = vld [vmem:[%s12765_s3 + $0xb8] sm:$0xff]  ;;  %1928 = vst.msk [vmem:[#allocation2 + $0xc] sm:$0xf] %vm1924_vm0, %v9439_v1  ;;  %vm2303_vm3 = vcmask 261120  }
  0x10   : > { %1522 = vperm.xlu2 %9409, %v1368_v13   ;;  %s9553_s23 = scalar_lea.vmem %s12762_s0, %s9396_s16  ;;  %v1352_v16 = vld [vmem:[%s12765_s3 + $0x20] sm:$0xff]  ;;  %v8778_v22 = vld [vmem:[%s12763_s1 + $0x78] sm:$0xff]  ;;  %v8777_v25 = vld [vmem:[%s12763_s1 + $0x70] sm:$0xff]  ;;  %1929 = vst.msk [vmem:[#allocation2 + $0x10] sm:$0xf] %vm1924_vm0, %v9439_v1  ;;  %vm5787_vm5 = vcmask 519168  }
  0x11   : > { %899 = vmatpush.bf16.msra.mxu0 %v8769_v4  ;;  %9313 = vmatpush.bf16.msra.mxu1 %v8769_v4  ;;  %v8763_v17 = vld [vmem:[%s12763_s1] sm:$0xff]  ;;  %v8692_v19 = vld [vmem:[%s9553_s23 + $0x4] sm:$0xf0]  ;;  %v1370_v31 = vld [vmem:[%s12765_s3 + $0xb0] sm:$0xff]  ;;  %1930 = vst.msk [vmem:[#allocation2 + $0x14] sm:$0xf] %vm1924_vm0, %v9439_v1 }
  0x12   : > { %v7463_v18 = vld [vmem:[%s9553_s23] sm:$0xf]  ;;  %v8756_v21 = vld [vmem:[%s9553_s23 + $0x204] sm:$0xf0]  ;;  %v1355_v32 = vld [vmem:[%s12765_s3 + $0x38] sm:$0xff]  ;;  %vm5969_vm6 = vcmask 523264  }
  0x13   : > { %v7719_v20 = vld [vmem:[%s9553_s23 + $0x200] sm:$0xf]  ;;  %v7464_v23 = vor.u32 %v8692_v19, %v7463_v18  ;;  %v1373_v27 = vld [vmem:[%s12765_s3 + $0xc8] sm:$0xff]  ;;  %v7471_v33 = vld [vmem:[%s9553_s23 + $0x10] sm:$0xf]  ;;  %vm6145_vm7 = vcmask 1046528  }
  0x14   : > { %v7720_v24 = vor.u32 %v8756_v21, %v7719_v20  ;;  %v1372_v26 = vld [vmem:[%s12765_s3 + $0xc0] sm:$0xff]  ;;  %v1369_v28 = vld [vmem:[%s12765_s3 + $0xa8] sm:$0xff]  ;;  %v1374_v34 = vld [vmem:[%s12765_s3 + $0xd0] sm:$0xff]  ;;  %1931 = vst.msk [vmem:[#allocation2 + $0x18] sm:$0xf] %vm1924_vm0, %v9439_v1  ;;  %vm6672_vm9 = vcmask 1044480  }
  0x15   : > { %900 = vmatpush.bf16.msra.mxu0 %v8768_v5  ;;  %9314 = vmatpush.bf16.msra.mxu1 %v8768_v5  ;;  %v8776_v29 = vld [vmem:[%s12763_s1 + $0x68] sm:$0xff]  ;;  %v8775_v30 = vld [vmem:[%s12763_s1 + $0x60] sm:$0xff]  ;;  %v8694_v35 = vld [vmem:[%s9553_s23 + $0x14] sm:$0xf0]  ;;  %1932 = vst.msk [vmem:[#allocation2 + $0x1c] sm:$0xf] %vm1924_vm0, %v9439_v1 }
  0x16   : > { %1517 = vperm.xlu0 %9407, %v1367_v6   ;;  %1427 = vperm.xlu1 %9408, %v1349_v7   ;;  %v7727_v36 = vld [vmem:[%s9553_s23 + $0x210] sm:$0xf]  ;;  %v8758_v37 = vld [vmem:[%s9553_s23 + $0x214] sm:$0xf0]  ;;  %v7472_v39 = vor.u32 %v8694_v35, %v7471_v33  ;;  %v1356_v42 = vld [vmem:[%s12765_s3 + $0x40] sm:$0xff]  ;;  %s9397_s11 = smul.u32 120, %s12936_s10 }
  0x17   : > { %v8774_v38 = vld [vmem:[%s12763_s1 + $0x58] sm:$0xff]  ;;  %v7728_v40 = vor.u32 %v8758_v37, %v7727_v36  ;;  %v8773_v41 = vld [vmem:[%s12763_s1 + $0x50] sm:$0xff]  ;;  %v1357_v43 = vld [vmem:[%s12765_s3 + $0x48] sm:$0xff]  ;;  %1933 = vst.msk [vmem:[#allocation2 + $0x20] sm:$0xf] %vm1924_vm0, %v9439_v1 }
  0x18   : > { %1527 = vperm.xlu2 %9409, %v1369_v28   ;;  %v1353_v44 = vld [vmem:[%s12765_s3 + $0x28] sm:$0xff]  ;;  %v8771_v46 = vld [vmem:[%s12763_s1 + $0x40] sm:$0xff]  ;;  %v1354_v47 = vld [vmem:[%s12765_s3 + $0x30] sm:$0xff]  ;;  %1934 = vst.msk [vmem:[#allocation2 + $0x24] sm:$0xf] %vm1924_vm0, %v9439_v1  ;;  %s12699_s13 = scalar_lea.vmem %s12771_s9, %s9397_s11 }
  0x19   : > { %901 = vmatpush.bf16.msra.mxu0 %v8767_v8  ;;  %9315 = vmatpush.bf16.msra.mxu1 %v8767_v8  ;;  %v8772_v45 = vld [vmem:[%s12763_s1 + $0x48] sm:$0xff]  ;;  %v7479_v49 = vld [vmem:[%s9553_s23 + $0x20] sm:$0xf]  ;;  %v1358_v50 = vld [vmem:[%s12765_s3 + $0x50] sm:$0xff]  ;;  %1935 = vst.msk [vmem:[#allocation2 + $0x28] sm:$0xf] %vm1924_vm0, %v9439_v1 }
  0x1a   : > { %v1377_v48 = vld [vmem:[%s12765_s3 + $0xe8] sm:$0xff]  ;;  %v7735_v52 = vld [vmem:[%s9553_s23 + $0x220] sm:$0xf]  ;;  %v1378_v56 = vld [vmem:[%s12765_s3 + $0xf0] sm:$0xff]  ;;  %1936 = vst.msk [vmem:[#allocation2 + $0x2c] sm:$0xf] %vm1924_vm0, %v9439_v1 }
  0x1b   : > { %v8696_v51 = vld [vmem:[%s9553_s23 + $0x24] sm:$0xf0]  ;;  %v1379_v57 = vld [vmem:[%s12765_s3 + $0xf8] sm:$0xff]  ;;  %v1376_v59 = vld [vmem:[%s12765_s3 + $0xe0] sm:$0xff]  ;;  %1937 = vst.msk [vmem:[#allocation2 + $0x30] sm:$0xf] %vm1924_vm0, %v9439_v1 }
  0x1c   : > { %v8760_v53 = vld [vmem:[%s9553_s23 + $0x224] sm:$0xf0]  ;;  %v7480_v54 = vor.u32 %v8696_v51, %v7479_v49  ;;  %v1375_v58 = vld [vmem:[%s12765_s3 + $0xd8] sm:$0xff]  ;;  %v7487_v61 = vld [vmem:[%s9553_s23 + $0x30] sm:$0xf] }
  0x1d   : > { %902 = vmatpush.bf16.msra.mxu0 %v8766_v9  ;;  %9316 = vmatpush.bf16.msra.mxu1 %v8766_v9  ;;  %v7736_v55 = vor.u32 %v8760_v53, %v7735_v52  ;;  %v1361_v60 = vld [vmem:[%s12765_s3 + $0x68] sm:$0xff]  ;;  %v1380_v62 = vld [vmem:[%s12765_s3 + $0x100] sm:$0xff]  ;;  %v8698_v63 = vld [vmem:[%s9553_s23 + $0x34] sm:$0xf0]  ;;  %1938 = vst.msk [vmem:[#allocation2 + $0x34] sm:$0xf] %vm1924_vm0, %v9439_v1 }
  0x1e   : > { %1432 = vperm.xlu0 %9407, %v1350_v10   ;;  %1437 = vperm.xlu1 %9408, %v1351_v11   ;;  %v7743_v0 = vld [vmem:[%s9553_s23 + $0x230] sm:$0xf]  ;;  %v8762_v2 = vld [vmem:[%s9553_s23 + $0x234] sm:$0xf0]  ;;  %v7488_v3 = vor.u32 %v8698_v63, %v7487_v61  ;;  %v1360_v8 = vld [vmem:[%s12765_s3 + $0x60] sm:$0xff] }
  0x1f   : > { %v7744_v4 = vor.u32 %v8762_v2, %v7743_v0  ;;  %v1362_v5 = vld [vmem:[%s12765_s3 + $0x70] sm:$0xff]  ;;  %v1363_v6 = vld [vmem:[%s12765_s3 + $0x78] sm:$0xff]  ;;  %v7495_v10 = vld [vmem:[%s9553_s23 + $0x40] sm:$0xf]  ;;  %1939 = vst.msk [vmem:[#allocation2 + $0x38] sm:$0xf] %vm1924_vm0, %v9439_v1 }
  0x20   : > { %1532 = vperm.xlu2 %9409, %v1370_v31   ;;  %v1359_v7 = vld [vmem:[%s12765_s3 + $0x58] sm:$0xff]  ;;  %v1364_v11 = vld [vmem:[%s12765_s3 + $0x80] sm:$0xff]  ;;  %v1385_v18 = vld [vmem:[%s12765_s3 + $0x128] sm:$0xff]  ;;  %1940 = vst.msk [vmem:[#allocation2 + $0x3c] sm:$0xf] %vm1924_vm0, %v9439_v1 }
  0x21   : > { %903 = vmatpush.bf16.msra.mxu0 %v8765_v12  ;;  %9317 = vmatpush.bf16.msra.mxu1 %v8765_v12  ;;  %v1383_v9 = vld [vmem:[%s12765_s3 + $0x118] sm:$0xff]  ;;  %v8700_v12 = vld [vmem:[%s9553_s23 + $0x44] sm:$0xf0]  ;;  %v8691_v13 = vld [vmem:[%s9553_s23 + $0x4] sm:$0xf] }
  0x22   : > { %v1381_v19 = vld [vmem:[%s12765_s3 + $0x108] sm:$0xff]  ;;  %v1382_v20 = vld [vmem:[%s12765_s3 + $0x110] sm:$0xff]  ;;  %v1403_v21 = vld [vmem:[%s12765_s3 + $0x1b8] sm:$0xff]  ;;  %1941 = vst.msk [vmem:[#allocation2 + $0x40] sm:$0xf] %vm1924_vm0, %v9439_v1 }
  0x23   : > { %v1365_v31 = vld [vmem:[%s12765_s3 + $0x88] sm:$0xff]  ;;  %v7511_v33 = vld [vmem:[%s9553_s23 + $0x60] sm:$0xf]  ;;  %v8695_v36 = vld [vmem:[%s9553_s23 + $0x24] sm:$0xf] }
  0x24   : > { %v8704_v35 = vld [vmem:[%s9553_s23 + $0x64] sm:$0xf0]  ;;  %v7481_v37 = vld [vmem:[%s9553_s23 + $0x28] sm:$0xf0]  ;;  %v7489_v49 = vld [vmem:[%s9553_s23 + $0x38] sm:$0xf0] }
  0x25   : > { %904 = vmatpush.bf16.msra.mxu0 %v8764_v14  ;;  %9318 = vmatpush.bf16.msra.mxu1 %v8764_v14  ;;  %v7465_v14 = vld [vmem:[%s9553_s23 + $0x8] sm:$0xf0]  ;;  %v1388_v52 = vld [vmem:[%s12765_s3 + $0x140] sm:$0xff]  ;;  %v1410_v53 = vld [vmem:[%s12765_s3 + $0x1f0] sm:$0xff]  ;;  %1942 = vst.msk [vmem:[#allocation2 + $0x44] sm:$0xf] %vm1924_vm0, %v9439_v1 }
  0x26   : > { %1537 = vperm.xlu0 %9407, %v1371_v15   ;;  %1442 = vperm.xlu1 %9408, %v1352_v16   ;;  %v7496_v15 = vor.u32 %v8700_v12, %v7495_v10  ;;  %v7468_v16 = vor.u32 %v8691_v13, %v7465_v14  ;;  %v7497_v61 = vld [vmem:[%s9553_s23 + $0x48] sm:$0xf0]  ;;  %v7535_v10 = vld [vmem:[%s9553_s23 + $0x90] sm:$0xf]  ;;  %v8710_v12 = vld [vmem:[%s9553_s23 + $0x94] sm:$0xf0] }
  0x27   : > { %v8701_v13 = vld [vmem:[%s9553_s23 + $0x54] sm:$0xf]  ;;  %v7505_v14 = vld [vmem:[%s9553_s23 + $0x58] sm:$0xf0]  ;;  %1943 = vst.msk [vmem:[#allocation2 + $0x48] sm:$0xf] %vm1924_vm0, %v9439_v1 }
  0x28   : > { %1447 = vperm.xlu2 %9409, %v1353_v44   ;;  %v1409_v44 = vld [vmem:[%s12765_s3 + $0x1e8] sm:$0xff]  ;;  %1944 = vst.msk [vmem:[#allocation2 + $0x4c] sm:$0xf] %vm1924_vm0, %v9439_v1  ;;  %vm2192_vm2 = vsmask.f32 6400 }
  0x29   : > { %905 = vmatpush.bf16.msra.mxu0 %v8763_v17  ;;  %9319 = vmatpush.bf16.msra.mxu1 %v8763_v17  ;;  %v1384_v17 = vld [vmem:[%s12765_s3 + $0x120] sm:$0xff]  ;;  %1945 = vst.msk [vmem:[#allocation2 + $0x50] sm:$0xf] %vm1924_vm0, %v9439_v1  ;;  %vm3925_vm4 = vsmask.f32 4352 }
  0x2a   : > { %1946 = vst.msk [vmem:[#allocation2 + $0x54] sm:$0xf] %vm1924_vm0, %v9439_v1  ;;  %vm5881_vm8 = vsmask.f32 7424  ;;  %vm6476_vm10 = vsmask.f32 5376 }
  0x2b   : > { %1947 = vst.msk [vmem:[#allocation2 + $0x58] sm:$0xf] %vm1924_vm0, %v9439_v1 }
  0x2c   : > { %906 = vmatmul.bf16.vlgmr.msra.gmra.mxu0 %v7464_v23  ;;  %1066 = vmatmul.bf16.vlgmr.msra.gmra.mxu1 %v7720_v24  ;;  %v1386_v23 = vld [vmem:[%s12765_s3 + $0x130] sm:$0xff]  ;;  %v8702_v24 = vld [vmem:[%s9553_s23 + $0x54] sm:$0xf0]  ;;  %1948 = vst.msk [vmem:[#allocation2 + $0x5c] sm:$0xf] %vm1924_vm0, %v9439_v1 }
  0x2d   : > { %1087 = vmatpush.bf16.msrb.mxu1 %v8778_v22  ;;  %v7503_v22 = vld [vmem:[%s9553_s23 + $0x50] sm:$0xf]  ;;  %1949 = vst.msk [vmem:[#allocation2 + $0x60] sm:$0xf] %vm1924_vm0, %v9439_v1 }
  0x2e   : > { %1542 = vperm.xlu0 %9407, %v1372_v26   ;;  %1547 = vperm.xlu1 %9408, %v1373_v27   ;;  %v7473_v26 = vld [vmem:[%s9553_s23 + $0x18] sm:$0xf0]  ;;  %v7504_v27 = vor.u32 %v8702_v24, %v7503_v22  ;;  %1950 = vst.msk [vmem:[#allocation2 + $0x64] sm:$0xf] %vm1924_vm0, %v9439_v1 }
  0x2f   : > { %1951 = vst.msk [vmem:[#allocation2 + $0x68] sm:$0xf] %vm1924_vm0, %v9439_v1 }
  0x30   : > { %1452 = vperm.xlu2 %9409, %v1354_v47   ;;  %v8706_v47 = vld [vmem:[%s9553_s23 + $0x74] sm:$0xf0]  ;;  %1952 = vst.msk [vmem:[#allocation2 + $0x6c] sm:$0xf] %vm1924_vm0, %v9439_v1 }
  0x31   : > { %1088 = vmatpush.bf16.msrb.mxu1 %v8777_v25  ;;  %v8693_v25 = vld [vmem:[%s9553_s23 + $0x14] sm:$0xf]  ;;  %1953 = vst.msk [vmem:[#allocation2 + $0x70] sm:$0xf] %vm1924_vm0, %v9439_v1 }
  0x32   : > { %v7476_v28 = vor.u32 %v8693_v25, %v7473_v26  ;;  %v1401_v25 = vld [vmem:[%s12765_s3 + $0x1a8] sm:$0xff]  ;;  %v7543_v26 = vld [vmem:[%s9553_s23 + $0xa0] sm:$0xf]  ;;  %1954 = vst.msk [vmem:[#allocation2 + $0x74] sm:$0xf] %vm1924_vm0, %v9439_v1 }
  0x33   : > { %1955 = vst.msk [vmem:[#allocation2 + $0x78] sm:$0xf] %vm1924_vm0, %v9439_v1 }
  0x34   : > { %1956 = vst.msk [vmem:[#allocation2 + $0x7c] sm:$0xf] %vm1924_vm0, %v9439_v1 }
  0x35   : > { %1089 = vmatpush.bf16.msrb.mxu1 %v8776_v29  ;;  %v1404_v29 = vld [vmem:[%s12765_s3 + $0x1c0] sm:$0xff]  ;;  %1957 = vst.msk [vmem:[#allocation2 + $0x80] sm:$0xf] %vm1924_vm0, %v9439_v1 }
  0x36   : > { %1457 = vperm.xlu0 %9407, %v1355_v32   ;;  %1552 = vperm.xlu1 %9408, %v1374_v34   ;;  %v1389_v32 = vld [vmem:[%s12765_s3 + $0x148] sm:$0xff]  ;;  %v1406_v34 = vld [vmem:[%s12765_s3 + $0x1d0] sm:$0xff]  ;;  %1958 = vst.msk [vmem:[#allocation2 + $0x84] sm:$0xf] %vm1924_vm0, %v9439_v1 }
  0x37   : > { %1959 = vst.msk [vmem:[#allocation2 + $0x88] sm:$0xf] %vm1924_vm0, %v9439_v1 }
  0x38   : > { %1557 = vperm.xlu2 %9409, %v1375_v58   ;;  %v1412_v58 = vld [vmem:[%s12765_s3 + $0x200] sm:$0xff]  ;;  %1960 = vst.msk [vmem:[#allocation2 + $0x8c] sm:$0xf] %vm1924_vm0, %v9439_v1 }
  0x39   : > { %1090 = vmatpush.bf16.msrb.mxu1 %v8775_v30  ;;  %v1405_v30 = vld [vmem:[%s12765_s3 + $0x1c8] sm:$0xff]  ;;  %1961 = vst.msk [vmem:[#allocation2 + $0x90] sm:$0xf] %vm1924_vm0, %v9439_v1 }
  0x3a   : > { %1962 = vst.msk [vmem:[#allocation2 + $0x94] sm:$0xf] %vm1924_vm0, %v9439_v1 }
  0x3b   : > { %1963 = vst.msk [vmem:[#allocation2 + $0x98] sm:$0xf] %vm1924_vm0, %v9439_v1 }
  0x3c   : > { %911 = vmatmul.bf16.gmra.mxu0 %v7472_v39  ;;  %1071 = vmatmul.bf16.gmra.mxu1 %v7728_v40  ;;  %v7484_v39 = vor.u32 %v8695_v36, %v7481_v37  ;;  %v1402_v40 = vld [vmem:[%s12765_s3 + $0x1b0] sm:$0xff]  ;;  %v5628_v36 = vld [vmem:[%s12768_s6 + $0x8] sm:$0xff]  ;;  %1964 = vst.msk [vmem:[#allocation2 + $0x9c] sm:$0xf] %vm1924_vm0, %v9439_v1 }
  0x3d   : > { %1091 = vmatpush.bf16.msrb.mxu1 %v8774_v38  ;;  %v7512_v38 = vor.u32 %v8704_v35, %v7511_v33  ;;  %v5627_v35 = vld [vmem:[%s12768_s6] sm:$0xff]  ;;  %1965 = vst.msk [vmem:[#allocation2 + $0xa0] sm:$0xf] %vm1924_vm0, %v9439_v1 }
  0x3e   : > { %1462 = vperm.xlu0 %9407, %v1356_v42   ;;  %1467 = vperm.xlu1 %9408, %v1357_v43   ;;  %v1391_v42 = vld [vmem:[%s12765_s3 + $0x158] sm:$0xff]  ;;  %1966 = vst.msk [vmem:[#allocation2 + $0xa4] sm:$0xf] %vm1924_vm0, %v9439_v1 }
  0x3f   : > { %v1387_v43 = vld [vmem:[%s12765_s3 + $0x138] sm:$0xff]  ;;  %1967 = vst.msk [vmem:[#allocation2 + $0xa8] sm:$0xf] %vm1924_vm0, %v9439_v1 }
  0x40   : > { %1562 = vperm.xlu2 %9409, %v1376_v59   ;;  %v8708_v59 = vld [vmem:[%s9553_s23 + $0x84] sm:$0xf0]  ;;  %1968 = vst.msk [vmem:[#allocation2 + $0xac] sm:$0xf] %vm1924_vm0, %v9439_v1 }
  0x41   : > { %1092 = vmatpush.bf16.msrb.mxu1 %v8773_v41  ;;  %v1390_v41 = vld [vmem:[%s12765_s3 + $0x150] sm:$0xff]  ;;  %1969 = vst.msk [vmem:[#allocation2 + $0xb0] sm:$0xf] %vm1924_vm0, %v9439_v1 }
  0x42   : > { %1970 = vst.msk [vmem:[#allocation2 + $0xb4] sm:$0xf] %vm1924_vm0, %v9439_v1 }
  0x43   : > { %1971 = vst.msk [vmem:[#allocation2 + $0xb8] sm:$0xf] %vm1924_vm0, %v9439_v1 }
  0x44   : > { %1972 = vst.msk [vmem:[#allocation2 + $0xbc] sm:$0xf] %vm1924_vm0, %v9439_v1 }
  0x45   : > { %1093 = vmatpush.bf16.msrb.mxu1 %v8772_v45  ;;  %v7519_v45 = vld [vmem:[%s9553_s23 + $0x70] sm:$0xf]  ;;  %1973 = vst.msk [vmem:[#allocation2 + $0xc0] sm:$0xf] %vm1924_vm0, %v9439_v1 }
  0x46   : > { %1567 = vperm.xlu0 %9407, %v1377_v48   ;;  %1472 = vperm.xlu1 %9408, %v1358_v50   ;;  %v8697_v48 = vld [vmem:[%s9553_s23 + $0x34] sm:$0xf]  ;;  %v7520_v50 = vor.u32 %v8706_v47, %v7519_v45  ;;  %1974 = vst.msk [vmem:[#allocation2 + $0xc4] sm:$0xf] %vm1924_vm0, %v9439_v1 }
  0x47   : > { %v7492_v51 = vor.u32 %v8697_v48, %v7489_v49  ;;  %v5633_v49 = vld [vmem:[%s12768_s6 + $0x30] sm:$0xff]  ;;  %1975 = vst.msk [vmem:[#allocation2 + $0xc8] sm:$0xf] %vm1924_vm0, %v9439_v1 }
  0x48   : > { %1477 = vperm.xlu2 %9409, %v1359_v7   ;;  %1976 = vst.msk [vmem:[#allocation2 + $0xcc] sm:$0xf] %vm1924_vm0, %v9439_v1 }
  0x49   : > { %1094 = vmatpush.bf16.msrb.mxu1 %v8771_v46  ;;  %v1392_v46 = vld [vmem:[%s12765_s3 + $0x160] sm:$0xff]  ;;  %1977 = vst.msk [vmem:[#allocation2 + $0xd0] sm:$0xf] %vm1924_vm0, %v9439_v1 }
  0x4a   : > { %1978 = vst.msk [vmem:[#allocation2 + $0xd4] sm:$0xf] %vm1924_vm0, %v9439_v1 }
  0x4b   : > { %1979 = vst.msk [vmem:[#allocation2 + $0xd8] sm:$0xf] %vm1924_vm0, %v9439_v1 }
  0x4c   : > { %916 = vmatmul.bf16.gmra.mxu0 %v7480_v54  ;;  %1076 = vmatmul.bf16.gmra.mxu1 %v7736_v55  ;;  %v1411_v54 = vld [vmem:[%s12765_s3 + $0x1f8] sm:$0xff]  ;;  %1980 = vst.msk [vmem:[#allocation2 + $0xdc] sm:$0xf] %vm1924_vm0, %v9439_v1 }
  0x4d   : > { %v1407_v55 = vld [vmem:[%s12765_s3 + $0x1d8] sm:$0xff]  ;;  %1981 = vst.msk [vmem:[#allocation2 + $0xe0] sm:$0xf] %vm1924_vm0, %v9439_v1 }
  0x4e   : > { %1572 = vperm.xlu0 %9407, %v1378_v56   ;;  %1577 = vperm.xlu1 %9408, %v1379_v57   ;;  %v1395_v56 = vld [vmem:[%s12765_s3 + $0x178] sm:$0xff]  ;;  %v7527_v57 = vld [vmem:[%s9553_s23 + $0x80] sm:$0xf]  ;;  %1982 = vst.msk [vmem:[#allocation2 + $0xe4] sm:$0xf] %vm1924_vm0, %v9439_v1 }
  0x4f   : > { %1983 = vst.msk [vmem:[#allocation2 + $0xe8] sm:$0xf] %vm1924_vm0, %v9439_v1 }
  0x50   : > { %1482 = vperm.xlu2 %9409, %v1360_v8   ;;  %v1393_v8 = vld [vmem:[%s12765_s3 + $0x168] sm:$0xff]  ;;  %1984 = vst.msk [vmem:[#allocation2 + $0xec] sm:$0xf] %vm1924_vm0, %v9439_v1 }
  0x51   : > { %1985 = vst.msk [vmem:[#allocation2 + $0xf0] sm:$0xf] %vm1924_vm0, %v9439_v1 }
  0x52   : > { %1986 = vst.msk [vmem:[#allocation2 + $0xf4] sm:$0xf] %vm1924_vm0, %v9439_v1 }
  0x53   : > { %1987 = vst.msk [vmem:[#allocation2 + $0xf8] sm:$0xf] %vm1924_vm0, %v9439_v1 }
  0x54   : > { %1988 = vst.msk [vmem:[#allocation2 + $0xfc] sm:$0xf] %vm1924_vm0, %v9439_v1 }
  0x55   : > { %1989 = vst.msk [vmem:[#allocation2 + $0x100] sm:$0xf] %vm1924_vm0, %v9439_v1 }
  0x56   : > { %1487 = vperm.xlu0 %9407, %v1361_v60   ;;  %1582 = vperm.xlu1 %9408, %v1380_v62   ;;  %v8699_v60 = vld [vmem:[%s9553_s23 + $0x44] sm:$0xf]  ;;  %v7528_v62 = vor.u32 %v8708_v59, %v7527_v57  ;;  %v7529_v57 = vld [vmem:[%s9553_s23 + $0x88] sm:$0xf0]  ;;  %1990 = vst.msk [vmem:[#allocation2 + $0x104] sm:$0xf] %vm1924_vm0, %v9439_v1 }
  0x57   : > { %v7500_v63 = vor.u32 %v8699_v60, %v7497_v61  ;;  %1991 = vst.msk [vmem:[#allocation2 + $0x108] sm:$0xf] %vm1924_vm0, %v9439_v1 }
  0x58   : > { %1587 = vperm.xlu2 %9409, %v1381_v19   ;;  %v1394_v19 = vld [vmem:[%s12765_s3 + $0x170] sm:$0xff]  ;;  %1992 = vst.msk [vmem:[#allocation2 + $0x10c] sm:$0xf] %vm1924_vm0, %v9439_v1 }
  0x59   : > { %1993 = vst.msk [vmem:[#allocation2 + $0x110] sm:$0xf] %vm1924_vm0, %v9439_v1 }
  0x5a   : > { %1994 = vst.msk [vmem:[#allocation2 + $0x114] sm:$0xf] %vm1924_vm0, %v9439_v1 }
  0x5b   : > { %1995 = vst.msk [vmem:[#allocation2 + $0x118] sm:$0xf] %vm1924_vm0, %v9439_v1 }
  0x5c   : > { %921 = vmatmul.bf16.gmra.mxu0 %v7488_v3  ;;  %1081 = vmatmul.bf16.gmra.mxu1 %v7744_v4  ;;  %v1408_v3 = vld [vmem:[%s12765_s3 + $0x1e0] sm:$0xff]  ;;  %1996 = vst.msk [vmem:[#allocation2 + $0x11c] sm:$0xf] %vm1924_vm0, %v9439_v1 }
  0x5d   : > { %v1396_v4 = vld [vmem:[%s12765_s3 + $0x180] sm:$0xff]  ;;  %1997 = vst.msk [vmem:[#allocation2 + $0x120] sm:$0xf] %vm1924_vm0, %v9439_v1 }
  0x5e   : > { %1492 = vperm.xlu0 %9407, %v1362_v5   ;;  %1497 = vperm.xlu1 %9408, %v1363_v6   ;;  %v1397_v5 = vld [vmem:[%s12765_s3 + $0x188] sm:$0xff]  ;;  %1998 = vst.msk [vmem:[#allocation2 + $0x124] sm:$0xf] %vm1924_vm0, %v9439_v1 }
  0x5f   : > { %1999 = vst.msk [vmem:[#allocation2 + $0x128] sm:$0xf] %vm1924_vm0, %v9439_v1 }
  0x60   : > { %1592 = vperm.xlu2 %9409, %v1382_v20   ;;  %v1416_v20 = vld [vmem:[%s12765_s3 + $0x220] sm:$0xff]  ;;  %2000 = vst.msk [vmem:[#allocation2 + $0x12c] sm:$0xf] %vm1924_vm0, %v9439_v1 }
  0x61   : > { %2001 = vst.msk [vmem:[#allocation2 + $0x130] sm:$0xf] %vm1924_vm0, %v9439_v1 }
  0x62   : > { %2002 = vst.msk [vmem:[#allocation2 + $0x134] sm:$0xf] %vm1924_vm0, %v9439_v1 }
  0x63   : > { %2003 = vst.msk [vmem:[#allocation2 + $0x138] sm:$0xf] %vm1924_vm0, %v9439_v1 }
  0x64   : > { %2004 = vst.msk [vmem:[#allocation2 + $0x13c] sm:$0xf] %vm1924_vm0, %v9439_v1 }
  0x65   : > { %2005 = vst.msk [vmem:[#allocation2 + $0x140] sm:$0xf] %vm1924_vm0, %v9439_v1 }
  0x66   : > { %1597 = vperm.xlu0 %9407, %v1383_v9   ;;  %1502 = vperm.xlu1 %9408, %v1364_v11   ;;  %v1415_v9 = vld [vmem:[%s12765_s3 + $0x218] sm:$0xff]  ;;  %v1398_v11 = vld [vmem:[%s12765_s3 + $0x190] sm:$0xff]  ;;  %2006 = vst.msk [vmem:[#allocation2 + $0x144] sm:$0xf] %vm1924_vm0, %v9439_v1 }
  0x67   : > { %2007 = vst.msk [vmem:[#allocation2 + $0x148] sm:$0xf] %vm1924_vm0, %v9439_v1 }
  0x68   : > { %1507 = vperm.xlu2 %9409, %v1365_v31   ;;  %2008 = vst.msk [vmem:[#allocation2 + $0x14c] sm:$0xf] %vm1924_vm0, %v9439_v1 }
  0x69   : > { %2009 = vst.msk [vmem:[#allocation2 + $0x150] sm:$0xf] %vm1924_vm0, %v9439_v1 }
  0x6a   : > { %2010 = vst.msk [vmem:[#allocation2 + $0x154] sm:$0xf] %vm1924_vm0, %v9439_v1 }
  0x6b   : > { %2011 = vst.msk [vmem:[#allocation2 + $0x158] sm:$0xf] %vm1924_vm0, %v9439_v1 }
  0x6c   : > { %926 = vmatmul.bf16.gmra.mxu0 %v7496_v15  ;;  %1095 = vmatmul.bf16.vlgmr.msrb.gmra.mxu1 %v7468_v16  ;;  %v7536_v15 = vor.u32 %v8710_v12, %v7535_v10  ;;  %v7508_v16 = vor.u32 %v8701_v13, %v7505_v14  ;;  %v1399_v12 = vld [vmem:[%s12765_s3 + $0x198] sm:$0xff]  ;;  %v5636_v13 = vld [vmem:[%s12768_s6 + $0x48] sm:$0xff]  ;;  %v9992_v14 = vpop.permute.xlu2 %1522  ;;  %2012 = vst.msk [vmem:[#allocation2 + $0x15c] sm:$0xf] %vm1924_vm0, %v9439_v1 }
  0x6e   : > { %1602 = vperm.xlu0 %9407, %v1384_v17   ;;  %1607 = vperm.xlu1 %9408, %v1385_v18  }
  0x70   : > { %1692 = vperm.xlu2 %9409, %v1402_v40   ;;  %v5630_v40 = vld [vmem:[%s12768_s6 + $0x18] sm:$0xff] }
  0x76   : > { %1697 = vperm.xlu0 %9407, %v1403_v21   ;;  %1612 = vperm.xlu1 %9408, %v1386_v23   ;;  %v1417_v21 = vld [vmem:[%s12765_s3 + $0x228] sm:$0xff] }
  0x77   : > { %v1413_v23 = vld [vmem:[%s12765_s3 + $0x208] sm:$0xff] }
  0x78   : > { %1617 = vperm.xlu2 %9409, %v1387_v43   ;;  %v8705_v43 = vld [vmem:[%s9553_s23 + $0x74] sm:$0xf] }
  0x7c   : > { %931 = vmatmul.bf16.gmra.mxu0 %v7504_v27  ;;  %1100 = vmatmul.bf16.gmra.mxu1 %v7476_v28  ;;  %v1418_v27 = vld [vmem:[%s12765_s3 + $0x230] sm:$0xff]  ;;  %v8712_v28 = vld [vmem:[%s9553_s23 + $0xa4] sm:$0xf0] }
  0x7d   : > { %v7544_v31 = vor.u32 %v8712_v28, %v7543_v26  ;;  %v5639_v26 = vld [vmem:[%s12768_s6 + $0x60] sm:$0xff]  ;;  %v8709_v28 = vld [vmem:[%s9553_s23 + $0x94] sm:$0xf] }
  0x7e   : > { %1702 = vperm.xlu0 %9407, %v1404_v29   ;;  %1707 = vperm.xlu1 %9408, %v1405_v30   ;;  %v8703_v29 = vld [vmem:[%s9553_s23 + $0x64] sm:$0xf]  ;;  %v7513_v30 = vld [vmem:[%s9553_s23 + $0x68] sm:$0xf0] }
  0x80   : > { %1622 = vperm.xlu2 %9409, %v1388_v52  }
  0x86   : > { %1627 = vperm.xlu0 %9407, %v1389_v32   ;;  %1712 = vperm.xlu1 %9408, %v1406_v34   ;;  %v7516_v32 = vor.u32 %v8703_v29, %v7513_v30  ;;  %v1414_v34 = vld [vmem:[%s12765_s3 + $0x210] sm:$0xff]  ;;  %v7537_v29 = vld [vmem:[%s9553_s23 + $0x98] sm:$0xf0]  ;;  %v5640_v30 = vld [vmem:[%s12768_s6 + $0x68] sm:$0xff] }
  0x88   : > { %1717 = vperm.xlu2 %9409, %v1407_v55   ;;  %v8716_v55 = vld [vmem:[%s9553_s23 + $0xc4] sm:$0xf0] }
  0x8c   : > { %936 = vmatmul.bf16.gmra.mxu0 %v7512_v38  ;;  %1105 = vmatmul.bf16.gmra.mxu1 %v7484_v39  ;;  %v7551_v39 = vld [vmem:[%s9553_s23 + $0xb0] sm:$0xf] }
  0x8e   : > { %1632 = vperm.xlu0 %9407, %v1390_v41   ;;  %1637 = vperm.xlu1 %9408, %v1391_v42   ;;  %v8714_v41 = vld [vmem:[%s9553_s23 + $0xb4] sm:$0xf0]  ;;  %v5631_v42 = vld [vmem:[%s12768_s6 + $0x20] sm:$0xff] }
  0x90   : > { %1722 = vperm.xlu2 %9409, %v1408_v3   ;;  %v1423_v3 = vpop.permute.xlu1 %1422 }
  0x96   : > { %1727 = vperm.xlu0 %9407, %v1409_v44   ;;  %1642 = vperm.xlu1 %9408, %v1392_v46   ;;  %v7521_v44 = vld [vmem:[%s9553_s23 + $0x78] sm:$0xf0]  ;;  %v7552_v46 = vor.u32 %v8714_v41, %v7551_v39 }
  0x97   : > { %v7524_v47 = vor.u32 %v8705_v43, %v7521_v44  ;;  %v1419_v39 = vld [vmem:[%s12765_s3 + $0x238] sm:$0xff]  ;;  %v5643_v43 = vld [vmem:[%s12768_s6 + $0x80] sm:$0xff] }
  0x98   : > { %1647 = vperm.xlu2 %9409, %v1393_v8  }
  0x9c   : > { %941 = vmatmul.bf16.gmra.mxu0 %v7520_v50  ;;  %1110 = vmatmul.bf16.gmra.mxu1 %v7492_v51  ;;  %v5634_v50 = vld [vmem:[%s12768_s6 + $0x38] sm:$0xff] }
  0x9e   : > { %1732 = vperm.xlu0 %9407, %v1410_v53   ;;  %1737 = vperm.xlu1 %9408, %v1411_v54   ;;  %v9903_v53 = vld [vmem:[%s12764_s2] ss:$0 sm:$0xff] }
  0x9f   : > { %v7559_v54 = vld [vmem:[%s9553_s23 + $0xc0] sm:$0xf] }
  0xa0   : > { %1652 = vperm.xlu2 %9409, %v1394_v19   ;;  %v7560_v59 = vor.u32 %v8716_v55, %v7559_v54 }
  0xa6   : > { %1657 = vperm.xlu0 %9407, %v1395_v56   ;;  %1742 = vperm.xlu1 %9408, %v1412_v58   ;;  %v8707_v56 = vld [vmem:[%s9553_s23 + $0x84] sm:$0xf] }
  0xa7   : > { %v7532_v60 = vor.u32 %v8707_v56, %v7529_v57  ;;  %v7575_v56 = vld [vmem:[%s9553_s23 + $0xe0] sm:$0xf]  ;;  %v8720_v57 = vld [vmem:[%s9553_s23 + $0xe4] sm:$0xf0] }
  0xa8   : > { %1747 = vperm.xlu2 %9409, %v1413_v23  }
  0xa9   : > { %v9765_v0 = vpop.f32.mrf.mxu0  ;;  %v9767_v2 = vpop.f32.mrf.mxu1 }
  0xaa   : > { %v908_v58 = vadd.f32 %v9903_v53, %v9765_v0 }
  0xac   : > { %946 = vmatmul.bf16.gmra.mxu0 %v7528_v62  ;;  %1115 = vmatmul.bf16.gmra.mxu1 %v7500_v63 }
  0xae   : > { %1662 = vperm.xlu0 %9407, %v1396_v4   ;;  %1667 = vperm.xlu1 %9408, %v1397_v5  }
  0xb0   : > { %1752 = vperm.xlu2 %9409, %v1414_v34   ;;  %v10039_v34 = vpop.permute.xlu2 %1527 }
  0xb1   : > { %v9778_v6 = vpop.f32.mrf.mxu0  ;;  %v9780_v7 = vpop.f32.mrf.mxu1 }
  0xb6   : > { %1757 = vperm.xlu0 %9407, %v1415_v9   ;;  %1672 = vperm.xlu1 %9408, %v1398_v11   ;;  %v9976_v11 = vpop.permute.xlu0 %1512 }
  0xb8   : > { %1677 = vperm.xlu2 %9409, %v1399_v12  }
  0xb9   : > { %v9795_v17 = vpop.f32.mrf.mxu0  ;;  %v9797_v18 = vpop.f32.mrf.mxu1 }
  0xba   : > { %12783 = vst [vmem:[#allocation4_spill] sm:$0xff] %v9797_v18 }
  0xbc   : > { %951 = vmatmul.bf16.gmra.mxu0 %v7536_v15  ;;  %1120 = vmatmul.bf16.gmra.mxu1 %v7508_v16  ;;  %v5637_v15 = vld [vmem:[%s12768_s6 + $0x50] sm:$0xff] }
  0xbe   : > { %1762 = vperm.xlu0 %9407, %v1416_v20   ;;  %1767 = vperm.xlu1 %9408, %v1417_v21   ;;  %v7567_v20 = vld [vmem:[%s9553_s23 + $0xd0] sm:$0xf]  ;;  %v8718_v21 = vld [vmem:[%s9553_s23 + $0xd4] sm:$0xf0]  ;;  %v10015_v23 = vpop.permute.xlu0 %1517 }
  0xc1   : > { %v9808_v22 = vpop.f32.mrf.mxu1  ;;  %v9813_v24 = vpop.f32.mrf.mxu0 }
  0xc2   : > { %12784 = vst [vmem:[#allocation5_spill] sm:$0xff] %v9808_v22 }
  0xc6   : > { %1687 = vperm.xlu0 %9407, %v1401_v25   ;;  %1772 = vperm.xlu1 %9408, %v1418_v27   ;;  %v1400_v25 = vld [vmem:[%s12765_s3 + $0x1a0] sm:$0xff]  ;;  %v7568_v27 = vor.u32 %v8718_v21, %v7567_v20  ;;  %v1433_v44 = vpop.permute.xlu0 %1432  ;;  %v5632_v20 = vld [vmem:[%s12768_s6 + $0x28] sm:$0xff] }
  0xc7   : > { %1682 = vperm.xlu2 %9409, %v1400_v25  }
  0xc9   : > { %v9825_v33 = vpop.f32.mrf.mxu1  ;;  %v9836_v37 = vpop.f32.mrf.mxu0 }
  0xca   : > { %12785 = vst [vmem:[#allocation6_spill] sm:$0xff] %v9825_v33  ;;  %v918_v54 = vadd.f32 %v9903_v53, %v9836_v37  ;;  %v7545_v37 = vld [vmem:[%s9553_s23 + $0xa8] sm:$0xf0] }
  0xcc   : > { %956 = vmatmul.bf16.gmra.mxu0 %v7544_v31  ;;  %1125 = vmatmul.bf16.gmra.mxu1 %v7516_v32  ;;  %v7540_v31 = vor.u32 %v8709_v28, %v7537_v29  ;;  %v8789_v32 = vld [vmem:[%s12766_s4 + $0x8] sm:$0xff]  ;;  %v2089_v28 = vld [vmem:[#allocation2 + $0x4] sm:$0xf] }
  0xcd   : > { %2592 = vmatpush.bf16.msra.mxu3 %v8789_v32 }
  0xce   : > { %5649 = vperm.xlu0 %9407, %v5627_v35   ;;  %5654 = vperm.xlu1 %9408, %v5628_v36   ;;  %v8788_v35 = vld [vmem:[%s12766_s4] sm:$0xff]  ;;  %v10048_v36 = vpop.permute.xlu1 %1427 }
  0xcf   : > { %1777 = vperm.xlu2 %9409, %v1419_v39  }
  0xd1   : > { %v9838_v38 = vpop.f32.mrf.mxu1  ;;  %v9862_v45 = vpop.f32.mrf.mxu0  ;;  %2593 = vmatpush.bf16.msra.mxu3 %v8788_v35 }
  0xd2   : > { %12786 = vst [vmem:[#allocation7_spill] sm:$0xff] %v9838_v38 }
  0xd6   : > { %5664 = vperm.xlu0 %9407, %v5630_v40   ;;  %5669 = vperm.xlu1 %9408, %v5631_v42   ;;  %v5642_v40 = vld [vmem:[%s12768_s6 + $0x78] sm:$0xff] }
  0xd9   : > { %v9868_v48 = vpop.f32.mrf.mxu1  ;;  %v9892_v51 = vpop.f32.mrf.mxu0 }
  0xda   : > { %12787 = vst [vmem:[#allocation8_spill] sm:$0xff] %v9868_v48 }
  0xdc   : > { %961 = vmatmul.bf16.gmra.mxu0 %v7552_v46  ;;  %1130 = vmatmul.bf16.gmra.mxu1 %v7524_v47  ;;  %v913_v46 = vadd.f32 %v9903_v53, %v9795_v17  ;;  %v910_v47 = vadd.f32 %v9903_v53, %v9778_v6  ;;  %v5645_v17 = vld [vmem:[%s12768_s6 + $0x90] sm:$0xff] }
  0xde   : > { %5679 = vperm.xlu0 %9407, %v5633_v49   ;;  %5684 = vperm.xlu1 %9408, %v5634_v50   ;;  %v10081_v49 = vpop.permute.xlu2 %1532  ;;  %v5629_v50 = vld [vmem:[%s12768_s6 + $0x10] sm:$0xff] }
  0xdf   : > { %5659 = vperm.xlu2 %9409, %v5629_v50   ;;  %v2645_v50 = vld [vmem:[#allocation2] sm:$0xc] }
  0xe1   : > { %v9894_v52 = vpop.f32.mrf.mxu1  ;;  %v9927_v63 = vpop.f32.mrf.mxu0 }
  0xe2   : > { %12788 = vst [vmem:[#allocation9_spill] sm:$0xff] %v9894_v52 }
  0xe6   : > { %5694 = vperm.xlu0 %9407, %v5636_v13   ;;  %5699 = vperm.xlu1 %9408, %v5637_v15   ;;  %v920_v15 = vadd.f32 %v9903_v53, %v9862_v45 }
  0xe7   : > { %5674 = vperm.xlu2 %9409, %v5632_v20  }
  0xe9   : > { %v1096_v61 = vpop.f32.mrf.mxu1  ;;  %v9948_v8 = vpop.f32.mrf.mxu0 }
  0xea   : > { %v1097_v62 = vadd.f32 %v1096_v61, %v908_v58  ;;  %v1438_v58 = vpop.permute.xlu1 %1437  ;;  %v7576_v61 = vor.u32 %v8720_v57, %v7575_v56 }
  0xec   : > { %v1276_v0 = vmax.f32 %v1097_v62, 0.0  ;;  %966 = vmatmul.bf16.gmra.mxu0 %v7560_v59  ;;  %1135 = vmatmul.bf16.gmra.mxu1 %v7532_v60  ;;  %v915_v59 = vadd.f32 %v9903_v53, %v9813_v24  ;;  %v8711_v62 = vld [vmem:[%s9553_s23 + $0xa4] sm:$0xf]  ;;  %v5646_v24 = vld [vmem:[%s12768_s6 + $0x98] sm:$0xff] }
  0xee   : > { %v1780_v4 = vmul.f32 %v1423_v3, %v1276_v0  ;;  %5709 = vperm.xlu0 %9407, %v5639_v26   ;;  %5714 = vperm.xlu1 %9408, %v5640_v30   ;;  %v7548_v3 = vor.u32 %v8711_v62, %v7545_v37  ;;  %v1448_v30 = vpop.permute.xlu2 %1447 }
  0xf0   : > { %v1852_v5 = vpack.c.bf16 %v1780_v4, %v1780_v4 }
  0xf1   : > { %v9972_v9 = vpop.f32.mrf.mxu0  ;;  %v9974_v10 = vpop.f32.mrf.mxu1 }
  0xf2   : > { %2013 = vst.msk [vmem:[#allocation2 + $0x8] sm:$0xf] %vm1924_vm0, %v1852_v5  ;;  %v1099_v60 = vadd.f32 %v9974_v10, %v910_v47  ;;  %v10116_v10 = vpop.permute.xlu0 %1537  ;;  %v1443_v32 = vpop.permute.xlu1 %1442 }
  0xf4   : > { %v1277_v12 = vmax.f32 %v1099_v60, 0.0  ;;  %v8722_v60 = vld [vmem:[%s9553_s23 + $0xf4] sm:$0xf0] }
  0xf6   : > { %5724 = vperm.xlu0 %9407, %v5642_v40   ;;  %5729 = vperm.xlu1 %9408, %v5643_v43   ;;  %v1781_v45 = vmul.f32 %v10048_v36, %v1277_v12  ;;  %v923_v43 = vadd.f32 %v9903_v53, %v9892_v51 }
  0xf9   : > { %v10009_v16 = vpop.f32.mrf.mxu0  ;;  %v10011_v19 = vpop.f32.mrf.mxu1 }
  0xfa   : > { %v1102_v0 = vadd.f32 %v10011_v19, %v913_v46 }
  0xfc   : > { %971 = vmatmul.bf16.gmra.mxu0 %v7568_v27  ;;  %1140 = vmatmul.bf16.gmra.mxu1 %v7540_v31  ;;  %v1278_v13 = vmax.f32 %v1102_v0, 0.0  ;;  %v2088_v27 = vld [vmem:[#allocation2] sm:$0xe]  ;;  %v8713_v0 = vld [vmem:[%s9553_s23 + $0xb4] sm:$0xf] }
  0xfd   : > { %v2414_v36 = vunpack.c.l.b16 %v2088_v27 }
  0xfe   : > { %5739 = vperm.xlu0 %9407, %v5645_v17   ;;  %5744 = vperm.xlu1 %9408, %v5646_v24   ;;  %v1782_v31 = vmul.f32 %v1433_v44, %v1278_v13  ;;  %v1853_v44 = vpack.c.bf16 %v1781_v45, %v1781_v45  ;;  %v10148_v17 = vpop.permute.xlu0 %1542  ;;  %v2652_v24 = vunpack.c.l.b16 %v2645_v50  ;;  %v5638_v45 = vld [vmem:[%s12768_s6 + $0x58] sm:$0xff] }
 0x100   : > { %v1854_v47 = vpack.c.bf16 %v1782_v31, %v1782_v31  ;;  %2014 = vst.msk [vmem:[#allocation2 + $0xc] sm:$0xf] %vm1924_vm0, %v1853_v44 }
 0x101   : > { %v10060_v41 = vpop.f32.mrf.mxu0  ;;  %v1103_v42 = vpop.f32.mrf.mxu1 }
 0x102   : > { %v1104_v4 = vadd.f32 %v1103_v42, %v915_v59  ;;  %v2415_v42 = vunpack.c.l.b16 %v2089_v28  ;;  %v7583_v59 = vld [vmem:[%s9553_s23 + $0xf0] sm:$0xf]  ;;  %2015 = vst.msk [vmem:[#allocation2 + $0x10] sm:$0xf] %vm1924_vm0, %v1854_v47  ;;  %v928_v47 = vadd.f32 %v9903_v53, %v9948_v8 }
 0x103   : > { %v7584_v37 = vor.u32 %v8722_v60, %v7583_v59  ;;  %v5641_v59 = vld [vmem:[%s12768_s6 + $0x70] sm:$0xff] }
 0x104   : > { %v1279_v19 = vmax.f32 %v1104_v4, 0.0  ;;  %v2435_v56 = vpack.c.b16 %v2415_v42, %v2414_v36  ;;  %v2653_v20 = vpack.c.b16 %v2415_v42, %v2652_v24 }
 0x106   : > { %v1783_v35 = vmul.f32 %v1438_v58, %v1279_v19  ;;  %v2447_v12 = vshrl.u32 %v2435_v56, 16  ;;  %v2450_v13 = vshll.u32 %v2435_v56, 16 }
 0x107   : > { %v8779_v27 = vld [vmem:[#allocation2 + $0x8] sm:$0xff] }
 0x108   : > { %v1855_v51 = vpack.c.bf16 %v1783_v35, %v1783_v35  ;;  %v2449_v28 = vrot.slane %v2447_v12, 1  ;;  %v2655_v35 = vrot.slane %v2653_v20, 2  ;;  %v2458_v36 = vshll.u32 %v8779_v27, 16  ;;  %v7561_v12 = vld [vmem:[%s9553_s23 + $0xc8] sm:$0xf0] }
 0x109   : > { %v10095_v6 = vpop.f32.mrf.mxu0  ;;  %v1106_v55 = vpop.f32.mrf.mxu1 }
 0x10a   : > { %v1107_v5 = vadd.f32 %v1106_v55, %v918_v54  ;;  %v5635_v54 = vld [vmem:[%s12768_s6 + $0x40] sm:$0xff]  ;;  %2016 = vst.msk [vmem:[#allocation2 + $0x14] sm:$0xf] %vm1924_vm0, %v1855_v51 }
 0x10b   : > { %5689 = vperm.xlu2 %9409, %v5635_v54  }
 0x10c   : > { %976 = vmatmul.bf16.gmra.mxu0 %v7576_v61  ;;  %1145 = vmatmul.bf16.gmra.mxu1 %v7548_v3  ;;  %v1280_v21 = vmax.f32 %v1107_v5, 0.0  ;;  %v7553_v3 = vld [vmem:[%s9553_s23 + $0xb8] sm:$0xf0]  ;;  %v1453_v5 = vpop.permute.xlu2 %1452 }
 0x10d   : > { %v7556_v4 = vor.u32 %v8713_v0, %v7553_v3  ;;  %v8724_v0 = vld [vmem:[%s9553_s23 + $0x104] sm:$0xf0] }
 0x10e   : > { %v1784_v40 = vmul.f32 %v1443_v32, %v1280_v21  ;;  %v925_v21 = vadd.f32 %v9903_v53, %v9927_v63  ;;  %v2656_v63 = vrot.slane %v8779_v27, 2 }
 0x110   : > { %v1856_v55 = vpack.c.bf16 %v1784_v40, %v1784_v40  ;;  %v2455_v40 = vshrl.u32 %v8779_v27, 16  ;;  %v10181_v51 = vsel %vm2654_vm1, %v2655_v35, %v2656_v63  ;;  %v930_v35 = vadd.f32 %v9903_v53, %v9972_v9 }
 0x111   : > { %v10131_v25 = vpop.f32.mrf.mxu0  ;;  %v1108_v26 = vpop.f32.mrf.mxu1 }
 0x112   : > { %v1109_v29 = vadd.f32 %v1108_v26, %v920_v15  ;;  %2017 = vst.msk [vmem:[#allocation2 + $0x18] sm:$0xf] %vm1924_vm0, %v1856_v55  ;;  %v10167_v15 = vpop.permute.xlu1 %1547  ;;  %v2457_v44 = vrot.slane %v2455_v40, 1  ;;  %v8780_v55 = vld [vmem:[#allocation2 + $0x10] sm:$0xff]  ;;  %v5644_v40 = vld [vmem:[%s12768_s6 + $0x88] sm:$0xff] }
 0x113   : > { %5704 = vperm.xlu2 %9409, %v5638_v45   ;;  %v2658_v20 = vrot.slane %v8780_v55, 2 }
 0x114   : > { %v1281_v39 = vmax.f32 %v1109_v29, 0.0  ;;  %v2452_v29 = vrot.slane %v2450_v13, 2  ;;  %v10200_v45 = vpop.permute.xlu2 %1557 }
 0x116   : > { %v1785_v46 = vmul.f32 %v1448_v30, %v1281_v39  ;;  %v1458_v39 = vpop.permute.xlu0 %1457 }
 0x118   : > { %v1857_v61 = vpack.c.bf16 %v1785_v46, %v1785_v46  ;;  %v2460_v46 = vrot.slane %v2458_v36, 2 }
 0x119   : > { %v10157_v57 = vpop.f32.mrf.mxu0  ;;  %v1111_v58 = vpop.f32.mrf.mxu1 }
 0x11a   : > { %v1112_v62 = vadd.f32 %v1111_v58, %v923_v43  ;;  %2018 = vst.msk [vmem:[#allocation2 + $0x1c] sm:$0xf] %vm1924_vm0, %v1857_v61  ;;  %v2453_v43 = vor.u32 %v2452_v29, %v2449_v28  ;;  %v2461_v54 = vor.u32 %v2460_v46, %v2457_v44  ;;  %v10183_v56 = vpop.permute.xlu1 %1552  ;;  %v10203_v28 = vsel %vm2654_vm1, %v2656_v63, %v2658_v20 }
 0x11b   : > { %5719 = vperm.xlu2 %9409, %v5641_v59  }
 0x11c   : > { %v1282_v1 = vmax.f32 %v1112_v62, 0.0  ;;  %981 = vmatmul.bf16.gmra.mxu0 %v7584_v37  ;;  %1150 = vmatmul.bf16.gmra.mxu1 %v7556_v4  ;;  %v2462_v60 = vsel %vm2192_vm2, %v2453_v43, %v2461_v54  ;;  %v7591_v37 = vld [vmem:[%s9553_s23 + $0x100] sm:$0xf]  ;;  %v8715_v4 = vld [vmem:[%s9553_s23 + $0xc4] sm:$0xf] }
 0x11d   : > { %7915 = vmatmul.msk.bf16.vlgmr.msra.gmra.mxu3 %vm2303_vm3, %v2462_v60  ;;  %v7592_v24 = vor.u32 %v8724_v0, %v7591_v37  ;;  %v10225_v60 = vpop.permute.xlu2 %1562 }
 0x11e   : > { %v1786_v19 = vmul.f32 %v1453_v5, %v1282_v1  ;;  %v2464_v1 = vshrl.u32 %v8780_v55, 16  ;;  %v2467_v5 = vshll.u32 %v8780_v55, 16 }
 0x120   : > { %v1858_v26 = vpack.c.bf16 %v1786_v19, %v1786_v19  ;;  %v7564_v19 = vor.u32 %v8715_v4, %v7561_v12  ;;  %v2466_v29 = vrot.slane %v2464_v1, 1  ;;  %v8717_v4 = vld [vmem:[%s9553_s23 + $0xd4] sm:$0xf] }
 0x121   : > { %v10175_v30 = vpop.f32.mrf.mxu0  ;;  %v1113_v31 = vpop.f32.mrf.mxu1  ;;  %v10191_v62 = vld [vmem:[#allocation2 + $0x18] sm:$0xff] }
 0x122   : > { %2019 = vst.msk [vmem:[#allocation2 + $0x20] sm:$0xf] %vm1924_vm0, %v1858_v26  ;;  %v1114_v32 = vadd.f32 %v1113_v31, %v925_v21  ;;  %v1463_v21 = vpop.permute.xlu0 %1462  ;;  %v2660_v26 = vrot.slane %v10191_v62, 2  ;;  %v2469_v31 = vrot.slane %v2467_v5, 2  ;;  %v1468_v44 = vpop.permute.xlu1 %1467  ;;  %v7569_v5 = vld [vmem:[%s9553_s23 + $0xd8] sm:$0xf0] }
 0x123   : > { %5734 = vperm.xlu2 %9409, %v5644_v40   ;;  %v2473_v12 = vshrl.u32 %v10191_v62, 16 }
 0x124   : > { %v1283_v42 = vmax.f32 %v1114_v32, 0.0  ;;  %v10206_v32 = vsel %vm2654_vm1, %v2658_v20, %v2660_v26  ;;  %v2470_v46 = vor.u32 %v2469_v31, %v2466_v29  ;;  %v935_v31 = vadd.f32 %v9903_v53, %v10060_v41 }
 0x125   : > { %v938_v41 = vadd.f32 %v9903_v53, %v10095_v6 }
 0x126   : > { %v1787_v50 = vmul.f32 %v1458_v39, %v1283_v42  ;;  %v2471_v59 = vsel %vm2192_vm2, %v2461_v54, %v2470_v46  ;;  %v2476_v54 = vshll.u32 %v10191_v62, 16 }
 0x128   : > { %v1859_v58 = vpack.c.bf16 %v1787_v50, %v1787_v50  ;;  %v933_v50 = vadd.f32 %v9903_v53, %v10009_v16  ;;  %v2478_v29 = vrot.slane %v2476_v54, 2  ;;  %v7577_v54 = vld [vmem:[%s9553_s23 + $0xe8] sm:$0xf0] }
 0x129   : > { %v10189_v8 = vpop.f32.mrf.mxu0  ;;  %v1116_v61 = vpop.f32.mrf.mxu1 }
 0x12a   : > { %2020 = vst.msk [vmem:[#allocation2 + $0x24] sm:$0xf] %vm1924_vm0, %v1859_v58  ;;  %v1117_v3 = vadd.f32 %v1116_v61, %v928_v47  ;;  %v1473_v20 = vpop.permute.xlu1 %1472 }
 0x12c   : > { %v1284_v13 = vmax.f32 %v1117_v3, 0.0  ;;  %986 = vmatmul.bf16.gmra.mxu0 %v7592_v24  ;;  %1155 = vmatmul.bf16.gmra.mxu1 %v7564_v19  ;;  %v7599_v3 = vld [vmem:[%s9553_s23 + $0x110] sm:$0xf]  ;;  %v8726_v24 = vld [vmem:[%s9553_s23 + $0x114] sm:$0xf0] }
 0x12d   : > { %7916 = vmatmul.msk.bf16.gmra.mxu3 %vm2303_vm3, %v2471_v59  ;;  %v7600_v1 = vor.u32 %v8726_v24, %v7599_v3 }
 0x12e   : > { %v1788_v27 = vmul.f32 %v1463_v21, %v1284_v13  ;;  %v7572_v13 = vor.u32 %v8717_v4, %v7569_v5  ;;  %v10237_v21 = vpop.permute.xlu0 %1567  ;;  %v8719_v5 = vld [vmem:[%s9553_s23 + $0xe4] sm:$0xf] }
 0x130   : > { %v1860_v39 = vpack.c.bf16 %v1788_v27, %v1788_v27  ;;  %v2475_v27 = vrot.slane %v2473_v12, 1 }
 0x131   : > { %v10213_v36 = vpop.f32.mrf.mxu0  ;;  %v1118_v42 = vpop.f32.mrf.mxu1  ;;  %v10215_v43 = vld [vmem:[#allocation2 + $0x20] sm:$0xff] }
 0x132   : > { %2021 = vst.msk [vmem:[#allocation2 + $0x28] sm:$0xf] %vm1924_vm0, %v1860_v39  ;;  %v1119_v63 = vadd.f32 %v1118_v42, %v930_v35  ;;  %v2662_v47 = vrot.slane %v10215_v43, 2 }
 0x134   : > { %v1285_v9 = vmax.f32 %v1119_v63, 0.0  ;;  %v10222_v58 = vsel %vm2654_vm1, %v2660_v26, %v2662_v47  ;;  %v1478_v63 = vpop.permute.xlu2 %1477 }
 0x136   : > { %v1789_v55 = vmul.f32 %v1468_v44, %v1285_v9  ;;  %v2479_v44 = vor.u32 %v2478_v29, %v2475_v27 }
 0x138   : > { %v1861_v61 = vpack.c.bf16 %v1789_v55, %v1789_v55 }
 0x139   : > { %v10227_v37 = vpop.f32.mrf.mxu0  ;;  %v1121_v0 = vpop.f32.mrf.mxu1  ;;  %v9329_v18 = vld [vmem:[#allocation2 + $0x24] sm:$0xff]  }
 0x13a   : > { %2022 = vst.msk [vmem:[#allocation2 + $0x2c] sm:$0xf] %vm1924_vm0, %v1861_v61  ;;  %v1122_v16 = vadd.f32 %v1121_v0, %v933_v50  ;;  %v2480_v61 = vsel %vm2192_vm2, %v2470_v46, %v2479_v44  ;;  %v10253_v0 = vpop.permute.xlu0 %1572  ;;  %v2485_v46 = vshll.u32 %v10215_v43, 16 }
 0x13c   : > { %v1286_v19 = vmax.f32 %v1122_v16, 0.0  ;;  %991 = vmatmul.bf16.gmra.mxu0 %v7600_v1  ;;  %1160 = vmatmul.bf16.gmra.mxu1 %v7572_v13  ;;  %v7607_v16 = vld [vmem:[%s9553_s23 + $0x120] sm:$0xf]  ;;  %v8728_v1 = vld [vmem:[%s9553_s23 + $0x124] sm:$0xf0]  ;;  %v7580_v13 = vor.u32 %v8719_v5, %v7577_v54 }
 0x13d   : > { %7917 = vmatmul.msk.bf16.gmra.mxu3 %vm2303_vm3, %v2480_v61  ;;  %v7608_v12 = vor.u32 %v8728_v1, %v7607_v16 }
 0x13e   : > { %v1790_v26 = vmul.f32 %v1473_v20, %v1286_v19  ;;  %v1483_v20 = vpop.permute.xlu2 %1482 }
 0x140   : > { %v1862_v35 = vpack.c.bf16 %v1790_v26, %v1790_v26  ;;  %v10265_v26 = vpop.permute.xlu1 %1577 }
 0x141   : > { %v10241_v39 = vpop.f32.mrf.mxu0  ;;  %v1123_v40 = vpop.f32.mrf.mxu1  ;;  %v10243_v42 = vld [vmem:[#allocation2 + $0x28] sm:$0xff] }
 0x142   : > { %2023 = vst.msk [vmem:[#allocation2 + $0x30] sm:$0xf] %vm1924_vm0, %v1862_v35  ;;  %v1124_v62 = vadd.f32 %v1123_v40, %v935_v31  ;;  %v2664_v50 = vrot.slane %v10243_v42, 2  ;;  %v2487_v31 = vrot.slane %v2485_v46, 2  ;;  %v940_v35 = vadd.f32 %v9903_v53, %v10131_v25  ;;  %v8730_v46 = vld [vmem:[%s9553_s23 + $0x134] sm:$0xf0] }
 0x143   : > { %v943_v25 = vadd.f32 %v9903_v53, %v10157_v57 }
 0x144   : > { %v1287_v9 = vmax.f32 %v1124_v62, 0.0  ;;  %v10250_v59 = vsel %vm2654_vm1, %v2662_v47, %v2664_v50  ;;  %v2482_v47 = vshrl.u32 %v10215_v43, 16 }
 0x146   : > { %v1791_v55 = vmul.f32 %v1478_v63, %v1287_v9  ;;  %v2484_v29 = vrot.slane %v2482_v47, 1  ;;  %v7615_v47 = vld [vmem:[%s9553_s23 + $0x130] sm:$0xf] }
 0x148   : > { %v1863_v3 = vpack.c.bf16 %v1791_v55, %v1791_v55  ;;  %v2488_v55 = vor.u32 %v2487_v31, %v2484_v29  ;;  %v10281_v5 = vpop.permute.xlu1 %1582 }
 0x149   : > { %v10255_v24 = vpop.f32.mrf.mxu0  ;;  %v1126_v4 = vpop.f32.mrf.mxu1 }
 0x14a   : > { %2024 = vst.msk [vmem:[#allocation2 + $0x34] sm:$0xf] %vm1924_vm0, %v1863_v3  ;;  %v1127_v6 = vadd.f32 %v1126_v4, %v938_v41  ;;  %v1488_v41 = vpop.permute.xlu0 %1487  ;;  %v2489_v1 = vsel %vm2192_vm2, %v2479_v44, %v2488_v55  ;;  %v2494_v44 = vshll.u32 %v10243_v42, 16 }
 0x14c   : > { %v1288_v19 = vmax.f32 %v1127_v6, 0.0  ;;  %996 = vmatmul.bf16.gmra.mxu0 %v7608_v12  ;;  %1165 = vmatmul.bf16.gmra.mxu1 %v7580_v13  ;;  %v8721_v13 = vld [vmem:[%s9553_s23 + $0xf4] sm:$0xf] }
 0x14d   : > { %7918 = vmatmul.msk.bf16.gmra.mxu3 %vm2303_vm3, %v2489_v1 }
 0x14e   : > { %v1792_v27 = vmul.f32 %v1483_v20, %v1288_v19  ;;  %v7616_v19 = vor.u32 %v8730_v46, %v7615_v47  ;;  %v7585_v20 = vld [vmem:[%s9553_s23 + $0xf8] sm:$0xf0] }
 0x150   : > { %v1864_v40 = vpack.c.bf16 %v1792_v27, %v1792_v27  ;;  %v7588_v27 = vor.u32 %v8721_v13, %v7585_v20 }
 0x151   : > { %v10269_v62 = vpop.f32.mrf.mxu0  ;;  %v1128_v63 = vpop.f32.mrf.mxu1  ;;  %v10271_v9 = vld [vmem:[#allocation2 + $0x30] sm:$0xff] }
 0x152   : > { %2025 = vst.msk [vmem:[#allocation2 + $0x38] sm:$0xf] %vm1924_vm0, %v1864_v40  ;;  %v1129_v43 = vadd.f32 %v1128_v63, %v940_v35  ;;  %v2666_v3 = vrot.slane %v10271_v9, 2  ;;  %v1493_v31 = vpop.permute.xlu0 %1492  ;;  %v2496_v63 = vrot.slane %v2494_v44, 2 }
 0x154   : > { %v1289_v61 = vmax.f32 %v1129_v43, 0.0  ;;  %v10278_v16 = vsel %vm2654_vm1, %v2664_v50, %v2666_v3  ;;  %v2491_v50 = vshrl.u32 %v10243_v42, 16  ;;  %v10293_v43 = vpop.permute.xlu2 %1587 }
 0x156   : > { %v1793_v4 = vmul.f32 %v1488_v41, %v1289_v61  ;;  %v2493_v40 = vrot.slane %v2491_v50, 1  ;;  %v945_v41 = vadd.f32 %v9903_v53, %v10175_v30  ;;  %v948_v30 = vadd.f32 %v9903_v53, %v10189_v8  ;;  %v7593_v8 = vld [vmem:[%s9553_s23 + $0x108] sm:$0xf0] }
 0x158   : > { %v1865_v6 = vpack.c.bf16 %v1793_v4, %v1793_v4 }
 0x159   : > { %v10283_v12 = vpop.f32.mrf.mxu0  ;;  %v1131_v54 = vpop.f32.mrf.mxu1 }
 0x15a   : > { %2026 = vst.msk [vmem:[#allocation2 + $0x3c] sm:$0xf] %vm1924_vm0, %v1865_v6  ;;  %v1132_v57 = vadd.f32 %v1131_v54, %v943_v25  ;;  %v1498_v6 = vpop.permute.xlu1 %1497  ;;  %v2497_v54 = vor.u32 %v2496_v63, %v2493_v40 }
 0x15c   : > { %v1290_v29 = vmax.f32 %v1132_v57, 0.0  ;;  %1001 = vmatmul.bf16.gmra.mxu0 %v7616_v19  ;;  %1170 = vmatmul.bf16.gmra.mxu1 %v7588_v27  ;;  %v2498_v19 = vsel %vm2192_vm2, %v2488_v55, %v2497_v54  ;;  %v7623_v27 = vld [vmem:[%s9553_s23 + $0x140] sm:$0xf]  ;;  %v10317_v63 = vpop.permute.xlu2 %1592  ;;  %v2503_v55 = vshll.u32 %v10271_v9, 16 }
 0x15d   : > { %7919 = vmatmul.msk.bf16.gmra.mxu3 %vm2303_vm3, %v2498_v19 }
 0x15e   : > { %v1794_v35 = vmul.f32 %v1493_v31, %v1290_v29  ;;  %v8732_v29 = vld [vmem:[%s9553_s23 + $0x144] sm:$0xf0]  ;;  %v8723_v31 = vld [vmem:[%s9553_s23 + $0x104] sm:$0xf] }
 0x15f   : > { %v7624_v40 = vor.u32 %v8732_v29, %v7623_v27 }
 0x160   : > { %v1866_v61 = vpack.c.bf16 %v1794_v35, %v1794_v35 }
 0x161   : > { %v10297_v25 = vpop.f32.mrf.mxu0  ;;  %v1133_v4 = vpop.f32.mrf.mxu1  ;;  %v10299_v42 = vld [vmem:[#allocation2 + $0x38] sm:$0xff] }
 0x162   : > { %2027 = vst.msk [vmem:[#allocation2 + $0x40] sm:$0xf] %vm1924_vm0, %v1866_v61  ;;  %v1134_v1 = vadd.f32 %v1133_v4, %v945_v41  ;;  %v2668_v46 = vrot.slane %v10299_v42, 2  ;;  %v7596_v41 = vor.u32 %v8723_v31, %v7593_v8  ;;  %v1503_v4 = vpop.permute.xlu1 %1502 }
 0x164   : > { %v1291_v47 = vmax.f32 %v1134_v1, 0.0  ;;  %v10306_v57 = vsel %vm2654_vm1, %v2666_v3, %v2668_v46  ;;  %v2500_v3 = vshrl.u32 %v10271_v9, 16 }
 0x166   : > { %v1795_v13 = vmul.f32 %v1498_v6, %v1291_v47  ;;  %v2502_v6 = vrot.slane %v2500_v3, 1  ;;  %v2505_v47 = vrot.slane %v2503_v55, 2  ;;  %v953_v3 = vadd.f32 %v9903_v53, %v10227_v37 }
 0x168   : > { %v1867_v20 = vpack.c.bf16 %v1795_v13, %v1795_v13  ;;  %v950_v13 = vadd.f32 %v9903_v53, %v10213_v36  ;;  %v2506_v27 = vor.u32 %v2505_v47, %v2502_v6  ;;  %v7601_v47 = vld [vmem:[%s9553_s23 + $0x118] sm:$0xf0] }
 0x169   : > { %v10309_v50 = vpop.f32.mrf.mxu0  ;;  %v1136_v44 = vpop.f32.mrf.mxu1 }
 0x16a   : > { %2028 = vst.msk [vmem:[#allocation2 + $0x44] sm:$0xf] %vm1924_vm0, %v1867_v20  ;;  %v1137_v35 = vadd.f32 %v1136_v44, %v948_v30  ;;  %v2507_v8 = vsel %vm2192_vm2, %v2497_v54, %v2506_v27 }
 0x16c   : > { %v1292_v61 = vmax.f32 %v1137_v35, 0.0  ;;  %1006 = vmatmul.bf16.gmra.mxu0 %v7624_v40  ;;  %1175 = vmatmul.bf16.gmra.mxu1 %v7596_v41  ;;  %v1508_v35 = vpop.permute.xlu2 %1507 }
 0x16d   : > { %7920 = vmatmul.msk.bf16.gmra.mxu3 %vm2303_vm3, %v2507_v8 }
 0x16e   : > { %v1796_v1 = vmul.f32 %v1503_v4, %v1292_v61  ;;  %v7631_v61 = vld [vmem:[%s9553_s23 + $0x150] sm:$0xf]  ;;  %v8734_v4 = vld [vmem:[%s9553_s23 + $0x154] sm:$0xf0] }
 0x16f   : > { %v7632_v6 = vor.u32 %v8734_v4, %v7631_v61 }
 0x170   : > { %v1868_v30 = vpack.c.bf16 %v1796_v1, %v1796_v1  ;;  %v8725_v1 = vld [vmem:[%s9553_s23 + $0x114] sm:$0xf] }
 0x171   : > { %v10323_v19 = vpop.f32.mrf.mxu0  ;;  %v1138_v20 = vpop.f32.mrf.mxu1  ;;  %v10325_v44 = vld [vmem:[#allocation2 + $0x40] sm:$0xff] }
 0x172   : > { %2029 = vst.msk [vmem:[#allocation2 + $0x48] sm:$0xf] %vm1924_vm0, %v1868_v30  ;;  %v1139_v9 = vadd.f32 %v1138_v20, %v950_v13  ;;  %v2670_v31 = vrot.slane %v10325_v44, 2  ;;  %v2512_v13 = vshll.u32 %v10299_v42, 16  ;;  %v7604_v30 = vor.u32 %v8725_v1, %v7601_v47 }
 0x174   : > { %v1293_v29 = vmax.f32 %v1139_v9, 0.0  ;;  %v10330_v36 = vsel %vm2654_vm1, %v2668_v46, %v2670_v31  ;;  %v2509_v46 = vshrl.u32 %v10299_v42, 16  ;;  %v2108_v9 = vld [vmem:[#allocation2 + $0x50] sm:$0x3]  ;;  %v955_v42 = vadd.f32 %v9903_v53, %v10241_v39 }
 0x175   : > { %v2434_v8 = vunpack.c.l.b16 %v2108_v9  ;;  %v958_v39 = vadd.f32 %v9903_v53, %v10255_v24  ;;  %v8736_v9 = vld [vmem:[%s9553_s23 + $0x164] sm:$0xf0] }
 0x176   : > { %v1797_v40 = vmul.f32 %v1508_v35, %v1293_v29  ;;  %v2511_v29 = vrot.slane %v2509_v46, 1  ;;  %v2514_v35 = vrot.slane %v2512_v13, 2 }
 0x178   : > { %v1869_v55 = vpack.c.bf16 %v1797_v40, %v1797_v40 }
 0x179   : > { %v10335_v41 = vpop.f32.mrf.mxu0  ;;  %v1141_v54 = vpop.f32.mrf.mxu1 }
 0x17a   : > { %2030 = vst.msk [vmem:[#allocation2 + $0x4c] sm:$0xf] %vm1924_vm0, %v1869_v55  ;;  %v1142_v20 = vadd.f32 %v1141_v54, %v953_v3  ;;  %v2515_v3 = vor.u32 %v2514_v35, %v2511_v29  ;;  %v8727_v29 = vld [vmem:[%s9553_s23 + $0x124] sm:$0xf] }
 0x17c   : > { %1011 = vmatmul.bf16.gmra.mxu0 %v7632_v6  ;;  %v1294_v37 = vmax.f32 %v1142_v20, 0.0  ;;  %1180 = vmatmul.bf16.gmra.mxu1 %v7604_v30  ;;  %v10353_v6 = vpack.c.b16 %v2434_v8, %v2434_v8  ;;  %v2516_v13 = vsel %vm2192_vm2, %v2506_v27, %v2515_v3  ;;  %v2518_v8 = vshrl.u32 %v10325_v44, 16 }
 0x17d   : > { %7921 = vmatmul.msk.bf16.gmra.mxu3 %vm2303_vm3, %v2516_v13  ;;  %v2521_v27 = vshll.u32 %v10325_v44, 16  ;;  %v10380_v13 = vld [vmem:[#allocation2 + $0x5c] sm:$0xf] }
 0x17e   : > { %v1798_v40 = vmul.f32 %v9976_v11, %v1294_v37  ;;  %v2674_v30 = vrot.slane %v10353_v6, 2  ;;  %v7639_v37 = vld [vmem:[%s9553_s23 + $0x160] sm:$0xf] }
 0x17f   : > { %v2523_v44 = vrot.slane %v2521_v27, 2 }
 0x180   : > { %v1870_v61 = vpack.c.bf16 %v1798_v40, %v1798_v40  ;;  %v7640_v40 = vor.u32 %v8736_v9, %v7639_v37 }
 0x181   : > { %v10346_v52 = vpop.f32.mrf.mxu0  ;;  %v10348_v55 = vld [vmem:[#allocation2 + $0x48] sm:$0xff]  ;;  %v1143_v4 = vpop.f32.mrf.mxu1 }
 0x182   : > { %2032 = vst.msk [vmem:[#allocation2 + $0x60] sm:$0xf] %vm1924_vm0, %v1870_v61  ;;  %v1144_v1 = vadd.f32 %v1143_v4, %v955_v42  ;;  %v2672_v11 = vrot.slane %v10348_v55, 2  ;;  %v8800_v4 = vld [vmem:[%s12766_s4 + $0x18] sm:$0xff] }
 0x183   : > { %2340 = vmatpush.bf16.msra.mxu2 %v8800_v4 }
 0x184   : > { %v1295_v47 = vmax.f32 %v1144_v1, 0.0  ;;  %v10357_v46 = vsel %vm2654_vm1, %v2670_v31, %v2672_v11  ;;  %v7609_v31 = vld [vmem:[%s9553_s23 + $0x128] sm:$0xf0] }
 0x185   : > { %v7612_v24 = vor.u32 %v8727_v29, %v7609_v31  ;;  %v960_v29 = vadd.f32 %v9903_v53, %v10269_v62 }
 0x186   : > { %v1799_v54 = vmul.f32 %v10015_v23, %v1295_v47  ;;  %v10374_v23 = vsel %vm2654_vm1, %v2672_v11, %v2674_v30  ;;  %v2113_v47 = vld [vmem:[#allocation2 + $0x58] sm:$0xe]  ;;  %v12772_v11 = vunpack.c.l.b16 %v10380_v13 }
 0x187   : > { %v2160_v37 = vunpack.c.l.b16 %v2113_v47 }
 0x188   : > { %v1871_v35 = vpack.c.bf16 %v1799_v54, %v1799_v54  ;;  %v2520_v54 = vrot.slane %v2518_v8, 1 }
 0x189   : > { %v10364_v20 = vpop.f32.mrf.mxu0  ;;  %v1146_v42 = vpop.f32.mrf.mxu1 }
 0x18a   : > { %2033 = vst.msk [vmem:[#allocation2 + $0x64] sm:$0xf] %vm1924_vm0, %v1871_v35  ;;  %v1147_v61 = vadd.f32 %v1146_v42, %v958_v39  ;;  %v2181_v39 = vpack.c.b16 %v12772_v11, %v2160_v37 }
 0x18c   : > { %1016 = vmatmul.bf16.gmra.mxu0 %v7640_v40  ;;  %v1296_v1 = vmax.f32 %v1147_v61, 0.0  ;;  %1185 = vmatmul.bf16.gmra.mxu1 %v7612_v24  ;;  %v2524_v40 = vor.u32 %v2523_v44, %v2520_v54  ;;  %v2194_v8 = vshrl.u32 %v2181_v39, 16  ;;  %v2197_v27 = vshll.u32 %v2181_v39, 16 }
 0x18e   : > { %v1800_v30 = vmul.f32 %v9992_v14, %v1296_v1  ;;  %v8799_v14 = vld [vmem:[%s12766_s4 + $0x10] sm:$0xff]  ;;  %v2196_v61 = vrot.slane %v2194_v8, 1  ;;  %v2199_v4 = vrot.slane %v2197_v27, 2  ;;  %v2525_v47 = vsel %vm2192_vm2, %v2515_v3, %v2524_v40  ;;  %v8738_v3 = vld [vmem:[%s9553_s23 + $0x174] sm:$0xf0] }
 0x18f   : > { %2341 = vmatpush.bf16.msra.mxu2 %v8799_v14  ;;  %v7647_v8 = vld [vmem:[%s9553_s23 + $0x170] sm:$0xf]  ;;  %v8729_v27 = vld [vmem:[%s9553_s23 + $0x134] sm:$0xf]  ;;  %7922 = vmatmul.msk.bf16.gmra.mxu3 %vm2303_vm3, %v2525_v47  ;;  %v8802_v14 = vld [vmem:[%s12766_s4 + $0x28] sm:$0xff] }
 0x190   : > { %v1872_v35 = vpack.c.bf16 %v1800_v30, %v1800_v30  ;;  %v2200_v54 = vor.u32 %v2199_v4, %v2196_v61  ;;  %v10402_v30 = vld [vmem:[%s12764_s2] ss:$0 sm:$0xff]  ;;  %v7648_v61 = vor.u32 %v8738_v3, %v7647_v8  ;;  %v7617_v4 = vld [vmem:[%s9553_s23 + $0x138] sm:$0xf0] }
 0x191   : > { %v10384_v9 = vpop.f32.mrf.mxu0  ;;  %v1148_v31 = vpop.f32.mrf.mxu1  ;;  %v10390_v42 = vld [vmem:[#allocation2 + $0x60] sm:$0xff]  ;;  %v963_v39 = vadd.f32 %v10402_v30, %v10283_v12  ;;  %v8804_v12 = vld [vmem:[%s12766_s4 + $0x38] sm:$0xff] }
 0x192   : > { %2034 = vst.msk [vmem:[#allocation2 + $0x68] sm:$0xf] %vm1924_vm0, %v1872_v35  ;;  %v1149_v24 = vadd.f32 %v1148_v31, %v960_v29  ;;  %v2202_v53 = vshrl.u32 %v10390_v42, 16  ;;  %v2205_v62 = vshll.u32 %v10390_v42, 16  ;;  %2875 = vmatpush.bf16.msrb.mxu3 %v8804_v12 }
 0x193   : > { %2724 = vmatpush.bf16.msrb.mxu2 %v8802_v14 }
 0x194   : > { %v1297_v1 = vmax.f32 %v1149_v24, 0.0  ;;  %v2204_v44 = vrot.slane %v2202_v53, 1  ;;  %v2207_v37 = vrot.slane %v2205_v62, 2  ;;  %v2530_v53 = vshll.u32 %v10348_v55, 16 }
 0x196   : > { %v1801_v29 = vmul.f32 %v10039_v34, %v1297_v1  ;;  %v2208_v31 = vor.u32 %v2207_v37, %v2204_v44  ;;  %v2527_v34 = vshrl.u32 %v10348_v55, 16  ;;  %v7620_v44 = vor.u32 %v8729_v27, %v7617_v4 }
 0x197   : > { %v2532_v8 = vrot.slane %v2530_v53, 2  ;;  %v965_v55 = vadd.f32 %v10402_v30, %v10297_v25 }
 0x198   : > { %v1873_v24 = vpack.c.bf16 %v1801_v29, %v1801_v29  ;;  %v2209_v1 = vsel %vm2192_vm2, %v2200_v54, %v2208_v31  ;;  %v2529_v29 = vrot.slane %v2527_v34, 1 }
 0x199   : > { %v10407_v35 = vpop.f32.mrf.mxu0  ;;  %v1151_v62 = vpop.f32.mrf.mxu1  ;;  %7861 = vmatmul.msk.bf16.vlgmr.msra.gmra.mxu2 %vm2303_vm3, %v2209_v1 }
 0x19a   : > { %2035 = vst.msk [vmem:[#allocation2 + $0x6c] sm:$0xf] %vm1924_vm0, %v1873_v24  ;;  %v1152_v47 = vadd.f32 %v1151_v62, %v963_v39  ;;  %v2533_v27 = vor.u32 %v2532_v8, %v2529_v29  ;;  %v968_v62 = vadd.f32 %v10402_v30, %v10309_v50  ;;  %v8740_v29 = vld [vmem:[%s9553_s23 + $0x184] sm:$0xf0]  ;;  %v8731_v8 = vld [vmem:[%s9553_s23 + $0x144] sm:$0xf] }
 0x19c   : > { %1021 = vmatmul.bf16.gmra.mxu0 %v7648_v61  ;;  %v1298_v37 = vmax.f32 %v1152_v47, 0.0  ;;  %1190 = vmatmul.bf16.gmra.mxu1 %v7620_v44  ;;  %v2534_v12 = vsel %vm2192_vm2, %v2524_v40, %v2533_v27 }
 0x19e   : > { %v1802_v3 = vmul.f32 %v10081_v49, %v1298_v37  ;;  %v8803_v49 = vld [vmem:[%s12766_s4 + $0x30] sm:$0xff]  ;;  %v7655_v37 = vld [vmem:[%s9553_s23 + $0x180] sm:$0xf] }
 0x19f   : > { %2876 = vmatpush.bf16.msrb.mxu3 %v8803_v49  ;;  %v2539_v49 = vshll.u32 %v10353_v6, 16 }
 0x1a0   : > { %v1874_v54 = vpack.c.bf16 %v1802_v3, %v1802_v3  ;;  %7923 = vmatmul.msk.bf16.gmra.mxu3 %vm2303_vm3, %v2534_v12 }
 0x1a1   : > { %v10426_v11 = vpop.f32.mrf.mxu0  ;;  %v1153_v24 = vpop.f32.mrf.mxu1  ;;  %v10430_v39 = vld [vmem:[#allocation2 + $0x68] sm:$0xff] }
 0x1a2   : > { %2036 = vst.msk [vmem:[#allocation2 + $0x70] sm:$0xf] %vm1924_vm0, %v1874_v54  ;;  %v1154_v14 = vadd.f32 %v1153_v24, %v965_v55  ;;  %v2211_v61 = vshrl.u32 %v10430_v39, 16  ;;  %v2214_v4 = vshll.u32 %v10430_v39, 16  ;;  %v7656_v55 = vor.u32 %v8740_v29, %v7655_v37  ;;  %v7625_v54 = vld [vmem:[%s9553_s23 + $0x148] sm:$0xf0] }
 0x1a4   : > { %v1299_v25 = vmax.f32 %v1154_v14, 0.0  ;;  %v2213_v34 = vrot.slane %v2211_v61, 1  ;;  %v2216_v53 = vrot.slane %v2214_v4, 2  ;;  %v7628_v14 = vor.u32 %v8731_v8, %v7625_v54 }
 0x1a6   : > { %v1803_v1 = vmul.f32 %v10116_v10, %v1299_v25  ;;  %v2217_v47 = vor.u32 %v2216_v53, %v2213_v34  ;;  %v2536_v10 = vshrl.u32 %v10353_v6, 16  ;;  %v10455_v25 = vpop.f32.mrf.mxu3  ;;  %v2541_v34 = vrot.slane %v2539_v49, 2  ;;  %v8742_v49 = vld [vmem:[%s9553_s23 + $0x194] sm:$0xf0] }
 0x1a7   : > { %v970_v53 = vadd.f32 %v10402_v30, %v10323_v19  ;;  %v973_v19 = vadd.f32 %v10402_v30, %v10335_v41 }
 0x1a8   : > { %v1875_v3 = vpack.c.bf16 %v1803_v1, %v1803_v1  ;;  %v2218_v24 = vsel %vm2192_vm2, %v2208_v31, %v2217_v47  ;;  %v2538_v12 = vrot.slane %v2536_v10, 1  ;;  %v7663_v10 = vld [vmem:[%s9553_s23 + $0x190] sm:$0xf] }
 0x1a9   : > { %v10442_v44 = vpop.f32.mrf.mxu0  ;;  %v1156_v40 = vpop.f32.mrf.mxu1  ;;  %7862 = vmatmul.msk.bf16.gmra.mxu2 %vm2303_vm3, %v2218_v24 }
 0x1aa   : > { %2037 = vst.msk [vmem:[#allocation2 + $0x74] sm:$0xf] %vm1924_vm0, %v1875_v3  ;;  %v1157_v50 = vadd.f32 %v1156_v40, %v968_v62 }
 0x1ac   : > { %1026 = vmatmul.bf16.gmra.mxu0 %v7656_v55  ;;  %v1300_v61 = vmax.f32 %v1157_v50, 0.0  ;;  %1195 = vmatmul.bf16.gmra.mxu1 %v7628_v14 }
 0x1ae   : > { %v1804_v4 = vmul.f32 %v10148_v17, %v1300_v61  ;;  %v2542_v17 = vor.u32 %v2541_v34, %v2538_v12  ;;  %v8733_v61 = vld [vmem:[%s9553_s23 + $0x154] sm:$0xf]  ;;  %v7664_v34 = vor.u32 %v8742_v49, %v7663_v10 }
 0x1b0   : > { %v1876_v62 = vpack.c.bf16 %v1804_v4, %v1804_v4  ;;  %v2543_v24 = vsel %vm2192_vm2, %v2533_v27, %v2542_v17  ;;  %v2797_v4 = vld [vmem:[#allocation2 + $0x58] sm:$0xc] }
 0x1b1   : > { %v10457_v31 = vpop.f32.mrf.mxu0  ;;  %v1158_v1 = vpop.f32.mrf.mxu1  ;;  %v10461_v37 = vld [vmem:[#allocation2 + $0x70] sm:$0xff]  ;;  %7924 = vmatmul.msk.bf16.gmra.mxu3 %vm2303_vm3, %v2543_v24 }
 0x1b2   : > { %2038 = vst.msk [vmem:[#allocation2 + $0x78] sm:$0xf] %vm1924_vm0, %v1876_v62  ;;  %v1159_v6 = vadd.f32 %v1158_v1, %v970_v53  ;;  %v2220_v29 = vshrl.u32 %v10461_v37, 16  ;;  %v2223_v8 = vshll.u32 %v10461_v37, 16  ;;  %v7633_v53 = vld [vmem:[%s9553_s23 + $0x158] sm:$0xf0]  ;;  %v10477_v62 = vpop.f32.mrf.mxu3 }
 0x1b4   : > { %v1301_v3 = vmax.f32 %v1159_v6, 0.0  ;;  %v2222_v55 = vrot.slane %v2220_v29, 1  ;;  %v2225_v54 = vrot.slane %v2223_v8, 2  ;;  %v2804_v6 = vunpack.c.l.b16 %v2797_v4 }
 0x1b5   : > { %v12789_v8 = vunpack.c.l.b16 %v10380_v13  ;;  %v2807_v13 = vrot.slane %v10390_v42, 2  ;;  %v8744_v42 = vld [vmem:[%s9553_s23 + $0x1a4] sm:$0xf0] }
 0x1b6   : > { %v1805_v40 = vmul.f32 %v10167_v15, %v1301_v3  ;;  %v2226_v50 = vor.u32 %v2225_v54, %v2222_v55  ;;  %v7636_v15 = vor.u32 %v8733_v61, %v7633_v53 }
 0x1b7   : > { %v2805_v3 = vpack.c.b16 %v12789_v8, %v2804_v6  ;;  %v8735_v6 = vld [vmem:[%s9553_s23 + $0x164] sm:$0xf]  ;;  %v7641_v8 = vld [vmem:[%s9553_s23 + $0x168] sm:$0xf0] }
 0x1b8   : > { %v1877_v12 = vpack.c.bf16 %v1805_v40, %v1805_v40  ;;  %v2227_v41 = vsel %vm2192_vm2, %v2217_v47, %v2226_v50  ;;  %v975_v47 = vadd.f32 %v10402_v30, %v10346_v52 }
 0x1b9   : > { %v10470_v14 = vpop.f32.mrf.mxu0  ;;  %v1161_v1 = vpop.f32.mrf.mxu1  ;;  %7863 = vmatmul.msk.bf16.gmra.mxu2 %vm2303_vm3, %v2227_v41 }
 0x1ba   : > { %2039 = vst.msk [vmem:[#allocation2 + $0x7c] sm:$0xf] %vm1924_vm0, %v1877_v12  ;;  %v1162_v27 = vadd.f32 %v1161_v1, %v973_v19  ;;  %v10492_v10 = vpop.f32.mrf.mxu3 }
 0x1bc   : > { %1031 = vmatmul.bf16.gmra.mxu0 %v7664_v34  ;;  %v1302_v17 = vmax.f32 %v1162_v27, 0.0  ;;  %1200 = vmatmul.bf16.gmra.mxu1 %v7636_v15  ;;  %v978_v34 = vadd.f32 %v10402_v30, %v10364_v20  ;;  %v7671_v27 = vld [vmem:[%s9553_s23 + $0x1a0] sm:$0xf] }
 0x1be   : > { %v1806_v29 = vmul.f32 %v10183_v56, %v1302_v17  ;;  %v2806_v56 = vrot.slane %v2805_v3, 2 }
 0x1c0   : > { %v1878_v54 = vpack.c.bf16 %v1806_v29, %v1806_v29  ;;  %v2808_v1 = vsel %vm2654_vm1, %v2806_v56, %v2807_v13  ;;  %v7672_v29 = vor.u32 %v8744_v42, %v7671_v27  ;;  %v983_v27 = vadd.f32 %v10402_v30, %v10407_v35 }
 0x1c1   : > { %v10485_v55 = vpop.f32.mrf.mxu0  ;;  %v1163_v40 = vpop.f32.mrf.mxu1  ;;  %v10489_v24 = vld [vmem:[#allocation2 + $0x78] sm:$0xff]  ;;  %7959 = vmatmul.msk.bf16.vlgmr.msrb.gmra.mxu3 %vm2303_vm3, %v2808_v1 }
 0x1c2   : > { %2040 = vst.msk [vmem:[#allocation2 + $0x80] sm:$0xf] %vm1924_vm0, %v1878_v54  ;;  %v1164_v19 = vadd.f32 %v1163_v40, %v975_v47  ;;  %v2229_v49 = vshrl.u32 %v10489_v24, 16  ;;  %v2232_v52 = vshll.u32 %v10489_v24, 16  ;;  %v7644_v54 = vor.u32 %v8735_v6, %v7641_v8  ;;  %v10511_v40 = vpop.f32.mrf.mxu3  ;;  %v7679_v8 = vld [vmem:[%s9553_s23 + $0x1b0] sm:$0xf] }
 0x1c4   : > { %v1303_v61 = vmax.f32 %v1164_v19, 0.0  ;;  %v2231_v4 = vrot.slane %v2229_v49, 1  ;;  %v2234_v12 = vrot.slane %v2232_v52, 2  ;;  %v980_v49 = vadd.f32 %v10402_v30, %v10384_v9 }
 0x1c6   : > { %v1807_v53 = vmul.f32 %v10200_v45, %v1303_v61  ;;  %v2235_v15 = vor.u32 %v2234_v12, %v2231_v4  ;;  %v2809_v12 = vrot.slane %v10430_v39, 2 }
 0x1c8   : > { %v1879_v17 = vpack.c.bf16 %v1807_v53, %v1807_v53  ;;  %v2236_v47 = vsel %vm2192_vm2, %v2226_v50, %v2235_v15 }
 0x1c9   : > { %v10501_v41 = vpop.f32.mrf.mxu0  ;;  %v1166_v3 = vpop.f32.mrf.mxu1  ;;  %7864 = vmatmul.msk.bf16.gmra.mxu2 %vm2303_vm3, %v2236_v47  ;;  %v8737_v47 = vld [vmem:[%s9553_s23 + $0x174] sm:$0xf] }
 0x1ca   : > { %2041 = vst.msk [vmem:[#allocation2 + $0x84] sm:$0xf] %vm1924_vm0, %v1879_v17  ;;  %v1167_v45 = vadd.f32 %v1166_v3, %v978_v34  ;;  %v10527_v6 = vpop.f32.mrf.mxu3  ;;  %v2810_v17 = vsel %vm2654_vm1, %v2807_v13, %v2809_v12  ;;  %v8746_v3 = vld [vmem:[%s9553_s23 + $0x1b4] sm:$0xf0] }
 0x1cb   : > { %v8834_v13 = vld [vmem:[%s12766_s4 + $0x98] sm:$0xff] }
 0x1cc   : > { %1036 = vmatmul.bf16.gmra.mxu0 %v7672_v29  ;;  %v1304_v20 = vmax.f32 %v1167_v45, 0.0  ;;  %1205 = vmatmul.bf16.gmra.mxu1 %v7644_v54  ;;  %v7680_v45 = vor.u32 %v8746_v3, %v7679_v8 }
 0x1cd   : > { %4370 = vmatpush.bf16.msra.mxu1 %v8834_v13 }
 0x1ce   : > { %v1808_v19 = vmul.f32 %v10225_v60, %v1304_v20  ;;  %v7649_v20 = vld [vmem:[%s9553_s23 + $0x178] sm:$0xf0] }
 0x1d0   : > { %v1880_v52 = vpack.c.bf16 %v1808_v19, %v1808_v19 }
 0x1d1   : > { %v10514_v56 = vpop.f32.mrf.mxu0  ;;  %v1168_v50 = vpop.f32.mrf.mxu1  ;;  %v10518_v61 = vld [vmem:[#allocation2 + $0x80] sm:$0xff]  ;;  %7960 = vmatmul.msk.bf16.gmra.mxu3 %vm2303_vm3, %v2810_v17 }
 0x1d2   : > { %2042 = vst.msk [vmem:[#allocation2 + $0x88] sm:$0xf] %vm1924_vm0, %v1880_v52  ;;  %v1169_v4 = vadd.f32 %v1168_v50, %v980_v49  ;;  %v2238_v34 = vshrl.u32 %v10518_v61, 16  ;;  %v2241_v60 = vshll.u32 %v10518_v61, 16  ;;  %v7652_v49 = vor.u32 %v8737_v47, %v7649_v20 }
 0x1d3   : > { %v988_v47 = vadd.f32 %v10402_v30, %v10442_v44 }
 0x1d4   : > { %v1305_v53 = vmax.f32 %v1169_v4, 0.0  ;;  %v2240_v1 = vrot.slane %v2238_v34, 1  ;;  %v2243_v9 = vrot.slane %v2241_v60, 2  ;;  %v10548_v60 = vpop.f32.mrf.mxu3 }
 0x1d6   : > { %v1809_v42 = vmul.f32 %v10237_v21, %v1305_v53  ;;  %v2244_v39 = vor.u32 %v2243_v9, %v2240_v1 }
 0x1d8   : > { %v1881_v54 = vpack.c.bf16 %v1809_v42, %v1809_v42  ;;  %v2245_v35 = vsel %vm2192_vm2, %v2235_v15, %v2244_v39  ;;  %v985_v15 = vadd.f32 %v10402_v30, %v10426_v11  ;;  %v8801_v11 = vld [vmem:[%s12766_s4 + $0x20] sm:$0xff] }
 0x1d9   : > { %v10530_v29 = vpop.f32.mrf.mxu0  ;;  %v1171_v19 = vpop.f32.mrf.mxu1  ;;  %7865 = vmatmul.msk.bf16.gmra.mxu2 %vm2303_vm3, %v2245_v35  ;;  %v8748_v35 = vld [vmem:[%s9553_s23 + $0x1c4] sm:$0xf0] }
 0x1da   : > { %2043 = vst.msk [vmem:[#allocation2 + $0x8c] sm:$0xf] %vm1924_vm0, %v1881_v54  ;;  %v1172_v21 = vadd.f32 %v1171_v19, %v983_v27  ;;  %v2811_v27 = vrot.slane %v10461_v37, 2  ;;  %2725 = vmatpush.bf16.msrb.mxu2 %v8801_v11  ;;  %v7687_v19 = vld [vmem:[%s9553_s23 + $0x1c0] sm:$0xf] }
 0x1db   : > { %v7688_v13 = vor.u32 %v8748_v35, %v7687_v19  ;;  %v993_v19 = vadd.f32 %v10402_v30, %v10470_v14 }
 0x1dc   : > { %1041 = vmatmul.bf16.gmra.mxu0 %v7680_v45  ;;  %v1306_v52 = vmax.f32 %v1172_v21, 0.0  ;;  %1210 = vmatmul.bf16.gmra.mxu1 %v7652_v49  ;;  %v2812_v37 = vsel %vm2654_vm1, %v2809_v12, %v2811_v27  ;;  %v8739_v49 = vld [vmem:[%s9553_s23 + $0x184] sm:$0xf]  ;;  %v10573_v44 = vpop.f32.mrf.mxu3 }
 0x1de   : > { %v1810_v50 = vmul.f32 %v10253_v0, %v1306_v52  ;;  %v7657_v52 = vld [vmem:[%s9553_s23 + $0x188] sm:$0xf0] }
 0x1e0   : > { %v1882_v34 = vpack.c.bf16 %v1810_v50, %v1810_v50 }
 0x1e1   : > { %v10544_v4 = vpop.f32.mrf.mxu0  ;;  %v1173_v53 = vpop.f32.mrf.mxu1  ;;  %v10550_v1 = vld [vmem:[#allocation2 + $0x88] sm:$0xff]  ;;  %7961 = vmatmul.msk.bf16.gmra.mxu3 %vm2303_vm3, %v2812_v37 }
 0x1e2   : > { %2044 = vst.msk [vmem:[#allocation2 + $0x90] sm:$0xf] %vm1924_vm0, %v1882_v34  ;;  %v1174_v9 = vadd.f32 %v1173_v53, %v985_v15  ;;  %v2247_v0 = vshrl.u32 %v10550_v1, 16  ;;  %v2250_v42 = vshll.u32 %v10550_v1, 16  ;;  %v7660_v34 = vor.u32 %v8739_v49, %v7657_v52  ;;  %v8750_v52 = vld [vmem:[%s9553_s23 + $0x1d4] sm:$0xf0] }
 0x1e4   : > { %v1307_v17 = vmax.f32 %v1174_v9, 0.0  ;;  %v2249_v8 = vrot.slane %v2247_v0, 1  ;;  %v2252_v3 = vrot.slane %v2250_v42, 2  ;;  %v990_v0 = vadd.f32 %v10402_v30, %v10457_v31 }
 0x1e6   : > { %v1811_v54 = vmul.f32 %v10265_v26, %v1307_v17  ;;  %v2253_v20 = vor.u32 %v2252_v3, %v2249_v8  ;;  %v2813_v8 = vrot.slane %v10489_v24, 2 }
 0x1e8   : > { %v1883_v21 = vpack.c.bf16 %v1811_v54, %v1811_v54  ;;  %v2254_v15 = vsel %vm2192_vm2, %v2244_v39, %v2253_v20  ;;  %v10586_v54 = vpop.f32.mrf.mxu3  ;;  %v2814_v49 = vsel %vm2654_vm1, %v2811_v27, %v2813_v8 }
 0x1e9   : > { %v10563_v45 = vpop.f32.mrf.mxu0  ;;  %v1176_v50 = vpop.f32.mrf.mxu1  ;;  %7866 = vmatmul.msk.bf16.gmra.mxu2 %vm2303_vm3, %v2254_v15  ;;  %12790 = vst [vmem:[#allocation10_spill] sm:$0xff] %v10586_v54 }
 0x1ea   : > { %2045 = vst.msk [vmem:[#allocation2 + $0x94] sm:$0xf] %vm1924_vm0, %v1883_v21  ;;  %v1177_v26 = vadd.f32 %v1176_v50, %v988_v47  ;;  %v8741_v50 = vld [vmem:[%s9553_s23 + $0x194] sm:$0xf] }
 0x1ec   : > { %1046 = vmatmul.bf16.gmra.mxu0 %v7688_v13  ;;  %v1308_v12 = vmax.f32 %v1177_v26, 0.0  ;;  %1215 = vmatmul.bf16.gmra.mxu1 %v7660_v34  ;;  %v7695_v13 = vld [vmem:[%s9553_s23 + $0x1d0] sm:$0xf]  ;;  %v7665_v26 = vld [vmem:[%s9553_s23 + $0x198] sm:$0xf0] }
 0x1ed   : > { %v7696_v34 = vor.u32 %v8750_v52, %v7695_v13  ;;  %v998_v13 = vadd.f32 %v10402_v30, %v10501_v41 }
 0x1ee   : > { %v1812_v53 = vmul.f32 %v10281_v5, %v1308_v12 }
 0x1f0   : > { %v1884_v42 = vpack.c.bf16 %v1812_v53, %v1812_v53 }
 0x1f1   : > { %v10576_v9 = vpop.f32.mrf.mxu0  ;;  %v1178_v39 = vpop.f32.mrf.mxu1  ;;  %v10580_v11 = vld [vmem:[#allocation2 + $0x90] sm:$0xff]  ;;  %7962 = vmatmul.msk.bf16.gmra.mxu3 %vm2303_vm3, %v2814_v49 }
 0x1f2   : > { %2046 = vst.msk [vmem:[#allocation2 + $0x98] sm:$0xf] %vm1924_vm0, %v1884_v42  ;;  %v1179_v17 = vadd.f32 %v1178_v39, %v990_v0  ;;  %v2256_v3 = vshrl.u32 %v10580_v11, 16  ;;  %v2259_v5 = vshll.u32 %v10580_v11, 16  ;;  %v7668_v0 = vor.u32 %v8741_v50, %v7665_v26  ;;  %v10603_v42 = vpop.f32.mrf.mxu3  ;;  %v7703_v26 = vld [vmem:[%s9553_s23 + $0x1e0] sm:$0xf] }
 0x1f3   : > { %12791 = vst [vmem:[#allocation11_spill] sm:$0xff] %v10603_v42 }
 0x1f4   : > { %v1309_v47 = vmax.f32 %v1179_v17, 0.0  ;;  %v2258_v31 = vrot.slane %v2256_v3, 1  ;;  %v2261_v37 = vrot.slane %v2259_v5, 2  ;;  %v995_v17 = vadd.f32 %v10402_v30, %v10485_v55 }
 0x1f6   : > { %v1813_v35 = vmul.f32 %v10293_v43, %v1309_v47  ;;  %v2262_v24 = vor.u32 %v2261_v37, %v2258_v31  ;;  %v1598_v31 = vpop.permute.xlu0 %1597 }
 0x1f8   : > { %v1885_v15 = vpack.c.bf16 %v1813_v35, %v1813_v35  ;;  %v2263_v53 = vsel %vm2192_vm2, %v2253_v20, %v2262_v24 }
 0x1f9   : > { %v10592_v21 = vpop.f32.mrf.mxu0  ;;  %v1181_v12 = vpop.f32.mrf.mxu1  ;;  %7867 = vmatmul.msk.bf16.gmra.mxu2 %vm2303_vm3, %v2263_v53 }
 0x1fa   : > { %2047 = vst.msk [vmem:[#allocation2 + $0x9c] sm:$0xf] %vm1924_vm0, %v1885_v15  ;;  %v1182_v43 = vadd.f32 %v1181_v12, %v993_v19  ;;  %v8752_v12 = vld [vmem:[%s9553_s23 + $0x1e4] sm:$0xf0] }
 0x1fc   : > { %1051 = vmatmul.bf16.gmra.mxu0 %v7696_v34  ;;  %v1310_v14 = vmax.f32 %v1182_v43, 0.0  ;;  %1220 = vmatmul.bf16.gmra.mxu1 %v7668_v0  ;;  %v7704_v0 = vor.u32 %v8752_v12, %v7703_v26  ;;  %v7673_v43 = vld [vmem:[%s9553_s23 + $0x1a8] sm:$0xf0] }
 0x1fe   : > { %v1814_v27 = vmul.f32 %v10317_v63, %v1310_v14  ;;  %v2815_v63 = vrot.slane %v10518_v61, 2  ;;  %v8743_v61 = vld [vmem:[%s9553_s23 + $0x1a4] sm:$0xf]  ;;  %v10625_v14 = vpop.f32.mrf.mxu3 }
 0x1ff   : > { %12792 = vst [vmem:[#allocation12_spill] sm:$0xff] %v10625_v14  ;;  %v7676_v41 = vor.u32 %v8743_v61, %v7673_v43  ;;  %v1003_v43 = vadd.f32 %v10402_v30, %v10530_v29  ;;  %v8832_v29 = vld [vmem:[%s12766_s4 + $0x88] sm:$0xff] }
 0x200   : > { %v1886_v3 = vpack.c.bf16 %v1814_v27, %v1814_v27  ;;  %v2816_v50 = vsel %vm2654_vm1, %v2813_v8, %v2815_v63  ;;  %4072 = vmatpush.bf16.msrb.mxu0 %v8832_v29 }
 0x201   : > { %v10605_v39 = vpop.f32.mrf.mxu0  ;;  %v1183_v20 = vpop.f32.mrf.mxu1  ;;  %v10609_v5 = vld [vmem:[#allocation2 + $0x98] sm:$0xff]  ;;  %7963 = vmatmul.msk.bf16.gmra.mxu3 %vm2303_vm3, %v2816_v50  ;;  %v12773_v50 = vrot.slane %v10550_v1, 2 }
 0x202   : > { %2048 = vst.msk [vmem:[#allocation2 + $0xa0] sm:$0xf] %vm1924_vm0, %v1886_v3  ;;  %v1184_v47 = vadd.f32 %v1183_v20, %v995_v17  ;;  %v2265_v37 = vshrl.u32 %v10609_v5, 16  ;;  %v2268_v19 = vshll.u32 %v10609_v5, 16  ;;  %v1603_v20 = vpop.permute.xlu0 %1602 }
 0x204   : > { %v1311_v35 = vmax.f32 %v1184_v47, 0.0  ;;  %v2267_v55 = vrot.slane %v2265_v37, 1  ;;  %v2270_v49 = vrot.slane %v2268_v19, 2  ;;  %v1000_v47 = vadd.f32 %v10402_v30, %v10514_v56 }
 0x206   : > { %v1815_v52 = vmul.f32 %v1598_v31, %v1311_v35  ;;  %v2271_v34 = vor.u32 %v2270_v49, %v2267_v55 }
 0x208   : > { %v1887_v53 = vpack.c.bf16 %v1815_v52, %v1815_v52  ;;  %v2272_v17 = vsel %vm2192_vm2, %v2262_v24, %v2271_v34  ;;  %v1608_v24 = vpop.permute.xlu1 %1607  ;;  %v10637_v52 = vpop.f32.mrf.mxu3 }
 0x209   : > { %v10618_v15 = vpop.f32.mrf.mxu0  ;;  %v1186_v27 = vpop.f32.mrf.mxu1  ;;  %7868 = vmatmul.msk.bf16.gmra.mxu2 %vm2303_vm3, %v2272_v17  ;;  %12793 = vst [vmem:[#allocation13_spill] sm:$0xff] %v10637_v52  ;;  %v9118_v17 = vld [vmem:[#allocation2 + $0x4] sm:$0x8] }
 0x20a   : > { %2049 = vst.msk [vmem:[#allocation2 + $0xa4] sm:$0xf] %vm1924_vm0, %v1887_v53  ;;  %v1187_v8 = vadd.f32 %v1186_v27, %v998_v13  ;;  %v2133_v13 = vld [vmem:[#allocation2 + $0xa8] sm:$0x3] }
 0x20c   : > { %1056 = vmatmul.bf16.gmra.mxu0 %v7704_v0  ;;  %v1312_v3 = vmax.f32 %v1187_v8, 0.0  ;;  %1225 = vmatmul.bf16.gmra.mxu1 %v7676_v41  ;;  %v2180_v0 = vunpack.c.l.b16 %v2133_v13  ;;  %v9321_v41 = vld [vmem:[#allocation2 + $0x4] sm:$0xf0]   ;;  %v2818_v8 = vsel %vm2654_vm1, %v2815_v63, %v12773_v50  ;;  %v7681_v13 = vld [vmem:[%s9553_s23 + $0x1b8] sm:$0xf0] }
 0x20e   : > { %v1816_v31 = vmul.f32 %v1603_v20, %v1312_v3 }
 0x210   : > { %v1888_v19 = vpack.c.bf16 %v1816_v31, %v1816_v31  ;;  %v8754_v31 = vld [vmem:[%s9553_s23 + $0x1f4] sm:$0xf0]  ;;  %v10667_v48 = vpop.f32.mrf.mxu3 }
 0x211   : > { %v10632_v37 = vpop.f32.mrf.mxu0  ;;  %v1188_v35 = vpop.f32.mrf.mxu1  ;;  %v10634_v55 = vld [vmem:[#allocation2 + $0xa0] sm:$0xff]  ;;  %7964 = vmatmul.msk.bf16.gmra.mxu3 %vm2303_vm3, %v2818_v8  ;;  %12794 = vst [vmem:[#allocation14_spill] sm:$0xff] %v10667_v48 }
 0x212   : > { %2051 = vst.msk [vmem:[#allocation2 + $0xb8] sm:$0xf] %vm1924_vm0, %v1888_v19  ;;  %v1189_v49 = vadd.f32 %v1188_v35, %v1000_v47  ;;  %v2274_v56 = vshrl.u32 %v10634_v55, 16  ;;  %v2277_v26 = vshll.u32 %v10634_v55, 16  ;;  %v7711_v47 = vld [vmem:[%s9553_s23 + $0x1f0] sm:$0xf]  ;;  %v1613_v8 = vpop.permute.xlu1 %1612 }
 0x213   : > { %v8745_v19 = vld [vmem:[%s9553_s23 + $0x1b4] sm:$0xf] }
 0x214   : > { %v1313_v12 = vmax.f32 %v1189_v49, 0.0  ;;  %v2276_v61 = vrot.slane %v2274_v56, 1  ;;  %v2279_v53 = vrot.slane %v2277_v26, 2  ;;  %v7712_v49 = vor.u32 %v8754_v31, %v7711_v47  ;;  %v10659_v56 = vpop.permute.xlu2 %1692 }
 0x216   : > { %v1817_v27 = vmul.f32 %v1608_v24, %v1313_v12  ;;  %v10649_v20 = vor.u32 %v2279_v53, %v2276_v61  ;;  %v9323_v24 = vld [vmem:[#allocation2 + $0xc] sm:$0xff]   ;;  %v7684_v12 = vor.u32 %v8745_v19, %v7681_v13  ;;  %v10663_v61 = vpack.c.b16 %v2180_v0, %v2180_v0  ;;  %v10673_v19 = vld [vmem:[#allocation2 + $0xb4] sm:$0xf] }
 0x217   : > { %v3935_v31 = vshrl.u32 %v9323_v24, 16  ;;  %v3938_v50 = vshll.u32 %v9323_v24, 16  ;;  %v12774_v24 = vunpack.c.l.b16 %v10673_v19 }
 0x218   : > { %v1889_v35 = vpack.c.bf16 %v1817_v27, %v1817_v27  ;;  %v2281_v26 = vsel %vm2192_vm2, %v2271_v34, %v10649_v20  ;;  %v9119_v27 = vor.u32 %v9321_v41, %v9118_v17  ;;  %v2283_v34 = vshrl.u32 %v10663_v61, 16  ;;  %v10677_v41 = vpop.permute.xlu0 %1697 }
 0x219   : > { %v10647_v3 = vpop.f32.mrf.mxu0  ;;  %v1191_v63 = vpop.f32.mrf.mxu1  ;;  %7869 = vmatmul.msk.bf16.gmra.mxu2 %vm2303_vm3, %v2281_v26  ;;  %v2286_v0 = vshll.u32 %v10663_v61, 16  ;;  %v3940_v33 = vrot.slane %v3938_v50, 4 }
 0x21a   : > { %2052 = vst.msk [vmem:[#allocation2 + $0xbc] sm:$0xf] %vm1924_vm0, %v1889_v35  ;;  %v1192_v53 = vadd.f32 %v1191_v63, %v1003_v43  ;;  %v3544_v43 = vld [vmem:[#allocation2 + $0xb0] sm:$0xc]  ;;  %v1005_v35 = vadd.f32 %v10402_v30, %v10544_v4  ;;  %v3927_v13 = vshrl.u32 %v9119_v27, 16  ;;  %v3930_v29 = vshll.u32 %v9119_v27, 16 }
 0x21b   : > { %v3551_v63 = vunpack.c.l.b16 %v3544_v43  ;;  %v2285_v48 = vrot.slane %v2283_v34, 1  ;;  %v2288_v52 = vrot.slane %v2286_v0, 2  ;;  %v2819_v27 = vrot.slane %v10580_v11, 2  ;;  %v8831_v43 = vld [vmem:[%s12766_s4 + $0x80] sm:$0xff] }
 0x21c   : > { %1061 = vmatmul.bf16.gmra.mxu0 %v7712_v49  ;;  %v1314_v47 = vmax.f32 %v1192_v53, 0.0  ;;  %1230 = vmatmul.bf16.gmra.mxu1 %v7684_v12  ;;  %v10669_v38 = vpop.f32.mrf.mxu2  ;;  %v3937_v12 = vrot.slane %v3935_v31, 3  ;;  %v3929_v31 = vrot.slane %v3927_v13, 3  ;;  %v3932_v34 = vrot.slane %v3930_v29, 4  ;;  %v10699_v13 = vpop.f32.mrf.mxu3 }
 0x21d   : > { %v3552_v4 = vpack.c.b16 %v12774_v24, %v3551_v63  ;;  %4073 = vmatpush.bf16.msrb.mxu0 %v8831_v43  ;;  %v2289_v63 = vor.u32 %v2288_v52, %v2285_v48  ;;  %v1008_v11 = vadd.f32 %v10402_v30, %v10563_v45  ;;  %12796 = vst [vmem:[#allocation16_spill] sm:$0xff] %v10699_v13  ;;  %v12797_v29 = vrot.slane %v10550_v1, 2  ;;  %v7689_v43 = vld [vmem:[%s9553_s23 + $0x1c8] sm:$0xf0]  ;;  %v9325_v1 = vld [vmem:[#allocation2 + $0x14] sm:$0xff]  }
 0x21e   : > { %v1818_v17 = vmul.f32 %v1613_v8, %v1314_v47  ;;  %v1618_v47 = vpop.permute.xlu2 %1617  ;;  %v3933_v48 = vor.u32 %v3932_v34, %v3929_v31  ;;  %v8751_v13 = vld [vmem:[%s9553_s23 + $0x1e4] sm:$0xf] }
 0x21f   : > { %v3553_v0 = vrot.slane %v3552_v4, 2  ;;  %v2820_v4 = vsel %vm2654_vm1, %v12797_v29, %v2819_v27  ;;  %v3944_v29 = vshrl.u32 %v9325_v1, 16 }
 0x220   : > { %v1890_v26 = vpack.c.bf16 %v1818_v17, %v1818_v17  ;;  %v10709_v52 = vpop.permute.xlu0 %1702 }
 0x221   : > { %v10679_v49 = vpop.f32.mrf.mxu0  ;;  %v1193_v53 = vpop.f32.mrf.mxu1  ;;  %v10682_v14 = vld [vmem:[#allocation2 + $0xb8] sm:$0xff]  ;;  %7965 = vmatmul.msk.bf16.gmra.mxu3 %vm2303_vm3, %v2820_v4  ;;  %v3947_v4 = vshll.u32 %v9325_v1, 16 }
 0x222   : > { %2053 = vst.msk [vmem:[#allocation2 + $0xc0] sm:$0xf] %vm1924_vm0, %v1890_v26  ;;  %v1194_v8 = vadd.f32 %v1193_v53, %v1005_v35  ;;  %v3554_v17 = vrot.slane %v10682_v14, 2  ;;  %v3941_v35 = vor.u32 %v3940_v33, %v3937_v12 }
 0x224   : > { %v1315_v50 = vmax.f32 %v1194_v8, 0.0  ;;  %v10692_v22 = vpop.f32.mrf.mxu2  ;;  %v10697_v53 = vsel %vm2654_vm1, %v3553_v0, %v3554_v17  ;;  %v8747_v8 = vld [vmem:[%s9553_s23 + $0x1c4] sm:$0xf] }
 0x225   : > { %12795 = vst [vmem:[#allocation15_spill] sm:$0xff] %v10697_v53  ;;  %v7692_v45 = vor.u32 %v8747_v8, %v7689_v43  ;;  %v10721_v8 = vpop.permute.xlu1 %1707 }
 0x226   : > { %v1819_v26 = vmul.f32 %v1618_v47, %v1315_v50  ;;  %v2290_v47 = vsel %vm2192_vm2, %v10649_v20, %v2289_v63  ;;  %v3942_v50 = vsel %vm3925_vm4, %v3933_v48, %v3941_v35  ;;  %v1623_v34 = vpop.permute.xlu2 %1622  ;;  %v1010_v20 = vadd.f32 %v10402_v30, %v10576_v9  ;;  %v10725_v48 = vpop.f32.mrf.mxu3 }
 0x227   : > { %12798 = vst [vmem:[#allocation17_spill] sm:$0xff] %v10725_v48  ;;  %v2821_v9 = vrot.slane %v10609_v5, 2  ;;  %v8815_v5 = vld [vmem:[%s12766_s4 + $0x48] sm:$0xff] }
 0x228   : > { %v1891_v33 = vpack.c.bf16 %v1819_v26, %v1819_v26  ;;  %v1628_v1 = vpop.permute.xlu0 %1627  ;;  %3173 = vmatpush.bf16.msra.mxu2 %v8815_v5 }
 0x229   : > { %v10704_v14 = vpop.f32.mrf.mxu0  ;;  %v1196_v12 = vpop.f32.mrf.mxu1  ;;  %7870 = vmatmul.msk.bf16.gmra.mxu2 %vm2303_vm3, %v2290_v47  ;;  %v3949_v47 = vrot.slane %v3947_v4, 4 }
 0x22a   : > { %2054 = vst.msk [vmem:[#allocation2 + $0xc4] sm:$0xf] %vm1924_vm0, %v1891_v33  ;;  %v1197_v0 = vadd.f32 %v1196_v12, %v1008_v11  ;;  %v3946_v12 = vrot.slane %v3944_v29, 3  ;;  %v1013_v29 = vadd.f32 %v10402_v30, %v10592_v21 }
 0x22c   : > { %8141 = vmatmul.msk.bf16.vlgmr.msrb.gmra.mxu0 %vm2303_vm3, %v3942_v50  ;;  %v1316_v31 = vmax.f32 %v1197_v0, 0.0  ;;  %1235 = vmatmul.bf16.gmra.mxu1 %v7692_v45  ;;  %v10717_v26 = vpop.f32.mrf.mxu2  ;;  %v3950_v24 = vor.u32 %v3949_v47, %v3946_v12  ;;  %v7697_v12 = vld [vmem:[%s9553_s23 + $0x1d8] sm:$0xf0] }
 0x22d   : > { %v10745_v47 = vpop.permute.xlu1 %1712 }
 0x22e   : > { %v1820_v63 = vmul.f32 %v1623_v34, %v1316_v31  ;;  %v3951_v21 = vsel %vm3925_vm4, %v3941_v35, %v3950_v24 }
 0x230   : > { %v1892_v11 = vpack.c.bf16 %v1820_v63, %v1820_v63  ;;  %v1633_v35 = vpop.permute.xlu0 %1632 }
 0x231   : > { %v10723_v43 = vpop.f32.mrf.mxu0  ;;  %v1198_v33 = vpop.f32.mrf.mxu1  ;;  %v8806_v45 = vld [vmem:[#allocation2 + $0xc0] sm:$0xff] }
 0x232   : > { %2055 = vst.msk [vmem:[#allocation2 + $0xc8] sm:$0xf] %vm1924_vm0, %v1892_v11  ;;  %v1199_v50 = vadd.f32 %v1198_v33, %v1010_v20  ;;  %v3556_v0 = vrot.slane %v8806_v45, 2  ;;  %v2822_v11 = vsel %vm2654_vm1, %v2819_v27, %v2821_v9  ;;  %v8749_v45 = vld [vmem:[%s9553_s23 + $0x1d4] sm:$0xf]  ;;  %v8826_v27 = vld [vmem:[%s12766_s4 + $0x58] sm:$0xff] }
 0x233   : > { %7966 = vmatmul.msk.bf16.gmra.mxu3 %vm2303_vm3, %v2822_v11 }
 0x234   : > { %v1317_v31 = vmax.f32 %v1199_v50, 0.0  ;;  %v10729_v34 = vpop.f32.mrf.mxu2  ;;  %v10732_v63 = vsel %vm2654_vm1, %v3554_v17, %v3556_v0  ;;  %v7700_v50 = vor.u32 %v8749_v45, %v7697_v12  ;;  %3471 = vmatpush.bf16.msra.mxu3 %v8826_v27 }
 0x235   : > { %12799 = vst [vmem:[#allocation18_spill] sm:$0xff] %v10732_v63 }
 0x236   : > { %v1821_v4 = vmul.f32 %v1628_v1, %v1317_v31  ;;  %v9327_v1 = vld [vmem:[#allocation2 + $0x1c] sm:$0xff]  }
 0x237   : > { %v3953_v12 = vshrl.u32 %v9327_v1, 16  ;;  %v3956_v63 = vshll.u32 %v9327_v1, 16  ;;  %v2823_v1 = vrot.slane %v10634_v55, 2 }
 0x238   : > { %v1893_v20 = vpack.c.bf16 %v1821_v4, %v1821_v4  ;;  %v10755_v4 = vpop.f32.mrf.mxu3 }
 0x239   : > { %v10738_v33 = vpop.f32.mrf.mxu0  ;;  %v1201_v17 = vpop.f32.mrf.mxu1  ;;  %7937 = vmatmul.msk.bf16.vlgmr.msrb.gmra.mxu2 %vm2303_vm3, %v10181_v51  ;;  %12800 = vst [vmem:[#allocation19_spill] sm:$0xff] %v10755_v4  ;;  %v3955_v53 = vrot.slane %v3953_v12, 3  ;;  %v3958_v5 = vrot.slane %v3956_v63, 4  ;;  %v1018_v63 = vadd.f32 %v10402_v30, %v10618_v15 }
 0x23a   : > { %2056 = vst.msk [vmem:[#allocation2 + $0xcc] sm:$0xf] %vm1924_vm0, %v1893_v20  ;;  %v1202_v31 = vadd.f32 %v1201_v17, %v1013_v29  ;;  %v1015_v20 = vadd.f32 %v10402_v30, %v10605_v39  ;;  %v10761_v17 = vpop.permute.xlu2 %1717  ;;  %v1638_v4 = vpop.permute.xlu1 %1637 }
 0x23b   : > { %v3959_v42 = vor.u32 %v3958_v5, %v3955_v53  ;;  %v10791_v5 = vpop.permute.xlu0 %1727 }
 0x23c   : > { %8142 = vmatmul.msk.bf16.gmra.mxu0 %vm2303_vm3, %v3951_v21  ;;  %v1318_v11 = vmax.f32 %v1202_v31, 0.0  ;;  %1240 = vmatmul.bf16.gmra.mxu1 %v7700_v50  ;;  %v10757_v45 = vpop.f32.mrf.mxu2 }
 0x23e   : > { %v1822_v29 = vmul.f32 %v1633_v35, %v1318_v11 }
 0x240   : > { %v1894_v51 = vpack.c.bf16 %v1822_v29, %v1822_v29  ;;  %v10767_v11 = vpop.f32.mrf.mxu3  ;;  %v7705_v29 = vld [vmem:[%s9553_s23 + $0x1e8] sm:$0xf0] }
 0x241   : > { %v1203_v21 = vpop.f32.mrf.mxu1  ;;  %v8807_v27 = vld [vmem:[#allocation2 + $0xc8] sm:$0xff]  ;;  %v10764_v50 = vpop.f32.mrf.mxu0  ;;  %12801 = vst [vmem:[#allocation20_spill] sm:$0xff] %v10767_v11  ;;  %v3960_v11 = vsel %vm3925_vm4, %v3950_v24, %v3959_v42  ;;  %v1020_v24 = vadd.f32 %v10402_v30, %v10632_v37  ;;  %v8753_v30 = vld [vmem:[%s9553_s23 + $0x1f4] sm:$0xf]  ;;  %v7713_v37 = vld [vmem:[%s9553_s23 + $0x1f8] sm:$0xf0] }
 0x242   : > { %2057 = vst.msk [vmem:[#allocation2 + $0xd0] sm:$0xf] %vm1924_vm0, %v1894_v51  ;;  %v1204_v31 = vadd.f32 %v1203_v21, %v1015_v20  ;;  %v3558_v39 = vrot.slane %v8807_v27, 2  ;;  %v2824_v20 = vsel %vm2654_vm1, %v2821_v9, %v2823_v1  ;;  %v7708_v21 = vor.u32 %v8751_v13, %v7705_v29  ;;  %v10780_v27 = vpop.permute.xlu2 %1722  ;;  %v1643_v9 = vpop.permute.xlu1 %1642 }
 0x243   : > { %7967 = vmatmul.msk.bf16.gmra.mxu3 %vm2303_vm3, %v2824_v20 }
 0x244   : > { %v1319_v48 = vmax.f32 %v1204_v31, 0.0  ;;  %v10769_v35 = vpop.f32.mrf.mxu2  ;;  %v10776_v51 = vsel %vm2654_vm1, %v3556_v0, %v3558_v39  ;;  %v3962_v0 = vshrl.u32 %v9329_v18, 16 }
 0x245   : > { %12802 = vst [vmem:[#allocation21_spill] sm:$0xff] %v10776_v51 }
 0x246   : > { %v1823_v12 = vmul.f32 %v1638_v4, %v1319_v48  ;;  %v3965_v4 = vshll.u32 %v9329_v18, 16  ;;  %v2825_v18 = vrot.slane %v10663_v61, 2 }
 0x248   : > { %v1895_v55 = vpack.c.bf16 %v1823_v12, %v1823_v12  ;;  %v3964_v12 = vrot.slane %v3962_v0, 3  ;;  %v3967_v20 = vrot.slane %v3965_v4, 4 }
 0x249   : > { %v1206_v31 = vpop.f32.mrf.mxu1  ;;  %7938 = vmatmul.msk.bf16.gmra.mxu2 %vm2303_vm3, %v10203_v28  ;;  %v10787_v15 = vpop.f32.mrf.mxu0 }
 0x24a   : > { %2058 = vst.msk [vmem:[#allocation2 + $0xd4] sm:$0xf] %vm1924_vm0, %v1895_v55  ;;  %v1207_v53 = vadd.f32 %v1206_v31, %v1018_v63  ;;  %v10795_v28 = vpop.f32.mrf.mxu3  ;;  %v1648_v31 = vpop.permute.xlu2 %1647 }
 0x24b   : > { %12803 = vst [vmem:[#allocation22_spill] sm:$0xff] %v10795_v28 }
 0x24c   : > { %8143 = vmatmul.msk.bf16.gmra.mxu0 %vm2303_vm3, %v3960_v11  ;;  %v1320_v48 = vmax.f32 %v1207_v53, 0.0  ;;  %1245 = vmatmul.bf16.gmra.mxu1 %v7708_v21  ;;  %v10789_v13 = vpop.f32.mrf.mxu2 }
 0x24e   : > { %v1824_v29 = vmul.f32 %v1643_v9, %v1320_v48  ;;  %v3968_v48 = vor.u32 %v3967_v20, %v3964_v12  ;;  %v10806_v9 = vld [vmem:[%s12764_s2] ss:$0 sm:$0xff]  ;;  %v7716_v12 = vor.u32 %v8753_v30, %v7713_v37 }
 0x24f   : > { %v1023_v0 = vadd.f32 %v10806_v9, %v10647_v3  ;;  %v9331_v3 = vld [vmem:[#allocation2 + $0x2c] sm:$0xff]   ;;  %v1025_v37 = vadd.f32 %v10806_v9, %v10679_v49 }
 0x250   : > { %v1896_v11 = vpack.c.bf16 %v1824_v29, %v1824_v29  ;;  %v2826_v29 = vsel %vm2654_vm1, %v2823_v1, %v2825_v18  ;;  %v3974_v30 = vshll.u32 %v9331_v3, 16 }
 0x251   : > { %v1208_v63 = vpop.f32.mrf.mxu1  ;;  %v8808_v55 = vld [vmem:[#allocation2 + $0xd0] sm:$0xff]  ;;  %v10810_v4 = vpop.f32.mrf.mxu0 }
 0x252   : > { %2059 = vst.msk [vmem:[#allocation2 + $0xd8] sm:$0xf] %vm1924_vm0, %v1896_v11  ;;  %v1209_v21 = vadd.f32 %v1208_v63, %v1020_v24  ;;  %v3560_v51 = vrot.slane %v8808_v55, 2  ;;  %v10816_v11 = vpop.permute.xlu0 %1732  ;;  %v10819_v20 = vpop.f32.mrf.mxu3 }
 0x253   : > { %7968 = vmatmul.msk.bf16.gmra.mxu3 %vm2303_vm3, %v2826_v29  ;;  %12806 = vst [vmem:[#allocation25_spill] sm:$0xff] %v10819_v20 }
 0x254   : > { %v1321_v53 = vmax.f32 %v1209_v21, 0.0  ;;  %v10799_v54 = vpop.f32.mrf.mxu2  ;;  %v10813_v61 = vsel %vm2654_vm1, %v3558_v39, %v3560_v51  ;;  %v3969_v21 = vsel %vm3925_vm4, %v3959_v42, %v3968_v48  ;;  %v1653_v39 = vpop.permute.xlu2 %1652 }
 0x255   : > { %12804 = vst [vmem:[#allocation23_spill] sm:$0xff] %v10799_v54 }
 0x256   : > { %v1825_v24 = vmul.f32 %v1648_v31, %v1321_v53  ;;  %12805 = vst [vmem:[#allocation24_spill] sm:$0xff] %v10813_v61  ;;  %v3971_v53 = vshrl.u32 %v9331_v3, 16 }
 0x258   : > { %v1897_v63 = vpack.c.bf16 %v1825_v24, %v1825_v24  ;;  %v10830_v24 = vpop.permute.xlu1 %1737 }
 0x259   : > { %v1211_v55 = vpop.f32.mrf.mxu1  ;;  %7939 = vmatmul.msk.bf16.gmra.mxu2 %vm2303_vm3, %v10206_v32 }
 0x25a   : > { %2060 = vst.msk [vmem:[#allocation2 + $0xdc] sm:$0xf] %vm1924_vm0, %v1897_v63  ;;  %v1212_v31 = vadd.f32 %v1211_v55, %v1023_v0  ;;  %v10832_v0 = vpop.f32.mrf.mxu0  ;;  %v3973_v63 = vrot.slane %v3971_v53, 3  ;;  %v3976_v55 = vrot.slane %v3974_v30, 4  ;;  %v10835_v3 = vpop.f32.mrf.mxu3 }
 0x25b   : > { %12808 = vst [vmem:[#allocation27_spill] sm:$0xff] %v10835_v3 }
 0x25c   : > { %8144 = vmatmul.msk.bf16.gmra.mxu0 %vm2303_vm3, %v3969_v21  ;;  %v1322_v1 = vmax.f32 %v1212_v31, 0.0  ;;  %1250 = vmatmul.bf16.gmra.mxu1 %v7716_v12  ;;  %v10826_v18 = vpop.f32.mrf.mxu2  ;;  %v1658_v21 = vpop.permute.xlu0 %1657  ;;  %v3977_v28 = vor.u32 %v3976_v55, %v3973_v63 }
 0x25d   : > { %12807 = vst [vmem:[#allocation26_spill] sm:$0xff] %v10826_v18 }
 0x25e   : > { %v1826_v42 = vmul.f32 %v1653_v39, %v1322_v1  ;;  %v8755_v1 = vld [vmem:[%s9553_s23 + $0x204] sm:$0xf]  ;;  %v7721_v39 = vld [vmem:[%s9553_s23 + $0x208] sm:$0xf0] }
 0x25f   : > { %v7724_v54 = vor.u32 %v8755_v1, %v7721_v39  ;;  %v10859_v39 = vpop.permute.xlu2 %1747 }
 0x260   : > { %v1898_v32 = vpack.c.bf16 %v1826_v42, %v1826_v42  ;;  %v1028_v42 = vadd.f32 %v10806_v9, %v10704_v14 }
 0x261   : > { %v1213_v29 = vpop.f32.mrf.mxu1  ;;  %v8809_v12 = vld [vmem:[#allocation2 + $0xd8] sm:$0xff] }
 0x262   : > { %2061 = vst.msk [vmem:[#allocation2 + $0xe0] sm:$0xf] %vm1924_vm0, %v1898_v32  ;;  %v1214_v31 = vadd.f32 %v1213_v29, %v1025_v37  ;;  %v3562_v49 = vrot.slane %v8809_v12, 2  ;;  %v10846_v32 = vpop.permute.xlu1 %1742  ;;  %v3978_v29 = vsel %vm3925_vm4, %v3968_v48, %v3977_v28  ;;  %v9333_v12 = vld [vmem:[#allocation2 + $0x34] sm:$0xff]   ;;  %v1030_v48 = vadd.f32 %v10806_v9, %v10723_v43 }
 0x263   : > { %v3980_v55 = vshrl.u32 %v9333_v12, 16  ;;  %v8757_v43 = vld [vmem:[%s9553_s23 + $0x214] sm:$0xf] }
 0x264   : > { %v1323_v61 = vmax.f32 %v1214_v31, 0.0  ;;  %v10837_v20 = vpop.f32.mrf.mxu2  ;;  %v10844_v53 = vsel %vm2654_vm1, %v3560_v51, %v3562_v49  ;;  %v10849_v31 = vpop.f32.mrf.mxu0 }
 0x265   : > { %12809 = vst [vmem:[#allocation28_spill] sm:$0xff] %v10837_v20  ;;  %v1663_v14 = vpop.permute.xlu0 %1662 }
 0x266   : > { %v1827_v18 = vmul.f32 %v1658_v21, %v1323_v61  ;;  %12810 = vst [vmem:[#allocation29_spill] sm:$0xff] %v10844_v53  ;;  %v2642_v61 = vpop.f32.mrf.mxu3  ;;  %v3983_v21 = vshll.u32 %v9333_v12, 16 }
 0x268   : > { %v1899_v30 = vpack.c.bf16 %v1827_v18, %v1827_v18 }
 0x269   : > { %v1216_v37 = vpop.f32.mrf.mxu1  ;;  %7940 = vmatmul.msk.bf16.gmra.mxu2 %vm2303_vm3, %v10222_v58 }
 0x26a   : > { %2062 = vst.msk [vmem:[#allocation2 + $0xe4] sm:$0xf] %vm1924_vm0, %v1899_v30  ;;  %v1217_v63 = vadd.f32 %v1216_v37, %v1028_v42  ;;  %v3982_v30 = vrot.slane %v3980_v55, 3  ;;  %v3985_v37 = vrot.slane %v3983_v21, 4 }
 0x26c   : > { %8145 = vmatmul.msk.bf16.gmra.mxu0 %vm2303_vm3, %v3978_v29  ;;  %v1324_v51 = vmax.f32 %v1217_v63, 0.0  ;;  %1255 = vmatmul.bf16.gmra.mxu1 %v7724_v54  ;;  %v10855_v18 = vpop.f32.mrf.mxu2  ;;  %v1668_v63 = vpop.permute.xlu1 %1667 }
 0x26d   : > { %12811 = vst [vmem:[#allocation30_spill] sm:$0xff] %v10855_v18  ;;  %v10862_v61 = vpop.f32.mrf.mxu0  ;;  %v7729_v18 = vld [vmem:[%s9553_s23 + $0x218] sm:$0xf0] }
 0x26e   : > { %v1828_v1 = vmul.f32 %v1663_v14, %v1324_v51  ;;  %v3986_v14 = vor.u32 %v3985_v37, %v3982_v30  ;;  %v1033_v51 = vadd.f32 %v10806_v9, %v10738_v33  ;;  %v10873_v21 = vpop.f32.mrf.mxu3 }
 0x26f   : > { %12814 = vst [vmem:[#allocation33_spill] sm:$0xff] %v10873_v21 }
 0x270   : > { %v1900_v42 = vpack.c.bf16 %v1828_v1, %v1828_v1 }
 0x271   : > { %v1218_v58 = vpop.f32.mrf.mxu1  ;;  %v8810_v29 = vld [vmem:[#allocation2 + $0xe0] sm:$0xff] }
 0x272   : > { %2063 = vst.msk [vmem:[#allocation2 + $0xe8] sm:$0xf] %vm1924_vm0, %v1900_v42  ;;  %v1219_v54 = vadd.f32 %v1218_v58, %v1030_v48  ;;  %v3564_v53 = vrot.slane %v8810_v29, 2  ;;  %v7732_v42 = vor.u32 %v8757_v43, %v7729_v18  ;;  %v10875_v58 = vpop.permute.xlu2 %1752  ;;  %v3987_v29 = vsel %vm3925_vm4, %v3977_v28, %v3986_v14 }
 0x274   : > { %v1325_v12 = vmax.f32 %v1219_v54, 0.0  ;;  %v10864_v3 = vpop.f32.mrf.mxu2  ;;  %v10871_v55 = vsel %vm2654_vm1, %v3562_v49, %v3564_v53  ;;  %v1673_v49 = vpop.permute.xlu1 %1672 }
 0x275   : > { %12812 = vst [vmem:[#allocation31_spill] sm:$0xff] %v10864_v3  ;;  %v9335_v3 = vld [vmem:[#allocation2 + $0x3c] sm:$0xff]   ;;  %v10886_v28 = vpop.f32.mrf.mxu0 }
 0x276   : > { %v1829_v1 = vmul.f32 %v1668_v63, %v1325_v12  ;;  %12813 = vst [vmem:[#allocation32_spill] sm:$0xff] %v10871_v55  ;;  %v3989_v18 = vshrl.u32 %v9335_v3, 16  ;;  %v3992_v63 = vshll.u32 %v9335_v3, 16  ;;  %v1035_v12 = vadd.f32 %v10806_v9, %v10764_v50  ;;  %v8814_v50 = vld [vmem:[%s12766_s4 + $0x40] sm:$0xff] }
 0x277   : > { %3174 = vmatpush.bf16.msra.mxu2 %v8814_v50 }
 0x278   : > { %v1901_v48 = vpack.c.bf16 %v1829_v1, %v1829_v1  ;;  %v10888_v1 = vpop.permute.xlu0 %1757 }
 0x279   : > { %v1221_v54 = vpop.f32.mrf.mxu1  ;;  %7941 = vmatmul.msk.bf16.gmra.mxu2 %vm2303_vm3, %v10250_v59  ;;  %12816 = vst [vmem:[#allocation35_spill] sm:$0xff] %v10888_v1  ;;  %v10890_v59 = vpop.f32.mrf.mxu3 }
 0x27a   : > { %2064 = vst.msk [vmem:[#allocation2 + $0xec] sm:$0xf] %vm1924_vm0, %v1901_v48  ;;  %v1222_v30 = vadd.f32 %v1221_v54, %v1033_v51  ;;  %v3994_v54 = vrot.slane %v3992_v63, 4  ;;  %v7737_v63 = vld [vmem:[%s9553_s23 + $0x228] sm:$0xf0] }
 0x27b   : > { %12817 = vst [vmem:[#allocation36_spill] sm:$0xff] %v10890_v59 }
 0x27c   : > { %8146 = vmatmul.msk.bf16.gmra.mxu0 %vm2303_vm3, %v3987_v29  ;;  %v1326_v33 = vmax.f32 %v1222_v30, 0.0  ;;  %1260 = vmatmul.bf16.gmra.mxu1 %v7732_v42  ;;  %v10882_v37 = vpop.f32.mrf.mxu2  ;;  %v3991_v42 = vrot.slane %v3989_v18, 3  ;;  %v1678_v30 = vpop.permute.xlu2 %1677  ;;  %v8759_v18 = vld [vmem:[%s9553_s23 + $0x224] sm:$0xf] }
 0x27d   : > { %12815 = vst [vmem:[#allocation34_spill] sm:$0xff] %v10882_v37  ;;  %v7740_v37 = vor.u32 %v8759_v18, %v7737_v63 }
 0x27e   : > { %v1830_v43 = vmul.f32 %v1673_v49, %v1326_v33  ;;  %v8825_v49 = vld [vmem:[%s12766_s4 + $0x50] sm:$0xff]  ;;  %v3995_v59 = vor.u32 %v3994_v54, %v3991_v42 }
 0x27f   : > { %3472 = vmatpush.bf16.msra.mxu3 %v8825_v49  ;;  %v1040_v49 = vadd.f32 %v10806_v9, %v10810_v4 }
 0x280   : > { %v1902_v51 = vpack.c.bf16 %v1830_v43, %v1830_v43  ;;  %v10911_v50 = vpop.permute.xlu0 %1762 }
 0x281   : > { %v1223_v48 = vpop.f32.mrf.mxu1  ;;  %v8811_v29 = vld [vmem:[#allocation2 + $0xe8] sm:$0xff]  ;;  %12820 = vst [vmem:[#allocation39_spill] sm:$0xff] %v10911_v50 }
 0x282   : > { %2065 = vst.msk [vmem:[#allocation2 + $0xf0] sm:$0xf] %vm1924_vm0, %v1902_v51  ;;  %v1224_v3 = vadd.f32 %v1223_v48, %v1035_v12  ;;  %v3566_v43 = vrot.slane %v8811_v29, 2  ;;  %v1038_v12 = vadd.f32 %v10806_v9, %v10787_v15  ;;  %v3996_v29 = vsel %vm3925_vm4, %v3986_v14, %v3995_v59  ;;  %v10917_v15 = vpop.f32.mrf.mxu3 }
 0x283   : > { %12821 = vst [vmem:[#allocation40_spill] sm:$0xff] %v10917_v15  ;;  %v9338_v15 = vld [vmem:[#allocation2 + $0x4c] sm:$0xff]  }
 0x284   : > { %v1327_v33 = vmax.f32 %v1224_v3, 0.0  ;;  %v10899_v55 = vpop.f32.mrf.mxu2  ;;  %v10906_v48 = vsel %vm2654_vm1, %v3564_v53, %v3566_v43  ;;  %v10908_v3 = vpop.f32.mrf.mxu0 }
 0x285   : > { %12818 = vst [vmem:[#allocation37_spill] sm:$0xff] %v10899_v55  ;;  %v9337_v55 = vld [vmem:[#allocation2 + $0x44] sm:$0xff]   ;;  %v1683_v54 = vpop.permute.xlu2 %1682 }
 0x286   : > { %v1831_v51 = vmul.f32 %v1678_v30, %v1327_v33  ;;  %12819 = vst [vmem:[#allocation38_spill] sm:$0xff] %v10906_v48  ;;  %v3998_v33 = vshrl.u32 %v9337_v55, 16  ;;  %v4001_v14 = vshll.u32 %v9337_v55, 16 }
 0x288   : > { %v1903_v21 = vpack.c.bf16 %v1831_v51, %v1831_v51  ;;  %v4003_v63 = vrot.slane %v4001_v14, 4 }
 0x289   : > { %v1226_v1 = vpop.f32.mrf.mxu1  ;;  %7942 = vmatmul.msk.bf16.gmra.mxu2 %vm2303_vm3, %v10278_v16  ;;  %v4000_v16 = vrot.slane %v3998_v33, 3  ;;  %v1043_v33 = vadd.f32 %v10806_v9, %v10832_v0  ;;  %v9167_v0 = vld [vmem:[#allocation2 + $0x5c] sm:$0x8] }
 0x28a   : > { %2066 = vst.msk [vmem:[#allocation2 + $0xf4] sm:$0xf] %vm1924_vm0, %v1903_v21  ;;  %v1227_v42 = vadd.f32 %v1226_v1, %v1038_v12  ;;  %v10929_v48 = vpop.f32.mrf.mxu3 }
 0x28b   : > { %12823 = vst [vmem:[#allocation42_spill] sm:$0xff] %v10929_v48 }
 0x28c   : > { %8147 = vmatmul.msk.bf16.gmra.mxu0 %vm2303_vm3, %v3996_v29  ;;  %v1328_v53 = vmax.f32 %v1227_v42, 0.0  ;;  %1265 = vmatmul.bf16.gmra.mxu1 %v7740_v37  ;;  %v10919_v30 = vpop.f32.mrf.mxu2  ;;  %v10925_v51 = vpop.f32.mrf.mxu0 }
 0x28d   : > { %12822 = vst [vmem:[#allocation41_spill] sm:$0xff] %v10919_v30  ;;  %v1688_v29 = vpop.permute.xlu0 %1687  ;;  %v9082_v30 = vld [vmem:[#allocation2 + $0x50] sm:$0xff]  }
 0x28e   : > { %v1832_v21 = vmul.f32 %v1683_v54, %v1328_v53  ;;  %v8761_v53 = vld [vmem:[%s9553_s23 + $0x234] sm:$0xf]  ;;  %v7745_v54 = vld [vmem:[%s9553_s23 + $0x238] sm:$0xf0] }
 0x290   : > { %v1904_v1 = vpack.c.bf16 %v1832_v21, %v1832_v21  ;;  %v10935_v21 = vor.u32 %v4003_v63, %v4000_v16  ;;  %v9340_v63 = vld [vmem:[#allocation2 + $0x5c] sm:$0xf0]  }
 0x291   : > { %v1228_v18 = vpop.f32.mrf.mxu1  ;;  %v10923_v12 = vld [vmem:[#allocation2 + $0xf0] sm:$0xff] }
 0x292   : > { %2067 = vst.msk [vmem:[#allocation2 + $0xf8] sm:$0xf] %vm1924_vm0, %v1904_v1  ;;  %v1229_v37 = vadd.f32 %v1228_v18, %v1040_v49  ;;  %v12775_v55 = vrot.slane %v10923_v12, 2  ;;  %v7748_v18 = vor.u32 %v8761_v53, %v7745_v54  ;;  %v4005_v48 = vsel %vm3925_vm4, %v3995_v59, %v10935_v21 }
 0x293   : > { %v4007_v54 = vshrl.u32 %v9338_v15, 16  ;;  %v4010_v59 = vshll.u32 %v9338_v15, 16 }
 0x294   : > { %v1329_v42 = vmax.f32 %v1229_v37, 0.0  ;;  %v10931_v4 = vpop.f32.mrf.mxu2  ;;  %v10942_v49 = vsel %vm2654_vm1, %v3566_v43, %v12775_v55  ;;  %v10950_v43 = vpop.f32.mrf.mxu0  ;;  %v2968_v55 = vld [vmem:[#allocation2 + $0x100] sm:$0x3] }
 0x295   : > { %12824 = vst [vmem:[#allocation43_spill] sm:$0xff] %v10931_v4  ;;  %v4012_v50 = vrot.slane %v4010_v59, 4 }
 0x296   : > { %v1833_v14 = vmul.f32 %v1688_v29, %v1329_v42  ;;  %12825 = vst [vmem:[#allocation44_spill] sm:$0xff] %v10942_v49  ;;  %v9342_v29 = vld [vmem:[#allocation2 + $0x64] sm:$0xff]   ;;  %v3015_v49 = vunpack.c.l.b16 %v2968_v55 }
 0x298   : > { %v1905_v1 = vpack.c.bf16 %v1833_v14, %v1833_v14  ;;  %v9168_v14 = vor.u32 %v9340_v63, %v9167_v0  ;;  %v8948_v63 = vunpack.c.h.b16 %v9082_v30 }
 0x299   : > { %v1231_v37 = vpop.f32.mrf.mxu1  ;;  %7943 = vmatmul.msk.bf16.gmra.mxu2 %vm2303_vm3, %v10306_v57 }
 0x29a   : > { %2068 = vst.msk [vmem:[#allocation2 + $0xfc] sm:$0xf] %vm1924_vm0, %v1905_v1  ;;  %v1232_v16 = vadd.f32 %v1231_v37, %v1043_v33  ;;  %v1045_v33 = vadd.f32 %v10806_v9, %v10849_v31  ;;  %v10957_v1 = vpop.f32.mrf.mxu3  ;;  %v4236_v37 = vshll.u32 %v9342_v29, 16  ;;  %v4228_v20 = vshll.u32 %v9168_v14, 16  ;;  %v8833_v31 = vld [vmem:[%s12766_s4 + $0x90] sm:$0xff] }
 0x29b   : > { %12827 = vst [vmem:[#allocation46_spill] sm:$0xff] %v10957_v1  ;;  %4371 = vmatpush.bf16.msra.mxu1 %v8833_v31  ;;  %v3924_v30 = vpack.c.b16 %v8948_v63, %v8948_v63  ;;  %v9344_v1 = vld [vmem:[#allocation2 + $0x6c] sm:$0xff]  }
 0x29c   : > { %8148 = vmatmul.msk.bf16.gmra.mxu0 %vm2303_vm3, %v4005_v48  ;;  %v1330_v42 = vmax.f32 %v1232_v16, 0.0  ;;  %1270 = vmatmul.bf16.gmra.mxu1 %v7748_v18  ;;  %v10952_v53 = vpop.f32.mrf.mxu2  ;;  %v4233_v48 = vshrl.u32 %v9342_v29, 16  ;;  %v4009_v18 = vrot.slane %v4007_v54, 3  ;;  %v4238_v0 = vrot.slane %v4236_v37, 4 }
 0x29d   : > { %12826 = vst [vmem:[#allocation45_spill] sm:$0xff] %v10952_v53  ;;  %v4225_v53 = vshrl.u32 %v9168_v14, 16  ;;  %v10963_v29 = vpack.c.b16 %v3015_v49, %v3015_v49  ;;  %v4230_v14 = vrot.slane %v4228_v20, 4 }
 0x29e   : > { %v1834_v57 = vmul.f32 %v10659_v56, %v1330_v42  ;;  %v4235_v56 = vrot.slane %v4233_v48, 3  ;;  %v10967_v54 = vor.u32 %v4012_v50, %v4009_v18 }
 0x29f   : > { %12828 = vst [vmem:[#allocation47_spill] sm:$0xff] %v10963_v29  ;;  %v4227_v59 = vrot.slane %v4225_v53, 3  ;;  %v12830_v53 = vrot.slane %v10923_v12, 2  ;;  %v4019_v12 = vshll.u32 %v3924_v30, 16 }
 0x2a0   : > { %v1906_v4 = vpack.c.bf16 %v1834_v57, %v1834_v57  ;;  %v10974_v37 = vor.u32 %v4238_v0, %v4235_v56  ;;  %v4014_v20 = vsel %vm3925_vm4, %v10935_v21, %v10967_v54  ;;  %v4016_v0 = vshrl.u32 %v3924_v30, 16 }
 0x2a1   : > { %v1233_v16 = vpop.f32.mrf.mxu1  ;;  %v8813_v42 = vld [vmem:[#allocation2 + $0xf8] sm:$0xff] }
 0x2a2   : > { %2070 = vst.msk [vmem:[#allocation2 + $0x110] sm:$0xf] %vm1924_vm0, %v1906_v4  ;;  %v1234_v15 = vadd.f32 %v1233_v16, %v1045_v33  ;;  %v1048_v4 = vadd.f32 %v10806_v9, %v10862_v61  ;;  %v10971_v33 = vpop.f32.mrf.mxu0  ;;  %v3570_v49 = vrot.slane %v8813_v42, 2  ;;  %v3572_v16 = vrot.slane %v10963_v29, 2  ;;  %v10977_v31 = vpop.f32.mrf.mxu3 }
 0x2a3   : > { %12829 = vst [vmem:[#allocation48_spill] sm:$0xff] %v10977_v31  ;;  %v4231_v61 = vor.u32 %v4230_v14, %v4227_v59  ;;  %v4242_v42 = vshrl.u32 %v9344_v1, 16  ;;  %v3246_v14 = vld [vmem:[#allocation2 + $0x108] sm:$0xe] }
 0x2a4   : > { %v1331_v55 = vmax.f32 %v1234_v15, 0.0  ;;  %v10965_v57 = vpop.f32.mrf.mxu2  ;;  %v10994_v21 = vsel %vm2654_vm1, %v3570_v49, %v3572_v16 }
 0x2a5   : > { %v4240_v56 = vsel %vm3925_vm4, %v4231_v61, %v10974_v37  ;;  %12832 = vst [vmem:[#allocation50_spill] sm:$0xff] %v10994_v21  ;;  %v4244_v21 = vrot.slane %v4242_v42, 3 }
 0x2a6   : > { %v1835_v48 = vmul.f32 %v10677_v41, %v1331_v55  ;;  %v10985_v41 = vsel %vm2654_vm1, %v12830_v53, %v3570_v49  ;;  %v4245_v55 = vshll.u32 %v9344_v1, 16  ;;  %v4018_v1 = vrot.slane %v4016_v0, 3 }
 0x2a7   : > { %12831 = vst [vmem:[#allocation49_spill] sm:$0xff] %v10985_v41 }
 0x2a8   : > { %v1907_v15 = vpack.c.bf16 %v1835_v48, %v1835_v48  ;;  %v1050_v48 = vadd.f32 %v10806_v9, %v10886_v28 }
 0x2a9   : > { %v1236_v50 = vpop.f32.mrf.mxu1  ;;  %7944 = vmatmul.msk.bf16.gmra.mxu2 %vm2303_vm3, %v10330_v36  ;;  %v3695_v36 = vld [vmem:[#allocation2 + $0x108] sm:$0xc] }
 0x2aa   : > { %2071 = vst.msk [vmem:[#allocation2 + $0x114] sm:$0xf] %vm1924_vm0, %v1907_v15  ;;  %v1237_v18 = vadd.f32 %v1236_v50, %v1048_v4  ;;  %v3247_v4 = vld [vmem:[#allocation2 + $0x10c] sm:$0xf]  ;;  %v3293_v50 = vunpack.c.l.b16 %v3246_v14  ;;  %v3702_v49 = vunpack.c.l.b16 %v3695_v36  ;;  %v11002_v16 = vpop.f32.mrf.mxu0 }
 0x2ac   : > { %8149 = vmatmul.msk.bf16.gmra.mxu0 %vm2303_vm3, %v4014_v20  ;;  %v1332_v63 = vmax.f32 %v1237_v18, 0.0  ;;  %8163 = vmatmul.msk.bf16.vlgmr.msra.gmra.mxu1 %vm2303_vm3, %v4240_v56  ;;  %v10997_v59 = vpop.f32.mrf.mxu2  ;;  %v3294_v20 = vunpack.c.l.b16 %v3247_v4  ;;  %v4021_v56 = vrot.slane %v4019_v12, 4 }
 0x2ae   : > { %v1836_v15 = vmul.f32 %v10709_v52, %v1332_v63  ;;  %v3314_v53 = vpack.c.b16 %v3294_v20, %v3293_v50  ;;  %v3703_v41 = vpack.c.b16 %v3294_v20, %v3702_v49  ;;  %v4247_v52 = vrot.slane %v4245_v55, 4  ;;  %v11007_v63 = vpop.f32.mrf.mxu3 }
 0x2af   : > { %12833 = vst [vmem:[#allocation51_spill] sm:$0xff] %v11007_v63  ;;  %v1053_v55 = vadd.f32 %v10806_v9, %v10908_v3  ;;  %v9359_v63 = vld [vmem:[#allocation2 + $0xb4] sm:$0xf0]  }
 0x2b0   : > { %v1908_v61 = vpack.c.bf16 %v1836_v15, %v1836_v15  ;;  %v3326_v28 = vshrl.u32 %v3314_v53, 16  ;;  %v3329_v29 = vshll.u32 %v3314_v53, 16  ;;  %v3704_v36 = vrot.slane %v3703_v41, 2 }
 0x2b1   : > { %v1238_v30 = vpop.f32.mrf.mxu1  ;;  %v11004_v18 = vld [vmem:[#allocation2 + $0x110] sm:$0xff]  ;;  %v4022_v41 = vor.u32 %v4021_v56, %v4018_v1  ;;  %v8840_v1 = vld [vmem:[%s12766_s4 + $0xc8] sm:$0xff]  ;;  %v2596_v56 = vadd.f32 %v10455_v25, %v10669_v38 }
 0x2b2   : > { %2072 = vst.msk [vmem:[#allocation2 + $0x118] sm:$0xf] %vm1924_vm0, %v1908_v61  ;;  %v1239_v31 = vadd.f32 %v1238_v30, %v1050_v48  ;;  %v3334_v14 = vshrl.u32 %v11004_v18, 16  ;;  %v3337_v4 = vshll.u32 %v11004_v18, 16  ;;  %v12778_v15 = vrot.slane %v11004_v18, 2  ;;  %4940 = vmatpush.bf16.msra.mxu0 %v8840_v1 }
 0x2b3   : > { %v3328_v0 = vrot.slane %v3326_v28, 1  ;;  %v3331_v12 = vrot.slane %v3329_v29, 2  ;;  %v9216_v30 = vld [vmem:[#allocation2 + $0xb4] sm:$0x8]  ;;  %v11022_v29 = vor.u32 %v4247_v52, %v4244_v21  ;;  %v4023_v3 = vsel %vm3925_vm4, %v10967_v54, %v4022_v41 }
 0x2b4   : > { %v1333_v50 = vmax.f32 %v1239_v31, 0.0  ;;  %v2390_v42 = vpop.f32.mrf.mxu2  ;;  %v3336_v20 = vrot.slane %v3334_v14, 1  ;;  %v3339_v49 = vrot.slane %v3337_v4, 2  ;;  %v11015_v48 = vsel %vm2654_vm1, %v3704_v36, %v12778_v15  ;;  %v9346_v36 = vld [vmem:[#allocation2 + $0x74] sm:$0xff]  }
 0x2b5   : > { %12834 = vst [vmem:[#allocation52_spill] sm:$0xff] %v11015_v48  ;;  %v3332_v53 = vor.u32 %v3331_v12, %v3328_v0  ;;  %v9361_v42 = vld [vmem:[#allocation2 + $0xbc] sm:$0xff]   ;;  %v9217_v15 = vor.u32 %v9359_v63, %v9216_v30  ;;  %v11026_v48 = vpop.f32.mrf.mxu0  ;;  %v4249_v21 = vsel %vm3925_vm4, %v10974_v37, %v11022_v29  ;;  %v4251_v54 = vshrl.u32 %v9346_v36, 16 }
 0x2b6   : > { %v1837_v61 = vmul.f32 %v10721_v8, %v1333_v50  ;;  %v11020_v31 = vor.u32 %v3339_v49, %v3336_v20  ;;  %v4254_v50 = vshll.u32 %v9346_v36, 16  ;;  %v4803_v12 = vshrl.u32 %v9361_v42, 16 }
 0x2b7   : > { %v4795_v0 = vshrl.u32 %v9217_v15, 16  ;;  %v1055_v37 = vadd.f32 %v10806_v9, %v10925_v51  ;;  %v4798_v25 = vshll.u32 %v9217_v15, 16  ;;  %v4253_v41 = vrot.slane %v4251_v54, 3 }
 0x2b8   : > { %v1909_v28 = vpack.c.bf16 %v1837_v61, %v1837_v61  ;;  %v3341_v4 = vsel %vm2192_vm2, %v3332_v53, %v11020_v31  ;;  %v4256_v30 = vrot.slane %v4254_v50, 4  ;;  %v4805_v36 = vrot.slane %v4803_v12, 3 }
 0x2b9   : > { %v1241_v14 = vpop.f32.mrf.mxu1  ;;  %7945 = vmatmul.msk.bf16.gmra.mxu2 %vm2303_vm3, %v10357_v46  ;;  %8075 = vmatmul.msk.bf16.vlgmr.msra.gmra.mxu3 %vm2303_vm3, %v3341_v4  ;;  %v11044_v46 = vpop.f32.mrf.mxu3  ;;  %v4797_v4 = vrot.slane %v4795_v0, 3  ;;  %v2598_v1 = vadd.f32 %v10477_v62, %v10692_v22  ;;  %v1058_v22 = vadd.f32 %v10806_v9, %v10950_v43  ;;  %v9348_v43 = vld [vmem:[#allocation2 + $0x7c] sm:$0xff]  }
 0x2ba   : > { %2073 = vst.msk [vmem:[#allocation2 + $0x11c] sm:$0xf] %vm1924_vm0, %v1909_v28  ;;  %v1242_v8 = vadd.f32 %v1241_v14, %v1053_v55  ;;  %v4806_v55 = vshll.u32 %v9361_v42, 16  ;;  %v2948_v28 = vld [vmem:[#allocation2 + $0xb0] sm:$0xe]  ;;  %v8828_v42 = vld [vmem:[%s12766_s4 + $0x68] sm:$0xff] }
 0x2bb   : > { %v2995_v54 = vunpack.c.l.b16 %v2948_v28  ;;  %3622 = vmatpush.bf16.msrb.mxu2 %v8828_v42  ;;  %v11088_v28 = vor.u32 %v4256_v30, %v4253_v41 }
 0x2bc   : > { %8150 = vmatmul.msk.bf16.gmra.mxu0 %vm2303_vm3, %v4023_v3  ;;  %v1334_v52 = vmax.f32 %v1242_v8, 0.0  ;;  %8164 = vmatmul.msk.bf16.gmra.mxu1 %vm2303_vm3, %v4249_v21  ;;  %v2727_v63 = vpop.f32.mrf.mxu2  ;;  %v4808_v8 = vrot.slane %v4806_v55, 4  ;;  %v8830_v3 = vld [vmem:[%s12766_s4 + $0x78] sm:$0xff] }
 0x2bd   : > { %v11049_v49 = vadd.f32 %v2727_v63, %v2596_v56  ;;  %v11068_v56 = vpop.f32.mrf.mxu0  ;;  %v4800_v63 = vrot.slane %v4798_v25, 4  ;;  %3773 = vmatpush.bf16.msrb.mxu3 %v8830_v3  ;;  %v9415_v3 = vld [vmem:[#allocation2 + $0xb8] sm:$0xff] }
 0x2be   : > { %v1838_v20 = vmul.f32 %v10745_v47, %v1334_v52  ;;  %v8839_v47 = vld [vmem:[%s12766_s4 + $0xc0] sm:$0xff]  ;;  %12835 = vst [vmem:[#allocation53_spill] sm:$0xff] %v11068_v56 }
 0x2bf   : > { %4941 = vmatpush.bf16.msra.mxu0 %v8839_v47  ;;  %v12837_v47 = vunpack.c.l.b16 %v10673_v19  ;;  %v4258_v19 = vsel %vm3925_vm4, %v11022_v29, %v11088_v28 }
 0x2c0   : > { %v1910_v38 = vpack.c.bf16 %v1838_v20, %v1838_v20 }
 0x2c1   : > { %v1243_v61 = vpop.f32.mrf.mxu1  ;;  %v11051_v53 = vld [vmem:[#allocation2 + $0x118] sm:$0xff]  ;;  %v11084_v25 = vpop.f32.mrf.mxu3 }
 0x2c2   : > { %2074 = vst.msk [vmem:[#allocation2 + $0x120] sm:$0xf] %vm1924_vm0, %v1910_v38  ;;  %v1244_v14 = vadd.f32 %v1243_v61, %v1055_v37  ;;  %v3343_v51 = vshrl.u32 %v11051_v53, 16  ;;  %v3346_v15 = vshll.u32 %v11051_v53, 16  ;;  %v3707_v21 = vrot.slane %v11051_v53, 2 }
 0x2c3   : > { %v12836_v37 = vrot.slane %v11004_v18, 2  ;;  %v11082_v38 = vor.u32 %v4808_v8, %v4805_v36  ;;  %v9363_v36 = vld [vmem:[#allocation2 + $0xc4] sm:$0xff]  }
 0x2c4   : > { %v1335_v52 = vmax.f32 %v1244_v14, 0.0  ;;  %v2729_v50 = vpop.f32.mrf.mxu2  ;;  %v3345_v0 = vrot.slane %v3343_v51, 1  ;;  %v3348_v12 = vrot.slane %v3346_v15, 2  ;;  %v4801_v14 = vor.u32 %v4800_v63, %v4797_v4 }
 0x2c5   : > { %v11075_v20 = vsel %vm2654_vm1, %v12836_v37, %v3707_v21  ;;  %v11080_v55 = vadd.f32 %v2729_v50, %v2598_v1  ;;  %v3016_v51 = vpack.c.b16 %v12837_v47, %v2995_v54  ;;  %v3036_v1 = vshrl.u32 %v9415_v3, 16  ;;  %v11110_v29 = vpop.f32.mrf.mxu0 }
 0x2c6   : > { %v1839_v62 = vmul.f32 %v10761_v17, %v1335_v52  ;;  %v11086_v61 = vor.u32 %v3348_v12, %v3345_v0  ;;  %v4810_v41 = vsel %vm3925_vm4, %v4801_v14, %v11082_v38  ;;  %v3039_v52 = vshll.u32 %v9415_v3, 16  ;;  %12838 = vst [vmem:[#allocation54_spill] sm:$0xff] %v11110_v29 }
 0x2c7   : > { %v3028_v4 = vshrl.u32 %v3016_v51, 16  ;;  %v3031_v42 = vshll.u32 %v3016_v51, 16  ;;  %v4260_v63 = vshrl.u32 %v9348_v43, 16  ;;  %v4812_v54 = vshrl.u32 %v9363_v36, 16 }
 0x2c8   : > { %v1911_v18 = vpack.c.bf16 %v1839_v62, %v1839_v62  ;;  %v3350_v17 = vsel %vm2192_vm2, %v11020_v31, %v11086_v61  ;;  %v2601_v31 = vadd.f32 %v10492_v10, %v10717_v26  ;;  %v1060_v50 = vadd.f32 %v10806_v9, %v10971_v33 }
 0x2c9   : > { %v1246_v15 = vpop.f32.mrf.mxu1  ;;  %7946 = vmatmul.msk.bf16.gmra.mxu2 %vm2303_vm3, %v10374_v23  ;;  %8076 = vmatmul.msk.bf16.gmra.mxu3 %vm2303_vm3, %v3350_v17  ;;  %v4815_v10 = vshll.u32 %v9363_v36, 16  ;;  %v4263_v26 = vshll.u32 %v9348_v43, 16  ;;  %v3033_v62 = vrot.slane %v3031_v42, 2  ;;  %v3038_v47 = vrot.slane %v3036_v1, 1 }
 0x2ca   : > { %2075 = vst.msk [vmem:[#allocation2 + $0x124] sm:$0xf] %vm1924_vm0, %v1911_v18  ;;  %v1247_v8 = vadd.f32 %v1246_v15, %v1058_v22  ;;  %v3030_v22 = vrot.slane %v3028_v4, 1  ;;  %v11115_v18 = vpop.f32.mrf.mxu3  ;;  %v3041_v51 = vrot.slane %v3039_v52, 2  ;;  %v4262_v17 = vrot.slane %v4260_v63, 3 }
 0x2cb   : > { %v4265_v36 = vrot.slane %v4263_v26, 4  ;;  %v1063_v63 = vadd.f32 %v10806_v9, %v11002_v16 }
 0x2cc   : > { %8229 = vmatmul.msk.bf16.vlgmr.msra.gmra.mxu0 %vm2303_vm3, %v4810_v41  ;;  %v1336_v30 = vmax.f32 %v1247_v8, 0.0  ;;  %8165 = vmatmul.msk.bf16.gmra.mxu1 %vm2303_vm3, %v4258_v19  ;;  %v2732_v23 = vpop.f32.mrf.mxu2  ;;  %v4814_v8 = vrot.slane %v4812_v54, 3  ;;  %v3034_v4 = vor.u32 %v3033_v62, %v3030_v22 }
 0x2cd   : > { %v11113_v12 = vadd.f32 %v2732_v23, %v2601_v31  ;;  %v2603_v31 = vadd.f32 %v10511_v40, %v10729_v34  ;;  %v11125_v23 = vor.u32 %v3041_v51, %v3038_v47 }
 0x2ce   : > { %v1840_v0 = vmul.f32 %v10780_v27, %v1336_v30  ;;  %v4817_v27 = vrot.slane %v4815_v10, 4  ;;  %v11145_v10 = vpop.f32.mrf.mxu0 }
 0x2cf   : > { %12839 = vst [vmem:[#allocation55_spill] sm:$0xff] %v11145_v10  ;;  %v1778_v10 = vpop.permute.xlu2 %1777 }
 0x2d0   : > { %v1912_v37 = vpack.c.bf16 %v1840_v0, %v1840_v0  ;;  %v11139_v34 = vor.u32 %v4817_v27, %v4814_v8  ;;  %v11143_v0 = vor.u32 %v4265_v36, %v4262_v17  ;;  %v9416_v17 = vld [vmem:[#allocation2 + $0xc0] sm:$0xff] }
 0x2d1   : > { %v1248_v14 = vpop.f32.mrf.mxu1  ;;  %v11117_v15 = vld [vmem:[#allocation2 + $0x120] sm:$0xff]  ;;  %v3045_v8 = vshrl.u32 %v9416_v17, 16  ;;  %v3048_v27 = vshll.u32 %v9416_v17, 16 }
 0x2d2   : > { %2076 = vst.msk [vmem:[#allocation2 + $0x128] sm:$0xf] %vm1924_vm0, %v1912_v37  ;;  %v1249_v33 = vadd.f32 %v1248_v14, %v1060_v50  ;;  %v3352_v41 = vshrl.u32 %v11117_v15, 16  ;;  %v3355_v43 = vshll.u32 %v11117_v15, 16  ;;  %v3709_v19 = vrot.slane %v11117_v15, 2  ;;  %v9365_v37 = vld [vmem:[#allocation2 + $0xcc] sm:$0xff]   ;;  %v11158_v14 = vpop.f32.mrf.mxu3 }
 0x2d3   : > { %v4819_v62 = vsel %vm3925_vm4, %v11082_v38, %v11139_v34  ;;  %v4267_v47 = vsel %vm3925_vm4, %v11088_v28, %v11143_v0  ;;  %v4821_v38 = vshrl.u32 %v9365_v37, 16 }
 0x2d4   : > { %v1337_v30 = vmax.f32 %v1249_v33, 0.0  ;;  %v2734_v42 = vpop.f32.mrf.mxu2  ;;  %v3354_v3 = vrot.slane %v3352_v41, 1  ;;  %v3357_v1 = vrot.slane %v3355_v43, 2  ;;  %v11132_v52 = vsel %vm2654_vm1, %v3707_v21, %v3709_v19 }
 0x2d5   : > { %v11137_v40 = vadd.f32 %v2734_v42, %v2603_v31  ;;  %v3043_v21 = vsel %vm2192_vm2, %v3034_v4, %v11125_v23  ;;  %v1065_v43 = vadd.f32 %v10806_v9, %v11026_v48  ;;  %v4824_v31 = vshll.u32 %v9365_v37, 16 }
 0x2d6   : > { %v1841_v54 = vmul.f32 %v10791_v5, %v1337_v30  ;;  %v11141_v50 = vor.u32 %v3357_v1, %v3354_v3  ;;  %v9350_v5 = vld [vmem:[#allocation2 + $0x84] sm:$0xff]   ;;  %v3050_v42 = vrot.slane %v3048_v27, 2  ;;  %v11174_v1 = vpop.f32.mrf.mxu0 }
 0x2d7   : > { %v4269_v41 = vshrl.u32 %v9350_v5, 16  ;;  %v4272_v30 = vshll.u32 %v9350_v5, 16  ;;  %12840 = vst [vmem:[#allocation56_spill] sm:$0xff] %v11174_v1  ;;  %v4826_v48 = vrot.slane %v4824_v31, 4  ;;  %v2608_v5 = vadd.f32 %v10548_v60, %v10769_v35  ;;  %v9367_v31 = vld [vmem:[#allocation2 + $0xd4] sm:$0xff]  }
 0x2d8   : > { %v1913_v26 = vpack.c.bf16 %v1841_v54, %v1841_v54  ;;  %v3359_v16 = vsel %vm2192_vm2, %v11086_v61, %v11141_v50  ;;  %v2606_v61 = vadd.f32 %v10527_v6, %v10757_v45  ;;  %v3047_v45 = vrot.slane %v3045_v8, 1 }
 0x2d9   : > { %v1251_v53 = vpop.f32.mrf.mxu1  ;;  %8017 = vmatmul.msk.bf16.vlgmr.msra.gmra.mxu2 %vm2303_vm3, %v3043_v21  ;;  %8077 = vmatmul.msk.bf16.gmra.mxu3 %vm2303_vm3, %v3359_v16  ;;  %v4271_v54 = vrot.slane %v4269_v41, 3  ;;  %v4274_v21 = vrot.slane %v4272_v30, 4  ;;  %v1068_v41 = vadd.f32 %v10806_v9, %v9767_v2 }
 0x2da   : > { %2077 = vst.msk [vmem:[#allocation2 + $0x12c] sm:$0xf] %vm1924_vm0, %v1913_v26  ;;  %v1252_v22 = vadd.f32 %v1251_v53, %v1063_v63  ;;  %v4823_v26 = vrot.slane %v4821_v38, 3 }
 0x2db   : > { %v11200_v27 = vor.u32 %v4274_v21, %v4271_v54 }
 0x2dc   : > { %8230 = vmatmul.msk.bf16.gmra.mxu0 %vm2303_vm3, %v4819_v62  ;;  %v1338_v51 = vmax.f32 %v1252_v22, 0.0  ;;  %8166 = vmatmul.msk.bf16.gmra.mxu1 %vm2303_vm3, %v4267_v47  ;;  %v2737_v33 = vpop.f32.mrf.mxu2  ;;  %v11182_v22 = vpop.f32.mrf.mxu3  ;;  %v11184_v47 = vor.u32 %v3050_v42, %v3047_v45  ;;  %v11196_v60 = vor.u32 %v4826_v48, %v4823_v26  ;;  %v9417_v45 = vld [vmem:[#allocation2 + $0xc8] sm:$0xff]  ;;  %v4833_v48 = vshll.u32 %v9367_v31, 16 }
 0x2dd   : > { %v11170_v28 = vadd.f32 %v2737_v33, %v2606_v61  ;;  %v3054_v42 = vshrl.u32 %v9417_v45, 16 }
 0x2de   : > { %v1842_v36 = vmul.f32 %v10816_v11, %v1338_v51  ;;  %v3052_v15 = vsel %vm2192_vm2, %v11125_v23, %v11184_v47  ;;  %v4828_v2 = vsel %vm3925_vm4, %v11139_v34, %v11196_v60  ;;  %v4276_v23 = vsel %vm3925_vm4, %v11143_v0, %v11200_v27  ;;  %v11222_v30 = vpop.f32.mrf.mxu0 }
 0x2df   : > { %12841 = vst [vmem:[#allocation57_spill] sm:$0xff] %v11222_v30  ;;  %v4830_v0 = vshrl.u32 %v9367_v31, 16 }
 0x2e0   : > { %v1914_v4 = vpack.c.bf16 %v1842_v36, %v1842_v36 }
 0x2e1   : > { %v1253_v6 = vpop.f32.mrf.mxu1  ;;  %v11172_v3 = vld [vmem:[#allocation2 + $0x128] sm:$0xff] }
 0x2e2   : > { %2078 = vst.msk [vmem:[#allocation2 + $0x130] sm:$0xf] %vm1924_vm0, %v1914_v4  ;;  %v1254_v63 = vadd.f32 %v1253_v6, %v1065_v43  ;;  %v3361_v11 = vshrl.u32 %v11172_v3, 16  ;;  %v3364_v53 = vshll.u32 %v11172_v3, 16  ;;  %v3711_v16 = vrot.slane %v11172_v3, 2  ;;  %v12845_v3 = vld [vmem:[#allocation4_spill] sm:$0xff] }
 0x2e4   : > { %v1339_v37 = vmax.f32 %v1254_v63, 0.0  ;;  %v2739_v62 = vpop.f32.mrf.mxu2  ;;  %v3363_v61 = vrot.slane %v3361_v11, 1  ;;  %v3366_v51 = vrot.slane %v3364_v53, 2  ;;  %v11191_v33 = vsel %vm2654_vm1, %v3709_v19, %v3711_v16  ;;  %v9352_v19 = vld [vmem:[#allocation2 + $0x8c] sm:$0xff]   ;;  %v11228_v11 = vpop.f32.mrf.mxu3 }
 0x2e5   : > { %v11194_v8 = vadd.f32 %v2739_v62, %v2608_v5  ;;  %v3057_v63 = vshll.u32 %v9417_v45, 16  ;;  %v4278_v34 = vshrl.u32 %v9352_v19, 16  ;;  %v4281_v53 = vshll.u32 %v9352_v19, 16 }
 0x2e6   : > { %v1843_v17 = vmul.f32 %v10830_v24, %v1339_v37  ;;  %v11198_v35 = vor.u32 %v3366_v51, %v3363_v61  ;;  %v3056_v5 = vrot.slane %v3054_v42, 1  ;;  %v4832_v51 = vrot.slane %v4830_v0, 3 }
 0x2e7   : > { %v3059_v37 = vrot.slane %v3057_v63, 2 }
 0x2e8   : > { %v1915_v38 = vpack.c.bf16 %v1843_v17, %v1843_v17  ;;  %v3368_v24 = vsel %vm2192_vm2, %v11141_v50, %v11198_v35  ;;  %v2611_v50 = vadd.f32 %v10573_v44, %v10789_v13  ;;  %v1070_v44 = vadd.f32 %v10806_v9, %v9780_v7  ;;  %v12842_v7 = vld [vmem:[#allocation23_spill] sm:$0xff]  ;;  %v12843_v9 = vld [vmem:[#allocation10_spill] sm:$0xff] }
 0x2e9   : > { %v1256_v43 = vpop.f32.mrf.mxu1  ;;  %8018 = vmatmul.msk.bf16.gmra.mxu2 %vm2303_vm3, %v3052_v15  ;;  %8078 = vmatmul.msk.bf16.gmra.mxu3 %vm2303_vm3, %v3368_v24  ;;  %v4835_v17 = vrot.slane %v4833_v48, 4  ;;  %v2613_v24 = vadd.f32 %v12843_v9, %v12842_v7 }
 0x2ea   : > { %2079 = vst.msk [vmem:[#allocation2 + $0x134] sm:$0xf] %vm1924_vm0, %v1915_v38  ;;  %v1257_v36 = vadd.f32 %v1256_v43, %v1068_v41  ;;  %v4283_v43 = vrot.slane %v4281_v53, 4 }
 0x2eb   : > { %v11254_v42 = vor.u32 %v4835_v17, %v4832_v51 }
 0x2ec   : > { %8231 = vmatmul.msk.bf16.gmra.mxu0 %vm2303_vm3, %v4828_v2  ;;  %v1340_v4 = vmax.f32 %v1257_v36, 0.0  ;;  %8167 = vmatmul.msk.bf16.gmra.mxu1 %vm2303_vm3, %v4276_v23  ;;  %v2742_v6 = vpop.f32.mrf.mxu2  ;;  %v11240_v2 = vor.u32 %v3059_v37, %v3056_v5  ;;  %v11267_v48 = vpop.f32.mrf.mxu3  ;;  %v9369_v37 = vld [vmem:[#allocation2 + $0xdc] sm:$0xff]  }
 0x2ed   : > { %v11226_v26 = vadd.f32 %v2742_v6, %v2611_v50  ;;  %v4837_v5 = vsel %vm3925_vm4, %v11196_v60, %v11254_v42 }
 0x2ee   : > { %v1844_v54 = vmul.f32 %v10846_v32, %v1340_v4  ;;  %v4280_v32 = vrot.slane %v4278_v34, 3  ;;  %v11249_v4 = vpop.f32.mrf.mxu0  ;;  %v3061_v53 = vsel %vm2192_vm2, %v11184_v47, %v11240_v2 }
 0x2ef   : > { %12844 = vst [vmem:[#allocation23_spill] sm:$0xff] %v11249_v4 }
 0x2f0   : > { %v1916_v13 = vpack.c.bf16 %v1844_v54, %v1844_v54  ;;  %v11258_v34 = vor.u32 %v4283_v43, %v4280_v32  ;;  %v11263_v54 = vld [vmem:[%s12764_s2] ss:$0 sm:$0xff] }
 0x2f1   : > { %v1258_v21 = vpop.f32.mrf.mxu1  ;;  %v11232_v62 = vld [vmem:[#allocation2 + $0x130] sm:$0xff] }
 0x2f2   : > { %2080 = vst.msk [vmem:[#allocation2 + $0x138] sm:$0xf] %vm1924_vm0, %v1916_v13  ;;  %v1259_v61 = vadd.f32 %v1258_v21, %v1070_v44  ;;  %v3370_v41 = vshrl.u32 %v11232_v62, 16  ;;  %v3373_v38 = vshll.u32 %v11232_v62, 16  ;;  %v3713_v15 = vrot.slane %v11232_v62, 2  ;;  %v9354_v13 = vld [vmem:[#allocation2 + $0x94] sm:$0xff]  }
 0x2f3   : > { %v4285_v47 = vsel %vm3925_vm4, %v11200_v27, %v11258_v34  ;;  %v4287_v7 = vshrl.u32 %v9354_v13, 16  ;;  %v4290_v27 = vshll.u32 %v9354_v13, 16 }
 0x2f4   : > { %v1341_v19 = vmax.f32 %v1259_v61, 0.0  ;;  %v2744_v36 = vpop.f32.mrf.mxu2  ;;  %v3372_v31 = vrot.slane %v3370_v41, 1  ;;  %v3375_v23 = vrot.slane %v3373_v38, 2  ;;  %v11247_v50 = vsel %vm2654_vm1, %v3711_v16, %v3713_v15  ;;  %v12847_v61 = vld [vmem:[#allocation11_spill] sm:$0xff]  ;;  %v9419_v41 = vld [vmem:[#allocation2 + $0xd0] sm:$0xff] }
 0x2f5   : > { %v11252_v45 = vadd.f32 %v2744_v36, %v2613_v24  ;;  %v1073_v16 = vadd.f32 %v11263_v54, %v12845_v3  ;;  %v3063_v38 = vshrl.u32 %v9419_v41, 16  ;;  %v3066_v43 = vshll.u32 %v9419_v41, 16  ;;  %v12848_v36 = vld [vmem:[#allocation5_spill] sm:$0xff] }
 0x2f6   : > { %v1845_v6 = vmul.f32 %v10859_v39, %v1341_v19  ;;  %v11256_v63 = vor.u32 %v3375_v23, %v3372_v31  ;;  %v4839_v24 = vshrl.u32 %v9369_v37, 16  ;;  %v4842_v19 = vshll.u32 %v9369_v37, 16  ;;  %v11293_v23 = vpop.f32.mrf.mxu0 }
 0x2f7   : > { %v1075_v31 = vadd.f32 %v11263_v54, %v12848_v36  ;;  %12849 = vst [vmem:[#allocation10_spill] sm:$0xff] %v11293_v23 }
 0x2f8   : > { %v1917_v0 = vpack.c.bf16 %v1845_v6, %v1845_v6  ;;  %v3377_v44 = vsel %vm2192_vm2, %v11198_v35, %v11256_v63  ;;  %v12846_v35 = vld [vmem:[#allocation26_spill] sm:$0xff] }
 0x2f9   : > { %v1261_v39 = vpop.f32.mrf.mxu1  ;;  %8019 = vmatmul.msk.bf16.gmra.mxu2 %vm2303_vm3, %v3061_v53  ;;  %8079 = vmatmul.msk.bf16.gmra.mxu3 %vm2303_vm3, %v3377_v44  ;;  %v2616_v32 = vadd.f32 %v12847_v61, %v12846_v35  ;;  %v4841_v44 = vrot.slane %v4839_v24, 3  ;;  %v12850_v61 = vld [vmem:[#allocation28_spill] sm:$0xff]  ;;  %v12852_v24 = vld [vmem:[#allocation35_spill] sm:$0xff] }
 0x2fa   : > { %2081 = vst.msk [vmem:[#allocation2 + $0x13c] sm:$0xf] %vm1924_vm0, %v1917_v0  ;;  %v1262_v21 = vadd.f32 %v1261_v39, %v1073_v16  ;;  %v3065_v16 = vrot.slane %v3063_v38, 1  ;;  %v3068_v0 = vrot.slane %v3066_v43, 2 }
 0x2fc   : > { %8232 = vmatmul.msk.bf16.gmra.mxu0 %vm2303_vm3, %v4837_v5  ;;  %v1342_v51 = vmax.f32 %v1262_v21, 0.0  ;;  %8168 = vmatmul.msk.bf16.gmra.mxu1 %vm2303_vm3, %v4285_v47  ;;  %v2747_v17 = vpop.f32.mrf.mxu2  ;;  %v4844_v21 = vrot.slane %v4842_v19, 4  ;;  %v11298_v5 = vpop.f32.mrf.mxu3  ;;  %v4292_v47 = vrot.slane %v4290_v27, 4  ;;  %v11305_v38 = vor.u32 %v3068_v0, %v3065_v16 }
 0x2fd   : > { %v11289_v9 = vadd.f32 %v2747_v17, %v2616_v32  ;;  %v12851_v32 = vld [vmem:[#allocation12_spill] sm:$0xff] }
 0x2fe   : > { %v1846_v60 = vmul.f32 %v10875_v58, %v1342_v51  ;;  %v4289_v58 = vrot.slane %v4287_v7, 3  ;;  %v2618_v51 = vadd.f32 %v12851_v32, %v12850_v61  ;;  %v11317_v36 = vor.u32 %v4844_v21, %v4841_v44  ;;  %v11331_v44 = vpop.f32.mrf.mxu0  ;;  %v12856_v61 = vld [vmem:[#allocation13_spill] sm:$0xff] }
 0x2ff   : > { %v3070_v62 = vsel %vm2192_vm2, %v11240_v2, %v11305_v38  ;;  %12854 = vst [vmem:[#allocation4_spill] sm:$0xff] %v11331_v44  ;;  %v8827_v2 = vld [vmem:[%s12766_s4 + $0x60] sm:$0xff] }
 0x300   : > { %v1918_v6 = vpack.c.bf16 %v1846_v60, %v1846_v60  ;;  %v4846_v21 = vsel %vm3925_vm4, %v11254_v42, %v11317_v36  ;;  %3623 = vmatpush.bf16.msrb.mxu2 %v8827_v2  ;;  %v8829_v42 = vld [vmem:[%s12766_s4 + $0x70] sm:$0xff] }
 0x301   : > { %v1263_v3 = vpop.f32.mrf.mxu1  ;;  %v11295_v39 = vld [vmem:[#allocation2 + $0x138] sm:$0xff]  ;;  %3774 = vmatpush.bf16.msrb.mxu3 %v8829_v42 }
 0x302   : > { %2082 = vst.msk [vmem:[#allocation2 + $0x140] sm:$0xf] %vm1924_vm0, %v1918_v6  ;;  %v1264_v53 = vadd.f32 %v1263_v3, %v1075_v31  ;;  %v3379_v13 = vshrl.u32 %v11295_v39, 16  ;;  %v3382_v37 = vshll.u32 %v11295_v39, 16  ;;  %v12779_v35 = vrot.slane %v11295_v39, 2  ;;  %v12853_v3 = vld [vmem:[#allocation6_spill] sm:$0xff] }
 0x303   : > { %v11321_v6 = vor.u32 %v4292_v47, %v4289_v58  ;;  %v1078_v16 = vadd.f32 %v11263_v54, %v12853_v3  ;;  %v12855_v47 = vld [vmem:[#allocation30_spill] sm:$0xff] }
 0x304   : > { %v1343_v17 = vmax.f32 %v1264_v53, 0.0  ;;  %v2749_v41 = vpop.f32.mrf.mxu2  ;;  %v3381_v43 = vrot.slane %v3379_v13, 1  ;;  %v3384_v7 = vrot.slane %v3382_v37, 2  ;;  %v11312_v60 = vsel %vm2654_vm1, %v3713_v15, %v12779_v35  ;;  %v9356_v13 = vld [vmem:[#allocation2 + $0x9c] sm:$0xff]   ;;  %v9371_v37 = vld [vmem:[#allocation2 + $0xe4] sm:$0xff]  }
 0x305   : > { %v11315_v27 = vadd.f32 %v2749_v41, %v2618_v51  ;;  %v2621_v32 = vadd.f32 %v12856_v61, %v12855_v47 }
 0x306   : > { %v1847_v19 = vmul.f32 %v12852_v24, %v1343_v17  ;;  %v11319_v31 = vor.u32 %v3384_v7, %v3381_v43  ;;  %v11352_v17 = vpop.f32.mrf.mxu3  ;;  %v9420_v43 = vld [vmem:[#allocation2 + $0xd8] sm:$0xff] }
 0x307   : > { %12857 = vst [vmem:[#allocation26_spill] sm:$0xff] %v11352_v17  ;;  %v3072_v7 = vshrl.u32 %v9420_v43, 16  ;;  %v3075_v24 = vshll.u32 %v9420_v43, 16 }
 0x308   : > { %v1919_v0 = vpack.c.bf16 %v1847_v19, %v1847_v19  ;;  %v3386_v15 = vsel %vm2192_vm2, %v11256_v63, %v11319_v31  ;;  %v4294_v63 = vsel %vm3925_vm4, %v11258_v34, %v11321_v6  ;;  %v4296_v34 = vshrl.u32 %v9356_v13, 16  ;;  %v12858_v19 = vld [vmem:[#allocation39_spill] sm:$0xff] }
 0x309   : > { %v1266_v53 = vpop.f32.mrf.mxu1  ;;  %8020 = vmatmul.msk.bf16.gmra.mxu2 %vm2303_vm3, %v3070_v62  ;;  %8080 = vmatmul.msk.bf16.gmra.mxu3 %vm2303_vm3, %v3386_v15  ;;  %v4299_v62 = vshll.u32 %v9356_v13, 16  ;;  %v12859_v15 = vld [vmem:[#allocation7_spill] sm:$0xff]  ;;  %v3077_v47 = vrot.slane %v3075_v24, 2  ;;  %v11367_v24 = vpop.f32.mrf.mxu0 }
 0x30a   : > { %2083 = vst.msk [vmem:[#allocation2 + $0x144] sm:$0xf] %vm1924_vm0, %v1919_v0  ;;  %v1267_v58 = vadd.f32 %v1266_v53, %v1078_v16  ;;  %v4848_v0 = vshrl.u32 %v9371_v37, 16  ;;  %v4851_v53 = vshll.u32 %v9371_v37, 16  ;;  %v4298_v35 = vrot.slane %v4296_v34, 3 }
 0x30b   : > { %v4301_v42 = vrot.slane %v4299_v62, 4  ;;  %12862 = vst [vmem:[#allocation11_spill] sm:$0xff] %v11367_v24 }
 0x30c   : > { %8233 = vmatmul.msk.bf16.gmra.mxu0 %vm2303_vm3, %v4846_v21  ;;  %v1344_v51 = vmax.f32 %v1267_v58, 0.0  ;;  %8169 = vmatmul.msk.bf16.gmra.mxu1 %vm2303_vm3, %v4294_v63  ;;  %v2752_v41 = vpop.f32.mrf.mxu2  ;;  %v1080_v58 = vadd.f32 %v11263_v54, %v12859_v15  ;;  %v3074_v63 = vrot.slane %v3072_v7, 1  ;;  %v12861_v15 = vld [vmem:[#allocation14_spill] sm:$0xff] }
 0x30d   : > { %v11355_v16 = vadd.f32 %v2752_v41, %v2621_v32  ;;  %v4853_v32 = vrot.slane %v4851_v53, 4  ;;  %v1768_v41 = vpop.permute.xlu1 %1767  ;;  %v12863_v53 = vrot.slane %v11295_v39, 2 }
 0x30e   : > { %v1848_v3 = vmul.f32 %v12858_v19, %v1344_v51  ;;  %v4850_v51 = vrot.slane %v4848_v0, 3 }
 0x310   : > { %v1920_v21 = vpack.c.bf16 %v1848_v3, %v1848_v3  ;;  %v12860_v3 = vld [vmem:[#allocation31_spill] sm:$0xff]  ;;  %v11380_v4 = vor.u32 %v4853_v32, %v4850_v51 }
 0x311   : > { %v1268_v2 = vpop.f32.mrf.mxu1  ;;  %v11359_v61 = vld [vmem:[#allocation2 + $0x140] sm:$0xff]  ;;  %v2623_v7 = vadd.f32 %v12861_v15, %v12860_v3  ;;  %v11382_v3 = vpop.f32.mrf.mxu3  ;;  %v9373_v32 = vld [vmem:[#allocation2 + $0xec] sm:$0xff]  }
 0x312   : > { %2084 = vst.msk [vmem:[#allocation2 + $0x148] sm:$0xf] %vm1924_vm0, %v1920_v21  ;;  %v1269_v43 = vadd.f32 %v1268_v2, %v1080_v58  ;;  %v3388_v37 = vshrl.u32 %v11359_v61, 16  ;;  %v3391_v13 = vshll.u32 %v11359_v61, 16  ;;  %v12780_v19 = vrot.slane %v11359_v61, 2 }
 0x313   : > { %v11369_v21 = vor.u32 %v3077_v47, %v3074_v63  ;;  %12864 = vst [vmem:[#allocation5_spill] sm:$0xff] %v11382_v3  ;;  %v11386_v63 = vor.u32 %v4301_v42, %v4298_v35  ;;  %v12865_v47 = vld [vmem:[#allocation8_spill] sm:$0xff]  ;;  %v4855_v35 = vsel %vm3925_vm4, %v11317_v36, %v11380_v4  ;;  %v11409_v36 = vpop.f32.mrf.mxu0 }
 0x314   : > { %v1345_v44 = vmax.f32 %v1269_v43, 0.0  ;;  %v2754_v23 = vpop.f32.mrf.mxu2  ;;  %v3390_v34 = vrot.slane %v3388_v37, 1  ;;  %v3393_v0 = vrot.slane %v3391_v13, 2  ;;  %v11376_v58 = vsel %vm2654_vm1, %v12863_v53, %v12780_v19  ;;  %v9421_v53 = vld [vmem:[#allocation2 + $0xe0] sm:$0xff]  ;;  %12868 = vst [vmem:[#allocation28_spill] sm:$0xff] %v11409_v36 }
 0x315   : > { %v11378_v2 = vadd.f32 %v2754_v23, %v2623_v7  ;;  %v1083_v37 = vadd.f32 %v11263_v54, %v12865_v47  ;;  %v3079_v39 = vsel %vm2192_vm2, %v11305_v38, %v11369_v21  ;;  %v4303_v38 = vsel %vm3925_vm4, %v11321_v6, %v11386_v63 }
 0x316   : > { %v1849_v62 = vmul.f32 %v1768_v41, %v1345_v44  ;;  %v11384_v43 = vor.u32 %v3393_v0, %v3390_v34  ;;  %v9357_v44 = vld [vmem:[#allocation2 + $0xa4] sm:$0xff]   ;;  %v12867_v41 = vld [vmem:[#allocation16_spill] sm:$0xff]  ;;  %v1773_v34 = vpop.permute.xlu1 %1772  ;;  %v3084_v47 = vshll.u32 %v9421_v53, 16  ;;  %v4857_v6 = vshrl.u32 %v9373_v32, 16 }
 0x318   : > { %v1921_v13 = vpack.c.bf16 %v1849_v62, %v1849_v62  ;;  %v3395_v23 = vsel %vm2192_vm2, %v11319_v31, %v11384_v43  ;;  %v12866_v31 = vld [vmem:[#allocation34_spill] sm:$0xff]  ;;  %v3081_v62 = vshrl.u32 %v9421_v53, 16  ;;  %v3086_v24 = vrot.slane %v3084_v47, 2  ;;  %v12872_v47 = vld [vmem:[#allocation37_spill] sm:$0xff] }
 0x319   : > { %v1271_v15 = vpop.f32.mrf.mxu1  ;;  %8021 = vmatmul.msk.bf16.gmra.mxu2 %vm2303_vm3, %v3079_v39  ;;  %8081 = vmatmul.msk.bf16.gmra.mxu3 %vm2303_vm3, %v3395_v23  ;;  %v2626_v42 = vadd.f32 %v12867_v41, %v12866_v31  ;;  %v4860_v39 = vshll.u32 %v9373_v32, 16  ;;  %v4308_v23 = vshll.u32 %v9357_v44, 16  ;;  %v11415_v41 = vpop.f32.mrf.mxu3 }
 0x31a   : > { %2085 = vst.msk [vmem:[#allocation2 + $0x14c] sm:$0xf] %vm1924_vm0, %v1921_v13  ;;  %v1272_v51 = vadd.f32 %v1271_v15, %v1083_v37  ;;  %v4305_v37 = vshrl.u32 %v9357_v44, 16  ;;  %v3083_v19 = vrot.slane %v3081_v62, 1  ;;  %v4859_v44 = vrot.slane %v4857_v6, 3 }
 0x31b   : > { %12870 = vst [vmem:[#allocation12_spill] sm:$0xff] %v11415_v41  ;;  %v4310_v53 = vrot.slane %v4308_v23, 4 }
 0x31c   : > { %8234 = vmatmul.msk.bf16.gmra.mxu0 %vm2303_vm3, %v4855_v35  ;;  %v1346_v7 = vmax.f32 %v1272_v51, 0.0  ;;  %8170 = vmatmul.msk.bf16.gmra.mxu1 %vm2303_vm3, %v4303_v38  ;;  %v2757_v0 = vpop.f32.mrf.mxu2  ;;  %v12869_v35 = vld [vmem:[#allocation9_spill] sm:$0xff]  ;;  %v4307_v32 = vrot.slane %v4305_v37, 3 }
 0x31d   : > { %v11411_v15 = vadd.f32 %v2757_v0, %v2626_v42  ;;  %v1085_v31 = vadd.f32 %v11263_v54, %v12869_v35  ;;  %v12873_v35 = vld [vmem:[#allocation17_spill] sm:$0xff] }
 0x31e   : > { %v1850_v13 = vmul.f32 %v1773_v34, %v1346_v7  ;;  %v8842_v7 = vld [vmem:[%s12766_s4 + $0xd8] sm:$0xff]  ;;  %v4862_v34 = vrot.slane %v4860_v39, 4  ;;  %v2628_v36 = vadd.f32 %v12873_v35, %v12872_v47  ;;  %v12874_v39 = vrot.slane %v11359_v61, 2 }
 0x31f   : > { %5238 = vmatpush.bf16.msrb.mxu1 %v8842_v7  ;;  %v11442_v35 = vor.u32 %v4310_v53, %v4307_v32  ;;  %v9375_v32 = vld [vmem:[#allocation2 + $0xf4] sm:$0xff]   ;;  %v12878_v53 = vld [vmem:[#allocation19_spill] sm:$0xff] }
 0x320   : > { %v1922_v51 = vpack.c.bf16 %v1850_v13, %v1850_v13  ;;  %v11425_v13 = vld [vmem:[#allocation2 + $0xa8] sm:$0xff]   ;;  %v4863_v29 = vor.u32 %v4862_v34, %v4859_v44  ;;  %v3266_v44 = vld [vmem:[#allocation2 + $0x158] sm:$0x3] }
 0x321   : > { %v1273_v38 = vpop.f32.mrf.mxu1  ;;  %v11417_v30 = vld [vmem:[#allocation2 + $0x148] sm:$0xff]  ;;  %12871 = vst [vmem:[#allocation35_spill] sm:$0xff] %v11425_v13  ;;  %v8988_v47 = vunpack.c.h.b16 %v11425_v13  ;;  %v3313_v34 = vunpack.c.l.b16 %v3266_v44 }
 0x322   : > { %2086 = vst.msk [vmem:[#allocation2 + $0x150] sm:$0xf] %vm1924_vm0, %v1922_v51  ;;  %v1274_v42 = vadd.f32 %v1273_v38, %v1085_v31  ;;  %v3397_v54 = vshrl.u32 %v11417_v30, 16  ;;  %v3400_v0 = vshll.u32 %v11417_v30, 16  ;;  %v12781_v62 = vrot.slane %v11417_v30, 2 }
 0x323   : > { %v11430_v31 = vor.u32 %v3086_v24, %v3083_v19  ;;  %v11444_v19 = vpop.f32.mrf.mxu0 }
 0x324   : > { %v1347_v1 = vmax.f32 %v1274_v42, 0.0  ;;  %v2759_v51 = vpop.f32.mrf.mxu2  ;;  %v3399_v37 = vrot.slane %v3397_v54, 1  ;;  %v3402_v6 = vrot.slane %v3400_v0, 2  ;;  %v11437_v23 = vsel %vm2654_vm1, %v12874_v39, %v12781_v62  ;;  %12875 = vst [vmem:[#allocation6_spill] sm:$0xff] %v11444_v19  ;;  %v12877_v0 = vld [vmem:[#allocation41_spill] sm:$0xff] }
 0x325   : > { %v11439_v7 = vadd.f32 %v2759_v51, %v2628_v36  ;;  %v3088_v54 = vsel %vm2192_vm2, %v11369_v21, %v11430_v31  ;;  %v4223_v36 = vpack.c.b16 %v8988_v47, %v8988_v47  ;;  %v11459_v21 = vpop.f32.mrf.mxu3  ;;  %v2631_v51 = vadd.f32 %v12878_v53, %v12877_v0 }
 0x326   : > { %v1851_v38 = vmul.f32 %v1778_v10, %v1347_v1  ;;  %v3403_v42 = vor.u32 %v3402_v6, %v3399_v37  ;;  %v8841_v10 = vld [vmem:[%s12766_s4 + $0xd0] sm:$0xff]  ;;  %v4864_v1 = vsel %vm3925_vm4, %v11380_v4, %v4863_v29  ;;  %12876 = vst [vmem:[#allocation30_spill] sm:$0xff] %v11459_v21  ;;  %v9422_v4 = vld [vmem:[#allocation2 + $0xe8] sm:$0xff] }
 0x327   : > { %5239 = vmatpush.bf16.msrb.mxu1 %v8841_v10  ;;  %v3090_v6 = vshrl.u32 %v9422_v4, 16  ;;  %v3093_v39 = vshll.u32 %v9422_v4, 16  ;;  %v4314_v47 = vshrl.u32 %v4223_v36, 16  ;;  %v12880_v4 = vld [vmem:[#allocation43_spill] sm:$0xff] }
 0x328   : > { %v1923_v24 = vpack.c.bf16 %v1851_v38, %v1851_v38  ;;  %v3404_v61 = vsel %vm2192_vm2, %v11384_v43, %v3403_v42  ;;  %v4312_v43 = vsel %vm3925_vm4, %v11386_v63, %v11442_v35  ;;  %v3324_v63 = vpack.c.b16 %v3313_v34, %v3313_v34 }
 0x329   : > { %8022 = vmatmul.msk.bf16.gmra.mxu2 %vm2303_vm3, %v3088_v54  ;;  %8082 = vmatmul.msk.bf16.gmra.mxu3 %vm2303_vm3, %v3404_v61  ;;  %v4869_v54 = vshll.u32 %v9375_v32, 16  ;;  %v4317_v61 = vshll.u32 %v4223_v36, 16  ;;  %v3092_v62 = vrot.slane %v3090_v6, 1  ;;  %v4316_v19 = vrot.slane %v4314_v47, 3 }
 0x32a   : > { %2087 = vst.msk [vmem:[#allocation2 + $0x154] sm:$0xf] %vm1924_vm0, %v1923_v24  ;;  %v4866_v24 = vshrl.u32 %v9375_v32, 16  ;;  %v3723_v21 = vrot.slane %v3324_v63, 2  ;;  %v12883_v47 = vrot.slane %v11417_v30, 2  ;;  %v9376_v30 = vld [vmem:[#allocation2 + $0xfc] sm:$0xff]  }
 0x32b   : > { %v11470_v44 = vpop.f32.mrf.mxu0  ;;  %v4871_v53 = vrot.slane %v4869_v54, 4  ;;  %v4319_v13 = vrot.slane %v4317_v61, 4 }
 0x32c   : > { %8235 = vmatmul.msk.bf16.gmra.mxu0 %vm2303_vm3, %v4864_v1  ;;  %8171 = vmatmul.msk.bf16.gmra.mxu1 %vm2303_vm3, %v4312_v43  ;;  %v2762_v37 = vpop.f32.mrf.mxu2  ;;  %v3095_v1 = vrot.slane %v3093_v39, 2  ;;  %12879 = vst [vmem:[#allocation13_spill] sm:$0xff] %v11470_v44  ;;  %v4868_v0 = vrot.slane %v4866_v24, 3 }
 0x32d   : > { %v11468_v38 = vadd.f32 %v2762_v37, %v2631_v51  ;;  %v12881_v51 = vld [vmem:[#allocation20_spill] sm:$0xff]  ;;  %v2925_v3 = vpop.f32.mrf.mxu3  ;;  %v4320_v61 = vor.u32 %v4319_v13, %v4316_v19  ;;  %v12886_v19 = vld [vmem:[#allocation45_spill] sm:$0xff] }
 0x32e   : > { %v2633_v37 = vadd.f32 %v12881_v51, %v12880_v4  ;;  %v3096_v36 = vor.u32 %v3095_v1, %v3092_v62  ;;  %v4872_v17 = vor.u32 %v4871_v53, %v4868_v0  ;;  %v9265_v1 = vld [vmem:[#allocation2 + $0x10c] sm:$0x8]  ;;  %v3415_v51 = vshrl.u32 %v3324_v63, 16 }
 0x32f   : > { %v4321_v13 = vsel %vm3925_vm4, %v11442_v35, %v4320_v61 }
 0x330   : > { %v3097_v3 = vsel %vm2192_vm2, %v11430_v31, %v3096_v36 }
 0x331   : > { %v8824_v10 = vld [vmem:[#allocation2 + $0x150] sm:$0xff] }
 0x332   : > { %v3406_v43 = vshrl.u32 %v8824_v10, 16  ;;  %v3409_v56 = vshll.u32 %v8824_v10, 16  ;;  %v3721_v41 = vrot.slane %v8824_v10, 2  ;;  %v9378_v10 = vld [vmem:[#allocation2 + $0x10c] sm:$0xf0]  }
 0x333   : > { %v11495_v0 = vpop.f32.mrf.mxu0 }
 0x334   : > { %v2764_v32 = vpop.f32.mrf.mxu2  ;;  %v3408_v34 = vrot.slane %v3406_v43, 1  ;;  %v3411_v6 = vrot.slane %v3409_v56, 2  ;;  %v11479_v24 = vsel %vm2654_vm1, %v12883_v47, %v3721_v41  ;;  %v11482_v44 = vsel %vm2654_vm1, %v3721_v41, %v3723_v21  ;;  %v9380_v41 = vld [vmem:[#allocation2 + $0x114] sm:$0xff]   ;;  %v12887_v21 = vld [vmem:[#allocation22_spill] sm:$0xff]  ;;  %12888 = vst [vmem:[#allocation14_spill] sm:$0xff] %v11495_v0 }
 0x335   : > { %v11474_v39 = vadd.f32 %v2764_v32, %v2633_v37  ;;  %12884 = vst [vmem:[#allocation7_spill] sm:$0xff] %v11479_v24  ;;  %v4873_v56 = vsel %vm3925_vm4, %v4863_v29, %v4872_v17  ;;  %v2636_v31 = vadd.f32 %v12887_v21, %v12886_v19  ;;  %v3418_v37 = vshll.u32 %v3324_v63, 16  ;;  %v12889_v63 = vld [vmem:[#allocation25_spill] sm:$0xff] }
 0x336   : > { %v3412_v54 = vor.u32 %v3411_v6, %v3408_v34  ;;  %12885 = vst [vmem:[#allocation31_spill] sm:$0xff] %v11482_v44  ;;  %v9266_v32 = vor.u32 %v9378_v10, %v9265_v1  ;;  %v4875_v34 = vshrl.u32 %v9376_v30, 16  ;;  %v4878_v6 = vshll.u32 %v9376_v30, 16 }
 0x337   : > { %12882 = vst [vmem:[#allocation39_spill] sm:$0xff] %v11474_v39  ;;  %v5101_v47 = vshrl.u32 %v9380_v41, 16  ;;  %v5104_v61 = vshll.u32 %v9380_v41, 16  ;;  %v3420_v19 = vrot.slane %v3418_v37, 2  ;;  %v9102_v39 = vld [vmem:[#allocation2 + $0x100] sm:$0xff]   ;;  %v2638_v1 = vadd.f32 %v12889_v63, %v10965_v57 }
 0x338   : > { %v3413_v62 = vsel %vm2192_vm2, %v3403_v42, %v3412_v54  ;;  %v9423_v42 = vld [vmem:[#allocation2 + $0xf0] sm:$0xff]  ;;  %v5096_v21 = vshll.u32 %v9266_v32, 16  ;;  %v4877_v0 = vrot.slane %v4875_v34, 3 }
 0x339   : > { %8023 = vmatmul.msk.bf16.gmra.mxu2 %vm2303_vm3, %v3097_v3  ;;  %8083 = vmatmul.msk.bf16.gmra.mxu3 %vm2303_vm3, %v3413_v62  ;;  %v3099_v53 = vshrl.u32 %v9423_v42, 16  ;;  %v3102_v43 = vshll.u32 %v9423_v42, 16  ;;  %v4880_v42 = vrot.slane %v4878_v6, 4  ;;  %v5103_v44 = vrot.slane %v5101_v47, 3 }
 0x33a   : > { %v5106_v24 = vrot.slane %v5104_v61, 4 }
 0x33b   : > { %v3101_v3 = vrot.slane %v3099_v53, 1  ;;  %v3104_v62 = vrot.slane %v3102_v43, 2  ;;  %v5098_v53 = vrot.slane %v5096_v21, 4  ;;  %v11506_v43 = vpop.f32.mrf.mxu1  ;;  %v4881_v37 = vor.u32 %v4880_v42, %v4877_v0  ;;  %v11510_v34 = vpop.f32.mrf.mxu0 }
 0x33c   : > { %8236 = vmatmul.msk.bf16.gmra.mxu0 %vm2303_vm3, %v4873_v56  ;;  %8172 = vmatmul.msk.bf16.gmra.mxu1 %vm2303_vm3, %v4321_v13  ;;  %v2767_v29 = vpop.f32.mrf.mxu2  ;;  %v11498_v4 = vpop.f32.mrf.mxu3  ;;  %v3417_v56 = vrot.slane %v3415_v51, 1  ;;  %v5093_v13 = vshrl.u32 %v9266_v32, 16  ;;  %v9028_v32 = vunpack.c.h.b16 %v9102_v39  ;;  %v5107_v6 = vor.u32 %v5106_v24, %v5103_v44  ;;  %v9382_v39 = vld [vmem:[#allocation2 + $0x11c] sm:$0xff]  }
 0x33d   : > { %v11500_v35 = vadd.f32 %v2767_v29, %v2636_v31  ;;  %v3105_v30 = vor.u32 %v3104_v62, %v3101_v3  ;;  %v4882_v3 = vsel %vm3925_vm4, %v4872_v17, %v4881_v37  ;;  %v5110_v63 = vshrl.u32 %v9382_v39, 16 }
 0x33e   : > { %v3421_v29 = vor.u32 %v3420_v19, %v3417_v56  ;;  %v5095_v41 = vrot.slane %v5093_v13, 3  ;;  %v4793_v62 = vpack.c.b16 %v9028_v32, %v9028_v32  ;;  %v12890_v56 = vld [vmem:[#allocation27_spill] sm:$0xff] }
 0x33f   : > { %v3106_v47 = vsel %vm2192_vm2, %v3096_v36, %v3105_v30  ;;  %v2641_v44 = vadd.f32 %v12890_v56, %v10997_v59 }
 0x340   : > { %v3422_v57 = vsel %vm2192_vm2, %v3412_v54, %v3421_v29  ;;  %v5099_v61 = vor.u32 %v5098_v53, %v5095_v41  ;;  %v9424_v54 = vld [vmem:[#allocation2 + $0xf8] sm:$0xff]  ;;  %v4884_v17 = vshrl.u32 %v4793_v62, 16  ;;  %v4887_v42 = vshll.u32 %v4793_v62, 16 }
 0x341   : > { %v3108_v19 = vshrl.u32 %v9424_v54, 16  ;;  %v3111_v13 = vshll.u32 %v9424_v54, 16 }
 0x342   : > { %v5108_v0 = vsel %vm3925_vm4, %v5099_v61, %v5107_v6  ;;  %v4886_v53 = vrot.slane %v4884_v17, 3  ;;  %v4889_v32 = vrot.slane %v4887_v42, 4  ;;  %v12894_v42 = vld [vmem:[#allocation33_spill] sm:$0xff] }
 0x343   : > { %v11528_v29 = vpop.f32.mrf.mxu0  ;;  %v3110_v41 = vrot.slane %v3108_v19, 1  ;;  %v3113_v59 = vrot.slane %v3111_v13, 2  ;;  %v8836_v19 = vld [vmem:[%s12766_s4 + $0xa8] sm:$0xff] }
 0x344   : > { %v2769_v10 = vpop.f32.mrf.mxu2  ;;  %v11504_v31 = vpop.f32.mrf.mxu3  ;;  %12891 = vst [vmem:[#allocation8_spill] sm:$0xff] %v11528_v29  ;;  %v4890_v56 = vor.u32 %v4889_v32, %v4886_v53  ;;  %4506 = vmatpush.bf16.msra.mxu2 %v8836_v19  ;;  %v12896_v19 = vld [vmem:[#allocation36_spill] sm:$0xff] }
 0x345   : > { %v11508_v51 = vadd.f32 %v2769_v10, %v2638_v1  ;;  %v5113_v1 = vshll.u32 %v9382_v39, 16  ;;  %v11526_v10 = vpop.f32.mrf.mxu1  ;;  %v12892_v39 = vld [vmem:[#allocation52_spill] sm:$0xff] }
 0x346   : > { %v4891_v54 = vsel %vm3925_vm4, %v4881_v37, %v4890_v56  ;;  %v8838_v37 = vld [vmem:[%s12766_s4 + $0xb8] sm:$0xff] }
 0x347   : > { %4642 = vmatpush.bf16.msra.mxu3 %v8838_v37 }
 0x349   : > { %8024 = vmatmul.msk.bf16.gmra.mxu2 %vm2303_vm3, %v3106_v47  ;;  %8084 = vmatmul.msk.bf16.gmra.mxu3 %vm2303_vm3, %v3422_v57  ;;  %v5112_v47 = vrot.slane %v5110_v63, 3  ;;  %v5115_v57 = vrot.slane %v5113_v1, 4  ;;  %v2928_v63 = vadd.f32 %v12894_v42, %v11049_v49 }
 0x34b   : > { %v11540_v13 = vpop.f32.mrf.mxu0 }
 0x34c   : > { %8237 = vmatmul.msk.bf16.gmra.mxu0 %vm2303_vm3, %v4882_v3  ;;  %8251 = vmatmul.msk.bf16.vlgmr.msrb.gmra.mxu1 %vm2303_vm3, %v5108_v0  ;;  %v2772_v36 = vpop.f32.mrf.mxu2  ;;  %v11522_v24 = vpop.f32.mrf.mxu3  ;;  %v3114_v0 = vor.u32 %v3113_v59, %v3110_v41  ;;  %12893 = vst [vmem:[#allocation34_spill] sm:$0xff] %v11540_v13  ;;  %v12895_v59 = vld [vmem:[#allocation47_spill] sm:$0xff] }
 0x34d   : > { %v11524_v21 = vadd.f32 %v2772_v36, %v2641_v44  ;;  %v5116_v44 = vor.u32 %v5115_v57, %v5112_v47  ;;  %v11531_v62 = vpop.f32.mrf.mxu1  ;;  %v3117_v53 = vshrl.u32 %v12895_v59, 16  ;;  %v3120_v32 = vshll.u32 %v12895_v59, 16 }
 0x34e   : > { %v3115_v36 = vsel %vm2192_vm2, %v3105_v30, %v3114_v0  ;;  %v9384_v30 = vld [vmem:[#allocation2 + $0x124] sm:$0xff]  }
 0x34f   : > { %v5117_v17 = vsel %vm3925_vm4, %v5107_v6, %v5116_v44  ;;  %v5119_v6 = vshrl.u32 %v9384_v30, 16  ;;  %v5122_v57 = vshll.u32 %v9384_v30, 16  ;;  %v3119_v56 = vrot.slane %v3117_v53, 1 }
 0x350   : > { %v3122_v49 = vrot.slane %v3120_v32, 2 }
 0x352   : > { %v3123_v29 = vor.u32 %v3122_v49, %v3119_v56 }
 0x354   : > { %v2774_v61 = vpop.f32.mrf.mxu2  ;;  %v3481_v3 = vpop.f32.mrf.mxu3 }
 0x359   : > { %8025 = vmatmul.msk.bf16.gmra.mxu2 %vm2303_vm3, %v3115_v36  ;;  %8119 = vmatmul.msk.bf16.vlgmr.msrb.gmra.mxu3 %vm2303_vm3, %v12892_v39  ;;  %v5121_v36 = vrot.slane %v5119_v6, 3  ;;  %v5124_v39 = vrot.slane %v5122_v57, 4 }
 0x35c   : > { %8238 = vmatmul.msk.bf16.gmra.mxu0 %vm2303_vm3, %v4891_v54  ;;  %8252 = vmatmul.msk.bf16.gmra.mxu1 %vm2303_vm3, %v5117_v17  ;;  %v3176_v1 = vpop.f32.mrf.mxu2  ;;  %v3484_v41 = vpop.f32.mrf.mxu3  ;;  %v2929_v17 = vadd.f32 %v12896_v19, %v11080_v55  ;;  %v12897_v55 = vld [vmem:[#allocation40_spill] sm:$0xff] }
 0x35d   : > { %v3226_v47 = vadd.f32 %v3176_v1, %v2928_v63  ;;  %v11555_v54 = vpop.f32.mrf.mxu1  ;;  %v5125_v63 = vor.u32 %v5124_v39, %v5121_v36  ;;  %v9386_v1 = vld [vmem:[#allocation2 + $0x12c] sm:$0xff]   ;;  %v2930_v53 = vadd.f32 %v12897_v55, %v11113_v12 }
 0x35e   : > { %v5128_v57 = vshrl.u32 %v9386_v1, 16 }
 0x35f   : > { %v11553_v61 = vadd.f32 %v11498_v4, %v3226_v47  ;;  %v3124_v4 = vsel %vm2192_vm2, %v3114_v0, %v3123_v29  ;;  %v5126_v30 = vsel %vm3925_vm4, %v5116_v44, %v5125_v63  ;;  %v5131_v29 = vshll.u32 %v9386_v1, 16  ;;  %v12898_v44 = vld [vmem:[#allocation42_spill] sm:$0xff] }
 0x360   : > { %v5130_v56 = vrot.slane %v5128_v57, 3  ;;  %v2931_v49 = vadd.f32 %v12898_v44, %v11137_v40  ;;  %v12900_v40 = vld [vmem:[#allocation46_spill] sm:$0xff] }
 0x364   : > { %v3178_v42 = vpop.f32.mrf.mxu2  ;;  %v3486_v13 = vpop.f32.mrf.mxu3 }
 0x365   : > { %v3227_v59 = vadd.f32 %v3178_v42, %v2929_v17  ;;  %v11570_v6 = vpop.f32.mrf.mxu1 }
 0x367   : > { %v11560_v37 = vadd.f32 %v11504_v31, %v3227_v59  ;;  %v12899_v59 = vld [vmem:[#allocation15_spill] sm:$0xff] }
 0x369   : > { %8026 = vmatmul.msk.bf16.gmra.mxu2 %vm2303_vm3, %v3124_v4  ;;  %8120 = vmatmul.msk.bf16.gmra.mxu3 %vm2303_vm3, %v11075_v20  ;;  %v5133_v20 = vrot.slane %v5131_v29, 4  ;;  %v9388_v4 = vld [vmem:[#allocation2 + $0x134] sm:$0xff]  }
 0x36b   : > { %v5134_v17 = vor.u32 %v5133_v20, %v5130_v56 }
 0x36c   : > { %8253 = vmatmul.msk.bf16.gmra.mxu1 %vm2303_vm3, %v5126_v30  ;;  %v3181_v32 = vpop.f32.mrf.mxu2  ;;  %v3489_v47 = vpop.f32.mrf.mxu3  ;;  %v2932_v30 = vadd.f32 %v12900_v40, %v11170_v28  ;;  %v12902_v28 = vld [vmem:[#allocation18_spill] sm:$0xff] }
 0x36d   : > { %v3228_v31 = vadd.f32 %v3181_v32, %v2930_v53  ;;  %v11577_v12 = vpop.f32.mrf.mxu1  ;;  %v5137_v32 = vshrl.u32 %v9388_v4, 16 }
 0x36f   : > { %v11573_v0 = vadd.f32 %v11522_v24, %v3228_v31  ;;  %v5135_v24 = vsel %vm3925_vm4, %v5125_v63, %v5134_v17  ;;  %v5139_v29 = vrot.slane %v5137_v32, 3 }
 0x374   : > { %v3183_v36 = vpop.f32.mrf.mxu2  ;;  %v3491_v39 = vpop.f32.mrf.mxu3 }
 0x375   : > { %v3229_v19 = vadd.f32 %v3183_v36, %v2931_v49  ;;  %v11591_v57 = vpop.f32.mrf.mxu1 }
 0x377   : > { %v11579_v42 = vadd.f32 %v3481_v3, %v3229_v19  ;;  %v5140_v3 = vshll.u32 %v9388_v4, 16 }
 0x379   : > { %8097 = vmatmul.msk.bf16.vlgmr.msrb.gmra.mxu2 %vm2303_vm3, %v12899_v59  ;;  %8121 = vmatmul.msk.bf16.gmra.mxu3 %vm2303_vm3, %v11132_v52  ;;  %v5142_v56 = vrot.slane %v5140_v3, 4  ;;  %v12901_v52 = vld [vmem:[#allocation48_spill] sm:$0xff]  ;;  %v9390_v59 = vld [vmem:[#allocation2 + $0x13c] sm:$0xff]  }
 0x37a   : > { %v2933_v63 = vadd.f32 %v12901_v52, %v11194_v8  ;;  %v12903_v8 = vld [vmem:[#allocation51_spill] sm:$0xff] }
 0x37b   : > { %v5143_v36 = vor.u32 %v5142_v56, %v5139_v29  ;;  %v2934_v4 = vadd.f32 %v12903_v8, %v11226_v26  ;;  %v12904_v26 = vld [vmem:[#allocation21_spill] sm:$0xff] }
 0x37c   : > { %8254 = vmatmul.msk.bf16.gmra.mxu1 %vm2303_vm3, %v5135_v24  ;;  %v3186_v1 = vpop.f32.mrf.mxu2  ;;  %v3494_v55 = vpop.f32.mrf.mxu3 }
 0x37d   : > { %v3230_v53 = vadd.f32 %v3186_v1, %v2932_v30  ;;  %v11602_v24 = vpop.f32.mrf.mxu1  ;;  %v5146_v1 = vshrl.u32 %v9390_v59, 16 }
 0x37f   : > { %v11589_v31 = vadd.f32 %v3484_v41, %v3230_v53  ;;  %v5144_v41 = vsel %vm3925_vm4, %v5134_v17, %v5143_v36  ;;  %v5149_v53 = vshll.u32 %v9390_v59, 16  ;;  %v5148_v3 = vrot.slane %v5146_v1, 3 }
 0x381   : > { %v5151_v29 = vrot.slane %v5149_v53, 4 }
 0x384   : > { %v3188_v20 = vpop.f32.mrf.mxu2  ;;  %v3496_v44 = vpop.f32.mrf.mxu3 }
 0x385   : > { %v3231_v49 = vadd.f32 %v3188_v20, %v2933_v63  ;;  %v11611_v52 = vpop.f32.mrf.mxu1  ;;  %v5152_v20 = vor.u32 %v5151_v29, %v5148_v3 }
 0x387   : > { %v11595_v19 = vadd.f32 %v3486_v13, %v3231_v49 }
 0x389   : > { %8098 = vmatmul.msk.bf16.gmra.mxu2 %vm2303_vm3, %v12902_v28  ;;  %8122 = vmatmul.msk.bf16.gmra.mxu3 %vm2303_vm3, %v11191_v33  ;;  %v2935_v33 = vadd.f32 %v11044_v46, %v11252_v45  ;;  %v9392_v28 = vld [vmem:[#allocation2 + $0x144] sm:$0xff]   ;;  %v2936_v46 = vadd.f32 %v11084_v25, %v11289_v9  ;;  %v12905_v9 = vld [vmem:[#allocation24_spill] sm:$0xff] }
 0x38a   : > { %v5155_v8 = vshrl.u32 %v9392_v28, 16 }
 0x38c   : > { %8255 = vmatmul.msk.bf16.gmra.mxu1 %vm2303_vm3, %v5144_v41  ;;  %v3191_v40 = vpop.f32.mrf.mxu2  ;;  %v3499_v30 = vpop.f32.mrf.mxu3 }
 0x38d   : > { %v3232_v13 = vadd.f32 %v3191_v40, %v2934_v4  ;;  %v11623_v4 = vpop.f32.mrf.mxu1 }
 0x38f   : > { %v11607_v32 = vadd.f32 %v3489_v47, %v3232_v13  ;;  %v5153_v47 = vsel %vm3925_vm4, %v5143_v36, %v5152_v20  ;;  %v5157_v13 = vrot.slane %v5155_v8, 3 }
 0x394   : > { %v3193_v17 = vpop.f32.mrf.mxu2  ;;  %v3501_v56 = vpop.f32.mrf.mxu3 }
 0x395   : > { %v3233_v63 = vadd.f32 %v3193_v17, %v2935_v33  ;;  %v11631_v25 = vpop.f32.mrf.mxu1  ;;  %v8837_v17 = vld [vmem:[%s12766_s4 + $0xb0] sm:$0xff] }
 0x396   : > { %4643 = vmatpush.bf16.msra.mxu3 %v8837_v17 }
 0x397   : > { %v11613_v49 = vadd.f32 %v3491_v39, %v3233_v63  ;;  %v5158_v39 = vshll.u32 %v9392_v28, 16 }
 0x399   : > { %8099 = vmatmul.msk.bf16.gmra.mxu2 %vm2303_vm3, %v12904_v26  ;;  %8123 = vmatmul.msk.bf16.gmra.mxu3 %vm2303_vm3, %v11247_v50  ;;  %v5160_v1 = vrot.slane %v5158_v39, 4  ;;  %v2937_v50 = vadd.f32 %v11115_v18, %v11315_v27  ;;  %v9394_v27 = vld [vmem:[#allocation2 + $0x14c] sm:$0xff]  }
 0x39a   : > { %v5167_v28 = vshll.u32 %v9394_v27, 16 }
 0x39b   : > { %v5161_v29 = vor.u32 %v5160_v1, %v5157_v13 }
 0x39c   : > { %8256 = vmatmul.msk.bf16.gmra.mxu1 %vm2303_vm3, %v5153_v47  ;;  %v3196_v45 = vpop.f32.mrf.mxu2  ;;  %v3504_v41 = vpop.f32.mrf.mxu3  ;;  %v5164_v47 = vshrl.u32 %v9394_v27, 16 }
 0x39d   : > { %v3234_v59 = vadd.f32 %v3196_v45, %v2936_v46  ;;  %v5162_v18 = vsel %vm3925_vm4, %v5152_v20, %v5161_v29  ;;  %v5169_v45 = vrot.slane %v5167_v28, 4 }
 0x39e   : > { %v5166_v20 = vrot.slane %v5164_v47, 3 }
 0x39f   : > { %v11625_v40 = vadd.f32 %v3494_v55, %v3234_v59  ;;  %v8835_v55 = vld [vmem:[%s12766_s4 + $0xa0] sm:$0xff]  ;;  %v11649_v59 = vpop.f32.mrf.mxu1 }
 0x3a0   : > { %4507 = vmatpush.bf16.msra.mxu2 %v8835_v55  ;;  %v5170_v13 = vor.u32 %v5169_v45, %v5166_v20  ;;  %v12907_v45 = vld [vmem:[#allocation32_spill] sm:$0xff] }
 0x3a4   : > { %v3198_v36 = vpop.f32.mrf.mxu2  ;;  %v3506_v53 = vpop.f32.mrf.mxu3 }
 0x3a5   : > { %v3235_v3 = vadd.f32 %v3198_v36, %v2937_v50  ;;  %v12906_v50 = vld [vmem:[#allocation29_spill] sm:$0xff] }
 0x3a6   : > { %v9395_v36 = vld [vmem:[#allocation2 + $0x154] sm:$0xff]  }
 0x3a7   : > { %v11629_v33 = vadd.f32 %v3496_v44, %v3235_v3  ;;  %v2938_v44 = vadd.f32 %v11158_v14, %v11355_v16  ;;  %v2939_v14 = vadd.f32 %v11182_v22, %v11378_v2  ;;  %v2940_v22 = vadd.f32 %v11228_v11, %v11411_v15 }
 0x3a8   : > { %v5173_v55 = vshrl.u32 %v9395_v36, 16 }
 0x3a9   : > { %8100 = vmatmul.msk.bf16.gmra.mxu2 %vm2303_vm3, %v12905_v9  ;;  %8124 = vmatmul.msk.bf16.gmra.mxu3 %vm2303_vm3, %v11312_v60  ;;  %v11663_v9 = vpop.f32.mrf.mxu1 }
 0x3ac   : > { %8257 = vmatmul.msk.bf16.gmra.mxu1 %vm2303_vm3, %v5162_v18  ;;  %v3201_v63 = vpop.f32.mrf.mxu2  ;;  %v3509_v26 = vpop.f32.mrf.mxu3  ;;  %v5176_v18 = vshll.u32 %v9395_v36, 16 }
 0x3ad   : > { %v3236_v60 = vadd.f32 %v3201_v63, %v2938_v44  ;;  %v5175_v44 = vrot.slane %v5173_v55, 3 }
 0x3ae   : > { %v5178_v17 = vrot.slane %v5176_v18, 4 }
 0x3af   : > { %v11647_v46 = vadd.f32 %v3499_v30, %v3236_v60  ;;  %v5171_v30 = vsel %vm3925_vm4, %v5161_v29, %v5170_v13  ;;  %v11669_v29 = vld [vmem:[#allocation2 + $0x158] sm:$0xff]  }
 0x3b0   : > { %v5179_v11 = vor.u32 %v5178_v17, %v5175_v44  ;;  %v9068_v15 = vunpack.c.h.b16 %v11669_v29 }
 0x3b1   : > { %v11672_v28 = vpop.f32.mrf.mxu1 }
 0x3b4   : > { %v3203_v16 = vpop.f32.mrf.mxu2  ;;  %v3511_v8 = vpop.f32.mrf.mxu3 }
 0x3b5   : > { %v3237_v39 = vadd.f32 %v3203_v16, %v2939_v14 }
 0x3b7   : > { %v11653_v1 = vadd.f32 %v3501_v56, %v3237_v39 }
 0x3b9   : > { %8101 = vmatmul.msk.bf16.gmra.mxu2 %vm2303_vm3, %v12906_v50  ;;  %8125 = vmatmul.msk.bf16.gmra.mxu3 %vm2303_vm3, %v11376_v58  ;;  %v2941_v58 = vadd.f32 %v11267_v48, %v11439_v7  ;;  %v5180_v48 = vsel %vm3925_vm4, %v5170_v13, %v5179_v11  ;;  %v5091_v7 = vpack.c.b16 %v9068_v15, %v9068_v15  ;;  %v11686_v36 = vpop.f32.mrf.mxu1 }
 0x3bb   : > { %v5182_v50 = vshrl.u32 %v5091_v7, 16 }
 0x3bc   : > { %8258 = vmatmul.msk.bf16.gmra.mxu1 %vm2303_vm3, %v5171_v30  ;;  %v3206_v2 = vpop.f32.mrf.mxu2  ;;  %v3514_v3 = vpop.f32.mrf.mxu3 }
 0x3bd   : > { %v3238_v56 = vadd.f32 %v3206_v2, %v2940_v22  ;;  %v5184_v22 = vrot.slane %v5182_v50, 3 }
 0x3bf   : > { %v11665_v27 = vadd.f32 %v3504_v41, %v3238_v56  ;;  %v2942_v41 = vadd.f32 %v11298_v5, %v11468_v38  ;;  %v12909_v56 = vld [vmem:[#allocation26_spill] sm:$0xff]  ;;  %v12911_v38 = vld [vmem:[#allocation7_spill] sm:$0xff] }
 0x3c0   : > { %v12910_v5 = vld [vmem:[#allocation38_spill] sm:$0xff] }
 0x3c4   : > { %v3208_v63 = vpop.f32.mrf.mxu2  ;;  %v3516_v60 = vpop.f32.mrf.mxu3 }
 0x3c5   : > { %v3239_v47 = vadd.f32 %v3208_v63, %v2941_v58  ;;  %v11697_v63 = vpop.f32.mrf.mxu1 }
 0x3c7   : > { %v11674_v20 = vadd.f32 %v3506_v53, %v3239_v47  ;;  %v5185_v53 = vshll.u32 %v5091_v7, 16  ;;  %v12912_v47 = vld [vmem:[#allocation5_spill] sm:$0xff] }
 0x3c8   : > { %v2944_v15 = vadd.f32 %v12912_v47, %v11500_v35  ;;  %v12916_v35 = vld [vmem:[#allocation30_spill] sm:$0xff] }
 0x3c9   : > { %8102 = vmatmul.msk.bf16.gmra.mxu2 %vm2303_vm3, %v12907_v45  ;;  %8126 = vmatmul.msk.bf16.gmra.mxu3 %vm2303_vm3, %v11437_v23  ;;  %v5187_v2 = vrot.slane %v5185_v53, 4  ;;  %v12908_v23 = vld [vmem:[#allocation39_spill] sm:$0xff] }
 0x3ca   : > { %v2943_v13 = vadd.f32 %v12909_v56, %v12908_v23  ;;  %v2946_v23 = vadd.f32 %v12916_v35, %v11524_v21  ;;  %v8846_v21 = vld [vmem:[%s12766_s4 + $0xf8] sm:$0xff] }
 0x3cb   : > { %v5188_v17 = vor.u32 %v5187_v2, %v5184_v22  ;;  %v12915_v2 = vld [vmem:[#allocation31_spill] sm:$0xff]  ;;  %5510 = vmatpush.bf16.msrb.mxu3 %v8846_v21 }
 0x3cc   : > { %8259 = vmatmul.msk.bf16.gmra.mxu1 %vm2303_vm3, %v5180_v48  ;;  %v3211_v14 = vpop.f32.mrf.mxu2  ;;  %v3519_v16 = vpop.f32.mrf.mxu3 }
 0x3cd   : > { %v3240_v39 = vadd.f32 %v3211_v14, %v2942_v41  ;;  %v12913_v41 = vld [vmem:[#allocation12_spill] sm:$0xff] }
 0x3ce   : > { %v2945_v14 = vadd.f32 %v12913_v41, %v11508_v51  ;;  %v9084_v41 = vld [vmem:[#allocation2 + $0x68] sm:$0xff]  }
 0x3cf   : > { %v11684_v30 = vadd.f32 %v3509_v26, %v3240_v39  ;;  %v5189_v26 = vsel %vm3925_vm4, %v5179_v11, %v5188_v17  ;;  %v12914_v11 = vld [vmem:[#allocation44_spill] sm:$0xff]  ;;  %v12917_v17 = vld [vmem:[#allocation49_spill] sm:$0xff] }
 0x3d4   : > { %v3213_v55 = vpop.f32.mrf.mxu2  ;;  %v3521_v18 = vpop.f32.mrf.mxu3 }
 0x3d5   : > { %v3241_v44 = vadd.f32 %v3213_v55, %v2943_v13 }
 0x3d7   : > { %v11690_v58 = vadd.f32 %v3511_v8, %v3241_v44  ;;  %v9083_v44 = vld [vmem:[#allocation2 + $0x60] sm:$0xff]  }
 0x3d9   : > { %8103 = vmatmul.msk.bf16.gmra.mxu2 %vm2303_vm3, %v12910_v5  ;;  %8127 = vmatmul.msk.bf16.gmra.mxu3 %vm2303_vm3, %v12911_v38 }
 0x3dc   : > { %8260 = vmatmul.msk.bf16.gmra.mxu1 %vm2303_vm3, %v5189_v26  ;;  %v3216_v45 = vpop.f32.mrf.mxu2  ;;  %v3776_v48 = vpop.f32.mrf.mxu3 }
 0x3dd   : > { %v3242_v7 = vadd.f32 %v3216_v45, %v2944_v15 }
 0x3df   : > { %v11702_v8 = vadd.f32 %v3514_v3, %v3242_v7 }
 0x3e4   : > { %v3218_v39 = vpop.f32.mrf.mxu2  ;;  %v3778_v50 = vpop.f32.mrf.mxu3 }
 0x3e5   : > { %v3243_v53 = vadd.f32 %v3218_v39, %v2945_v14  ;;  %v12918_v14 = vld [vmem:[#allocation50_spill] sm:$0xff] }
 0x3e7   : > { %v11706_v22 = vadd.f32 %v3516_v60, %v3243_v53  ;;  %v8844_v60 = vld [vmem:[%s12766_s4 + $0xe8] sm:$0xff] }
 0x3e8   : > { %5374 = vmatpush.bf16.msrb.mxu2 %v8844_v60 }
 0x3e9   : > { %8104 = vmatmul.msk.bf16.gmra.mxu2 %vm2303_vm3, %v12914_v11  ;;  %8128 = vmatmul.msk.bf16.gmra.mxu3 %vm2303_vm3, %v12915_v2 }
 0x3ec   : > { %v3221_v56 = vpop.f32.mrf.mxu2  ;;  %v3781_v3 = vpop.f32.mrf.mxu3 }
 0x3ed   : > { %v3244_v13 = vadd.f32 %v3221_v56, %v2946_v23 }
 0x3ef   : > { %v11714_v55 = vadd.f32 %v3519_v16, %v3244_v13 }
 0x3f4   : > { %v3223_v51 = vpop.f32.mrf.mxu2  ;;  %v3783_v18 = vpop.f32.mrf.mxu3 }
 0x3f9   : > { %8105 = vmatmul.msk.bf16.gmra.mxu2 %vm2303_vm3, %v12917_v17  ;;  %8207 = vmatmul.msk.bf16.vlgmr.msra.gmra.mxu3 %vm2303_vm3, %v9083_v44 }
 0x3fc   : > { %v3625_v16 = vpop.f32.mrf.mxu2  ;;  %v3786_v5 = vpop.f32.mrf.mxu3 }
 0x3fd   : > { %v3675_v38 = vadd.f32 %v3625_v16, %v11553_v61 }
 0x3ff   : > { %v11726_v26 = vadd.f32 %v3776_v48, %v3675_v38 }
 0x404   : > { %v3627_v47 = vpop.f32.mrf.mxu2  ;;  %v3788_v15 = vpop.f32.mrf.mxu3 }
 0x405   : > { %v3676_v45 = vadd.f32 %v3627_v47, %v11560_v37  ;;  %v9073_v37 = vld [vmem:[#allocation2 + $0x8] sm:$0xff]  }
 0x407   : > { %v11729_v7 = vadd.f32 %v3778_v50, %v3676_v45  ;;  %v9085_v50 = vld [vmem:[#allocation2 + $0x70] sm:$0xff]  }
 0x409   : > { %8106 = vmatmul.msk.bf16.gmra.mxu2 %vm2303_vm3, %v12918_v14  ;;  %8208 = vmatmul.msk.bf16.gmra.mxu3 %vm2303_vm3, %v9084_v41 }
 0x40c   : > { %v3630_v39 = vpop.f32.mrf.mxu2  ;;  %v3791_v53 = vpop.f32.mrf.mxu3 }
 0x40d   : > { %v3677_v11 = vadd.f32 %v3630_v39, %v11573_v0 }
 0x40f   : > { %v11735_v2 = vadd.f32 %v3781_v3, %v3677_v11 }
 0x414   : > { %v3632_v61 = vpop.f32.mrf.mxu2  ;;  %v3793_v48 = vpop.f32.mrf.mxu3 }
 0x415   : > { %v3678_v35 = vadd.f32 %v3632_v61, %v11579_v42  ;;  %v9074_v42 = vld [vmem:[#allocation2 + $0x10] sm:$0xff]  }
 0x417   : > { %v11738_v23 = vadd.f32 %v3783_v18, %v3678_v35  ;;  %v9086_v18 = vld [vmem:[#allocation2 + $0x78] sm:$0xff]  }
 0x419   : > { %8185 = vmatmul.msk.bf16.vlgmr.msra.gmra.mxu2 %vm2303_vm3, %v9073_v37  ;;  %8209 = vmatmul.msk.bf16.gmra.mxu3 %vm2303_vm3, %v9085_v50  ;;  %v8843_v50 = vld [vmem:[%s12766_s4 + $0xe0] sm:$0xff] }
 0x41a   : > { %5375 = vmatpush.bf16.msrb.mxu2 %v8843_v50 }
 0x41c   : > { %v3635_v56 = vpop.f32.mrf.mxu2  ;;  %v3796_v13 = vpop.f32.mrf.mxu3 }
 0x41d   : > { %v3679_v51 = vadd.f32 %v3635_v56, %v11589_v31 }
 0x41f   : > { %v11743_v44 = vadd.f32 %v3786_v5, %v3679_v51 }
 0x424   : > { %v3637_v0 = vpop.f32.mrf.mxu2  ;;  %v3798_v3 = vpop.f32.mrf.mxu3 }
 0x425   : > { %v3680_v17 = vadd.f32 %v3637_v0, %v11595_v19  ;;  %v9075_v19 = vld [vmem:[#allocation2 + $0x18] sm:$0xff]  }
 0x427   : > { %v11746_v60 = vadd.f32 %v3788_v15, %v3680_v17  ;;  %v9087_v15 = vld [vmem:[#allocation2 + $0x80] sm:$0xff]  }
 0x429   : > { %8186 = vmatmul.msk.bf16.gmra.mxu2 %vm2303_vm3, %v9074_v42  ;;  %8210 = vmatmul.msk.bf16.gmra.mxu3 %vm2303_vm3, %v9086_v18  ;;  %v9077_v18 = vld [vmem:[#allocation2 + $0x28] sm:$0xff]  }
 0x42c   : > { %v3640_v21 = vpop.f32.mrf.mxu2  ;;  %v3801_v16 = vpop.f32.mrf.mxu3 }
 0x42d   : > { %v3681_v38 = vadd.f32 %v3640_v21, %v11607_v32  ;;  %v9089_v21 = vld [vmem:[#allocation2 + $0x90] sm:$0xff]  }
 0x42f   : > { %v11751_v47 = vadd.f32 %v3791_v53, %v3681_v38 }
 0x434   : > { %v3642_v31 = vpop.f32.mrf.mxu2  ;;  %v3803_v5 = vpop.f32.mrf.mxu3 }
 0x435   : > { %v3682_v45 = vadd.f32 %v3642_v31, %v11613_v49  ;;  %v9076_v49 = vld [vmem:[#allocation2 + $0x20] sm:$0xff]  }
 0x437   : > { %v11754_v41 = vadd.f32 %v3793_v48, %v3682_v45  ;;  %v9088_v48 = vld [vmem:[#allocation2 + $0x88] sm:$0xff]  }
 0x439   : > { %8187 = vmatmul.msk.bf16.gmra.mxu2 %vm2303_vm3, %v9075_v19  ;;  %8211 = vmatmul.msk.bf16.gmra.mxu3 %vm2303_vm3, %v9087_v15 }
 0x43c   : > { %v3645_v14 = vpop.f32.mrf.mxu2  ;;  %v3806_v39 = vpop.f32.mrf.mxu3 }
 0x43d   : > { %v3683_v11 = vadd.f32 %v3645_v14, %v11625_v40  ;;  %v8845_v40 = vld [vmem:[%s12766_s4 + $0xf0] sm:$0xff] }
 0x43e   : > { %5511 = vmatpush.bf16.msrb.mxu3 %v8845_v40 }
 0x43f   : > { %v11759_v61 = vadd.f32 %v3796_v13, %v3683_v11 }
 0x444   : > { %v3647_v32 = vpop.f32.mrf.mxu2  ;;  %v3808_v53 = vpop.f32.mrf.mxu3 }
 0x445   : > { %v3684_v35 = vadd.f32 %v3647_v32, %v11629_v33 }
 0x447   : > { %v11762_v37 = vadd.f32 %v3798_v3, %v3684_v35 }
 0x449   : > { %8188 = vmatmul.msk.bf16.gmra.mxu2 %vm2303_vm3, %v9076_v49  ;;  %8212 = vmatmul.msk.bf16.gmra.mxu3 %vm2303_vm3, %v9088_v48 }
 0x44c   : > { %v3650_v56 = vpop.f32.mrf.mxu2  ;;  %v3811_v33 = vpop.f32.mrf.mxu3 }
 0x44d   : > { %v3685_v13 = vadd.f32 %v3650_v56, %v11647_v46 }
 0x44f   : > { %v11773_v51 = vadd.f32 %v3801_v16, %v3685_v13 }
 0x454   : > { %v3652_v0 = vpop.f32.mrf.mxu2  ;;  %v3813_v3 = vpop.f32.mrf.mxu3 }
 0x455   : > { %v3686_v17 = vadd.f32 %v3652_v0, %v11653_v1  ;;  %v9078_v1 = vld [vmem:[#allocation2 + $0x30] sm:$0xff]  }
 0x457   : > { %v11776_v42 = vadd.f32 %v3803_v5, %v3686_v17  ;;  %v9090_v5 = vld [vmem:[#allocation2 + $0x98] sm:$0xff]  }
 0x459   : > { %8189 = vmatmul.msk.bf16.gmra.mxu2 %vm2303_vm3, %v9077_v18  ;;  %8213 = vmatmul.msk.bf16.gmra.mxu3 %vm2303_vm3, %v9089_v21 }
 0x45c   : > { %v3655_v38 = vpop.f32.mrf.mxu2  ;;  %v3816_v31 = vpop.f32.mrf.mxu3 }
 0x45d   : > { %v3687_v45 = vadd.f32 %v3655_v38, %v11665_v27 }
 0x45f   : > { %v11781_v19 = vadd.f32 %v3806_v39, %v3687_v45 }
 0x464   : > { %v3657_v46 = vpop.f32.mrf.mxu2  ;;  %v3818_v16 = vpop.f32.mrf.mxu3 }
 0x465   : > { %v3688_v15 = vadd.f32 %v3657_v46, %v11674_v20  ;;  %v9079_v20 = vld [vmem:[#allocation2 + $0x38] sm:$0xff]  }
 0x467   : > { %v11784_v14 = vadd.f32 %v3808_v53, %v3688_v15  ;;  %v9091_v53 = vld [vmem:[#allocation2 + $0xa0] sm:$0xff]   ;;  %v12920_v15 = vld [vmem:[#allocation53_spill] sm:$0xff] }
 0x469   : > { %8190 = vmatmul.msk.bf16.gmra.mxu2 %vm2303_vm3, %v9078_v1  ;;  %8214 = vmatmul.msk.bf16.gmra.mxu3 %vm2303_vm3, %v9090_v5  ;;  %v4125_v1 = vadd.f32 %v12920_v15, %v11726_v26 }
 0x46b   : > { %v4423_v5 = vadd.f32 %v11506_v43, %v4125_v1  ;;  %v9425_v43 = vld [vmem:[#allocation2 + $0x50] sm:$0xff]  }
 0x46c   : > { %v3660_v11 = vpop.f32.mrf.mxu2  ;;  %v3821_v32 = vpop.f32.mrf.mxu3 }
 0x46d   : > { %v3689_v35 = vadd.f32 %v3660_v11, %v11684_v30 }
 0x46f   : > { %v11789_v49 = vadd.f32 %v3811_v33, %v3689_v35 }
 0x474   : > { %v3662_v27 = vpop.f32.mrf.mxu2  ;;  %v3823_v39 = vpop.f32.mrf.mxu3 }
 0x475   : > { %v3690_v48 = vadd.f32 %v3662_v27, %v11690_v58  ;;  %v9080_v58 = vld [vmem:[#allocation2 + $0x40] sm:$0xff]  }
 0x477   : > { %v11792_v50 = vadd.f32 %v3813_v3, %v3690_v48  ;;  %v12919_v3 = vld [vmem:[#allocation35_spill] sm:$0xff] }
 0x479   : > { %8191 = vmatmul.msk.bf16.gmra.mxu2 %vm2303_vm3, %v9079_v20  ;;  %8215 = vmatmul.msk.bf16.gmra.mxu3 %vm2303_vm3, %v9091_v53 }
 0x47c   : > { %v3665_v40 = vpop.f32.mrf.mxu2  ;;  %v4645_v56 = vpop.f32.mrf.mxu3 }
 0x47d   : > { %v3691_v13 = vadd.f32 %v3665_v40, %v11702_v8 }
 0x47f   : > { %v11797_v0 = vadd.f32 %v3816_v31, %v3691_v13  ;;  %v12922_v13 = vld [vmem:[#allocation55_spill] sm:$0xff] }
 0x484   : > { %v3667_v30 = vpop.f32.mrf.mxu2  ;;  %v4647_v33 = vpop.f32.mrf.mxu3 }
 0x485   : > { %v3692_v17 = vadd.f32 %v3667_v30, %v11706_v22  ;;  %v9081_v22 = vld [vmem:[#allocation2 + $0x48] sm:$0xff]   ;;  %v4127_v30 = vadd.f32 %v12922_v13, %v11735_v2  ;;  %v8860_v2 = vld [vmem:[%s12769_s7 + $0x38] sm:$0xff] }
 0x486   : > { %5998 = vmatpush.bf16.msrb.mxu0 %v8860_v2 }
 0x487   : > { %v11800_v18 = vadd.f32 %v3818_v16, %v3692_v17  ;;  %v9103_v16 = vld [vmem:[#allocation2 + $0x110] sm:$0xff]   ;;  %v9104_v17 = vld [vmem:[#allocation2 + $0x118] sm:$0xff]  }
 0x489   : > { %8192 = vmatmul.msk.bf16.gmra.mxu2 %vm2303_vm3, %v9080_v58  ;;  %8216 = vmatmul.msk.bf16.gmra.mxu3 %vm2303_vm3, %v12919_v3 }
 0x48c   : > { %v3670_v21 = vpop.f32.mrf.mxu2  ;;  %v4650_v38 = vpop.f32.mrf.mxu3 }
 0x48d   : > { %v3693_v45 = vadd.f32 %v3670_v21, %v11714_v55  ;;  %v12921_v55 = vld [vmem:[#allocation54_spill] sm:$0xff]  ;;  %v12923_v21 = vld [vmem:[#allocation56_spill] sm:$0xff] }
 0x48f   : > { %v11806_v46 = vadd.f32 %v3821_v32, %v3693_v45  ;;  %v4126_v32 = vadd.f32 %v12921_v55, %v11729_v7 }
 0x491   : > { %v4424_v48 = vadd.f32 %v11526_v10, %v4126_v32  ;;  %v12925_v32 = vld [vmem:[#allocation23_spill] sm:$0xff] }
 0x494   : > { %v3672_v8 = vpop.f32.mrf.mxu2  ;;  %v4652_v31 = vpop.f32.mrf.mxu3 }
 0x499   : > { %8193 = vmatmul.msk.bf16.gmra.mxu2 %vm2303_vm3, %v9081_v22  ;;  %8295 = vmatmul.msk.bf16.vlgmr.msrb.gmra.mxu3 %vm2303_vm3, %v9103_v16 }
 0x49c   : > { %v4509_v11 = vpop.f32.mrf.mxu2  ;;  %v4655_v35 = vpop.f32.mrf.mxu3 }
 0x49d   : > { %v4559_v27 = vadd.f32 %v4509_v11, %v4423_v5  ;;  %v9105_v5 = vld [vmem:[#allocation2 + $0x120] sm:$0xff]  }
 0x49f   : > { %v11813_v39 = vadd.f32 %v4645_v56, %v4559_v27  ;;  %v4425_v56 = vadd.f32 %v11531_v62, %v4127_v30  ;;  %v12924_v62 = vld [vmem:[#allocation57_spill] sm:$0xff]  ;;  %v12926_v30 = vld [vmem:[#allocation10_spill] sm:$0xff] }
 0x4a0   : > { %v4129_v16 = vadd.f32 %v12924_v62, %v11743_v44  ;;  %v9095_v62 = vld [vmem:[#allocation2 + $0xc8] sm:$0xff]  }
 0x4a4   : > { %v4511_v20 = vpop.f32.mrf.mxu2  ;;  %v4657_v26 = vpop.f32.mrf.mxu3 }
 0x4a5   : > { %v4560_v53 = vadd.f32 %v4511_v20, %v4424_v48 }
 0x4a7   : > { %v11818_v40 = vadd.f32 %v4647_v33, %v4560_v53  ;;  %v4128_v33 = vadd.f32 %v12923_v21, %v11738_v23  ;;  %v4427_v23 = vadd.f32 %v11570_v6, %v4129_v16  ;;  %v9106_v6 = vld [vmem:[#allocation2 + $0x128] sm:$0xff]  }
 0x4a9   : > { %8194 = vmatmul.msk.bf16.gmra.mxu2 %vm2303_vm3, %v9425_v43  ;;  %8296 = vmatmul.msk.bf16.gmra.mxu3 %vm2303_vm3, %v9104_v17  ;;  %v4426_v45 = vadd.f32 %v11555_v54, %v4128_v33  ;;  %v4131_v17 = vadd.f32 %v12926_v30, %v11751_v47  ;;  %v9094_v43 = vld [vmem:[#allocation2 + $0xc0] sm:$0xff]   ;;  %v9096_v30 = vld [vmem:[#allocation2 + $0xd0] sm:$0xff]  }
 0x4ac   : > { %v4514_v58 = vpop.f32.mrf.mxu2  ;;  %v4660_v7 = vpop.f32.mrf.mxu3 }
 0x4ad   : > { %v4561_v3 = vadd.f32 %v4514_v58, %v4425_v56 }
 0x4af   : > { %v11825_v10 = vadd.f32 %v4650_v38, %v4561_v3  ;;  %v9093_v38 = vld [vmem:[#allocation2 + $0xb8] sm:$0xff]   ;;  %v12927_v3 = vld [vmem:[#allocation4_spill] sm:$0xff] }
 0x4b4   : > { %v4516_v8 = vpop.f32.mrf.mxu2  ;;  %v4662_v15 = vpop.f32.mrf.mxu3 }
 0x4b5   : > { %v4562_v1 = vadd.f32 %v4516_v8, %v4426_v45  ;;  %v12928_v8 = vld [vmem:[#allocation11_spill] sm:$0xff] }
 0x4b7   : > { %v11833_v22 = vadd.f32 %v4652_v31, %v4562_v1  ;;  %v4130_v31 = vadd.f32 %v12925_v32, %v11746_v60  ;;  %v4133_v1 = vadd.f32 %v12928_v8, %v11759_v61  ;;  %v12929_v61 = vld [vmem:[#allocation28_spill] sm:$0xff]  ;;  %v9097_v8 = vld [vmem:[#allocation2 + $0xd8] sm:$0xff]  }
 0x4b9   : > { %8273 = vmatmul.msk.bf16.vlgmr.msrb.gmra.mxu2 %vm2303_vm3, %v9093_v38  ;;  %8297 = vmatmul.msk.bf16.gmra.mxu3 %vm2303_vm3, %v9105_v5  ;;  %v4428_v48 = vadd.f32 %v11577_v12, %v4130_v31  ;;  %v4134_v5 = vadd.f32 %v12929_v61, %v11762_v37  ;;  %v4115_v31 = vpop.f32.mrf.mxu0 }
 0x4bc   : > { %v4519_v11 = vpop.f32.mrf.mxu2  ;;  %v4665_v27 = vpop.f32.mrf.mxu3 }
 0x4bd   : > { %v4563_v55 = vadd.f32 %v4519_v11, %v4427_v23  ;;  %v4432_v23 = vadd.f32 %v11623_v4, %v4134_v5 }
 0x4bf   : > { %v11840_v54 = vadd.f32 %v4655_v35, %v4563_v55  ;;  %v4429_v35 = vadd.f32 %v11591_v57, %v4131_v17  ;;  %v9107_v57 = vld [vmem:[#allocation2 + $0x130] sm:$0xff]   ;;  %v9108_v17 = vld [vmem:[#allocation2 + $0x138] sm:$0xff]  }
 0x4c4   : > { %v4521_v20 = vpop.f32.mrf.mxu2  ;;  %v4667_v44 = vpop.f32.mrf.mxu3 }
 0x4c5   : > { %v4564_v53 = vadd.f32 %v4521_v20, %v4428_v48  ;;  %v11872_v48 = vpop.f32.mrf.mxu1 }
 0x4c7   : > { %v11845_v13 = vadd.f32 %v4657_v26, %v4564_v53  ;;  %v4132_v26 = vadd.f32 %v12927_v3, %v11754_v41  ;;  %v8859_v41 = vld [vmem:[%s12769_s7 + $0x30] sm:$0xff] }
 0x4c8   : > { %5999 = vmatpush.bf16.msrb.mxu0 %v8859_v41 }
 0x4c9   : > { %8274 = vmatmul.msk.bf16.gmra.mxu2 %vm2303_vm3, %v9094_v43  ;;  %8298 = vmatmul.msk.bf16.gmra.mxu3 %vm2303_vm3, %v9106_v6  ;;  %v4430_v21 = vadd.f32 %v11602_v24, %v4132_v26  ;;  %v4431_v24 = vadd.f32 %v11611_v52, %v4133_v1  ;;  %v12930_v52 = vld [vmem:[#allocation6_spill] sm:$0xff] }
 0x4ca   : > { %v4135_v53 = vadd.f32 %v12930_v52, %v11773_v51  ;;  %v9098_v52 = vld [vmem:[#allocation2 + $0xe0] sm:$0xff]  }
 0x4cc   : > { %v4524_v56 = vpop.f32.mrf.mxu2  ;;  %v4670_v60 = vpop.f32.mrf.mxu3  ;;  %v4433_v37 = vadd.f32 %v11631_v25, %v4135_v53  ;;  %v12932_v25 = vld [vmem:[#allocation14_spill] sm:$0xff] }
 0x4cd   : > { %v4565_v58 = vadd.f32 %v4524_v56, %v4429_v35  ;;  %v12931_v35 = vld [vmem:[#allocation13_spill] sm:$0xff]  ;;  %v11885_v56 = vpop.f32.mrf.mxu0 }
 0x4cf   : > { %v11852_v12 = vadd.f32 %v4660_v7, %v4565_v58  ;;  %v11887_v58 = vpop.f32.mrf.mxu1 }
 0x4d4   : > { %v4526_v33 = vpop.f32.mrf.mxu2  ;;  %v4672_v47 = vpop.f32.mrf.mxu3 }
 0x4d5   : > { %v4566_v2 = vadd.f32 %v4526_v33, %v4430_v21 }
 0x4d7   : > { %v11857_v45 = vadd.f32 %v4662_v15, %v4566_v2  ;;  %v4137_v2 = vadd.f32 %v12932_v25, %v11781_v19  ;;  %v4418_v1 = vpop.f32.mrf.mxu1  ;;  %v8858_v19 = vld [vmem:[%s12769_s7 + $0x28] sm:$0xff]  ;;  %v9111_v25 = vld [vmem:[#allocation2 + $0x150] sm:$0xff]  }
 0x4d8   : > { %6000 = vmatpush.bf16.msrb.mxu0 %v8858_v19 }
 0x4d9   : > { %8275 = vmatmul.msk.bf16.gmra.mxu2 %vm2303_vm3, %v9095_v62  ;;  %8299 = vmatmul.msk.bf16.gmra.mxu3 %vm2303_vm3, %v9107_v57  ;;  %v4435_v62 = vadd.f32 %v11663_v9, %v4137_v2 }
 0x4dc   : > { %v4529_v7 = vpop.f32.mrf.mxu2  ;;  %v4675_v16 = vpop.f32.mrf.mxu3 }
 0x4dd   : > { %v4567_v15 = vadd.f32 %v4529_v7, %v4431_v24 }
 0x4df   : > { %v11867_v38 = vadd.f32 %v4665_v27, %v4567_v15  ;;  %v4420_v9 = vpop.f32.mrf.mxu1 }
 0x4e4   : > { %v4531_v11 = vpop.f32.mrf.mxu2  ;;  %v4677_v55 = vpop.f32.mrf.mxu3 }
 0x4e5   : > { %v4568_v32 = vadd.f32 %v4531_v11, %v4432_v23 }
 0x4e7   : > { %v11874_v20 = vadd.f32 %v4667_v44, %v4568_v32  ;;  %v4136_v44 = vadd.f32 %v12931_v35, %v11776_v42  ;;  %v4120_v42 = vpop.f32.mrf.mxu0 }
 0x4e9   : > { %8276 = vmatmul.msk.bf16.gmra.mxu2 %vm2303_vm3, %v9096_v30  ;;  %8300 = vmatmul.msk.bf16.gmra.mxu3 %vm2303_vm3, %v9108_v17  ;;  %v4434_v51 = vadd.f32 %v11649_v59, %v4136_v44 }
 0x4ec   : > { %v4534_v4 = vpop.f32.mrf.mxu2  ;;  %v4680_v27 = vpop.f32.mrf.mxu3 }
 0x4ed   : > { %v4569_v43 = vadd.f32 %v4534_v4, %v4433_v37  ;;  %v5241_v37 = vpop.f32.mrf.mxu1 }
 0x4ef   : > { %v11881_v6 = vadd.f32 %v4670_v60, %v4569_v43  ;;  %v9109_v60 = vld [vmem:[#allocation2 + $0x140] sm:$0xff]   ;;  %v4122_v5 = vpop.f32.mrf.mxu0 }
 0x4f4   : > { %v4536_v3 = vpop.f32.mrf.mxu2  ;;  %v4682_v26 = vpop.f32.mrf.mxu3 }
 0x4f5   : > { %v4570_v21 = vadd.f32 %v4536_v3, %v4434_v51 }
 0x4f7   : > { %v11890_v33 = vadd.f32 %v4672_v47, %v4570_v21  ;;  %v4138_v47 = vadd.f32 %v11510_v34, %v11784_v14  ;;  %v9110_v34 = vld [vmem:[#allocation2 + $0x148] sm:$0xff]   ;;  %v4943_v17 = vpop.f32.mrf.mxu0  ;;  %v4141_v21 = vadd.f32 %v4115_v31, %v11797_v0  ;;  %v4143_v31 = vadd.f32 %v4120_v42, %v11806_v46  ;;  %v8857_v46 = vld [vmem:[%s12769_s7 + $0x20] sm:$0xff]  ;;  %v8874_v42 = vld [vmem:[%s12769_s7 + $0x78] sm:$0xff] }
 0x4f8   : > { %6001 = vmatpush.bf16.msrb.mxu0 %v8857_v46  ;;  %6404 = vmatpush.bf16.msra.mxu3 %v8874_v42 }
 0x4f9   : > { %8277 = vmatmul.msk.bf16.gmra.mxu2 %vm2303_vm3, %v9097_v8  ;;  %8301 = vmatmul.msk.bf16.gmra.mxu3 %vm2303_vm3, %v9109_v60  ;;  %v4436_v7 = vadd.f32 %v11672_v28, %v4138_v47  ;;  %v5243_v8 = vpop.f32.mrf.mxu1  ;;  %v9100_v47 = vld [vmem:[#allocation2 + $0xf0] sm:$0xff]  }
 0x4fc   : > { %v4539_v57 = vpop.f32.mrf.mxu2  ;;  %v4685_v59 = vpop.f32.mrf.mxu3 }
 0x4fd   : > { %v4571_v41 = vadd.f32 %v4539_v57, %v4435_v62 }
 0x4ff   : > { %v11897_v24 = vadd.f32 %v4675_v16, %v4571_v41  ;;  %v12933_v16 = vld [vmem:[#allocation8_spill] sm:$0xff]  ;;  %v4945_v2 = vpop.f32.mrf.mxu0 }
 0x500   : > { %v4139_v32 = vadd.f32 %v12933_v16, %v11789_v49 }
 0x502   : > { %v4437_v14 = vadd.f32 %v11686_v36, %v4139_v32  ;;  %v9099_v36 = vld [vmem:[#allocation2 + $0xe8] sm:$0xff]  }
 0x504   : > { %v4541_v15 = vpop.f32.mrf.mxu2  ;;  %v11905_v61 = vpop.f32.mrf.mxu3 }
 0x505   : > { %v4572_v23 = vadd.f32 %v4541_v15, %v4436_v7 }
 0x507   : > { %v11907_v11 = vadd.f32 %v4677_v55, %v4572_v23  ;;  %v12934_v55 = vld [vmem:[#allocation34_spill] sm:$0xff]  ;;  %v4948_v57 = vpop.f32.mrf.mxu0  ;;  %v8864_v23 = vld [vmem:[%s12769_s7 + $0x58] sm:$0xff] }
 0x508   : > { %v4140_v43 = vadd.f32 %v12934_v55, %v11792_v50  ;;  %6213 = vmatpush.bf16.msra.mxu2 %v8864_v23 }
 0x509   : > { %8278 = vmatmul.msk.bf16.gmra.mxu2 %vm2303_vm3, %v9098_v52  ;;  %8302 = vmatmul.msk.bf16.gmra.mxu3 %vm2303_vm3, %v9110_v34  ;;  %v4993_v52 = vadd.f32 %v4943_v17, %v11813_v39  ;;  %v11968_v39 = vld [vmem:[%s12767_s5] ss:$0 sm:$0xff] }
 0x50a   : > { %v4438_v49 = vadd.f32 %v11697_v63, %v4140_v43 }
 0x50c   : > { %v4544_v28 = vpop.f32.mrf.mxu2  ;;  %v4690_v53 = vpop.f32.mrf.mxu3 }
 0x50d   : > { %v4573_v30 = vadd.f32 %v4544_v28, %v4437_v14  ;;  %v9101_v14 = vld [vmem:[#allocation2 + $0xf8] sm:$0xff]   ;;  %v8855_v28 = vld [vmem:[%s12769_s7 + $0x10] sm:$0xff] }
 0x50f   : > { %v11914_v4 = vadd.f32 %v4680_v27, %v4573_v30  ;;  %v4439_v27 = vadd.f32 %v11872_v48, %v4141_v21  ;;  %v4441_v48 = vadd.f32 %v4418_v1, %v4143_v31  ;;  %v4950_v15 = vpop.f32.mrf.mxu0  ;;  %v8854_v30 = vld [vmem:[%s12769_s7 + $0x8] sm:$0xff]  ;;  %v4995_v31 = vadd.f32 %v4948_v57, %v11825_v10 }
 0x514   : > { %v4546_v35 = vpop.f32.mrf.mxu2  ;;  %v4692_v44 = vpop.f32.mrf.mxu3 }
 0x515   : > { %v4574_v51 = vadd.f32 %v4546_v35, %v4438_v49  ;;  %v4994_v49 = vadd.f32 %v4945_v2, %v11818_v40 }
 0x517   : > { %v11919_v3 = vadd.f32 %v4682_v26, %v4574_v51  ;;  %v11927_v26 = vpop.f32.mrf.mxu1  ;;  %v11953_v32 = vpop.f32.mrf.mxu0  ;;  %v8853_v51 = vld [vmem:[%s12769_s7] sm:$0xff] }
 0x519   : > { %8279 = vmatmul.msk.bf16.gmra.mxu2 %vm2303_vm3, %v9099_v36  ;;  %8303 = vmatmul.msk.bf16.gmra.mxu3 %vm2303_vm3, %v9111_v25  ;;  %v5292_v25 = vadd.f32 %v5243_v8, %v4994_v49  ;;  %v8863_v8 = vld [vmem:[%s12769_s7 + $0x50] sm:$0xff] }
 0x51a   : > { %6214 = vmatpush.bf16.msra.mxu2 %v8863_v8 }
 0x51c   : > { %v4549_v50 = vpop.f32.mrf.mxu2  ;;  %v5513_v60 = vpop.f32.mrf.mxu3 }
 0x51d   : > { %v4575_v63 = vadd.f32 %v4549_v50, %v4439_v27  ;;  %v5650_v27 = vpop.permute.xlu0 %5649 }
 0x51f   : > { %v11925_v62 = vadd.f32 %v4685_v59, %v4575_v63  ;;  %v11935_v5 = vpop.f32.mrf.mxu1  ;;  %v11973_v44 = vpop.f32.mrf.mxu0 }
 0x524   : > { %v11929_v41 = vpop.f32.mrf.mxu2  ;;  %v5515_v0 = vpop.f32.mrf.mxu3 }
 0x527   : > { %v11956_v34 = vpop.f32.mrf.mxu1  ;;  %v11990_v23 = vpop.f32.mrf.mxu0 }
 0x529   : > { %8280 = vmatmul.msk.bf16.gmra.mxu2 %vm2303_vm3, %v9100_v47  ;;  %8304 = vmatmul.msk.bf16.gmra.mxu3 %vm2303_vm3, %v11669_v29  ;;  %v8856_v29 = vld [vmem:[%s12769_s7 + $0x18] sm:$0xff] }
 0x52a   : > { %6088 = vmatpush.bf16.msra.mxu1 %v8856_v29 }
 0x52c   : > { %v4554_v19 = vpop.f32.mrf.mxu2  ;;  %v5518_v7 = vpop.f32.mrf.mxu3 }
 0x52d   : > { %v4577_v59 = vadd.f32 %v4554_v19, %v4441_v48  ;;  %v9426_v48 = vld [vmem:[#allocation2 + $0x100] sm:$0xff]  }
 0x52e   : > { %6089 = vmatpush.bf16.msra.mxu1 %v8855_v28 }
 0x52f   : > { %v11937_v9 = vadd.f32 %v4690_v53, %v4577_v59  ;;  %v5291_v53 = vadd.f32 %v5241_v37, %v4993_v52  ;;  %v11979_v21 = vpop.f32.mrf.mxu1  ;;  %v5655_v59 = vpop.permute.xlu1 %5654 }
 0x532   : > { %6090 = vmatpush.bf16.msra.mxu1 %v8854_v30  ;;  %v5660_v30 = vpop.permute.xlu2 %5659 }
 0x534   : > { %v4556_v1 = vpop.f32.mrf.mxu2  ;;  %v11951_v16 = vpop.f32.mrf.mxu3 }
 0x536   : > { %6091 = vmatpush.bf16.msra.mxu1 %v8853_v51 }
 0x537   : > { %v11993_v10 = vpop.f32.mrf.mxu1 }
 0x539   : > { %8281 = vmatmul.msk.bf16.gmra.mxu2 %vm2303_vm3, %v9101_v14  ;;  %v4996_v14 = vadd.f32 %v4950_v15, %v11833_v22  ;;  %v8861_v22 = vld [vmem:[%s12769_s7 + $0x40] sm:$0xff] }
 0x53c   : > { %v5377_v55 = vpop.f32.mrf.mxu2  ;;  %v11971_v35 = vpop.f32.mrf.mxu3 }
 0x53d   : > { %v5427_v43 = vadd.f32 %v5377_v55, %v5291_v53  ;;  %v8862_v53 = vld [vmem:[%s12769_s7 + $0x48] sm:$0xff] }
 0x53e   : > { %6215 = vmatpush.bf16.msra.mxu2 %v8862_v53 }
 0x53f   : > { %v5563_v17 = vadd.f32 %v5513_v60, %v5427_v43  ;;  %v5294_v43 = vadd.f32 %v11935_v5, %v4996_v14  ;;  %v12012_v51 = vpop.f32.mrf.mxu1  ;;  %v4997_v5 = vadd.f32 %v11953_v32, %v11840_v54  ;;  %v8871_v54 = vld [vmem:[%s12769_s7 + $0x60] sm:$0xff]  ;;  %v5665_v32 = vpop.permute.xlu0 %5664 }
 0x541   : > { %v5587_v37 = vadd.f32 %v11968_v39, %v5563_v17  ;;  %v12010_v17 = vpop.f32.mrf.mxu0 }
 0x542   : > { %6216 = vmatpush.bf16.msra.mxu2 %v8861_v22 }
 0x543   : > { %v5607_v36 = vmax.f32 %v5587_v37, 0.0 }
 0x544   : > { %v5379_v50 = vpop.f32.mrf.mxu2  ;;  %v11988_v19 = vpop.f32.mrf.mxu3 }
 0x545   : > { %v5747_v60 = vmul.f32 %v5650_v27, %v5607_v36  ;;  %v5428_v40 = vadd.f32 %v5379_v50, %v5292_v25 }
 0x547   : > { %v5767_v2 = vpack.c.bf16 %v5747_v60, %v5747_v60  ;;  %v5564_v63 = vadd.f32 %v5515_v0, %v5428_v40  ;;  %v5293_v0 = vadd.f32 %v11927_v26, %v4995_v31  ;;  %v8873_v26 = vld [vmem:[%s12769_s7 + $0x70] sm:$0xff]  ;;  %v8872_v60 = vld [vmem:[%s12769_s7 + $0x68] sm:$0xff]  ;;  %v8878_v40 = vld [vmem:[%s12769_s7 + $0x98] sm:$0xff] }
 0x548   : > { %6405 = vmatpush.bf16.msra.mxu3 %v8873_v26  ;;  %6600 = vmatpush.bf16.msra.mxu0 %v8878_v40 }
 0x549   : > { %5788 = vst.msk [vmem:[#allocation3] sm:$0xf] %vm5787_vm5, %v5767_v2  ;;  %v5588_v47 = vadd.f32 %v11968_v39, %v5564_v63  ;;  %8282 = vmatmul.msk.bf16.gmra.mxu2 %vm2303_vm3, %v9426_v48  ;;  %v5295_v2 = vadd.f32 %v11956_v34, %v4997_v5  ;;  %v12032_v8 = vpop.f32.mrf.mxu0  ;;  %v4998_v34 = vadd.f32 %v11973_v44, %v11845_v13 }
 0x54a   : > { %v4999_v13 = vadd.f32 %v11990_v23, %v11852_v12 }
 0x54b   : > { %v5608_v46 = vmax.f32 %v5588_v47, 0.0 }
 0x54c   : > { %v5382_v57 = vpop.f32.mrf.mxu2  ;;  %6406 = vmatpush.bf16.msra.mxu3 %v8872_v60  ;;  %v5297_v12 = vadd.f32 %v11993_v10, %v4999_v13 }
 0x54d   : > { %v5748_v29 = vmul.f32 %v5655_v59, %v5608_v46  ;;  %v5429_v42 = vadd.f32 %v5382_v57, %v5293_v0  ;;  %v12037_v0 = vpop.f32.mrf.mxu1 }
 0x54f   : > { %v5768_v1 = vpack.c.bf16 %v5748_v29, %v5748_v29  ;;  %v5565_v52 = vadd.f32 %v5518_v7, %v5429_v42  ;;  %v12008_v7 = vpop.f32.mrf.mxu3  ;;  %v5296_v42 = vadd.f32 %v11979_v21, %v4998_v34  ;;  %v5000_v34 = vadd.f32 %v12010_v17, %v11857_v45 }
 0x550   : > { %6407 = vmatpush.bf16.msra.mxu3 %v8871_v54  ;;  %v9114_v44 = vld [vmem:[#allocation3] sm:$0xe] }
 0x551   : > { %5789 = vst.msk [vmem:[#allocation3 + $0x4] sm:$0xf] %vm5787_vm5, %v5768_v1  ;;  %v5589_v28 = vadd.f32 %v11968_v39, %v5565_v52  ;;  %v5670_v52 = vpop.permute.xlu1 %5669 }
 0x553   : > { %v5609_v55 = vmax.f32 %v5589_v28, 0.0 }
 0x554   : > { %v5384_v15 = vpop.f32.mrf.mxu2 }
 0x555   : > { %v5749_v49 = vmul.f32 %v5660_v30, %v5609_v55  ;;  %v5430_v37 = vadd.f32 %v5384_v15, %v5294_v43 }
 0x557   : > { %v5769_v36 = vpack.c.bf16 %v5749_v49, %v5749_v49  ;;  %v5566_v25 = vadd.f32 %v11951_v16, %v5430_v37  ;;  %v12030_v48 = vpop.f32.mrf.mxu3 }
 0x558   : > { %v9070_v27 = vld [vmem:[#allocation3] sm:$0xff]  }
 0x559   : > { %5790 = vst.msk [vmem:[#allocation3 + $0x8] sm:$0xf] %vm5787_vm5, %v5769_v36  ;;  %v5590_v50 = vadd.f32 %v11968_v39, %v5566_v25  ;;  %8377 = vmatmul.msk.bf16.vlgmr.msra.gmra.mxu1 %vm5969_vm6, %v9070_v27  ;;  %v9113_v1 = vld [vmem:[#allocation3] sm:$0xf0]  ;;  %v5885_v14 = vshll.u32 %v9070_v27, 16  ;;  %v12049_v25 = vpop.f32.mrf.mxu0 }
 0x55a   : > { %v9115_v30 = vor.u32 %v9114_v44, %v9113_v1  ;;  %v6272_v55 = vld [vmem:[#allocation3 + $0x4] sm:$0xc] }
 0x55b   : > { %v5610_v16 = vmax.f32 %v5590_v50, 0.0  ;;  %v5887_v49 = vrot.slane %v5885_v14, 1  ;;  %v6659_v36 = vld [vmem:[#allocation3 + $0x4] sm:$0x8]  ;;  %v6313_v23 = vunpack.c.l.b16 %v6272_v55  ;;  %v12054_v50 = vpop.f32.mrf.mxu1 }
 0x55c   : > { %v5387_v63 = vpop.f32.mrf.mxu2  ;;  %v6146_v60 = vrot.slane %v9115_v30, 1  ;;  %v5680_v30 = vpop.permute.xlu0 %5679 }
 0x55d   : > { %v5750_v31 = vmul.f32 %v5665_v32, %v5610_v16  ;;  %v5431_v47 = vadd.f32 %v5387_v63, %v5295_v2  ;;  %v6670_v32 = vunpack.c.l.b16 %v6659_v36  ;;  %v5675_v63 = vpop.permute.xlu2 %5674 }
 0x55f   : > { %v5770_v59 = vpack.c.bf16 %v5750_v31, %v5750_v31  ;;  %v5567_v46 = vadd.f32 %v11971_v35, %v5431_v47  ;;  %v12045_v37 = vpop.f32.mrf.mxu3 }
 0x560   : > { %v6273_v53 = vld [vmem:[#allocation3 + $0x8] sm:$0xf] }
 0x561   : > { %5791 = vst.msk [vmem:[#allocation3 + $0xc] sm:$0xf] %vm5787_vm5, %v5770_v59  ;;  %v5591_v57 = vadd.f32 %v11968_v39, %v5567_v46  ;;  %v6314_v15 = vunpack.c.l.b16 %v6273_v53  ;;  %v12082_v55 = vpop.f32.mrf.mxu0 }
 0x563   : > { %v5611_v29 = vmax.f32 %v5591_v57, 0.0  ;;  %v6329_v54 = vpack.c.b16 %v6314_v15, %v6313_v23  ;;  %v6671_v57 = vpack.c.b16 %v6314_v15, %v6670_v32 }
 0x564   : > { %v5389_v28 = vpop.f32.mrf.mxu2 }
 0x565   : > { %v5751_v26 = vmul.f32 %v5670_v52, %v5611_v29  ;;  %v5432_v35 = vadd.f32 %v5389_v28, %v5296_v42  ;;  %v6478_v52 = vshrl.u32 %v6329_v54, 16  ;;  %v6481_v14 = vshll.u32 %v6329_v54, 16 }
 0x566   : > { %v6337_v45 = vrot.slane %v6329_v54, 2  ;;  %v6673_v17 = vrot.slane %v6671_v57, 3 }
 0x567   : > { %v5771_v43 = vpack.c.bf16 %v5751_v26, %v5751_v26  ;;  %v5568_v22 = vadd.f32 %v11988_v19, %v5432_v35  ;;  %v5883_v19 = vshrl.u32 %v9070_v27, 16  ;;  %v5298_v26 = vadd.f32 %v12012_v51, %v5000_v34  ;;  %v12077_v35 = vpop.f32.mrf.mxu3  ;;  %v12085_v51 = vpop.f32.mrf.mxu1 }
 0x568   : > { %v12047_v21 = vld [vmem:[#allocation3 + $0x8] sm:$0xff]  ;;  %v6483_v15 = vrot.slane %v6481_v14, 3 }
 0x569   : > { %5792 = vst.msk [vmem:[#allocation3 + $0x10] sm:$0xf] %vm5787_vm5, %v5771_v43  ;;  %v5592_v5 = vadd.f32 %v11968_v39, %v5568_v22  ;;  %8378 = vmatmul.msk.bf16.gmra.mxu1 %vm5969_vm6, %v12047_v21  ;;  %v6147_v40 = vrot.slane %v12047_v21, 1  ;;  %v5890_v16 = vshll.u32 %v12047_v21, 16  ;;  %v5888_v31 = vor.u32 %v5887_v49, %v5883_v19 }
 0x56a   : > { %v6480_v22 = vrot.slane %v6478_v52, 2  ;;  %v5894_v34 = vshrl.u32 %v12047_v21, 16 }
 0x56b   : > { %v5612_v2 = vmax.f32 %v5592_v5, 0.0  ;;  %v6148_v47 = vsel %vm6145_vm7, %v6146_v60, %v6147_v40  ;;  %v12063_v27 = vrot.slane %v5890_v16, 1 }
 0x56c   : > { %v5392_v10 = vpop.f32.mrf.mxu2  ;;  %8409 = vmatmul.msk.bf16.vlgmr.msra.gmra.mxu2 %vm5969_vm6, %v6148_v47 }
 0x56d   : > { %v5752_v59 = vmul.f32 %v5675_v63, %v5612_v2  ;;  %v5433_v46 = vadd.f32 %v5392_v10, %v5297_v12  ;;  %v5893_v29 = vsel %vm5881_vm8, %v5888_v31, %v12063_v27  ;;  %v5001_v2 = vadd.f32 %v12032_v8, %v11867_v38  ;;  %v8877_v38 = vld [vmem:[%s12769_s7 + $0x90] sm:$0xff] }
 0x56e   : > { %8353 = vmatmul.msk.bf16.vlgmr.msrb.gmra.mxu0 %vm5969_vm6, %v5893_v29  ;;  %v6484_v63 = vor.u32 %v6483_v15, %v6480_v22  ;;  %v9433_v29 = vld [vmem:[#allocation3 + $0xc] sm:$0xe]  ;;  %v5002_v15 = vadd.f32 %v12049_v25, %v11874_v20 }
 0x56f   : > { %v5772_v42 = vpack.c.bf16 %v5752_v59, %v5752_v59  ;;  %v5569_v1 = vadd.f32 %v12008_v7, %v5433_v46  ;;  %v5299_v52 = vadd.f32 %v12037_v0, %v5001_v2  ;;  %6601 = vmatpush.bf16.msra.mxu0 %v8877_v38  ;;  %v12120_v14 = vpop.f32.mrf.mxu3  ;;  %v12129_v22 = vpop.f32.mrf.mxu1 }
 0x570   : > { %v12072_v28 = vld [vmem:[#allocation3 + $0xc] sm:$0xff] }
 0x571   : > { %5793 = vst.msk [vmem:[#allocation3 + $0x14] sm:$0xf] %vm5787_vm5, %v5772_v42  ;;  %v5593_v53 = vadd.f32 %v11968_v39, %v5569_v1  ;;  %v6338_v13 = vrot.slane %v12072_v28, 2  ;;  %v6674_v7 = vrot.slane %v12072_v28, 3  ;;  %v6486_v44 = vshrl.u32 %v12072_v28, 16  ;;  %v12103_v47 = vld [vmem:[#allocation3 + $0xc] sm:$0xff]   ;;  %v5685_v42 = vpop.permute.xlu1 %5684 }
 0x572   : > { %v6489_v49 = vshll.u32 %v12072_v28, 16  ;;  %v9432_v59 = vld [vmem:[#allocation3 + $0xc] sm:$0xf0]  ;;  %v5003_v28 = vadd.f32 %v12082_v55, %v11881_v6 }
 0x573   : > { %v5613_v43 = vmax.f32 %v5593_v53, 0.0  ;;  %v6339_v5 = vsel %vm2654_vm1, %v6337_v45, %v6338_v13  ;;  %v12093_v12 = vsel %vm6672_vm9, %v6673_v17, %v6674_v7  ;;  %v6488_v23 = vrot.slane %v6486_v44, 2  ;;  %v4970_v44 = vpop.f32.mrf.mxu0 }
 0x574   : > { %v5394_v36 = vpop.f32.mrf.mxu2  ;;  %8465 = vmatmul.msk.bf16.vlgmr.msra.gmra.mxu3 %vm5969_vm6, %v6339_v5  ;;  %v6491_v16 = vrot.slane %v6489_v49, 3  ;;  %v5896_v45 = vor.u32 %v5894_v34, %v12063_v27 }
 0x575   : > { %v5753_v19 = vmul.f32 %v5680_v30, %v5613_v43  ;;  %v5434_v60 = vadd.f32 %v5394_v36, %v5298_v26 }
 0x576   : > { %v12099_v31 = vor.u32 %v6491_v16, %v6488_v23  ;;  %v5300_v23 = vadd.f32 %v12054_v50, %v5002_v15 }
 0x577   : > { %v5773_v54 = vpack.c.bf16 %v5753_v19, %v5753_v19  ;;  %v5570_v32 = vadd.f32 %v12030_v48, %v5434_v60 }
 0x578   : > { %v12101_v10 = vld [vmem:[#allocation3 + $0x10] sm:$0xff]  ;;  %v12112_v8 = vsel %vm6476_vm10, %v6484_v63, %v12099_v31 }
 0x579   : > { %5794 = vst.msk [vmem:[#allocation3 + $0x18] sm:$0xf] %vm5787_vm5, %v5773_v54  ;;  %v5594_v46 = vadd.f32 %v11968_v39, %v5570_v32  ;;  %8379 = vmatmul.msk.bf16.gmra.mxu1 %vm5969_vm6, %v12101_v10  ;;  %v6149_v48 = vrot.slane %v12101_v10, 1  ;;  %v5898_v57 = vshll.u32 %v12101_v10, 16  ;;  %v5690_v54 = vpop.permute.xlu2 %5689  ;;  %v5902_v6 = vshrl.u32 %v12101_v10, 16 }
 0x57b   : > { %v5614_v1 = vmax.f32 %v5594_v46, 0.0  ;;  %v6150_v26 = vsel %vm6145_vm7, %v6147_v40, %v6149_v48  ;;  %v5900_v17 = vrot.slane %v5898_v57, 1  ;;  %v9434_v40 = vor.u32 %v9433_v29, %v9432_v59  ;;  %v5540_v29 = vpop.f32.mrf.mxu3 }
 0x57c   : > { %v5397_v53 = vpop.f32.mrf.mxu2  ;;  %8410 = vmatmul.msk.bf16.gmra.mxu2 %vm5969_vm6, %v6150_v26 }
 0x57d   : > { %v5754_v30 = vmul.f32 %v5685_v42, %v5614_v1  ;;  %v5435_v43 = vadd.f32 %v5397_v53, %v5299_v52  ;;  %v5901_v0 = vsel %vm5881_vm8, %v5896_v45, %v5900_v17  ;;  %v7224_v16 = vrot.slane %v9434_v40, 1  ;;  %v12169_v52 = vpop.f32.mrf.mxu1 }
 0x57e   : > { %8354 = vmatmul.msk.bf16.gmra.mxu0 %vm5969_vm6, %v5901_v0  ;;  %v5695_v0 = vpop.permute.xlu0 %5694 }
 0x57f   : > { %v5774_v49 = vpack.c.bf16 %v5754_v30, %v5754_v30  ;;  %v5571_v21 = vadd.f32 %v12045_v37, %v5435_v43  ;;  %v5301_v43 = vadd.f32 %v12085_v51, %v5003_v28  ;;  %v5004_v51 = vadd.f32 %v4970_v44, %v11890_v33 }
 0x580   : > { %v12136_v27 = vld [vmem:[#allocation3 + $0x14] sm:$0xff] }
 0x581   : > { %v12138_v36 = vld [vmem:[#allocation3 + $0x14] sm:$0xff]  ;;  %5795 = vst.msk [vmem:[#allocation3 + $0x1c] sm:$0xf] %vm5787_vm5, %v5774_v49  ;;  %v5595_v5 = vadd.f32 %v11968_v39, %v5571_v21  ;;  %v6340_v19 = vrot.slane %v12136_v27, 2  ;;  %v6676_v20 = vrot.slane %v12136_v27, 3  ;;  %v6495_v25 = vshrl.u32 %v12136_v27, 16 }
 0x582   : > { %v6498_v60 = vshll.u32 %v12136_v27, 16  ;;  %v7225_v2 = vrot.slane %v12138_v36, 1  ;;  %v5904_v49 = vor.u32 %v5902_v6, %v5900_v17  ;;  %v5302_v33 = vadd.f32 %v12129_v22, %v5004_v51 }
 0x583   : > { %v5615_v37 = vmax.f32 %v5595_v5, 0.0  ;;  %v6341_v50 = vsel %vm2654_vm1, %v6338_v13, %v6340_v19  ;;  %v12158_v63 = vsel %vm6672_vm9, %v6674_v7, %v6676_v20  ;;  %v6497_v59 = vrot.slane %v6495_v25, 2  ;;  %v4973_v13 = vpop.f32.mrf.mxu0 }
 0x584   : > { %v5399_v32 = vpop.f32.mrf.mxu2  ;;  %8466 = vmatmul.msk.bf16.gmra.mxu3 %vm5969_vm6, %v6341_v50  ;;  %v6500_v34 = vrot.slane %v6498_v60, 3  ;;  %v12164_v57 = vsel %vm6145_vm7, %v7224_v16, %v7225_v2  ;;  %v5543_v60 = vpop.f32.mrf.mxu3  ;;  %v5005_v27 = vadd.f32 %v4973_v13, %v11897_v24 }
 0x585   : > { %v5755_v46 = vmul.f32 %v5690_v54, %v5615_v37  ;;  %v5436_v38 = vadd.f32 %v5399_v32, %v5300_v23  ;;  %v5273_v54 = vpop.f32.mrf.mxu1 }
 0x586   : > { %v6501_v7 = vor.u32 %v6500_v34, %v6497_v59 }
 0x587   : > { %v5775_v42 = vpack.c.bf16 %v5755_v46, %v5755_v46  ;;  %v5572_v1 = vadd.f32 %v12077_v35, %v5436_v38  ;;  %v5700_v38 = vpop.permute.xlu1 %5699 }
 0x588   : > { %v12171_v53 = vld [vmem:[#allocation3 + $0x18] sm:$0xff]  ;;  %v12177_v45 = vsel %vm6476_vm10, %v12099_v31, %v6501_v7 }
 0x589   : > { %5796 = vst.msk [vmem:[#allocation3 + $0x20] sm:$0xf] %vm5787_vm5, %v5775_v42  ;;  %v5596_v26 = vadd.f32 %v11968_v39, %v5572_v1  ;;  %8380 = vmatmul.msk.bf16.gmra.mxu1 %vm5969_vm6, %v12171_v53  ;;  %v6151_v35 = vrot.slane %v12171_v53, 1  ;;  %v5906_v55 = vshll.u32 %v12171_v53, 16 }
 0x58b   : > { %v5616_v30 = vmax.f32 %v5596_v26, 0.0  ;;  %v6152_v31 = vsel %vm6145_vm7, %v6149_v48, %v6151_v35  ;;  %v5908_v21 = vrot.slane %v5906_v55, 1  ;;  %v4975_v48 = vpop.f32.mrf.mxu0 }
 0x58c   : > { %v5402_v15 = vpop.f32.mrf.mxu2  ;;  %8411 = vmatmul.msk.bf16.gmra.mxu2 %vm5969_vm6, %v6152_v31 }
 0x58d   : > { %v5756_v40 = vmul.f32 %v5695_v0, %v5616_v30  ;;  %v5437_v5 = vadd.f32 %v5402_v15, %v5301_v43  ;;  %v5909_v23 = vsel %vm5881_vm8, %v5904_v49, %v5908_v21  ;;  %v8876_v15 = vld [vmem:[%s12769_s7 + $0x88] sm:$0xff]  ;;  %v5705_v49 = vpop.permute.xlu2 %5704 }
 0x58e   : > { %8355 = vmatmul.msk.bf16.gmra.mxu0 %vm5969_vm6, %v5909_v23  ;;  %v5303_v23 = vadd.f32 %v12169_v52, %v5005_v27  ;;  %v5006_v52 = vadd.f32 %v4975_v48, %v11907_v11 }
 0x58f   : > { %v5776_v25 = vpack.c.bf16 %v5756_v40, %v5756_v40  ;;  %v5573_v37 = vadd.f32 %v12120_v14, %v5437_v5  ;;  %6602 = vmatpush.bf16.msra.mxu0 %v8876_v15 }
 0x590   : > { %v12195_v16 = vld [vmem:[#allocation3 + $0x1c] sm:$0xff] }
 0x591   : > { %v12197_v10 = vld [vmem:[#allocation3 + $0x1c] sm:$0xff]  ;;  %5797 = vst.msk [vmem:[#allocation3 + $0x24] sm:$0xf] %vm5787_vm5, %v5776_v25  ;;  %v5597_v17 = vadd.f32 %v11968_v39, %v5573_v37  ;;  %v6342_v32 = vrot.slane %v12195_v16, 2  ;;  %v6678_v50 = vrot.slane %v12195_v16, 3  ;;  %v6504_v14 = vshrl.u32 %v12195_v16, 16  ;;  %v5276_v25 = vpop.f32.mrf.mxu1 }
 0x592   : > { %v6507_v44 = vshll.u32 %v12195_v16, 16  ;;  %v7227_v46 = vrot.slane %v12197_v10, 1 }
 0x593   : > { %v5617_v59 = vmax.f32 %v5597_v17, 0.0  ;;  %v6343_v42 = vsel %vm2654_vm1, %v6340_v19, %v6342_v32  ;;  %v12217_v1 = vsel %vm6672_vm9, %v6676_v20, %v6678_v50  ;;  %v6506_v22 = vrot.slane %v6504_v14, 2  ;;  %v4978_v40 = vpop.f32.mrf.mxu0 }
 0x594   : > { %v5404_v34 = vpop.f32.mrf.mxu2  ;;  %8467 = vmatmul.msk.bf16.gmra.mxu3 %vm5969_vm6, %v6343_v42  ;;  %v6509_v6 = vrot.slane %v6507_v44, 3  ;;  %v12225_v55 = vsel %vm6145_vm7, %v7225_v2, %v7227_v46  ;;  %v5545_v2 = vpop.f32.mrf.mxu3 }
 0x595   : > { %v5757_v28 = vmul.f32 %v5700_v38, %v5617_v59  ;;  %v5438_v26 = vadd.f32 %v5404_v34, %v5302_v33 }
 0x596   : > { %v6510_v43 = vor.u32 %v6509_v6, %v6506_v22 }
 0x597   : > { %v5777_v19 = vpack.c.bf16 %v5757_v28, %v5757_v28  ;;  %v5574_v30 = vadd.f32 %v5540_v29, %v5438_v26  ;;  %v5910_v29 = vshrl.u32 %v12171_v53, 16  ;;  %v5710_v28 = vpop.permute.xlu0 %5709  ;;  %v5304_v26 = vadd.f32 %v5273_v54, %v5006_v52 }
 0x598   : > { %v12228_v20 = vld [vmem:[#allocation3 + $0x20] sm:$0xff]  ;;  %v12236_v31 = vsel %vm6476_vm10, %v6501_v7, %v6510_v43 }
 0x599   : > { %5798 = vst.msk [vmem:[#allocation3 + $0x28] sm:$0xf] %vm5787_vm5, %v5777_v19  ;;  %v5598_v0 = vadd.f32 %v11968_v39, %v5574_v30  ;;  %8381 = vmatmul.msk.bf16.gmra.mxu1 %vm5969_vm6, %v12228_v20  ;;  %v6153_v24 = vrot.slane %v12228_v20, 1  ;;  %v5914_v13 = vshll.u32 %v12228_v20, 16  ;;  %v5912_v51 = vor.u32 %v5910_v29, %v5908_v21 }
 0x59b   : > { %v5618_v5 = vmax.f32 %v5598_v0, 0.0  ;;  %v6154_v7 = vsel %vm6145_vm7, %v6151_v35, %v6153_v24  ;;  %v5916_v17 = vrot.slane %v5914_v13, 1  ;;  %v4980_v0 = vpop.f32.mrf.mxu0 }
 0x59c   : > { %v5407_v37 = vpop.f32.mrf.mxu2  ;;  %8412 = vmatmul.msk.bf16.gmra.mxu2 %vm5969_vm6, %v6154_v7  ;;  %v5548_v48 = vpop.f32.mrf.mxu3 }
 0x59d   : > { %v5758_v14 = vmul.f32 %v5705_v49, %v5618_v5  ;;  %v5439_v59 = vadd.f32 %v5407_v37, %v5303_v23  ;;  %v5917_v33 = vsel %vm5881_vm8, %v5912_v51, %v5916_v17  ;;  %v5278_v49 = vpop.f32.mrf.mxu1 }
 0x59e   : > { %8356 = vmatmul.msk.bf16.gmra.mxu0 %vm5969_vm6, %v5917_v33 }
 0x59f   : > { %v5778_v44 = vpack.c.bf16 %v5758_v14, %v5758_v14  ;;  %v5575_v38 = vadd.f32 %v5543_v60, %v5439_v59  ;;  %v5715_v59 = vpop.permute.xlu1 %5714 }
 0x5a0   : > { %v12251_v34 = vld [vmem:[#allocation3 + $0x24] sm:$0xff] }
 0x5a1   : > { %v12253_v42 = vld [vmem:[#allocation3 + $0x24] sm:$0xff]  ;;  %5799 = vst.msk [vmem:[#allocation3 + $0x2c] sm:$0xf] %vm5787_vm5, %v5778_v44  ;;  %v5599_v53 = vadd.f32 %v11968_v39, %v5575_v38  ;;  %v6344_v35 = vrot.slane %v12251_v34, 2  ;;  %v6680_v21 = vrot.slane %v12251_v34, 3  ;;  %v6513_v22 = vshrl.u32 %v12251_v34, 16 }
 0x5a2   : > { %v6516_v6 = vshll.u32 %v12251_v34, 16  ;;  %v7229_v11 = vrot.slane %v12253_v42, 1 }
 0x5a3   : > { %v5619_v60 = vmax.f32 %v5599_v53, 0.0  ;;  %v6345_v30 = vsel %vm2654_vm1, %v6342_v32, %v6344_v35  ;;  %v12272_v27 = vsel %vm6672_vm9, %v6678_v50, %v6680_v21  ;;  %v6515_v54 = vrot.slane %v6513_v22, 2 }
 0x5a4   : > { %v5409_v19 = vpop.f32.mrf.mxu2  ;;  %8468 = vmatmul.msk.bf16.gmra.mxu3 %vm5969_vm6, %v6345_v30  ;;  %v6518_v13 = vrot.slane %v6516_v6, 3  ;;  %v12280_v32 = vsel %vm6145_vm7, %v7227_v46, %v7229_v11  ;;  %v5007_v50 = vadd.f32 %v4978_v40, %v11914_v4  ;;  %v5550_v22 = vpop.f32.mrf.mxu3 }
 0x5a5   : > { %v5759_v15 = vmul.f32 %v5710_v28, %v5619_v60  ;;  %v5440_v29 = vadd.f32 %v5409_v19, %v5304_v26  ;;  %v4983_v28 = vpop.f32.mrf.mxu0  ;;  %v5008_v26 = vadd.f32 %v4980_v0, %v11919_v3  ;;  %v5281_v6 = vpop.f32.mrf.mxu1 }
 0x5a6   : > { %v12283_v23 = vor.u32 %v6518_v13, %v6515_v54  ;;  %v5305_v14 = vadd.f32 %v5276_v25, %v5007_v50  ;;  %v5720_v13 = vpop.permute.xlu2 %5719 }
 0x5a7   : > { %v5779_v5 = vpack.c.bf16 %v5759_v15, %v5759_v15  ;;  %v5576_v16 = vadd.f32 %v5545_v2, %v5440_v29  ;;  %v5918_v2 = vshrl.u32 %v12228_v20, 16 }
 0x5a8   : > { %v12285_v37 = vld [vmem:[#allocation3 + $0x28] sm:$0xff]  ;;  %v12291_v51 = vsel %vm6476_vm10, %v6510_v43, %v12283_v23 }
 0x5a9   : > { %5800 = vst.msk [vmem:[#allocation3 + $0x30] sm:$0xf] %vm5787_vm5, %v5779_v5  ;;  %v5600_v7 = vadd.f32 %v11968_v39, %v5576_v16  ;;  %8382 = vmatmul.msk.bf16.gmra.mxu1 %vm5969_vm6, %v12285_v37  ;;  %v6155_v46 = vrot.slane %v12285_v37, 1  ;;  %v5922_v4 = vshll.u32 %v12285_v37, 16  ;;  %v5920_v38 = vor.u32 %v5918_v2, %v5916_v17 }
 0x5ab   : > { %v5620_v40 = vmax.f32 %v5600_v7, 0.0  ;;  %v6156_v44 = vsel %vm6145_vm7, %v6153_v24, %v6155_v46  ;;  %v12301_v43 = vrot.slane %v5922_v4, 1  ;;  %v4142_v24 = vadd.f32 %v11885_v56, %v11800_v18 }
 0x5ac   : > { %v5412_v33 = vpop.f32.mrf.mxu2  ;;  %8413 = vmatmul.msk.bf16.gmra.mxu2 %vm5969_vm6, %v6156_v44  ;;  %v5306_v18 = vadd.f32 %v5278_v49, %v5008_v26 }
 0x5ad   : > { %v5760_v52 = vmul.f32 %v5715_v59, %v5620_v40  ;;  %v5441_v53 = vadd.f32 %v5412_v33, %v5305_v14  ;;  %v5925_v20 = vsel %vm5881_vm8, %v5920_v38, %v12301_v43  ;;  %v4440_v5 = vadd.f32 %v11887_v58, %v4142_v24  ;;  %v5553_v33 = vpop.f32.mrf.mxu3  ;;  %v4985_v38 = vpop.f32.mrf.mxu0 }
 0x5ae   : > { %8357 = vmatmul.msk.bf16.gmra.mxu0 %vm5969_vm6, %v5925_v20  ;;  %v5926_v20 = vshrl.u32 %v12285_v37, 16  ;;  %v5725_v24 = vpop.permute.xlu0 %5724 }
 0x5af   : > { %v5780_v60 = vpack.c.bf16 %v5760_v52, %v5760_v52  ;;  %v5577_v25 = vadd.f32 %v5548_v48, %v5441_v53  ;;  %v8882_v48 = vld [vmem:[%s12769_s7 + $0xb8] sm:$0xff]  ;;  %v4576_v34 = vadd.f32 %v11929_v41, %v4440_v5  ;;  %v5283_v53 = vpop.f32.mrf.mxu1 }
 0x5b0   : > { %v12310_v17 = vld [vmem:[#allocation3 + $0x2c] sm:$0xff]  ;;  %6740 = vmatpush.bf16.msrb.mxu1 %v8882_v48 }
 0x5b1   : > { %v12312_v19 = vld [vmem:[#allocation3 + $0x2c] sm:$0xff]  ;;  %5801 = vst.msk [vmem:[#allocation3 + $0x34] sm:$0xf] %vm5787_vm5, %v5780_v60  ;;  %v5601_v30 = vadd.f32 %v11968_v39, %v5577_v25  ;;  %v6346_v54 = vrot.slane %v12310_v17, 2  ;;  %v6682_v3 = vrot.slane %v12310_v17, 3  ;;  %v6522_v0 = vshrl.u32 %v12310_v17, 16 }
 0x5b2   : > { %v6525_v56 = vshll.u32 %v12310_v17, 16  ;;  %v7231_v29 = vrot.slane %v12312_v19, 1  ;;  %v4712_v60 = vadd.f32 %v11905_v61, %v4576_v34 }
 0x5b3   : > { %v5621_v15 = vmax.f32 %v5601_v30, 0.0  ;;  %v6347_v50 = vsel %vm2654_vm1, %v6344_v35, %v6346_v54  ;;  %v12335_v49 = vsel %vm6672_vm9, %v6680_v21, %v6682_v3  ;;  %v6524_v7 = vrot.slane %v6522_v0, 2 }
 0x5b4   : > { %v5414_v16 = vpop.f32.mrf.mxu2  ;;  %8469 = vmatmul.msk.bf16.gmra.mxu3 %vm5969_vm6, %v6347_v50  ;;  %v6527_v58 = vrot.slane %v6525_v56, 3  ;;  %v12343_v40 = vsel %vm6145_vm7, %v7229_v11, %v7231_v29  ;;  %v5009_v35 = vadd.f32 %v4983_v28, %v11925_v62  ;;  %v8881_v11 = vld [vmem:[%s12769_s7 + $0xb0] sm:$0xff]  ;;  %v8875_v62 = vld [vmem:[%s12769_s7 + $0x80] sm:$0xff]  ;;  %v5928_v0 = vor.u32 %v5926_v20, %v12301_v43  ;;  %v8893_v50 = vld [vmem:[%s12769_s7 + $0xd8] sm:$0xff] }
 0x5b5   : > { %v5761_v2 = vmul.f32 %v5720_v13, %v5621_v15  ;;  %v5442_v4 = vadd.f32 %v5414_v16, %v5306_v18  ;;  %6741 = vmatpush.bf16.msrb.mxu1 %v8881_v11  ;;  %6603 = vmatpush.bf16.msra.mxu0 %v8875_v62  ;;  %v5010_v5 = vadd.f32 %v4985_v38, %v4712_v60  ;;  %v8879_v16 = vld [vmem:[%s12769_s7 + $0xa0] sm:$0xff]  ;;  %v4988_v34 = vpop.f32.mrf.mxu0 }
 0x5b6   : > { %v12347_v59 = vor.u32 %v6527_v58, %v6524_v7  ;;  %v5307_v26 = vadd.f32 %v5281_v6, %v5009_v35  ;;  %v5555_v7 = vpop.f32.mrf.mxu3  ;;  %v5730_v35 = vpop.permute.xlu1 %5729  ;;  %6913 = vmatpush.bf16.msrb.mxu2 %v8893_v50  ;;  %v5011_v17 = vadd.f32 %v4988_v34, %v11937_v9 }
 0x5b7   : > { %v5781_v14 = vpack.c.bf16 %v5761_v2, %v5761_v2  ;;  %v5578_v21 = vadd.f32 %v5550_v22, %v5442_v4  ;;  %v5286_v11 = vpop.f32.mrf.mxu1  ;;  %v5735_v50 = vpop.permute.xlu2 %5734 }
 0x5b8   : > { %v12349_v44 = vld [vmem:[#allocation3 + $0x30] sm:$0xff]  ;;  %v12362_v41 = vsel %vm6476_vm10, %v12283_v23, %v12347_v59  ;;  %v8880_v23 = vld [vmem:[%s12769_s7 + $0xa8] sm:$0xff] }
 0x5b9   : > { %5802 = vst.msk [vmem:[#allocation3 + $0x38] sm:$0xf] %vm5787_vm5, %v5781_v14  ;;  %v5602_v52 = vadd.f32 %v11968_v39, %v5578_v21  ;;  %8383 = vmatmul.msk.bf16.gmra.mxu1 %vm5969_vm6, %v12349_v44  ;;  %v6157_v22 = vrot.slane %v12349_v44, 1  ;;  %v5930_v28 = vshll.u32 %v12349_v44, 16  ;;  %v5308_v21 = vadd.f32 %v5283_v53, %v5010_v5 }
 0x5ba   : > { %6742 = vmatpush.bf16.msrb.mxu1 %v8880_v23 }
 0x5bb   : > { %v5622_v25 = vmax.f32 %v5602_v52, 0.0  ;;  %v6158_v48 = vsel %vm6145_vm7, %v6155_v46, %v6157_v22  ;;  %v12379_v15 = vrot.slane %v5930_v28, 1 }
 0x5bc   : > { %v5417_v30 = vpop.f32.mrf.mxu2  ;;  %8414 = vmatmul.msk.bf16.gmra.mxu2 %vm5969_vm6, %v6158_v48 }
 0x5bd   : > { %v5762_v61 = vmul.f32 %v5725_v24, %v5622_v25  ;;  %v5443_v6 = vadd.f32 %v5417_v30, %v5307_v26  ;;  %v5933_v18 = vsel %vm5881_vm8, %v5928_v0, %v12379_v15  ;;  %v8891_v0 = vld [vmem:[%s12769_s7 + $0xc8] sm:$0xff] }
 0x5be   : > { %8358 = vmatmul.msk.bf16.gmra.mxu0 %vm5969_vm6, %v5933_v18  ;;  %6743 = vmatpush.bf16.msrb.mxu1 %v8879_v16  ;;  %v8904_v18 = vld [vmem:[%s12769_s7 + $0xf8] sm:$0xff]  ;;  %v5558_v9 = vpop.f32.mrf.mxu3  ;;  %v5309_v16 = vadd.f32 %v5286_v11, %v5011_v17 }
 0x5bf   : > { %v5782_v56 = vpack.c.bf16 %v5762_v61, %v5762_v61  ;;  %v5579_v13 = vadd.f32 %v5553_v33, %v5443_v6  ;;  %v8892_v33 = vld [vmem:[%s12769_s7 + $0xd0] sm:$0xff]  ;;  %7152 = vmatpush.bf16.msrb.mxu3 %v8904_v18  ;;  %v5288_v11 = vpop.f32.mrf.mxu1 }
 0x5c0   : > { %v12385_v37 = vld [vmem:[#allocation3 + $0x34] sm:$0xff]  ;;  %6914 = vmatpush.bf16.msrb.mxu2 %v8892_v33  ;;  %v8890_v33 = vld [vmem:[%s12769_s7 + $0xc0] sm:$0xff] }
 0x5c1   : > { %v12387_v46 = vld [vmem:[#allocation3 + $0x34] sm:$0xff]  ;;  %5803 = vst.msk [vmem:[#allocation3 + $0x3c] sm:$0xf] %vm5787_vm5, %v5782_v56  ;;  %v5603_v43 = vadd.f32 %v11968_v39, %v5579_v13  ;;  %v6348_v2 = vrot.slane %v12385_v37, 2  ;;  %v6684_v4 = vrot.slane %v12385_v37, 3  ;;  %v6531_v58 = vshrl.u32 %v12385_v37, 16 }
 0x5c2   : > { %v6534_v38 = vshll.u32 %v12385_v37, 16  ;;  %v7233_v52 = vrot.slane %v12387_v46, 1 }
 0x5c3   : > { %v5623_v14 = vmax.f32 %v5603_v43, 0.0  ;;  %v6349_v20 = vsel %vm2654_vm1, %v6346_v54, %v6348_v2  ;;  %v12415_v53 = vsel %vm6672_vm9, %v6682_v3, %v6684_v4  ;;  %v6533_v28 = vrot.slane %v6531_v58, 2 }
 0x5c4   : > { %v5419_v62 = vpop.f32.mrf.mxu2  ;;  %8470 = vmatmul.msk.bf16.gmra.mxu3 %vm5969_vm6, %v6349_v20  ;;  %v6536_v26 = vrot.slane %v6534_v38, 3  ;;  %v12423_v23 = vsel %vm6145_vm7, %v7231_v29, %v7233_v52  ;;  %6915 = vmatpush.bf16.msrb.mxu2 %v8891_v0  ;;  %v5934_v58 = vshrl.u32 %v12349_v44, 16  ;;  %v8903_v38 = vld [vmem:[%s12769_s7 + $0xf0] sm:$0xff]  ;;  %v8902_v44 = vld [vmem:[%s12769_s7 + $0xe8] sm:$0xff] }
 0x5c5   : > { %v5763_v60 = vmul.f32 %v5730_v35, %v5623_v14  ;;  %v5444_v25 = vadd.f32 %v5419_v62, %v5308_v21  ;;  %v4990_v35 = vpop.f32.mrf.mxu0  ;;  %7153 = vmatpush.bf16.msrb.mxu3 %v8903_v38 }
 0x5c6   : > { %v12426_v3 = vor.u32 %v6536_v26, %v6533_v28  ;;  %v5936_v62 = vor.u32 %v5934_v58, %v12379_v15 }
 0x5c7   : > { %v5783_v54 = vpack.c.bf16 %v5763_v60, %v5763_v60  ;;  %v5580_v24 = vadd.f32 %v5555_v7, %v5444_v25 }
 0x5c8   : > { %v5822_v30 = vld [vmem:[#allocation3 + $0x38] sm:$0xff]   ;;  %v12439_v56 = vsel %vm6476_vm10, %v12347_v59, %v12426_v3  ;;  %6916 = vmatpush.bf16.msrb.mxu2 %v8890_v33 }
 0x5c9   : > { %v5831_v48 = vld [vmem:[#allocation3 + $0x3c] sm:$0x1]  ;;  %5804 = vst.msk [vmem:[#allocation3 + $0x40] sm:$0xf] %vm5787_vm5, %v5783_v54  ;;  %v5604_v61 = vadd.f32 %v11968_v39, %v5580_v24  ;;  %v5871_v6 = vunpack.c.l.b16 %v5822_v30  ;;  %7154 = vmatpush.bf16.msrb.mxu3 %v8902_v44 }
 0x5ca   : > { %v5872_v29 = vunpack.c.l.b16 %v5831_v48  ;;  %v6327_v48 = vunpack.c.h.b16 %v5822_v30  ;;  %v5560_v30 = vpop.f32.mrf.mxu3 }
 0x5cb   : > { %v5624_v13 = vmax.f32 %v5604_v61, 0.0  ;;  %v6042_v43 = vpack.c.b16 %v5871_v6, %v5871_v6 }
 0x5cc   : > { %v12441_v5 = vpack.c.b16 %v5872_v29, %v5871_v6  ;;  %v5422_v7 = vpop.f32.mrf.mxu2  ;;  %v5740_v29 = vpop.permute.xlu0 %5739 }
 0x5cd   : > { %v5764_v34 = vmul.f32 %v5735_v50, %v5624_v13  ;;  %8384 = vmatmul.msk.bf16.gmra.mxu1 %vm5969_vm6, %v6042_v43  ;;  %v5445_v14 = vadd.f32 %v5422_v7, %v5309_v16  ;;  %v8901_v7 = vld [vmem:[%s12769_s7 + $0xe0] sm:$0xff] }
 0x5ce   : > { %v6159_v21 = vrot.slane %v12441_v5, 1  ;;  %v5938_v59 = vshll.u32 %v12441_v5, 16  ;;  %7155 = vmatpush.bf16.msrb.mxu3 %v8901_v7  ;;  %v5942_v37 = vshrl.u32 %v12441_v5, 16 }
 0x5cf   : > { %v5784_v20 = vpack.c.bf16 %v5764_v34, %v5764_v34  ;;  %v5581_v28 = vadd.f32 %v5558_v9, %v5445_v14 }
 0x5d0   : > { %v6160_v60 = vsel %vm6145_vm7, %v6157_v22, %v6159_v21  ;;  %v5940_v25 = vrot.slane %v5938_v59, 1  ;;  %v6287_v26 = vld [vmem:[#allocation3 + $0x40] sm:$0x3]  ;;  %v8908_v22 = vld [vmem:[%s12769_s7 + $0x118] sm:$0xff] }
 0x5d1   : > { %8415 = vmatmul.msk.bf16.gmra.mxu2 %vm5969_vm6, %v6160_v60  ;;  %v6463_v54 = vld [vmem:[#allocation3 + $0x40] sm:$0x7]  ;;  %5805 = vst.msk [vmem:[#allocation3 + $0x44] sm:$0xf] %vm5787_vm5, %v5784_v20  ;;  %v5605_v17 = vadd.f32 %v11968_v39, %v5581_v28  ;;  %v6328_v0 = vunpack.c.l.b16 %v6287_v26  ;;  %7291 = vmatpush.bf16.msrb.mxu0 %v8908_v22  ;;  %v5745_v20 = vpop.permute.xlu1 %5744 }
 0x5d2   : > { %v12458_v24 = vld [vmem:[#allocation3 + $0x3c] sm:$0xff]  ;;  %v5941_v15 = vsel %vm5881_vm8, %v5936_v62, %v5940_v25  ;;  %v6474_v61 = vunpack.c.l.b16 %v6463_v54 }
 0x5d3   : > { %8359 = vmatmul.msk.bf16.gmra.mxu0 %vm5969_vm6, %v5941_v15  ;;  %v7235_v6 = vrot.slane %v12458_v24, 1  ;;  %v5625_v18 = vmax.f32 %v5605_v17, 0.0  ;;  %v6336_v39 = vpack.c.b16 %v6328_v0, %v6327_v48  ;;  %v8883_v15 = vld [vmem:[#allocation3 + $0xc] sm:$0xff]  ;;  %v7045_v0 = vshll.u32 %v12138_v36, 16 }
 0x5d4   : > { %v5424_v9 = vpop.f32.mrf.mxu2  ;;  %v12471_v13 = vpack.c.b16 %v6474_v61, %v6327_v48 }
 0x5d5   : > { %v12476_v43 = vsel %vm6145_vm7, %v7233_v52, %v7235_v6  ;;  %v5765_v16 = vmul.f32 %v5740_v29, %v5625_v18  ;;  %v6350_v50 = vrot.slane %v6336_v39, 2  ;;  %v7047_v29 = vrot.slane %v7045_v0, 1 }
 0x5d6   : > { %v6093_v58 = vpop.f32.mrf.mxu1  ;;  %v6686_v35 = vrot.slane %v12471_v13, 3  ;;  %v6540_v34 = vshrl.u32 %v12471_v13, 16  ;;  %v6543_v14 = vshll.u32 %v12471_v13, 16 }
 0x5d7   : > { %v5785_v59 = vpack.c.bf16 %v5765_v16, %v5765_v16  ;;  %v6351_v33 = vsel %vm2654_vm1, %v6348_v2, %v6350_v50 }
 0x5d8   : > { %8471 = vmatmul.msk.bf16.gmra.mxu3 %vm5969_vm6, %v6351_v33  ;;  %v12493_v52 = vsel %vm6672_vm9, %v6684_v4, %v6686_v35  ;;  %v6542_v38 = vrot.slane %v6540_v34, 2  ;;  %v6545_v11 = vrot.slane %v6543_v14, 3  ;;  %v5944_v4 = vor.u32 %v5942_v37, %v5940_v25  ;;  %v8631_v60 = vld [vmem:[#allocation3 + $0x44] sm:$0xf]  ;;  %v8884_v14 = vld [vmem:[#allocation3 + $0x14] sm:$0xff] }
 0x5d9   : > { %5806 = vst.msk [vmem:[#allocation3 + $0x48] sm:$0xf] %vm5787_vm5, %v5785_v59  ;;  %v7040_v25 = vshll.u32 %v12103_v47, 16  ;;  %v7053_v33 = vshll.u32 %v12197_v10, 16  ;;  %v7049_v37 = vshrl.u32 %v12138_v36, 16  ;;  %v8885_v36 = vld [vmem:[#allocation3 + $0x1c] sm:$0xff] }
 0x5da   : > { %v12496_v62 = vor.u32 %v6545_v11, %v6542_v38 }
 0x5db   : > { %v7042_v61 = vrot.slane %v7040_v25, 1 }
 0x5dc   : > { %v12501_v2 = vsel %vm6476_vm10, %v12426_v3, %v12496_v62 }
 0x5dd   : > { %8529 = vmatmul.msk.bf16.vlgmr.msrb.gmra.mxu1 %vm5969_vm6, %v12093_v12 }
 0x5de   : > { %v6095_v28 = vpop.f32.mrf.mxu1 }
 0x5e0   : > { %v8900_v26 = vld [vmem:[#allocation3 + $0x44] sm:$0x10] }
 0x5e1   : > { %8416 = vmatmul.msk.bf16.gmra.mxu2 %vm5969_vm6, %v6159_v21  ;;  %v12507_v54 = vor.u32 %v8900_v26, %v8631_v60  ;;  %v7051_v26 = vor.u32 %v7049_v37, %v7047_v29 }
 0x5e3   : > { %8360 = vmatmul.msk.bf16.gmra.mxu0 %vm5969_vm6, %v5944_v4  ;;  %v7237_v17 = vrot.slane %v12507_v54, 1  ;;  %v7055_v4 = vrot.slane %v7053_v33, 1  ;;  %v8886_v33 = vld [vmem:[#allocation3 + $0x24] sm:$0xff] }
 0x5e5   : > { %v12514_v3 = vsel %vm6145_vm7, %v7235_v6, %v7237_v17  ;;  %v8907_v6 = vld [vmem:[%s12769_s7 + $0x110] sm:$0xff] }
 0x5e6   : > { %v6098_v12 = vpop.f32.mrf.mxu1  ;;  %7292 = vmatpush.bf16.msrb.mxu0 %v8907_v6 }
 0x5e8   : > { %8472 = vmatmul.msk.bf16.gmra.mxu3 %vm5969_vm6, %v6350_v50 }
 0x5eb   : > { %v6003_v5 = vpop.f32.mrf.mxu0 }
 0x5ec   : > { %v6094_v21 = vadd.f32 %v6093_v58, %v6003_v5  ;;  %v7056_v5 = vsel %vm5881_vm8, %v7051_v26, %v7055_v4 }
 0x5ed   : > { %8530 = vmatmul.msk.bf16.gmra.mxu1 %vm5969_vm6, %v12158_v63  ;;  %v7038_v63 = vshrl.u32 %v12103_v47, 16 }
 0x5ee   : > { %v6100_v48 = vpop.f32.mrf.mxu1 }
 0x5ef   : > { %v6218_v44 = vpop.f32.mrf.mxu2  ;;  %v7043_v9 = vor.u32 %v7042_v61, %v7038_v63 }
 0x5f0   : > { %v6257_v22 = vadd.f32 %v6218_v44, %v6094_v21 }
 0x5f1   : > { %8589 = vmatmul.msk.bf16.vlgmr.msrb.gmra.mxu2 %vm5969_vm6, %v8883_v15  ;;  %v7048_v16 = vsel %vm5881_vm8, %v7043_v9, %v7047_v29 }
 0x5f3   : > { %8497 = vmatmul.msk.bf16.vlgmr.msra.gmra.mxu0 %vm5969_vm6, %v12112_v8  ;;  %v6005_v18 = vpop.f32.mrf.mxu0 }
 0x5f4   : > { %v6096_v39 = vadd.f32 %v6095_v28, %v6005_v18  ;;  %v8906_v18 = vld [vmem:[%s12769_s7 + $0x108] sm:$0xff] }
 0x5f5   : > { %7293 = vmatpush.bf16.msrb.mxu0 %v8906_v18 }
 0x5f6   : > { %v6103_v30 = vpop.f32.mrf.mxu1 }
 0x5f7   : > { %v6220_v50 = vpop.f32.mrf.mxu2  ;;  %v6409_v7 = vpop.f32.mrf.mxu3 }
 0x5f8   : > { %8649 = vmatmul.msk.bf16.vlgmr.msrb.gmra.mxu3 %vm5969_vm6, %v7048_v16  ;;  %v6258_v58 = vadd.f32 %v6220_v50, %v6096_v39  ;;  %v12530_v8 = vadd.f32 %v6409_v7, %v6257_v22 }
 0x5fb   : > { %v6008_v34 = vpop.f32.mrf.mxu0 }
 0x5fc   : > { %v6099_v47 = vadd.f32 %v6098_v12, %v6008_v34 }
 0x5fd   : > { %8531 = vmatmul.msk.bf16.gmra.mxu1 %vm5969_vm6, %v12217_v1 }
 0x5fe   : > { %v6105_v59 = vpop.f32.mrf.mxu1 }
 0x5ff   : > { %v6223_v38 = vpop.f32.mrf.mxu2  ;;  %v6411_v11 = vpop.f32.mrf.mxu3 }
 0x600   : > { %v6259_v20 = vadd.f32 %v6223_v38, %v6099_v47  ;;  %v12536_v28 = vadd.f32 %v6411_v11, %v6258_v58 }
 0x601   : > { %8590 = vmatmul.msk.bf16.gmra.mxu2 %vm5969_vm6, %v8884_v14 }
 0x603   : > { %8498 = vmatmul.msk.bf16.gmra.mxu0 %vm5969_vm6, %v12177_v45  ;;  %v6010_v60 = vpop.f32.mrf.mxu0 }
 0x604   : > { %v6101_v1 = vadd.f32 %v6100_v48, %v6010_v60  ;;  %v7061_v48 = vshll.u32 %v12253_v42, 16  ;;  %v7065_v60 = vshrl.u32 %v12253_v42, 16  ;;  %v8887_v42 = vld [vmem:[#allocation3 + $0x2c] sm:$0xff] }
 0x606   : > { %v6108_v12 = vpop.f32.mrf.mxu1  ;;  %v7063_v39 = vrot.slane %v7061_v48, 1 }
 0x607   : > { %v6225_v21 = vpop.f32.mrf.mxu2  ;;  %v6414_v25 = vpop.f32.mrf.mxu3 }
 0x608   : > { %8650 = vmatmul.msk.bf16.gmra.mxu3 %vm5969_vm6, %v7056_v5  ;;  %v6260_v15 = vadd.f32 %v6225_v21, %v6101_v1  ;;  %v12543_v0 = vadd.f32 %v6414_v25, %v6259_v20 }
 0x60b   : > { %v6013_v44 = vpop.f32.mrf.mxu0 }
 0x60c   : > { %v6104_v45 = vadd.f32 %v6103_v30, %v6013_v44 }
 0x60d   : > { %8532 = vmatmul.msk.bf16.gmra.mxu1 %vm5969_vm6, %v12272_v27  ;;  %v7057_v27 = vshrl.u32 %v12197_v10, 16 }
 0x60e   : > { %v6110_v22 = vpop.f32.mrf.mxu1 }
 0x60f   : > { %v6228_v61 = vpop.f32.mrf.mxu2  ;;  %v6416_v6 = vpop.f32.mrf.mxu3  ;;  %v7059_v16 = vor.u32 %v7057_v27, %v7055_v4  ;;  %v8905_v27 = vld [vmem:[%s12769_s7 + $0x100] sm:$0xff] }
 0x610   : > { %v6261_v63 = vadd.f32 %v6228_v61, %v6104_v45  ;;  %v12549_v29 = vadd.f32 %v6416_v6, %v6260_v15  ;;  %7294 = vmatpush.bf16.msrb.mxu0 %v8905_v27 }
 0x611   : > { %8591 = vmatmul.msk.bf16.gmra.mxu2 %vm5969_vm6, %v8885_v36  ;;  %v7064_v7 = vsel %vm5881_vm8, %v7059_v16, %v7063_v39 }
 0x613   : > { %8499 = vmatmul.msk.bf16.gmra.mxu0 %vm5969_vm6, %v12236_v31  ;;  %v6015_v9 = vpop.f32.mrf.mxu0 }
 0x614   : > { %v6106_v30 = vadd.f32 %v6105_v59, %v6015_v9  ;;  %v7069_v59 = vshll.u32 %v12312_v19, 16 }
 0x616   : > { %v6113_v50 = vpop.f32.mrf.mxu1  ;;  %v7071_v1 = vrot.slane %v7069_v59, 1 }
 0x617   : > { %v6230_v58 = vpop.f32.mrf.mxu2  ;;  %v6419_v34 = vpop.f32.mrf.mxu3 }
 0x618   : > { %8651 = vmatmul.msk.bf16.gmra.mxu3 %vm5969_vm6, %v7064_v7  ;;  %v6262_v47 = vadd.f32 %v6230_v58, %v6106_v30  ;;  %v12559_v31 = vadd.f32 %v6419_v34, %v6261_v63 }
 0x61b   : > { %v6018_v14 = vpop.f32.mrf.mxu0 }
 0x61c   : > { %v6109_v10 = vadd.f32 %v6108_v12, %v6018_v14  ;;  %v7067_v12 = vor.u32 %v7065_v60, %v7063_v39  ;;  %v7081_v60 = vshrl.u32 %v12387_v46, 16 }
 0x61d   : > { %8533 = vmatmul.msk.bf16.gmra.mxu1 %vm5969_vm6, %v12335_v49 }
 0x61e   : > { %v6115_v38 = vpop.f32.mrf.mxu1  ;;  %v7072_v21 = vsel %vm5881_vm8, %v7067_v12, %v7071_v1 }
 0x61f   : > { %v6233_v11 = vpop.f32.mrf.mxu2  ;;  %v6421_v20 = vpop.f32.mrf.mxu3 }
 0x620   : > { %v6263_v37 = vadd.f32 %v6233_v11, %v6109_v10  ;;  %v12565_v4 = vadd.f32 %v6421_v20, %v6262_v47  ;;  %v8888_v10 = vld [vmem:[#allocation3 + $0x34] sm:$0xff] }
 0x621   : > { %8592 = vmatmul.msk.bf16.gmra.mxu2 %vm5969_vm6, %v8886_v33  ;;  %v7085_v33 = vshll.u32 %v12458_v24, 16 }
 0x623   : > { %8500 = vmatmul.msk.bf16.gmra.mxu0 %vm5969_vm6, %v12291_v51  ;;  %v6020_v26 = vpop.f32.mrf.mxu0 }
 0x624   : > { %v6111_v49 = vadd.f32 %v6110_v22, %v6020_v26  ;;  %v7077_v22 = vshll.u32 %v12387_v46, 16 }
 0x626   : > { %v6118_v5 = vpop.f32.mrf.mxu1  ;;  %v7079_v39 = vrot.slane %v7077_v22, 1 }
 0x627   : > { %v6235_v25 = vpop.f32.mrf.mxu2  ;;  %v6424_v15 = vpop.f32.mrf.mxu3 }
 0x628   : > { %8652 = vmatmul.msk.bf16.gmra.mxu3 %vm5969_vm6, %v7072_v21  ;;  %v6264_v44 = vadd.f32 %v6235_v25, %v6111_v49  ;;  %v12572_v45 = vadd.f32 %v6424_v15, %v6263_v37  ;;  %v7083_v49 = vor.u32 %v7081_v60, %v7079_v39 }
 0x62b   : > { %v6023_v36 = vpop.f32.mrf.mxu0 }
 0x62c   : > { %v6114_v51 = vadd.f32 %v6113_v50, %v6023_v36  ;;  %v7093_v36 = vshll.u32 %v12507_v54, 16 }
 0x62d   : > { %8534 = vmatmul.msk.bf16.gmra.mxu1 %vm5969_vm6, %v12415_v53  ;;  %v7073_v53 = vshrl.u32 %v12312_v19, 16 }
 0x62e   : > { %v6120_v48 = vpop.f32.mrf.mxu1  ;;  %v7095_v13 = vrot.slane %v7093_v36, 1 }
 0x62f   : > { %v6238_v61 = vpop.f32.mrf.mxu2  ;;  %v6426_v6 = vpop.f32.mrf.mxu3  ;;  %v7075_v16 = vor.u32 %v7073_v53, %v7071_v1  ;;  %v7087_v1 = vrot.slane %v7085_v33, 1 }
 0x630   : > { %v6265_v63 = vadd.f32 %v6238_v61, %v6114_v51  ;;  %v12578_v18 = vadd.f32 %v6426_v6, %v6264_v44  ;;  %v7089_v6 = vshrl.u32 %v12458_v24, 16 }
 0x631   : > { %8593 = vmatmul.msk.bf16.gmra.mxu2 %vm5969_vm6, %v8887_v42  ;;  %v7080_v7 = vsel %vm5881_vm8, %v7075_v16, %v7079_v39  ;;  %v7088_v12 = vsel %vm5881_vm8, %v7083_v49, %v7087_v1  ;;  %v6813_v39 = vld [vmem:[#allocation3 + $0x44] sm:$0xf] }
 0x632   : > { %v6852_v16 = vunpack.c.l.b16 %v6813_v39 }
 0x633   : > { %8501 = vmatmul.msk.bf16.gmra.mxu0 %vm5969_vm6, %v12362_v41  ;;  %v6025_v9 = vpop.f32.mrf.mxu0 }
 0x634   : > { %v6116_v30 = vadd.f32 %v6115_v38, %v6025_v9 }
 0x636   : > { %v6123_v50 = vpop.f32.mrf.mxu1 }
 0x637   : > { %v6240_v58 = vpop.f32.mrf.mxu2  ;;  %v6429_v34 = vpop.f32.mrf.mxu3 }
 0x638   : > { %8653 = vmatmul.msk.bf16.gmra.mxu3 %vm5969_vm6, %v7080_v7  ;;  %v6266_v47 = vadd.f32 %v6240_v58, %v6116_v30  ;;  %v12588_v41 = vadd.f32 %v6429_v34, %v6265_v63 }
 0x63b   : > { %v6028_v14 = vpop.f32.mrf.mxu0 }
 0x63c   : > { %v6119_v19 = vadd.f32 %v6118_v5, %v6028_v14 }
 0x63d   : > { %8535 = vmatmul.msk.bf16.gmra.mxu1 %vm5969_vm6, %v12493_v52 }
 0x63e   : > { %v6125_v37 = vpop.f32.mrf.mxu1 }
 0x63f   : > { %v6243_v38 = vpop.f32.mrf.mxu2  ;;  %v6431_v59 = vpop.f32.mrf.mxu3 }
 0x640   : > { %v6267_v11 = vadd.f32 %v6243_v38, %v6119_v19  ;;  %v12594_v20 = vadd.f32 %v6431_v59, %v6266_v47  ;;  %v7097_v59 = vshrl.u32 %v12507_v54, 16 }
 0x641   : > { %8594 = vmatmul.msk.bf16.gmra.mxu2 %vm5969_vm6, %v8888_v10 }
 0x643   : > { %8502 = vmatmul.msk.bf16.gmra.mxu0 %vm5969_vm6, %v12439_v56  ;;  %v6030_v26 = vpop.f32.mrf.mxu0  ;;  %v8889_v56 = vld [vmem:[#allocation3 + $0x3c] sm:$0xff] }
 0x644   : > { %v6121_v52 = vadd.f32 %v6120_v48, %v6030_v26 }
 0x647   : > { %v6245_v5 = vpop.f32.mrf.mxu2  ;;  %v6434_v21 = vpop.f32.mrf.mxu3 }
 0x648   : > { %8654 = vmatmul.msk.bf16.gmra.mxu3 %vm5969_vm6, %v7088_v12  ;;  %v6268_v25 = vadd.f32 %v6245_v5, %v6121_v52  ;;  %v12601_v15 = vadd.f32 %v6434_v21, %v6267_v11  ;;  %v7099_v11 = vor.u32 %v7097_v59, %v7095_v13 }
 0x64a   : > { %v6128_v44 = vpop.f32.mrf.mxu1 }
 0x64d   : > { %8536 = vmatmul.msk.bf16.gmra.mxu1 %vm5969_vm6, %v6686_v35  ;;  %v7091_v35 = vor.u32 %v7089_v6, %v7087_v1 }
 0x64f   : > { %v6436_v42 = vpop.f32.mrf.mxu3  ;;  %v7096_v53 = vsel %vm5881_vm8, %v7091_v35, %v7095_v13 }
 0x650   : > { %v6033_v46 = vpop.f32.mrf.mxu0  ;;  %v12608_v48 = vadd.f32 %v6436_v42, %v6268_v25 }
 0x651   : > { %v6124_v51 = vadd.f32 %v6123_v50, %v6033_v46  ;;  %8595 = vmatmul.msk.bf16.gmra.mxu2 %vm5969_vm6, %v8889_v56 }
 0x652   : > { %v6130_v22 = vpop.f32.mrf.mxu1 }
 0x653   : > { %8503 = vmatmul.msk.bf16.gmra.mxu0 %vm5969_vm6, %v12501_v2  ;;  %v6860_v2 = vpack.c.b16 %v6852_v16, %v6852_v16 }
 0x654   : > { %v6248_v61 = vpop.f32.mrf.mxu2 }
 0x655   : > { %v6269_v63 = vadd.f32 %v6248_v61, %v6124_v51 }
 0x658   : > { %v6035_v27 = vpop.f32.mrf.mxu0  ;;  %8655 = vmatmul.msk.bf16.gmra.mxu3 %vm5969_vm6, %v7096_v53 }
 0x659   : > { %v6126_v9 = vadd.f32 %v6125_v37, %v6035_v27 }
 0x65a   : > { %v6745_v30 = vpop.f32.mrf.mxu1 }
 0x65b   : > { %v6439_v7 = vpop.f32.mrf.mxu3 }
 0x65c   : > { %v6250_v50 = vpop.f32.mrf.mxu2  ;;  %v12615_v34 = vadd.f32 %v6439_v7, %v6269_v63 }
 0x65d   : > { %v6270_v58 = vadd.f32 %v6250_v50, %v6126_v9 }
 0x660   : > { %v6038_v47 = vpop.f32.mrf.mxu0 }
 0x661   : > { %v6129_v24 = vadd.f32 %v6128_v44, %v6038_v47  ;;  %8596 = vmatmul.msk.bf16.gmra.mxu2 %vm5969_vm6, %v6860_v2 }
 0x662   : > { %v6747_v14 = vpop.f32.mrf.mxu1 }
 0x663   : > { %8504 = vmatmul.msk.bf16.gmra.mxu0 %vm5969_vm6, %v12496_v62  ;;  %v6441_v10 = vpop.f32.mrf.mxu3 }
 0x664   : > { %v6253_v19 = vpop.f32.mrf.mxu2  ;;  %v12620_v38 = vadd.f32 %v6441_v10, %v6270_v58 }
 0x665   : > { %v6271_v33 = vadd.f32 %v6253_v19, %v6129_v24 }
 0x668   : > { %v6040_v37 = vpop.f32.mrf.mxu0  ;;  %8656 = vmatmul.msk.bf16.gmra.mxu3 %vm5969_vm6, %v7099_v11 }
 0x66a   : > { %v6750_v60 = vpop.f32.mrf.mxu1 }
 0x66b   : > { %v6444_v26 = vpop.f32.mrf.mxu3 }
 0x66c   : > { %v6255_v1 = vpop.f32.mrf.mxu2  ;;  %v12624_v52 = vadd.f32 %v6444_v26, %v6271_v33 }
 0x670   : > { %v6605_v49 = vpop.f32.mrf.mxu0 }
 0x671   : > { %v6644_v12 = vadd.f32 %v6605_v49, %v12530_v8 }
 0x672   : > { %v6752_v62 = vpop.f32.mrf.mxu1 }
 0x673   : > { %8681 = vmatmul.msk.bf16.vlgmr.msrb.gmra.mxu0 %vm5969_vm6, %v12164_v57  ;;  %v6784_v5 = vadd.f32 %v6745_v30, %v6644_v12  ;;  %v6446_v21 = vpop.f32.mrf.mxu3 }
 0x674   : > { %v6918_v25 = vpop.f32.mrf.mxu2 }
 0x675   : > { %v6957_v44 = vadd.f32 %v6918_v25, %v6784_v5 }
 0x678   : > { %v6607_v56 = vpop.f32.mrf.mxu0 }
 0x679   : > { %v6645_v46 = vadd.f32 %v6607_v56, %v12536_v28 }
 0x67a   : > { %v6755_v36 = vpop.f32.mrf.mxu1 }
 0x67b   : > { %v6785_v51 = vadd.f32 %v6747_v14, %v6645_v46  ;;  %v7157_v22 = vpop.f32.mrf.mxu3 }
 0x67c   : > { %v6920_v42 = vpop.f32.mrf.mxu2  ;;  %v12630_v6 = vadd.f32 %v7157_v22, %v6957_v44 }
 0x67d   : > { %v6958_v61 = vadd.f32 %v6920_v42, %v6785_v51 }
 0x680   : > { %v6610_v13 = vpop.f32.mrf.mxu0 }
 0x681   : > { %v6646_v8 = vadd.f32 %v6610_v13, %v12543_v0 }
 0x682   : > { %v6757_v63 = vpop.f32.mrf.mxu1 }
 0x683   : > { %8682 = vmatmul.msk.bf16.gmra.mxu0 %vm5969_vm6, %v12225_v55  ;;  %v6786_v57 = vadd.f32 %v6750_v60, %v6646_v8  ;;  %v7159_v27 = vpop.f32.mrf.mxu3 }
 0x684   : > { %v6923_v35 = vpop.f32.mrf.mxu2  ;;  %v12635_v39 = vadd.f32 %v7159_v27, %v6958_v61 }
 0x685   : > { %v6959_v53 = vadd.f32 %v6923_v35, %v6786_v57 }
 0x688   : > { %v6612_v28 = vpop.f32.mrf.mxu0 }
 0x689   : > { %v6647_v9 = vadd.f32 %v6612_v28, %v12549_v29 }
 0x68a   : > { %v6760_v30 = vpop.f32.mrf.mxu1 }
 0x68b   : > { %v6787_v16 = vadd.f32 %v6752_v62, %v6647_v9  ;;  %v7162_v7 = vpop.f32.mrf.mxu3 }
 0x68c   : > { %v6925_v50 = vpop.f32.mrf.mxu2  ;;  %v12638_v2 = vadd.f32 %v7162_v7, %v6959_v53 }
 0x68d   : > { %v6960_v58 = vadd.f32 %v6925_v50, %v6787_v16 }
 0x690   : > { %v6615_v0 = vpop.f32.mrf.mxu0 }
 0x691   : > { %v6648_v47 = vadd.f32 %v6615_v0, %v12559_v31 }
 0x692   : > { %v6762_v55 = vpop.f32.mrf.mxu1 }
 0x693   : > { %8683 = vmatmul.msk.bf16.gmra.mxu0 %vm5969_vm6, %v12280_v32  ;;  %v6788_v24 = vadd.f32 %v6755_v36, %v6648_v47  ;;  %v7164_v19 = vpop.f32.mrf.mxu3 }
 0x694   : > { %v6928_v14 = vpop.f32.mrf.mxu2  ;;  %v12643_v33 = vadd.f32 %v7164_v19, %v6960_v58 }
 0x695   : > { %v6961_v10 = vadd.f32 %v6928_v14, %v6788_v24 }
 0x698   : > { %v6617_v29 = vpop.f32.mrf.mxu0 }
 0x699   : > { %v6649_v59 = vadd.f32 %v6617_v29, %v12565_v4 }
 0x69a   : > { %v6765_v11 = vpop.f32.mrf.mxu1 }
 0x69b   : > { %v6789_v37 = vadd.f32 %v6757_v63, %v6649_v59  ;;  %v7167_v1 = vpop.f32.mrf.mxu3 }
 0x69c   : > { %v6930_v60 = vpop.f32.mrf.mxu2  ;;  %v12646_v49 = vadd.f32 %v7167_v1, %v6961_v10 }
 0x69d   : > { %v6962_v26 = vadd.f32 %v6930_v60, %v6789_v37 }
 0x6a0   : > { %v6620_v31 = vpop.f32.mrf.mxu0 }
 0x6a1   : > { %v6650_v12 = vadd.f32 %v6620_v31, %v12572_v45 }
 0x6a2   : > { %v6767_v32 = vpop.f32.mrf.mxu1 }
 0x6a3   : > { %8684 = vmatmul.msk.bf16.gmra.mxu0 %vm5969_vm6, %v12343_v40  ;;  %v6790_v62 = vadd.f32 %v6760_v30, %v6650_v12  ;;  %v7169_v21 = vpop.f32.mrf.mxu3 }
 0x6a4   : > { %v6933_v5 = vpop.f32.mrf.mxu2  ;;  %v12651_v44 = vadd.f32 %v7169_v21, %v6962_v26 }
 0x6a5   : > { %v6963_v25 = vadd.f32 %v6933_v5, %v6790_v62 }
 0x6a8   : > { %v6622_v4 = vpop.f32.mrf.mxu0 }
 0x6a9   : > { %v6651_v56 = vadd.f32 %v6622_v4, %v12578_v18 }
 0x6aa   : > { %v6770_v46 = vpop.f32.mrf.mxu1 }
 0x6ab   : > { %v6791_v36 = vadd.f32 %v6762_v55, %v6651_v56  ;;  %v7172_v42 = vpop.f32.mrf.mxu3 }
 0x6ac   : > { %v6935_v51 = vpop.f32.mrf.mxu2  ;;  %v12654_v61 = vadd.f32 %v7172_v42, %v6963_v25 }
 0x6ad   : > { %v6964_v22 = vadd.f32 %v6935_v51, %v6791_v36 }
 0x6b0   : > { %v6625_v45 = vpop.f32.mrf.mxu0 }
 0x6b1   : > { %v6652_v13 = vadd.f32 %v6625_v45, %v12588_v41 }
 0x6b2   : > { %v6772_v40 = vpop.f32.mrf.mxu1 }
 0x6b3   : > { %8685 = vmatmul.msk.bf16.gmra.mxu0 %vm5969_vm6, %v12423_v23  ;;  %v6792_v8 = vadd.f32 %v6765_v11, %v6652_v13  ;;  %v7174_v57 = vpop.f32.mrf.mxu3 }
 0x6b4   : > { %v6938_v63 = vpop.f32.mrf.mxu2  ;;  %v12659_v27 = vadd.f32 %v7174_v57, %v6964_v22 }
 0x6b5   : > { %v6965_v35 = vadd.f32 %v6938_v63, %v6792_v8  ;;  %v12691_v63 = vld [vmem:[%s12770_s8] ss:$0 sm:$0xff] }
 0x6b8   : > { %v6627_v18 = vpop.f32.mrf.mxu0 }
 0x6b9   : > { %v6653_v53 = vadd.f32 %v6627_v18, %v12594_v20 }
 0x6ba   : > { %v6775_v28 = vpop.f32.mrf.mxu1 }
 0x6bb   : > { %v6793_v9 = vadd.f32 %v6767_v32, %v6653_v53  ;;  %v7177_v16 = vpop.f32.mrf.mxu3 }
 0x6bc   : > { %v6940_v30 = vpop.f32.mrf.mxu2  ;;  %v12662_v7 = vadd.f32 %v7177_v16, %v6965_v35 }
 0x6bd   : > { %v6966_v50 = vadd.f32 %v6940_v30, %v6793_v9 }
 0x6c0   : > { %v6630_v41 = vpop.f32.mrf.mxu0 }
 0x6c1   : > { %v6654_v58 = vadd.f32 %v6630_v41, %v12601_v15 }
 0x6c2   : > { %v6777_v23 = vpop.f32.mrf.mxu1 }
 0x6c3   : > { %8686 = vmatmul.msk.bf16.gmra.mxu0 %vm5969_vm6, %v12476_v43  ;;  %v6794_v0 = vadd.f32 %v6770_v46, %v6654_v58  ;;  %v7179_v55 = vpop.f32.mrf.mxu3 }
 0x6c4   : > { %v6943_v47 = vpop.f32.mrf.mxu2  ;;  %v12667_v14 = vadd.f32 %v7179_v55, %v6966_v50 }
 0x6c5   : > { %v6967_v24 = vadd.f32 %v6943_v47, %v6794_v0 }
 0x6c8   : > { %v6632_v20 = vpop.f32.mrf.mxu0 }
 0x6c9   : > { %v6655_v19 = vadd.f32 %v6632_v20, %v12608_v48 }
 0x6ca   : > { %v6780_v10 = vpop.f32.mrf.mxu1 }
 0x6cb   : > { %v6795_v29 = vadd.f32 %v6772_v40, %v6655_v19  ;;  %v7182_v11 = vpop.f32.mrf.mxu3 }
 0x6cc   : > { %v6945_v59 = vpop.f32.mrf.mxu2  ;;  %v12670_v60 = vadd.f32 %v7182_v11, %v6967_v24 }
 0x6cd   : > { %v6968_v37 = vadd.f32 %v6945_v59, %v6795_v29 }
 0x6d0   : > { %v6635_v15 = vpop.f32.mrf.mxu0 }
 0x6d1   : > { %v6656_v1 = vadd.f32 %v6635_v15, %v12615_v34 }
 0x6d2   : > { %v6782_v43 = vpop.f32.mrf.mxu1 }
 0x6d3   : > { %8687 = vmatmul.msk.bf16.gmra.mxu0 %vm5969_vm6, %v12514_v3  ;;  %v6796_v26 = vadd.f32 %v6775_v28, %v6656_v1  ;;  %v7184_v12 = vpop.f32.mrf.mxu3 }
 0x6d4   : > { %v6948_v31 = vpop.f32.mrf.mxu2  ;;  %v12675_v62 = vadd.f32 %v7184_v12, %v6968_v37 }
 0x6d5   : > { %v6969_v32 = vadd.f32 %v6948_v31, %v6796_v26 }
 0x6d8   : > { %v6637_v48 = vpop.f32.mrf.mxu0 }
 0x6d9   : > { %v6657_v5 = vadd.f32 %v6637_v48, %v12620_v38 }
 0x6db   : > { %v6797_v21 = vadd.f32 %v6777_v23, %v6657_v5  ;;  %v7187_v4 = vpop.f32.mrf.mxu3 }
 0x6dc   : > { %v6950_v25 = vpop.f32.mrf.mxu2  ;;  %v12678_v46 = vadd.f32 %v7187_v4, %v6969_v32 }
 0x6dd   : > { %v6970_v56 = vadd.f32 %v6950_v25, %v6797_v21 }
 0x6e0   : > { %v6640_v34 = vpop.f32.mrf.mxu0 }
 0x6e1   : > { %v6658_v36 = vadd.f32 %v6640_v34, %v12624_v52 }
 0x6e3   : > { %8688 = vmatmul.msk.bf16.gmra.mxu0 %vm5969_vm6, %v7237_v17  ;;  %v6798_v3 = vadd.f32 %v6780_v10, %v6658_v36  ;;  %v7189_v42 = vpop.f32.mrf.mxu3 }
 0x6e4   : > { %v6953_v51 = vpop.f32.mrf.mxu2  ;;  %v12684_v45 = vadd.f32 %v7189_v42, %v6970_v56 }
 0x6e5   : > { %v6971_v22 = vadd.f32 %v6953_v51, %v6798_v3 }
 0x6e8   : > { %v6642_v38 = vpop.f32.mrf.mxu0 }
 0x6eb   : > { %v7192_v40 = vpop.f32.mrf.mxu3 }
 0x6ec   : > { %v6955_v13 = vpop.f32.mrf.mxu2  ;;  %v12686_v8 = vadd.f32 %v7192_v40, %v6971_v22 }
 0x6f0   : > { %v7296_v54 = vpop.f32.mrf.mxu0 }
 0x6f1   : > { %v7335_v17 = vadd.f32 %v7296_v54, %v12630_v6 }
 0x6f3   : > { %v7354_v52 = vadd.f32 %v12691_v63, %v7335_v17  ;;  %v7194_v57 = vpop.f32.mrf.mxu3 }
 0x6f5   : > { %v7369_v35 = vmax.f32 %v7354_v52, 0.0 }
 0x6f7   : > { %7384 = vst.msk [vmem:[%s12699_s13] sm:$0xff] %vm5969_vm6, %v7369_v35 }
 0x6f8   : > { %v7298_v18 = vpop.f32.mrf.mxu0 }
 0x6f9   : > { %v7336_v53 = vadd.f32 %v7298_v18, %v12635_v39 }
 0x6fb   : > { %v7355_v6 = vadd.f32 %v12691_v63, %v7336_v53 }
 0x6fd   : > { %v7370_v28 = vmax.f32 %v7355_v6, 0.0 }
 0x6ff   : > { %7385 = vst.msk [vmem:[%s12699_s13 + $0x8] sm:$0xff] %vm5969_vm6, %v7370_v28 }
 0x700   : > { %v7301_v9 = vpop.f32.mrf.mxu0 }
 0x701   : > { %v7337_v30 = vadd.f32 %v7301_v9, %v12638_v2 }
 0x703   : > { %v7356_v16 = vadd.f32 %v12691_v63, %v7337_v30 }
 0x705   : > { %v7371_v50 = vmax.f32 %v7356_v16, 0.0 }
 0x707   : > { %7386 = vst.msk [vmem:[%s12699_s13 + $0x10] sm:$0xff] %vm5969_vm6, %v7371_v50 }
 0x708   : > { %v7303_v41 = vpop.f32.mrf.mxu0 }
 0x709   : > { %v7338_v58 = vadd.f32 %v7303_v41, %v12643_v33 }
 0x70b   : > { %v7357_v39 = vadd.f32 %v12691_v63, %v7338_v58 }
 0x70d   : > { %v7372_v23 = vmax.f32 %v7357_v39, 0.0 }
 0x70f   : > { %7387 = vst.msk [vmem:[%s12699_s13 + $0x18] sm:$0xff] %vm5969_vm6, %v7372_v23 }
 0x710   : > { %v7306_v0 = vpop.f32.mrf.mxu0 }
 0x711   : > { %v7339_v47 = vadd.f32 %v7306_v0, %v12646_v49 }
 0x713   : > { %v7358_v2 = vadd.f32 %v12691_v63, %v7339_v47 }
 0x715   : > { %v7373_v55 = vmax.f32 %v7358_v2, 0.0 }
 0x717   : > { %7388 = vst.msk [vmem:[%s12699_s13 + $0x20] sm:$0xff] %vm5969_vm6, %v7373_v55 }
 0x718   : > { %v7308_v24 = vpop.f32.mrf.mxu0 }
 0x719   : > { %v7340_v20 = vadd.f32 %v7308_v24, %v12651_v44 }
 0x71b   : > { %v7359_v33 = vadd.f32 %v12691_v63, %v7340_v20 }
 0x71d   : > { %v7374_v19 = vmax.f32 %v7359_v33, 0.0 }
 0x71f   : > { %7389 = vst.msk [vmem:[%s12699_s13 + $0x28] sm:$0xff] %vm5969_vm6, %v7374_v19 }
 0x720   : > { %v7311_v10 = vpop.f32.mrf.mxu0 }
 0x721   : > { %v7341_v29 = vadd.f32 %v7311_v10, %v12654_v61 }
 0x723   : > { %v7360_v49 = vadd.f32 %v12691_v63, %v7341_v29 }
 0x725   : > { %v7375_v59 = vmax.f32 %v7360_v49, 0.0 }
 0x727   : > { %7390 = vst.msk [vmem:[%s12699_s13 + $0x30] sm:$0xff] %vm5969_vm6, %v7375_v59 }
 0x728   : > { %v7313_v11 = vpop.f32.mrf.mxu0 }
 0x729   : > { %v7342_v37 = vadd.f32 %v7313_v11, %v12659_v27 }
 0x72b   : > { %v7361_v44 = vadd.f32 %v12691_v63, %v7342_v37 }
 0x72d   : > { %v7376_v15 = vmax.f32 %v7361_v44, 0.0 }
 0x72f   : > { %7391 = vst.msk [vmem:[%s12699_s13 + $0x38] sm:$0xff] %vm5969_vm6, %v7376_v15 }
 0x730   : > { %v7316_v1 = vpop.f32.mrf.mxu0 }
 0x731   : > { %v7343_v43 = vadd.f32 %v7316_v1, %v12662_v7 }
 0x733   : > { %v7362_v61 = vadd.f32 %v12691_v63, %v7343_v43 }
 0x735   : > { %v7377_v26 = vmax.f32 %v7362_v61, 0.0 }
 0x737   : > { %7392 = vst.msk [vmem:[%s12699_s13 + $0x40] sm:$0xff] %vm5969_vm6, %v7377_v26 }
 0x738   : > { %v7318_v31 = vpop.f32.mrf.mxu0 }
 0x739   : > { %v7344_v12 = vadd.f32 %v7318_v31, %v12667_v14 }
 0x73b   : > { %v7363_v27 = vadd.f32 %v12691_v63, %v7344_v12 }
 0x73d   : > { %v7378_v32 = vmax.f32 %v7363_v27, 0.0 }
 0x73f   : > { %7393 = vst.msk [vmem:[%s12699_s13 + $0x48] sm:$0xff] %vm5969_vm6, %v7378_v32 }
 0x740   : > { %v7321_v48 = vpop.f32.mrf.mxu0 }
 0x741   : > { %v7345_v5 = vadd.f32 %v7321_v48, %v12670_v60 }
 0x743   : > { %v7364_v7 = vadd.f32 %v12691_v63, %v7345_v5 }
 0x745   : > { %v7379_v21 = vmax.f32 %v7364_v7, 0.0 }
 0x747   : > { %7394 = vst.msk [vmem:[%s12699_s13 + $0x50] sm:$0xff] %vm5969_vm6, %v7379_v21 }
 0x748   : > { %v7323_v25 = vpop.f32.mrf.mxu0 }
 0x749   : > { %v7346_v4 = vadd.f32 %v7323_v25, %v12675_v62 }
 0x74b   : > { %v7365_v14 = vadd.f32 %v12691_v63, %v7346_v4 }
 0x74d   : > { %v7380_v56 = vmax.f32 %v7365_v14, 0.0 }
 0x74f   : > { %7395 = vst.msk [vmem:[%s12699_s13 + $0x58] sm:$0xff] %vm5969_vm6, %v7380_v56 }
 0x750   : > { %v7326_v34 = vpop.f32.mrf.mxu0 }
 0x751   : > { %v7347_v36 = vadd.f32 %v7326_v34, %v12678_v46 }
 0x753   : > { %v7366_v60 = vadd.f32 %v12691_v63, %v7347_v36 }
 0x755   : > { %v7381_v3 = vmax.f32 %v7366_v60, 0.0 }
 0x757   : > { %7396 = vst.msk [vmem:[%s12699_s13 + $0x60] sm:$0xff] %vm5969_vm6, %v7381_v3 }
 0x758   : > { %v7328_v51 = vpop.f32.mrf.mxu0 }
 0x759   : > { %v7348_v42 = vadd.f32 %v7328_v51, %v12684_v45 }
 0x75b   : > { %v7367_v22 = vadd.f32 %v12691_v63, %v7348_v42 }
 0x75d   : > { %v7382_v62 = vmax.f32 %v7367_v22, 0.0 }
 0x75f   : > { %7397 = vst.msk [vmem:[%s12699_s13 + $0x68] sm:$0xff] %vm5969_vm6, %v7382_v62 }
 0x760   : > { %v7331_v38 = vpop.f32.mrf.mxu0 }
 0x761   : > { %v7349_v13 = vadd.f32 %v7331_v38, %v12686_v8 }
 0x763   : > { %v7368_v40 = vadd.f32 %v12691_v63, %v7349_v13 }
 0x765   : > { %v7383_v54 = vmax.f32 %v7368_v40, 0.0 }
 0x767   : > { %7398 = vst.msk [vmem:[%s12699_s13 + $0x70] sm:$0xff] %vm5969_vm6, %v7383_v54 }
 0x768   : > { %v7333_v46 = vpop.f32.mrf.mxu0 }
 0x769 PF: > { %s19_s30 = sadd.s32 1, %s9437_s30  }
 0x76a   : > { %p16_p4 = scmp.ge.s32.totalorder %s19_s30, 4  }
 0x76c   :  { %18 = sbr.rel (!%p16_p4) target bundleno = 1 (0x1), region = 112 }

</bundles_post_ra>
